<compile_context>
chip_gen: v7x
topology: tpu7x:2x2x1
jax: 0.10.0
libtpu: 0.0.40
codegen_flags: <defaults>
</compile_context>

<pallas_src>
import functools

import jax
import jax.numpy as jnp
from jax.experimental import pallas as pl
from jax.experimental.pallas import tpu as pltpu


def _vmem_limit_bytes():
    # ~48 MiB on v7x (64 MiB physical), ~96 MiB on v5e/v6e (128 MiB physical).
    try:
        cap = int(pltpu.get_tpu_info().vmem_capacity_bytes)
    except Exception:
        cap = 64 * 1024 * 1024
    return (cap // 4) * 3


_VMEM_LIMIT = _vmem_limit_bytes()


# ----------------------------------------------------------------------------
# 3x3 conv kernel (also used for the fused upsample+conv+patchify up path)
# ----------------------------------------------------------------------------

def _conv3x3_kernel(xp_ref, w_ref, b_ref, o_ref, *, H, W, Cin):
    # xp_ref: (1, H+2, W+2, Cin) bf16, 1-pixel zero-padded input block.
    # w_ref:  (3, 3*Cin, Cout) bf16, slab dy with rows ordered (dx, ci).
    # b_ref:  (1, Cout) f32.
    # o_ref:  (1, H*W, Cout) f32.
    acc = None
    for dy in range(3):
        # Only a K = 3*Cin bf16 im2col slab is live per step (never 9*Cin f32).
        taps = jnp.concatenate(
            [xp_ref[0, dy:dy + H, dx:dx + W, :] for dx in range(3)], axis=-1)
        part = jnp.dot(taps.reshape(H * W, 3 * Cin), w_ref[dy],
                       preferred_element_type=jnp.float32)
        acc = part if acc is None else acc + part
    o_ref[0] = acc + b_ref[...]


def conv3x3(x, w, b):
    # x: (B, H, W, Cin) float; w: (3, 3*Cin, Co) bf16; b: (1, Co) f32.
    # Returns (B, H*W, Co) f32 rows (pixel order, or ps=2 token order when the
    # phase-expanded "up" weights are passed).
    B, H, W, Cin = x.shape
    Co = w.shape[-1]
    # bf16 cast fused with the zero pad: one half-width XLA pass; the MXU
    # operands arrive already in bf16 (no in-kernel cast copy).
    xp = jnp.pad(x.astype(jnp.bfloat16), ((0, 0), (1, 1), (1, 1), (0, 0)))
    kern = functools.partial(_conv3x3_kernel, H=H, W=W, Cin=Cin)
    return pl.pallas_call(
        kern,
        out_shape=jax.ShapeDtypeStruct((B, H * W, Co), jnp.float32),
        grid=(B,),
        in_specs=[
            pl.BlockSpec((1, H + 2, W + 2, Cin), lambda i: (i, 0, 0, 0)),
            pl.BlockSpec((3, 3 * Cin, Co), lambda i: (0, 0, 0)),
            pl.BlockSpec((1, Co), lambda i: (0, 0)),
        ],
        out_specs=pl.BlockSpec((1, H * W, Co), lambda i: (i, 0, 0)),
        compiler_params=pltpu.CompilerParams(
            dimension_semantics=("parallel",),
            vmem_limit_bytes=_VMEM_LIMIT),
    )(xp, w, b)


# ----------------------------------------------------------------------------
# Residual pre-LayerNorm attention kernel (optionally fused 2x2 maxpool / ReLU)
# ----------------------------------------------------------------------------

def _res_attn_kernel(x_ref, pos_ref, g_ref, bta_ref,
                     wqkv_ref, bqkv_ref, wo_ref, bo_ref,
                     o_ref, ctx_ref, *, num_heads, pool, relu):
    x = x_ref[0] + pos_ref[...]                       # (N, D) f32
    N, D = x.shape
    hd = D // num_heads

    # Pre-LayerNorm ("ResNorm"), biased variance, eps = 1e-5.
    mu = jnp.mean(x, axis=-1, keepdims=True)
    xc = x - mu
    var = jnp.mean(xc * xc, axis=-1, keepdims=True)
    xn = xc * jax.lax.rsqrt(var + 1e-5) * g_ref[...] + bta_ref[...]

    # Fused QKV projection; the 1/sqrt(hd) scale is pre-folded into the Q part
    # of wqkv/bqkv at param-build time (no (N,N) scale multiply below).
    qkv = jnp.dot(xn.astype(jnp.bfloat16), wqkv_ref[...],
                  preferred_element_type=jnp.float32) + bqkv_ref[...]

    # Per-head attention; each head's context is written straight into a VMEM
    # scratch slice (no ctx concatenate, score tensors die per iteration).
    for h in range(num_heads):
        lo, hi = h * hd, (h + 1) * hd
        q_h = qkv[:, lo:hi].astype(jnp.bfloat16)
        k_h = qkv[:, D + lo:D + hi].astype(jnp.bfloat16)
        v_h = qkv[:, 2 * D + lo:2 * D + hi].astype(jnp.bfloat16)
        s = jax.lax.dot_general(q_h, k_h, (((1,), (1,)), ((), ())),
                                preferred_element_type=jnp.float32)
        m = jnp.max(s, axis=-1, keepdims=True)
        e = jnp.exp(s - m)
        p = e * pl.reciprocal(jnp.sum(e, axis=-1, keepdims=True), approx=True)
        ctx_ref[:, lo:hi] = jnp.dot(p.astype(jnp.bfloat16), v_h,
                                    preferred_element_type=jnp.float32)

    # Single full-D output projection.
    attn = jnp.dot(ctx_ref[...].astype(jnp.bfloat16), wo_ref[...],
                   preferred_element_type=jnp.float32) + bo_ref[...]

    out = x + attn                                    # residual add
    if relu:                                          # fused final ReLU
        out = jnp.maximum(out, 0.0)
    if pool:
        # ps == 2 down blocks: 2x2 maxpool == per-token max over the 4 pixel
        # channel slices; the pooled rows are already in pixel (row-major)
        # order, so unpatchify + maxpool both vanish.
        C = D // 4
        out = jnp.maximum(jnp.maximum(out[:, 0:C], out[:, C:2 * C]),
                          jnp.maximum(out[:, 2 * C:3 * C], out[:, 3 * C:4 * C]))
    o_ref[0] = out


def res_attn_tokens(tokens, p, *, pool=False, relu=False):
    B, N, D = tokens.shape
    out_d = D // 4 if pool else D
    kern = functools.partial(_res_attn_kernel, num_heads=p["heads"],
                             pool=pool, relu=relu)
    const = lambda shp: pl.BlockSpec(shp, lambda i: (0, 0))
    return pl.pallas_call(
        kern,
        out_shape=jax.ShapeDtypeStruct((B, N, out_d), jnp.float32),
        grid=(B,),
        in_specs=[
            pl.BlockSpec((1, N, D), lambda i: (i, 0, 0)),   # tokens
            const((N, D)),                                  # pos emb
            const((1, D)), const((1, D)),                   # gamma, beta
            const((D, 3 * D)), const((1, 3 * D)),           # fused QKV w, b
            const((D, D)), const((1, D)),                   # out proj w, b
        ],
        out_specs=pl.BlockSpec((1, N, out_d), lambda i: (i, 0, 0)),
        scratch_shapes=[pltpu.VMEM((N, D), jnp.float32)],   # per-head ctx
        compiler_params=pltpu.CompilerParams(
            dimension_semantics=("parallel",),
            vmem_limit_bytes=_VMEM_LIMIT),
    )(tokens, p["pos"], p["gamma"], p["beta"],
      p["wqkv"], p["bqkv"], p["wo"], p["bo"])


# ----------------------------------------------------------------------------
# Layout glue kept in XLA (row-permutation only)
# ----------------------------------------------------------------------------

def patchify(x, ps):
    B, H, W, C = x.shape
    t = x.reshape(B, H // ps, ps, W // ps, ps, C)
    t = jnp.transpose(t, (0, 1, 3, 2, 4, 5))
    return t.reshape(B, (H // ps) * (W // ps), ps * ps * C)


def unpatchify(t, H, W, C, ps):
    B = t.shape[0]
    t = t.reshape(B, H // ps, W // ps, ps, ps, C)
    t = jnp.transpose(t, (0, 1, 3, 2, 4, 5))
    return t.reshape(B, H, W, C)


def maxpool2(x):
    B, H, W, C = x.shape
    return jnp.max(x.reshape(B, H // 2, 2, W // 2, 2, C), axis=(2, 4))


# ----------------------------------------------------------------------------
# Blocks
# ----------------------------------------------------------------------------

def down_block(x, p):
    B, H, W, _ = x.shape
    C = p["out_c"]
    y = conv3x3(x, p["conv_w"], p["conv_b"]).reshape(B, H, W, C)
    t = patchify(y, p["ps"])
    if p["ps"] == 2:
        t = res_attn_tokens(t, p, pool=True)          # fused unpatchify+maxpool
        return t.reshape(B, H // 2, W // 2, C)
    t = res_attn_tokens(t, p)
    return maxpool2(unpatchify(t, H, W, C, p["ps"]))


def up_block(x, p, relu=False):
    B, H, W, _ = x.shape                              # low-res input
    C = p["out_c"]
    if p["ps"] == 2:
        # Fused 2x upsample + 3x3 conv + patchify: the same conv kernel run on
        # the LOW-RES image with phase-expanded weights emits ps=2 tokens.
        t = conv3x3(x, p["up_w"], p["up_b"])          # (B, H*W, 4C) tokens
        t = res_attn_tokens(t, p, relu=relu)
        return unpatchify(t, 2 * H, 2 * W, C, 2)
    # TODO(synk): generic-ps fallback keeps the upsample as an XLA pass.
    xu = jnp.repeat(jnp.repeat(x, 2, axis=1), 2, axis=2)
    y = conv3x3(xu, p["conv_w"], p["conv_b"]).reshape(B, 2 * H, 2 * W, C)
    t = res_attn_tokens(patchify(y, p["ps"]), p, relu=relu)
    return unpatchify(t, 2 * H, 2 * W, C, p["ps"])


def vit_unet_forward(x_nchw, params):
    x = jnp.transpose(x_nchw, (0, 2, 3, 1))            # NCHW -> NHWC
    for p in params["down"]:
        x = down_block(x, p)
    ups = params["up"]
    for i, p in enumerate(ups):
        # The model-level final ReLU is fused into the last attention kernel.
        x = up_block(x, p, relu=(i == len(ups) - 1))
    return jnp.transpose(x, (0, 3, 1, 2))              # NHWC -> NCHW


# ----------------------------------------------------------------------------
# Deterministic parameter construction (synthetic init, no checkpoint)
# ----------------------------------------------------------------------------

def _init_block(key, in_c, out_c, heads, ps, attn_h, attn_w, *, is_up):
    D = out_c * ps * ps
    N = (attn_h // ps) * (attn_w // ps)
    assert D % heads == 0
    hd = D // heads
    ks = jax.random.split(key, 9)
    s = 0.1
    rnd = lambda k, shp: s * jax.random.normal(k, shp, jnp.float32)

    w4 = rnd(ks[0], (3, 3, in_c, out_c))               # (dy, dx, ci, co)
    conv_b = rnd(ks[1], (out_c,))
    wqkv = rnd(ks[5], (D, 3 * D))
    bqkv = rnd(ks[6], (1, 3 * D))
    # Fold the 1/sqrt(hd) attention scale into the Q projection (zero runtime cost).
    scale = 1.0 / float(hd) ** 0.5
    wqkv = wqkv.at[:, :D].multiply(scale)
    bqkv = bqkv.at[:, :D].multiply(scale)

    p = dict(
        conv_w=w4.reshape(3, 3 * in_c, out_c).astype(jnp.bfloat16),
        conv_b=conv_b.reshape(1, out_c),
        pos=rnd(ks[2], (N, D)),
        gamma=1.0 + rnd(ks[3], (1, D)),
        beta=rnd(ks[4], (1, D)),
        wqkv=wqkv.astype(jnp.bfloat16),
        bqkv=bqkv,
        wo=rnd(ks[7], (D, D)).astype(jnp.bfloat16),
        bo=rnd(ks[8], (1, D)),
        heads=heads, ps=ps, out_c=out_c,
    )
    if is_up and ps == 2:
        # Phase-expanded (polyphase) weights: out[2t+pu, 2s+pv] of
        # conv3x3(upsample2(x)) == 3x3 im2col matmul on the padded low-res x
        # with these collapsed weights; columns ordered (pu, pv, co) so the
        # output rows are directly the ps=2 patch tokens.
        R = jnp.array([[[1., 0., 0.], [0., 1., 1.], [0., 0., 0.]],
                       [[0., 0., 0.], [1., 1., 0.], [0., 0., 1.]]], jnp.float32)
        wup = jnp.einsum('pta,qsb,abio->tsipqo', R, R, w4)  # (3,3,Cin,2,2,Cout)
        p["up_w"] = wup.reshape(3, 3 * in_c, 4 * out_c).astype(jnp.bfloat16)
        p["up_b"] = jnp.tile(conv_b, 4).reshape(1, 4 * out_c)
    return p


def build_params(key, channels, num_heads, patch_sizes, init_h, init_w):
    down, up = [], []
    in_c = channels[0]
    h, w = init_h, init_w
    keys = iter(jax.random.split(key, 2 * len(channels) + 4))
    for out_c, nh, ps in zip(channels[1:], num_heads, patch_sizes):
        down.append(_init_block(next(keys), in_c, out_c, nh, ps, h, w,
                                is_up=False))
        in_c = out_c
        h //= 2
        w //= 2
    for out_c, nh, ps in zip(reversed(channels[:-1]), reversed(num_heads[:-1]),
                             reversed(patch_sizes[:-1])):
        up.append(_init_block(next(keys), in_c, out_c, nh, ps, 2 * h, 2 * w,
                              is_up=True))
        in_c = out_c
        h *= 2
        w *= 2
    up.append(_init_block(next(keys), in_c, channels[0], num_heads[0],
                          patch_sizes[0], 2 * h, 2 * w, is_up=True))
    return dict(down=down, up=up)


# ----------------------------------------------------------------------------

if __name__ == "__main__":
    key = jax.random.PRNGKey(0)
    kx, kp = jax.random.split(key)

    channels = [1, 8, 16]
    num_heads = [2, 4]
    patch_sizes = [2, 2]
    init_h = init_w = 16
    B = 2

    x = jax.random.normal(kx, (B, channels[0], init_h, init_w), jnp.float32)
    params = build_params(kp, channels, num_heads, patch_sizes, init_h, init_w)

    fwd = jax.jit(lambda inp: vit_unet_forward(inp, params))
    y = jax.block_until_ready(fwd(x))

    assert y.shape == (B, channels[0], init_h, init_w), y.shape
    assert bool(jnp.all(y >= 0.0))          # final (fused) ReLU
    print("KERNEL_OK")
</pallas_src>

<mosaic_0001>
module attributes {stable_mosaic.version = 11 : i64} {
  func.func @_conv3x3_kernel(%arg0: i32, %arg1: memref<1x18x18x1xbf16, #tpu.memory_space<vmem>>, %arg2: memref<3x3x8xbf16, #tpu.memory_space<vmem>>, %arg3: memref<1x8xf32, #tpu.memory_space<vmem>>, %arg4: memref<1x256x8xf32, #tpu.memory_space<vmem>>) attributes {dimension_semantics = [#tpu.dimension_semantics<parallel>], iteration_bounds = array<i64: 2>, scalar_prefetch = 0 : i64, scratch_operands = 0 : i64, tpu.core_type = #tpu.core_type<tc>, window_params = [{transform_indices = @transform_0, window_bounds = array<i64: 1, 18, 18, 1>}, {pipeline_mode = #tpu.pipeline_mode<synchronous>, transform_indices = @transform_1, window_bounds = array<i64: 3, 3, 8>}, {pipeline_mode = #tpu.pipeline_mode<synchronous>, transform_indices = @transform_2, window_bounds = array<i64: 1, 8>}, {transform_indices = @transform_3, window_bounds = array<i64: 1, 256, 8>}]} {
    %c0 = arith.constant 0 : index
    %c0_0 = arith.constant 0 : index
    %c0_1 = arith.constant 0 : index
    %c0_2 = arith.constant 0 : index
    %0 = vector.load %arg1[%c0, %c0_0, %c0_1, %c0_2] : memref<1x18x18x1xbf16, #tpu.memory_space<vmem>>, vector<1x16x16x1xbf16>
    %1 = vector.shape_cast %0 : vector<1x16x16x1xbf16> to vector<16x16x1xbf16>
    %c0_3 = arith.constant 0 : index
    %c0_4 = arith.constant 0 : index
    %c1 = arith.constant 1 : index
    %c0_5 = arith.constant 0 : index
    %2 = vector.load %arg1[%c0_3, %c0_4, %c1, %c0_5] : memref<1x18x18x1xbf16, #tpu.memory_space<vmem>>, vector<1x16x16x1xbf16>
    %3 = vector.shape_cast %2 : vector<1x16x16x1xbf16> to vector<16x16x1xbf16>
    %c0_6 = arith.constant 0 : index
    %c0_7 = arith.constant 0 : index
    %c2 = arith.constant 2 : index
    %c0_8 = arith.constant 0 : index
    %4 = vector.load %arg1[%c0_6, %c0_7, %c2, %c0_8] : memref<1x18x18x1xbf16, #tpu.memory_space<vmem>>, vector<1x16x16x1xbf16>
    %5 = vector.shape_cast %4 : vector<1x16x16x1xbf16> to vector<16x16x1xbf16>
    %6 = tpu.concatenate %1, %3, %5 in 2 : vector<16x16x1xbf16>, vector<16x16x1xbf16>, vector<16x16x1xbf16> -> vector<16x16x3xbf16>
    %7 = vector.shape_cast %6 : vector<16x16x3xbf16> to vector<256x3xbf16>
    %c0_9 = arith.constant 0 : index
    %c0_10 = arith.constant 0 : index
    %c0_11 = arith.constant 0 : index
    %8 = vector.load %arg2[%c0_9, %c0_10, %c0_11] : memref<3x3x8xbf16, #tpu.memory_space<vmem>>, vector<1x3x8xbf16>
    %9 = vector.shape_cast %8 : vector<1x3x8xbf16> to vector<3x8xbf16>
    %cst = arith.constant dense<0.000000e+00> : vector<256x8xf32>
    %10 = tpu.matmul %7, %9, %cst {dimension_numbers = #tpu.dot_dimension_numbers<[1], [0], [0], [1], [0, 0, 1, 1], [], []>} : vector<256x3xbf16>, vector<3x8xbf16>, vector<256x8xf32> -> vector<256x8xf32>
    %c0_12 = arith.constant 0 : index
    %c1_13 = arith.constant 1 : index
    %c0_14 = arith.constant 0 : index
    %c0_15 = arith.constant 0 : index
    %11 = vector.load %arg1[%c0_12, %c1_13, %c0_14, %c0_15] : memref<1x18x18x1xbf16, #tpu.memory_space<vmem>>, vector<1x16x16x1xbf16>
    %12 = vector.shape_cast %11 : vector<1x16x16x1xbf16> to vector<16x16x1xbf16>
    %c0_16 = arith.constant 0 : index
    %c1_17 = arith.constant 1 : index
    %c1_18 = arith.constant 1 : index
    %c0_19 = arith.constant 0 : index
    %13 = vector.load %arg1[%c0_16, %c1_17, %c1_18, %c0_19] : memref<1x18x18x1xbf16, #tpu.memory_space<vmem>>, vector<1x16x16x1xbf16>
    %14 = vector.shape_cast %13 : vector<1x16x16x1xbf16> to vector<16x16x1xbf16>
    %c0_20 = arith.constant 0 : index
    %c1_21 = arith.constant 1 : index
    %c2_22 = arith.constant 2 : index
    %c0_23 = arith.constant 0 : index
    %15 = vector.load %arg1[%c0_20, %c1_21, %c2_22, %c0_23] : memref<1x18x18x1xbf16, #tpu.memory_space<vmem>>, vector<1x16x16x1xbf16>
    %16 = vector.shape_cast %15 : vector<1x16x16x1xbf16> to vector<16x16x1xbf16>
    %17 = tpu.concatenate %12, %14, %16 in 2 : vector<16x16x1xbf16>, vector<16x16x1xbf16>, vector<16x16x1xbf16> -> vector<16x16x3xbf16>
    %18 = vector.shape_cast %17 : vector<16x16x3xbf16> to vector<256x3xbf16>
    %c1_24 = arith.constant 1 : index
    %c0_25 = arith.constant 0 : index
    %c0_26 = arith.constant 0 : index
    %19 = vector.load %arg2[%c1_24, %c0_25, %c0_26] : memref<3x3x8xbf16, #tpu.memory_space<vmem>>, vector<1x3x8xbf16>
    %20 = vector.shape_cast %19 : vector<1x3x8xbf16> to vector<3x8xbf16>
    %cst_27 = arith.constant dense<0.000000e+00> : vector<256x8xf32>
    %21 = tpu.matmul %18, %20, %cst_27 {dimension_numbers = #tpu.dot_dimension_numbers<[1], [0], [0], [1], [0, 0, 1, 1], [], []>} : vector<256x3xbf16>, vector<3x8xbf16>, vector<256x8xf32> -> vector<256x8xf32>
    %22 = arith.addf %10, %21 : vector<256x8xf32>
    %c0_28 = arith.constant 0 : index
    %c2_29 = arith.constant 2 : index
    %c0_30 = arith.constant 0 : index
    %c0_31 = arith.constant 0 : index
    %23 = vector.load %arg1[%c0_28, %c2_29, %c0_30, %c0_31] : memref<1x18x18x1xbf16, #tpu.memory_space<vmem>>, vector<1x16x16x1xbf16>
    %24 = vector.shape_cast %23 : vector<1x16x16x1xbf16> to vector<16x16x1xbf16>
    %c0_32 = arith.constant 0 : index
    %c2_33 = arith.constant 2 : index
    %c1_34 = arith.constant 1 : index
    %c0_35 = arith.constant 0 : index
    %25 = vector.load %arg1[%c0_32, %c2_33, %c1_34, %c0_35] : memref<1x18x18x1xbf16, #tpu.memory_space<vmem>>, vector<1x16x16x1xbf16>
    %26 = vector.shape_cast %25 : vector<1x16x16x1xbf16> to vector<16x16x1xbf16>
    %c0_36 = arith.constant 0 : index
    %c2_37 = arith.constant 2 : index
    %c2_38 = arith.constant 2 : index
    %c0_39 = arith.constant 0 : index
    %27 = vector.load %arg1[%c0_36, %c2_37, %c2_38, %c0_39] : memref<1x18x18x1xbf16, #tpu.memory_space<vmem>>, vector<1x16x16x1xbf16>
    %28 = vector.shape_cast %27 : vector<1x16x16x1xbf16> to vector<16x16x1xbf16>
    %29 = tpu.concatenate %24, %26, %28 in 2 : vector<16x16x1xbf16>, vector<16x16x1xbf16>, vector<16x16x1xbf16> -> vector<16x16x3xbf16>
    %30 = vector.shape_cast %29 : vector<16x16x3xbf16> to vector<256x3xbf16>
    %c2_40 = arith.constant 2 : index
    %c0_41 = arith.constant 0 : index
    %c0_42 = arith.constant 0 : index
    %31 = vector.load %arg2[%c2_40, %c0_41, %c0_42] : memref<3x3x8xbf16, #tpu.memory_space<vmem>>, vector<1x3x8xbf16>
    %32 = vector.shape_cast %31 : vector<1x3x8xbf16> to vector<3x8xbf16>
    %cst_43 = arith.constant dense<0.000000e+00> : vector<256x8xf32>
    %33 = tpu.matmul %30, %32, %cst_43 {dimension_numbers = #tpu.dot_dimension_numbers<[1], [0], [0], [1], [0, 0, 1, 1], [], []>} : vector<256x3xbf16>, vector<3x8xbf16>, vector<256x8xf32> -> vector<256x8xf32>
    %34 = arith.addf %22, %33 : vector<256x8xf32>
    %c0_44 = arith.constant 0 : index
    %c0_45 = arith.constant 0 : index
    %35 = vector.load %arg3[%c0_44, %c0_45] : memref<1x8xf32, #tpu.memory_space<vmem>>, vector<1x8xf32>
    %36 = vector.broadcast %35 : vector<1x8xf32> to vector<256x8xf32>
    %37 = arith.addf %34, %36 : vector<256x8xf32>
    %c0_46 = arith.constant 0 : index
    %c0_47 = arith.constant 0 : index
    %c0_48 = arith.constant 0 : index
    %38 = vector.load %arg4[%c0_46, %c0_47, %c0_48] : memref<1x256x8xf32, #tpu.memory_space<vmem>>, vector<1x256x8xf32>
    %39 = vector.shape_cast %38 : vector<1x256x8xf32> to vector<256x8xf32>
    %40 = vector.shape_cast %37 : vector<256x8xf32> to vector<1x256x8xf32>
    tpu.vector_store %arg4[%c0_46, %c0_47, %c0_48], %40 {strides = array<i32>} : memref<1x256x8xf32, #tpu.memory_space<vmem>>, vector<1x256x8xf32>,
    return
  }
  func.func @transform_0(%arg0: i32) -> (i32, i32, i32, i32) {
    %c0_i32 = arith.constant 0 : i32
    %c0_i32_0 = arith.constant 0 : i32
    %c0_i32_1 = arith.constant 0 : i32
    %c0_i32_2 = arith.constant 0 : i32
    return %arg0, %c0_i32, %c0_i32_0, %c0_i32_1 : i32, i32, i32, i32
  }
  func.func @transform_1(%arg0: i32) -> (i32, i32, i32) {
    %c0_i32 = arith.constant 0 : i32
    %c0_i32_0 = arith.constant 0 : i32
    %c0_i32_1 = arith.constant 0 : i32
    %c0_i32_2 = arith.constant 0 : i32
    return %c0_i32, %c0_i32_0, %c0_i32_1 : i32, i32, i32
  }
  func.func @transform_2(%arg0: i32) -> (i32, i32) {
    %c0_i32 = arith.constant 0 : i32
    %c0_i32_0 = arith.constant 0 : i32
    %c0_i32_1 = arith.constant 0 : i32
    return %c0_i32, %c0_i32_0 : i32, i32
  }
  func.func @transform_3(%arg0: i32) -> (i32, i32, i32) {
    %c0_i32 = arith.constant 0 : i32
    %c0_i32_0 = arith.constant 0 : i32
    %c0_i32_1 = arith.constant 0 : i32
    return %arg0, %c0_i32, %c0_i32_0 : i32, i32, i32
  }
}

module attributes {stable_mosaic.version = 11 : i64} {
  func.func @_res_attn_kernel(%arg0: i32, %arg1: memref<1x64x32xf32, #tpu.memory_space<vmem>>, %arg2: memref<64x32xf32, #tpu.memory_space<vmem>>, %arg3: memref<1x32xf32, #tpu.memory_space<vmem>>, %arg4: memref<1x32xf32, #tpu.memory_space<vmem>>, %arg5: memref<32x96xbf16, #tpu.memory_space<vmem>>, %arg6: memref<1x96xf32, #tpu.memory_space<vmem>>, %arg7: memref<32x32xbf16, #tpu.memory_space<vmem>>, %arg8: memref<1x32xf32, #tpu.memory_space<vmem>>, %arg9: memref<1x64x8xf32, #tpu.memory_space<vmem>>, %arg10: memref<64x32xf32, #tpu.memory_space<vmem>>) attributes {dimension_semantics = [#tpu.dimension_semantics<parallel>], iteration_bounds = array<i64: 2>, scalar_prefetch = 0 : i64, scratch_operands = 1 : i64, tpu.core_type = #tpu.core_type<tc>, window_params = [{transform_indices = @transform_0, window_bounds = array<i64: 1, 64, 32>}, {pipeline_mode = #tpu.pipeline_mode<synchronous>, transform_indices = @transform_1, window_bounds = array<i64: 64, 32>}, {pipeline_mode = #tpu.pipeline_mode<synchronous>, transform_indices = @transform_2, window_bounds = array<i64: 1, 32>}, {pipeline_mode = #tpu.pipeline_mode<synchronous>, transform_indices = @transform_3, window_bounds = array<i64: 1, 32>}, {pipeline_mode = #tpu.pipeline_mode<synchronous>, transform_indices = @transform_4, window_bounds = array<i64: 32, 96>}, {pipeline_mode = #tpu.pipeline_mode<synchronous>, transform_indices = @transform_5, window_bounds = array<i64: 1, 96>}, {pipeline_mode = #tpu.pipeline_mode<synchronous>, transform_indices = @transform_6, window_bounds = array<i64: 32, 32>}, {pipeline_mode = #tpu.pipeline_mode<synchronous>, transform_indices = @transform_7, window_bounds = array<i64: 1, 32>}, {transform_indices = @transform_8, window_bounds = array<i64: 1, 64, 8>}]} {
    %c0 = arith.constant 0 : index
    %c0_0 = arith.constant 0 : index
    %c0_1 = arith.constant 0 : index
    %0 = vector.load %arg1[%c0, %c0_0, %c0_1] : memref<1x64x32xf32, #tpu.memory_space<vmem>>, vector<1x64x32xf32>
    %1 = vector.shape_cast %0 : vector<1x64x32xf32> to vector<64x32xf32>
    %c0_2 = arith.constant 0 : index
    %c0_3 = arith.constant 0 : index
    %2 = vector.load %arg2[%c0_2, %c0_3] : memref<64x32xf32, #tpu.memory_space<vmem>>, vector<64x32xf32>
    %3 = arith.addf %1, %2 : vector<64x32xf32>
    %cst = arith.constant dense<0.000000e+00> : vector<64xf32>
    %4 = vector.multi_reduction <add>, %3, %cst [1] : vector<64x32xf32> to vector<64xf32>
    %5 = vector.shape_cast %4 : vector<64xf32> to vector<64x1xf32>
    %cst_4 = arith.constant 3.200000e+01 : f32
    %6 = vector.broadcast %cst_4 : f32 to vector<64x1xf32>
    %7 = arith.divf %5, %6 : vector<64x1xf32>
    %8 = vector.broadcast %7 : vector<64x1xf32> to vector<64x32xf32>
    %9 = arith.subf %3, %8 : vector<64x32xf32>
    %10 = arith.mulf %9, %9 : vector<64x32xf32>
    %cst_5 = arith.constant dense<0.000000e+00> : vector<64xf32>
    %11 = vector.multi_reduction <add>, %10, %cst_5 [1] : vector<64x32xf32> to vector<64xf32>
    %12 = vector.shape_cast %11 : vector<64xf32> to vector<64x1xf32>
    %cst_6 = arith.constant 3.200000e+01 : f32
    %13 = vector.broadcast %cst_6 : f32 to vector<64x1xf32>
    %14 = arith.divf %12, %13 : vector<64x1xf32>
    %cst_7 = arith.constant 9.99999974E-6 : f32
    %15 = vector.broadcast %cst_7 : f32 to vector<64x1xf32>
    %16 = arith.addf %14, %15 : vector<64x1xf32>
    %17 = math.rsqrt %16 : vector<64x1xf32>
    %18 = vector.broadcast %17 : vector<64x1xf32> to vector<64x32xf32>
    %19 = arith.mulf %9, %18 : vector<64x32xf32>
    %c0_8 = arith.constant 0 : index
    %c0_9 = arith.constant 0 : index
    %20 = vector.load %arg3[%c0_8, %c0_9] : memref<1x32xf32, #tpu.memory_space<vmem>>, vector<1x32xf32>
    %21 = vector.broadcast %20 : vector<1x32xf32> to vector<64x32xf32>
    %22 = arith.mulf %19, %21 : vector<64x32xf32>
    %c0_10 = arith.constant 0 : index
    %c0_11 = arith.constant 0 : index
    %23 = vector.load %arg4[%c0_10, %c0_11] : memref<1x32xf32, #tpu.memory_space<vmem>>, vector<1x32xf32>
    %24 = vector.broadcast %23 : vector<1x32xf32> to vector<64x32xf32>
    %25 = arith.addf %22, %24 : vector<64x32xf32>
    %26 = arith.truncf %25 : vector<64x32xf32> to vector<64x32xbf16>
    %c0_12 = arith.constant 0 : index
    %c0_13 = arith.constant 0 : index
    %27 = vector.load %arg5[%c0_12, %c0_13] : memref<32x96xbf16, #tpu.memory_space<vmem>>, vector<32x96xbf16>
    %cst_14 = arith.constant dense<0.000000e+00> : vector<64x96xf32>
    %28 = tpu.matmul %26, %27, %cst_14 {dimension_numbers = #tpu.dot_dimension_numbers<[1], [0], [0], [1], [0, 0, 1, 1], [], []>} : vector<64x32xbf16>, vector<32x96xbf16>, vector<64x96xf32> -> vector<64x96xf32>
    %c0_15 = arith.constant 0 : index
    %c0_16 = arith.constant 0 : index
    %29 = vector.load %arg6[%c0_15, %c0_16] : memref<1x96xf32, #tpu.memory_space<vmem>>, vector<1x96xf32>
    %30 = vector.broadcast %29 : vector<1x96xf32> to vector<64x96xf32>
    %31 = arith.addf %28, %30 : vector<64x96xf32>
    %32 = vector.extract_strided_slice %31 {offsets = [0, 0], sizes = [64, 16], strides = [1, 1]} : vector<64x96xf32> to vector<64x16xf32>
    %33 = arith.truncf %32 : vector<64x16xf32> to vector<64x16xbf16>
    %34 = vector.extract_strided_slice %31 {offsets = [0, 32], sizes = [64, 16], strides = [1, 1]} : vector<64x96xf32> to vector<64x16xf32>
    %35 = arith.truncf %34 : vector<64x16xf32> to vector<64x16xbf16>
    %36 = vector.extract_strided_slice %31 {offsets = [0, 64], sizes = [64, 16], strides = [1, 1]} : vector<64x96xf32> to vector<64x16xf32>
    %37 = arith.truncf %36 : vector<64x16xf32> to vector<64x16xbf16>
    %cst_17 = arith.constant dense<0.000000e+00> : vector<64x64xf32>
    %38 = tpu.matmul %33, %35, %cst_17 {dimension_numbers = #tpu.dot_dimension_numbers<[1], [1], [0], [0], [0, 0, 1, 0], [], []>} : vector<64x16xbf16>, vector<64x16xbf16>, vector<64x64xf32> -> vector<64x64xf32>
    %cst_18 = arith.constant dense<0xFF800000> : vector<64xf32>
    %39 = vector.multi_reduction <maximumf>, %38, %cst_18 [1] : vector<64x64xf32> to vector<64xf32>
    %40 = vector.shape_cast %39 : vector<64xf32> to vector<64x1xf32>
    %41 = vector.broadcast %40 : vector<64x1xf32> to vector<64x64xf32>
    %42 = arith.subf %38, %41 : vector<64x64xf32>
    %43 = math.exp %42 : vector<64x64xf32>
    %cst_19 = arith.constant dense<0.000000e+00> : vector<64xf32>
    %44 = vector.multi_reduction <add>, %43, %cst_19 [1] : vector<64x64xf32> to vector<64xf32>
    %45 = vector.shape_cast %44 : vector<64xf32> to vector<64x1xf32>
    %46 = tpu.reciprocal %45 {approx = true} : vector<64x1xf32> -> vector<64x1xf32>
    %47 = vector.broadcast %46 : vector<64x1xf32> to vector<64x64xf32>
    %48 = arith.mulf %43, %47 : vector<64x64xf32>
    %49 = arith.truncf %48 : vector<64x64xf32> to vector<64x64xbf16>
    %cst_20 = arith.constant dense<0.000000e+00> : vector<64x16xf32>
    %50 = tpu.matmul %49, %37, %cst_20 {dimension_numbers = #tpu.dot_dimension_numbers<[1], [0], [0], [1], [0, 0, 1, 1], [], []>} : vector<64x64xbf16>, vector<64x16xbf16>, vector<64x16xf32> -> vector<64x16xf32>
    %c0_21 = arith.constant 0 : index
    %c0_22 = arith.constant 0 : index
    %51 = vector.load %arg10[%c0_21, %c0_22] : memref<64x32xf32, #tpu.memory_space<vmem>>, vector<64x16xf32>
    tpu.vector_store %arg10[%c0_21, %c0_22], %50 {strides = array<i32>} : memref<64x32xf32, #tpu.memory_space<vmem>>, vector<64x16xf32>,
    %52 = vector.extract_strided_slice %31 {offsets = [0, 16], sizes = [64, 16], strides = [1, 1]} : vector<64x96xf32> to vector<64x16xf32>
    %53 = arith.truncf %52 : vector<64x16xf32> to vector<64x16xbf16>
    %54 = vector.extract_strided_slice %31 {offsets = [0, 48], sizes = [64, 16], strides = [1, 1]} : vector<64x96xf32> to vector<64x16xf32>
    %55 = arith.truncf %54 : vector<64x16xf32> to vector<64x16xbf16>
    %56 = vector.extract_strided_slice %31 {offsets = [0, 80], sizes = [64, 16], strides = [1, 1]} : vector<64x96xf32> to vector<64x16xf32>
    %57 = arith.truncf %56 : vector<64x16xf32> to vector<64x16xbf16>
    %cst_23 = arith.constant dense<0.000000e+00> : vector<64x64xf32>
    %58 = tpu.matmul %53, %55, %cst_23 {dimension_numbers = #tpu.dot_dimension_numbers<[1], [1], [0], [0], [0, 0, 1, 0], [], []>} : vector<64x16xbf16>, vector<64x16xbf16>, vector<64x64xf32> -> vector<64x64xf32>
    %cst_24 = arith.constant dense<0xFF800000> : vector<64xf32>
    %59 = vector.multi_reduction <maximumf>, %58, %cst_24 [1] : vector<64x64xf32> to vector<64xf32>
    %60 = vector.shape_cast %59 : vector<64xf32> to vector<64x1xf32>
    %61 = vector.broadcast %60 : vector<64x1xf32> to vector<64x64xf32>
    %62 = arith.subf %58, %61 : vector<64x64xf32>
    %63 = math.exp %62 : vector<64x64xf32>
    %cst_25 = arith.constant dense<0.000000e+00> : vector<64xf32>
    %64 = vector.multi_reduction <add>, %63, %cst_25 [1] : vector<64x64xf32> to vector<64xf32>
    %65 = vector.shape_cast %64 : vector<64xf32> to vector<64x1xf32>
    %66 = tpu.reciprocal %65 {approx = true} : vector<64x1xf32> -> vector<64x1xf32>
    %67 = vector.broadcast %66 : vector<64x1xf32> to vector<64x64xf32>
    %68 = arith.mulf %63, %67 : vector<64x64xf32>
    %69 = arith.truncf %68 : vector<64x64xf32> to vector<64x64xbf16>
    %cst_26 = arith.constant dense<0.000000e+00> : vector<64x16xf32>
    %70 = tpu.matmul %69, %57, %cst_26 {dimension_numbers = #tpu.dot_dimension_numbers<[1], [0], [0], [1], [0, 0, 1, 1], [], []>} : vector<64x64xbf16>, vector<64x16xbf16>, vector<64x16xf32> -> vector<64x16xf32>
    %c0_27 = arith.constant 0 : index
    %c16 = arith.constant 16 : index
    %71 = vector.load %arg10[%c0_27, %c16] : memref<64x32xf32, #tpu.memory_space<vmem>>, vector<64x16xf32>
    tpu.vector_store %arg10[%c0_27, %c16], %70 {strides = array<i32>} : memref<64x32xf32, #tpu.memory_space<vmem>>, vector<64x16xf32>,
    %c0_28 = arith.constant 0 : index
    %c0_29 = arith.constant 0 : index
    %72 = vector.load %arg10[%c0_28, %c0_29] : memref<64x32xf32, #tpu.memory_space<vmem>>, vector<64x32xf32>
    %73 = arith.truncf %72 : vector<64x32xf32> to vector<64x32xbf16>
    %c0_30 = arith.constant 0 : index
    %c0_31 = arith.constant 0 : index
    %74 = vector.load %arg7[%c0_30, %c0_31] : memref<32x32xbf16, #tpu.memory_space<vmem>>, vector<32x32xbf16>
    %cst_32 = arith.constant dense<0.000000e+00> : vector<64x32xf32>
    %75 = tpu.matmul %73, %74, %cst_32 {dimension_numbers = #tpu.dot_dimension_numbers<[1], [0], [0], [1], [0, 0, 1, 1], [], []>} : vector<64x32xbf16>, vector<32x32xbf16>, vector<64x32xf32> -> vector<64x32xf32>
    %c0_33 = arith.constant 0 : index
    %c0_34 = arith.constant 0 : index
    %76 = vector.load %arg8[%c0_33, %c0_34] : memref<1x32xf32, #tpu.memory_space<vmem>>, vector<1x32xf32>
    %77 = vector.broadcast %76 : vector<1x32xf32> to vector<64x32xf32>
    %78 = arith.addf %75, %77 : vector<64x32xf32>
    %79 = arith.addf %3, %78 : vector<64x32xf32>
    %80 = vector.extract_strided_slice %79 {offsets = [0, 0], sizes = [64, 8], strides = [1, 1]} : vector<64x32xf32> to vector<64x8xf32>
    %81 = vector.extract_strided_slice %79 {offsets = [0, 8], sizes = [64, 8], strides = [1, 1]} : vector<64x32xf32> to vector<64x8xf32>
    %82 = arith.maximumf %80, %81 : vector<64x8xf32>
    %83 = vector.extract_strided_slice %79 {offsets = [0, 16], sizes = [64, 8], strides = [1, 1]} : vector<64x32xf32> to vector<64x8xf32>
    %84 = vector.extract_strided_slice %79 {offsets = [0, 24], sizes = [64, 8], strides = [1, 1]} : vector<64x32xf32> to vector<64x8xf32>
    %85 = arith.maximumf %83, %84 : vector<64x8xf32>
    %86 = arith.maximumf %82, %85 : vector<64x8xf32>
    %c0_35 = arith.constant 0 : index
    %c0_36 = arith.constant 0 : index
    %c0_37 = arith.constant 0 : index
    %87 = vector.load %arg9[%c0_35, %c0_36, %c0_37] : memref<1x64x8xf32, #tpu.memory_space<vmem>>, vector<1x64x8xf32>
    %88 = vector.shape_cast %87 : vector<1x64x8xf32> to vector<64x8xf32>
    %89 = vector.shape_cast %86 : vector<64x8xf32> to vector<1x64x8xf32>
    tpu.vector_store %arg9[%c0_35, %c0_36, %c0_37], %89 {strides = array<i32>} : memref<1x64x8xf32, #tpu.memory_space<vmem>>, vector<1x64x8xf32>,
    return
  }
  func.func @transform_0(%arg0: i32) -> (i32, i32, i32) {
    %c0_i32 = arith.constant 0 : i32
    %c0_i32_0 = arith.constant 0 : i32
    %c0_i32_1 = arith.constant 0 : i32
    return %arg0, %c0_i32, %c0_i32_0 : i32, i32, i32
  }
  func.func @transform_1(%arg0: i32) -> (i32, i32) {
    %c0_i32 = arith.constant 0 : i32
    %c0_i32_0 = arith.constant 0 : i32
    %c0_i32_1 = arith.constant 0 : i32
    return %c0_i32, %c0_i32_0 : i32, i32
  }
  func.func @transform_2(%arg0: i32) -> (i32, i32) {
    %c0_i32 = arith.constant 0 : i32
    %c0_i32_0 = arith.constant 0 : i32
    %c0_i32_1 = arith.constant 0 : i32
    return %c0_i32, %c0_i32_0 : i32, i32
  }
  func.func @transform_3(%arg0: i32) -> (i32, i32) {
    %c0_i32 = arith.constant 0 : i32
    %c0_i32_0 = arith.constant 0 : i32
    %c0_i32_1 = arith.constant 0 : i32
    return %c0_i32, %c0_i32_0 : i32, i32
  }
  func.func @transform_4(%arg0: i32) -> (i32, i32) {
    %c0_i32 = arith.constant 0 : i32
    %c0_i32_0 = arith.constant 0 : i32
    %c0_i32_1 = arith.constant 0 : i32
    return %c0_i32, %c0_i32_0 : i32, i32
  }
  func.func @transform_5(%arg0: i32) -> (i32, i32) {
    %c0_i32 = arith.constant 0 : i32
    %c0_i32_0 = arith.constant 0 : i32
    %c0_i32_1 = arith.constant 0 : i32
    return %c0_i32, %c0_i32_0 : i32, i32
  }
  func.func @transform_6(%arg0: i32) -> (i32, i32) {
    %c0_i32 = arith.constant 0 : i32
    %c0_i32_0 = arith.constant 0 : i32
    %c0_i32_1 = arith.constant 0 : i32
    return %c0_i32, %c0_i32_0 : i32, i32
  }
  func.func @transform_7(%arg0: i32) -> (i32, i32) {
    %c0_i32 = arith.constant 0 : i32
    %c0_i32_0 = arith.constant 0 : i32
    %c0_i32_1 = arith.constant 0 : i32
    return %c0_i32, %c0_i32_0 : i32, i32
  }
  func.func @transform_8(%arg0: i32) -> (i32, i32, i32) {
    %c0_i32 = arith.constant 0 : i32
    %c0_i32_0 = arith.constant 0 : i32
    %c0_i32_1 = arith.constant 0 : i32
    return %arg0, %c0_i32, %c0_i32_0 : i32, i32, i32
  }
}

module attributes {stable_mosaic.version = 11 : i64} {
  func.func @_conv3x3_kernel(%arg0: i32, %arg1: memref<1x10x10x8xbf16, #tpu.memory_space<vmem>>, %arg2: memref<3x24x16xbf16, #tpu.memory_space<vmem>>, %arg3: memref<1x16xf32, #tpu.memory_space<vmem>>, %arg4: memref<1x64x16xf32, #tpu.memory_space<vmem>>) attributes {dimension_semantics = [#tpu.dimension_semantics<parallel>], iteration_bounds = array<i64: 2>, scalar_prefetch = 0 : i64, scratch_operands = 0 : i64, tpu.core_type = #tpu.core_type<tc>, window_params = [{transform_indices = @transform_0, window_bounds = array<i64: 1, 10, 10, 8>}, {pipeline_mode = #tpu.pipeline_mode<synchronous>, transform_indices = @transform_1, window_bounds = array<i64: 3, 24, 16>}, {pipeline_mode = #tpu.pipeline_mode<synchronous>, transform_indices = @transform_2, window_bounds = array<i64: 1, 16>}, {transform_indices = @transform_3, window_bounds = array<i64: 1, 64, 16>}]} {
    %c0 = arith.constant 0 : index
    %c0_0 = arith.constant 0 : index
    %c0_1 = arith.constant 0 : index
    %c0_2 = arith.constant 0 : index
    %0 = vector.load %arg1[%c0, %c0_0, %c0_1, %c0_2] : memref<1x10x10x8xbf16, #tpu.memory_space<vmem>>, vector<1x8x8x8xbf16>
    %1 = vector.shape_cast %0 : vector<1x8x8x8xbf16> to vector<8x8x8xbf16>
    %c0_3 = arith.constant 0 : index
    %c0_4 = arith.constant 0 : index
    %c1 = arith.constant 1 : index
    %c0_5 = arith.constant 0 : index
    %2 = vector.load %arg1[%c0_3, %c0_4, %c1, %c0_5] : memref<1x10x10x8xbf16, #tpu.memory_space<vmem>>, vector<1x8x8x8xbf16>
    %3 = vector.shape_cast %2 : vector<1x8x8x8xbf16> to vector<8x8x8xbf16>
    %c0_6 = arith.constant 0 : index
    %c0_7 = arith.constant 0 : index
    %c2 = arith.constant 2 : index
    %c0_8 = arith.constant 0 : index
    %4 = vector.load %arg1[%c0_6, %c0_7, %c2, %c0_8] : memref<1x10x10x8xbf16, #tpu.memory_space<vmem>>, vector<1x8x8x8xbf16>
    %5 = vector.shape_cast %4 : vector<1x8x8x8xbf16> to vector<8x8x8xbf16>
    %6 = tpu.concatenate %1, %3, %5 in 2 : vector<8x8x8xbf16>, vector<8x8x8xbf16>, vector<8x8x8xbf16> -> vector<8x8x24xbf16>
    %7 = vector.shape_cast %6 : vector<8x8x24xbf16> to vector<64x24xbf16>
    %c0_9 = arith.constant 0 : index
    %c0_10 = arith.constant 0 : index
    %c0_11 = arith.constant 0 : index
    %8 = vector.load %arg2[%c0_9, %c0_10, %c0_11] : memref<3x24x16xbf16, #tpu.memory_space<vmem>>, vector<1x24x16xbf16>
    %9 = vector.shape_cast %8 : vector<1x24x16xbf16> to vector<24x16xbf16>
    %cst = arith.constant dense<0.000000e+00> : vector<64x16xf32>
    %10 = tpu.matmul %7, %9, %cst {dimension_numbers = #tpu.dot_dimension_numbers<[1], [0], [0], [1], [0, 0, 1, 1], [], []>} : vector<64x24xbf16>, vector<24x16xbf16>, vector<64x16xf32> -> vector<64x16xf32>
    %c0_12 = arith.constant 0 : index
    %c1_13 = arith.constant 1 : index
    %c0_14 = arith.constant 0 : index
    %c0_15 = arith.constant 0 : index
    %11 = vector.load %arg1[%c0_12, %c1_13, %c0_14, %c0_15] : memref<1x10x10x8xbf16, #tpu.memory_space<vmem>>, vector<1x8x8x8xbf16>
    %12 = vector.shape_cast %11 : vector<1x8x8x8xbf16> to vector<8x8x8xbf16>
    %c0_16 = arith.constant 0 : index
    %c1_17 = arith.constant 1 : index
    %c1_18 = arith.constant 1 : index
    %c0_19 = arith.constant 0 : index
    %13 = vector.load %arg1[%c0_16, %c1_17, %c1_18, %c0_19] : memref<1x10x10x8xbf16, #tpu.memory_space<vmem>>, vector<1x8x8x8xbf16>
    %14 = vector.shape_cast %13 : vector<1x8x8x8xbf16> to vector<8x8x8xbf16>
    %c0_20 = arith.constant 0 : index
    %c1_21 = arith.constant 1 : index
    %c2_22 = arith.constant 2 : index
    %c0_23 = arith.constant 0 : index
    %15 = vector.load %arg1[%c0_20, %c1_21, %c2_22, %c0_23] : memref<1x10x10x8xbf16, #tpu.memory_space<vmem>>, vector<1x8x8x8xbf16>
    %16 = vector.shape_cast %15 : vector<1x8x8x8xbf16> to vector<8x8x8xbf16>
    %17 = tpu.concatenate %12, %14, %16 in 2 : vector<8x8x8xbf16>, vector<8x8x8xbf16>, vector<8x8x8xbf16> -> vector<8x8x24xbf16>
    %18 = vector.shape_cast %17 : vector<8x8x24xbf16> to vector<64x24xbf16>
    %c1_24 = arith.constant 1 : index
    %c0_25 = arith.constant 0 : index
    %c0_26 = arith.constant 0 : index
    %19 = vector.load %arg2[%c1_24, %c0_25, %c0_26] : memref<3x24x16xbf16, #tpu.memory_space<vmem>>, vector<1x24x16xbf16>
    %20 = vector.shape_cast %19 : vector<1x24x16xbf16> to vector<24x16xbf16>
    %cst_27 = arith.constant dense<0.000000e+00> : vector<64x16xf32>
    %21 = tpu.matmul %18, %20, %cst_27 {dimension_numbers = #tpu.dot_dimension_numbers<[1], [0], [0], [1], [0, 0, 1, 1], [], []>} : vector<64x24xbf16>, vector<24x16xbf16>, vector<64x16xf32> -> vector<64x16xf32>
    %22 = arith.addf %10, %21 : vector<64x16xf32>
    %c0_28 = arith.constant 0 : index
    %c2_29 = arith.constant 2 : index
    %c0_30 = arith.constant 0 : index
    %c0_31 = arith.constant 0 : index
    %23 = vector.load %arg1[%c0_28, %c2_29, %c0_30, %c0_31] : memref<1x10x10x8xbf16, #tpu.memory_space<vmem>>, vector<1x8x8x8xbf16>
    %24 = vector.shape_cast %23 : vector<1x8x8x8xbf16> to vector<8x8x8xbf16>
    %c0_32 = arith.constant 0 : index
    %c2_33 = arith.constant 2 : index
    %c1_34 = arith.constant 1 : index
    %c0_35 = arith.constant 0 : index
    %25 = vector.load %arg1[%c0_32, %c2_33, %c1_34, %c0_35] : memref<1x10x10x8xbf16, #tpu.memory_space<vmem>>, vector<1x8x8x8xbf16>
    %26 = vector.shape_cast %25 : vector<1x8x8x8xbf16> to vector<8x8x8xbf16>
    %c0_36 = arith.constant 0 : index
    %c2_37 = arith.constant 2 : index
    %c2_38 = arith.constant 2 : index
    %c0_39 = arith.constant 0 : index
    %27 = vector.load %arg1[%c0_36, %c2_37, %c2_38, %c0_39] : memref<1x10x10x8xbf16, #tpu.memory_space<vmem>>, vector<1x8x8x8xbf16>
    %28 = vector.shape_cast %27 : vector<1x8x8x8xbf16> to vector<8x8x8xbf16>
    %29 = tpu.concatenate %24, %26, %28 in 2 : vector<8x8x8xbf16>, vector<8x8x8xbf16>, vector<8x8x8xbf16> -> vector<8x8x24xbf16>
    %30 = vector.shape_cast %29 : vector<8x8x24xbf16> to vector<64x24xbf16>
    %c2_40 = arith.constant 2 : index
    %c0_41 = arith.constant 0 : index
    %c0_42 = arith.constant 0 : index
    %31 = vector.load %arg2[%c2_40, %c0_41, %c0_42] : memref<3x24x16xbf16, #tpu.memory_space<vmem>>, vector<1x24x16xbf16>
    %32 = vector.shape_cast %31 : vector<1x24x16xbf16> to vector<24x16xbf16>
    %cst_43 = arith.constant dense<0.000000e+00> : vector<64x16xf32>
    %33 = tpu.matmul %30, %32, %cst_43 {dimension_numbers = #tpu.dot_dimension_numbers<[1], [0], [0], [1], [0, 0, 1, 1], [], []>} : vector<64x24xbf16>, vector<24x16xbf16>, vector<64x16xf32> -> vector<64x16xf32>
    %34 = arith.addf %22, %33 : vector<64x16xf32>
    %c0_44 = arith.constant 0 : index
    %c0_45 = arith.constant 0 : index
    %35 = vector.load %arg3[%c0_44, %c0_45] : memref<1x16xf32, #tpu.memory_space<vmem>>, vector<1x16xf32>
    %36 = vector.broadcast %35 : vector<1x16xf32> to vector<64x16xf32>
    %37 = arith.addf %34, %36 : vector<64x16xf32>
    %c0_46 = arith.constant 0 : index
    %c0_47 = arith.constant 0 : index
    %c0_48 = arith.constant 0 : index
    %38 = vector.load %arg4[%c0_46, %c0_47, %c0_48] : memref<1x64x16xf32, #tpu.memory_space<vmem>>, vector<1x64x16xf32>
    %39 = vector.shape_cast %38 : vector<1x64x16xf32> to vector<64x16xf32>
    %40 = vector.shape_cast %37 : vector<64x16xf32> to vector<1x64x16xf32>
    tpu.vector_store %arg4[%c0_46, %c0_47, %c0_48], %40 {strides = array<i32>} : memref<1x64x16xf32, #tpu.memory_space<vmem>>, vector<1x64x16xf32>,
    return
  }
  func.func @transform_0(%arg0: i32) -> (i32, i32, i32, i32) {
    %c0_i32 = arith.constant 0 : i32
    %c0_i32_0 = arith.constant 0 : i32
    %c0_i32_1 = arith.constant 0 : i32
    %c0_i32_2 = arith.constant 0 : i32
    return %arg0, %c0_i32, %c0_i32_0, %c0_i32_1 : i32, i32, i32, i32
  }
  func.func @transform_1(%arg0: i32) -> (i32, i32, i32) {
    %c0_i32 = arith.constant 0 : i32
    %c0_i32_0 = arith.constant 0 : i32
    %c0_i32_1 = arith.constant 0 : i32
    %c0_i32_2 = arith.constant 0 : i32
    return %c0_i32, %c0_i32_0, %c0_i32_1 : i32, i32, i32
  }
  func.func @transform_2(%arg0: i32) -> (i32, i32) {
    %c0_i32 = arith.constant 0 : i32
    %c0_i32_0 = arith.constant 0 : i32
    %c0_i32_1 = arith.constant 0 : i32
    return %c0_i32, %c0_i32_0 : i32, i32
  }
  func.func @transform_3(%arg0: i32) -> (i32, i32, i32) {
    %c0_i32 = arith.constant 0 : i32
    %c0_i32_0 = arith.constant 0 : i32
    %c0_i32_1 = arith.constant 0 : i32
    return %arg0, %c0_i32, %c0_i32_0 : i32, i32, i32
  }
}

module attributes {stable_mosaic.version = 11 : i64} {
  func.func @_res_attn_kernel(%arg0: i32, %arg1: memref<1x16x64xf32, #tpu.memory_space<vmem>>, %arg2: memref<16x64xf32, #tpu.memory_space<vmem>>, %arg3: memref<1x64xf32, #tpu.memory_space<vmem>>, %arg4: memref<1x64xf32, #tpu.memory_space<vmem>>, %arg5: memref<64x192xbf16, #tpu.memory_space<vmem>>, %arg6: memref<1x192xf32, #tpu.memory_space<vmem>>, %arg7: memref<64x64xbf16, #tpu.memory_space<vmem>>, %arg8: memref<1x64xf32, #tpu.memory_space<vmem>>, %arg9: memref<1x16x16xf32, #tpu.memory_space<vmem>>, %arg10: memref<16x64xf32, #tpu.memory_space<vmem>>) attributes {dimension_semantics = [#tpu.dimension_semantics<parallel>], iteration_bounds = array<i64: 2>, scalar_prefetch = 0 : i64, scratch_operands = 1 : i64, tpu.core_type = #tpu.core_type<tc>, window_params = [{transform_indices = @transform_0, window_bounds = array<i64: 1, 16, 64>}, {pipeline_mode = #tpu.pipeline_mode<synchronous>, transform_indices = @transform_1, window_bounds = array<i64: 16, 64>}, {pipeline_mode = #tpu.pipeline_mode<synchronous>, transform_indices = @transform_2, window_bounds = array<i64: 1, 64>}, {pipeline_mode = #tpu.pipeline_mode<synchronous>, transform_indices = @transform_3, window_bounds = array<i64: 1, 64>}, {pipeline_mode = #tpu.pipeline_mode<synchronous>, transform_indices = @transform_4, window_bounds = array<i64: 64, 192>}, {pipeline_mode = #tpu.pipeline_mode<synchronous>, transform_indices = @transform_5, window_bounds = array<i64: 1, 192>}, {pipeline_mode = #tpu.pipeline_mode<synchronous>, transform_indices = @transform_6, window_bounds = array<i64: 64, 64>}, {pipeline_mode = #tpu.pipeline_mode<synchronous>, transform_indices = @transform_7, window_bounds = array<i64: 1, 64>}, {transform_indices = @transform_8, window_bounds = array<i64: 1, 16, 16>}]} {
    %c0 = arith.constant 0 : index
    %c0_0 = arith.constant 0 : index
    %c0_1 = arith.constant 0 : index
    %0 = vector.load %arg1[%c0, %c0_0, %c0_1] : memref<1x16x64xf32, #tpu.memory_space<vmem>>, vector<1x16x64xf32>
    %1 = vector.shape_cast %0 : vector<1x16x64xf32> to vector<16x64xf32>
    %c0_2 = arith.constant 0 : index
    %c0_3 = arith.constant 0 : index
    %2 = vector.load %arg2[%c0_2, %c0_3] : memref<16x64xf32, #tpu.memory_space<vmem>>, vector<16x64xf32>
    %3 = arith.addf %1, %2 : vector<16x64xf32>
    %cst = arith.constant dense<0.000000e+00> : vector<16xf32>
    %4 = vector.multi_reduction <add>, %3, %cst [1] : vector<16x64xf32> to vector<16xf32>
    %5 = vector.shape_cast %4 : vector<16xf32> to vector<16x1xf32>
    %cst_4 = arith.constant 6.400000e+01 : f32
    %6 = vector.broadcast %cst_4 : f32 to vector<16x1xf32>
    %7 = arith.divf %5, %6 : vector<16x1xf32>
    %8 = vector.broadcast %7 : vector<16x1xf32> to vector<16x64xf32>
    %9 = arith.subf %3, %8 : vector<16x64xf32>
    %10 = arith.mulf %9, %9 : vector<16x64xf32>
    %cst_5 = arith.constant dense<0.000000e+00> : vector<16xf32>
    %11 = vector.multi_reduction <add>, %10, %cst_5 [1] : vector<16x64xf32> to vector<16xf32>
    %12 = vector.shape_cast %11 : vector<16xf32> to vector<16x1xf32>
    %cst_6 = arith.constant 6.400000e+01 : f32
    %13 = vector.broadcast %cst_6 : f32 to vector<16x1xf32>
    %14 = arith.divf %12, %13 : vector<16x1xf32>
    %cst_7 = arith.constant 9.99999974E-6 : f32
    %15 = vector.broadcast %cst_7 : f32 to vector<16x1xf32>
    %16 = arith.addf %14, %15 : vector<16x1xf32>
    %17 = math.rsqrt %16 : vector<16x1xf32>
    %18 = vector.broadcast %17 : vector<16x1xf32> to vector<16x64xf32>
    %19 = arith.mulf %9, %18 : vector<16x64xf32>
    %c0_8 = arith.constant 0 : index
    %c0_9 = arith.constant 0 : index
    %20 = vector.load %arg3[%c0_8, %c0_9] : memref<1x64xf32, #tpu.memory_space<vmem>>, vector<1x64xf32>
    %21 = vector.broadcast %20 : vector<1x64xf32> to vector<16x64xf32>
    %22 = arith.mulf %19, %21 : vector<16x64xf32>
    %c0_10 = arith.constant 0 : index
    %c0_11 = arith.constant 0 : index
    %23 = vector.load %arg4[%c0_10, %c0_11] : memref<1x64xf32, #tpu.memory_space<vmem>>, vector<1x64xf32>
    %24 = vector.broadcast %23 : vector<1x64xf32> to vector<16x64xf32>
    %25 = arith.addf %22, %24 : vector<16x64xf32>
    %26 = arith.truncf %25 : vector<16x64xf32> to vector<16x64xbf16>
    %c0_12 = arith.constant 0 : index
    %c0_13 = arith.constant 0 : index
    %27 = vector.load %arg5[%c0_12, %c0_13] : memref<64x192xbf16, #tpu.memory_space<vmem>>, vector<64x192xbf16>
    %cst_14 = arith.constant dense<0.000000e+00> : vector<16x192xf32>
    %28 = tpu.matmul %26, %27, %cst_14 {dimension_numbers = #tpu.dot_dimension_numbers<[1], [0], [0], [1], [0, 0, 1, 1], [], []>} : vector<16x64xbf16>, vector<64x192xbf16>, vector<16x192xf32> -> vector<16x192xf32>
    %c0_15 = arith.constant 0 : index
    %c0_16 = arith.constant 0 : index
    %29 = vector.load %arg6[%c0_15, %c0_16] : memref<1x192xf32, #tpu.memory_space<vmem>>, vector<1x192xf32>
    %30 = vector.broadcast %29 : vector<1x192xf32> to vector<16x192xf32>
    %31 = arith.addf %28, %30 : vector<16x192xf32>
    %32 = vector.extract_strided_slice %31 {offsets = [0, 0], sizes = [16, 16], strides = [1, 1]} : vector<16x192xf32> to vector<16x16xf32>
    %33 = arith.truncf %32 : vector<16x16xf32> to vector<16x16xbf16>
    %34 = vector.extract_strided_slice %31 {offsets = [0, 64], sizes = [16, 16], strides = [1, 1]} : vector<16x192xf32> to vector<16x16xf32>
    %35 = arith.truncf %34 : vector<16x16xf32> to vector<16x16xbf16>
    %36 = vector.extract_strided_slice %31 {offsets = [0, 128], sizes = [16, 16], strides = [1, 1]} : vector<16x192xf32> to vector<16x16xf32>
    %37 = arith.truncf %36 : vector<16x16xf32> to vector<16x16xbf16>
    %cst_17 = arith.constant dense<0.000000e+00> : vector<16x16xf32>
    %38 = tpu.matmul %33, %35, %cst_17 {dimension_numbers = #tpu.dot_dimension_numbers<[1], [1], [0], [0], [0, 0, 1, 0], [], []>} : vector<16x16xbf16>, vector<16x16xbf16>, vector<16x16xf32> -> vector<16x16xf32>
    %cst_18 = arith.constant dense<0xFF800000> : vector<16xf32>
    %39 = vector.multi_reduction <maximumf>, %38, %cst_18 [1] : vector<16x16xf32> to vector<16xf32>
    %40 = vector.shape_cast %39 : vector<16xf32> to vector<16x1xf32>
    %41 = vector.broadcast %40 : vector<16x1xf32> to vector<16x16xf32>
    %42 = arith.subf %38, %41 : vector<16x16xf32>
    %43 = math.exp %42 : vector<16x16xf32>
    %cst_19 = arith.constant dense<0.000000e+00> : vector<16xf32>
    %44 = vector.multi_reduction <add>, %43, %cst_19 [1] : vector<16x16xf32> to vector<16xf32>
    %45 = vector.shape_cast %44 : vector<16xf32> to vector<16x1xf32>
    %46 = tpu.reciprocal %45 {approx = true} : vector<16x1xf32> -> vector<16x1xf32>
    %47 = vector.broadcast %46 : vector<16x1xf32> to vector<16x16xf32>
    %48 = arith.mulf %43, %47 : vector<16x16xf32>
    %49 = arith.truncf %48 : vector<16x16xf32> to vector<16x16xbf16>
    %cst_20 = arith.constant dense<0.000000e+00> : vector<16x16xf32>
    %50 = tpu.matmul %49, %37, %cst_20 {dimension_numbers = #tpu.dot_dimension_numbers<[1], [0], [0], [1], [0, 0, 1, 1], [], []>} : vector<16x16xbf16>, vector<16x16xbf16>, vector<16x16xf32> -> vector<16x16xf32>
    %c0_21 = arith.constant 0 : index
    %c0_22 = arith.constant 0 : index
    %51 = vector.load %arg10[%c0_21, %c0_22] : memref<16x64xf32, #tpu.memory_space<vmem>>, vector<16x16xf32>
    tpu.vector_store %arg10[%c0_21, %c0_22], %50 {strides = array<i32>} : memref<16x64xf32, #tpu.memory_space<vmem>>, vector<16x16xf32>,
    %52 = vector.extract_strided_slice %31 {offsets = [0, 16], sizes = [16, 16], strides = [1, 1]} : vector<16x192xf32> to vector<16x16xf32>
    %53 = arith.truncf %52 : vector<16x16xf32> to vector<16x16xbf16>
    %54 = vector.extract_strided_slice %31 {offsets = [0, 80], sizes = [16, 16], strides = [1, 1]} : vector<16x192xf32> to vector<16x16xf32>
    %55 = arith.truncf %54 : vector<16x16xf32> to vector<16x16xbf16>
    %56 = vector.extract_strided_slice %31 {offsets = [0, 144], sizes = [16, 16], strides = [1, 1]} : vector<16x192xf32> to vector<16x16xf32>
    %57 = arith.truncf %56 : vector<16x16xf32> to vector<16x16xbf16>
    %cst_23 = arith.constant dense<0.000000e+00> : vector<16x16xf32>
    %58 = tpu.matmul %53, %55, %cst_23 {dimension_numbers = #tpu.dot_dimension_numbers<[1], [1], [0], [0], [0, 0, 1, 0], [], []>} : vector<16x16xbf16>, vector<16x16xbf16>, vector<16x16xf32> -> vector<16x16xf32>
    %cst_24 = arith.constant dense<0xFF800000> : vector<16xf32>
    %59 = vector.multi_reduction <maximumf>, %58, %cst_24 [1] : vector<16x16xf32> to vector<16xf32>
    %60 = vector.shape_cast %59 : vector<16xf32> to vector<16x1xf32>
    %61 = vector.broadcast %60 : vector<16x1xf32> to vector<16x16xf32>
    %62 = arith.subf %58, %61 : vector<16x16xf32>
    %63 = math.exp %62 : vector<16x16xf32>
    %cst_25 = arith.constant dense<0.000000e+00> : vector<16xf32>
    %64 = vector.multi_reduction <add>, %63, %cst_25 [1] : vector<16x16xf32> to vector<16xf32>
    %65 = vector.shape_cast %64 : vector<16xf32> to vector<16x1xf32>
    %66 = tpu.reciprocal %65 {approx = true} : vector<16x1xf32> -> vector<16x1xf32>
    %67 = vector.broadcast %66 : vector<16x1xf32> to vector<16x16xf32>
    %68 = arith.mulf %63, %67 : vector<16x16xf32>
    %69 = arith.truncf %68 : vector<16x16xf32> to vector<16x16xbf16>
    %cst_26 = arith.constant dense<0.000000e+00> : vector<16x16xf32>
    %70 = tpu.matmul %69, %57, %cst_26 {dimension_numbers = #tpu.dot_dimension_numbers<[1], [0], [0], [1], [0, 0, 1, 1], [], []>} : vector<16x16xbf16>, vector<16x16xbf16>, vector<16x16xf32> -> vector<16x16xf32>
    %c0_27 = arith.constant 0 : index
    %c16 = arith.constant 16 : index
    %71 = vector.load %arg10[%c0_27, %c16] : memref<16x64xf32, #tpu.memory_space<vmem>>, vector<16x16xf32>
    tpu.vector_store %arg10[%c0_27, %c16], %70 {strides = array<i32>} : memref<16x64xf32, #tpu.memory_space<vmem>>, vector<16x16xf32>,
    %72 = vector.extract_strided_slice %31 {offsets = [0, 32], sizes = [16, 16], strides = [1, 1]} : vector<16x192xf32> to vector<16x16xf32>
    %73 = arith.truncf %72 : vector<16x16xf32> to vector<16x16xbf16>
    %74 = vector.extract_strided_slice %31 {offsets = [0, 96], sizes = [16, 16], strides = [1, 1]} : vector<16x192xf32> to vector<16x16xf32>
    %75 = arith.truncf %74 : vector<16x16xf32> to vector<16x16xbf16>
    %76 = vector.extract_strided_slice %31 {offsets = [0, 160], sizes = [16, 16], strides = [1, 1]} : vector<16x192xf32> to vector<16x16xf32>
    %77 = arith.truncf %76 : vector<16x16xf32> to vector<16x16xbf16>
    %cst_28 = arith.constant dense<0.000000e+00> : vector<16x16xf32>
    %78 = tpu.matmul %73, %75, %cst_28 {dimension_numbers = #tpu.dot_dimension_numbers<[1], [1], [0], [0], [0, 0, 1, 0], [], []>} : vector<16x16xbf16>, vector<16x16xbf16>, vector<16x16xf32> -> vector<16x16xf32>
    %cst_29 = arith.constant dense<0xFF800000> : vector<16xf32>
    %79 = vector.multi_reduction <maximumf>, %78, %cst_29 [1] : vector<16x16xf32> to vector<16xf32>
    %80 = vector.shape_cast %79 : vector<16xf32> to vector<16x1xf32>
    %81 = vector.broadcast %80 : vector<16x1xf32> to vector<16x16xf32>
    %82 = arith.subf %78, %81 : vector<16x16xf32>
    %83 = math.exp %82 : vector<16x16xf32>
    %cst_30 = arith.constant dense<0.000000e+00> : vector<16xf32>
    %84 = vector.multi_reduction <add>, %83, %cst_30 [1] : vector<16x16xf32> to vector<16xf32>
    %85 = vector.shape_cast %84 : vector<16xf32> to vector<16x1xf32>
    %86 = tpu.reciprocal %85 {approx = true} : vector<16x1xf32> -> vector<16x1xf32>
    %87 = vector.broadcast %86 : vector<16x1xf32> to vector<16x16xf32>
    %88 = arith.mulf %83, %87 : vector<16x16xf32>
    %89 = arith.truncf %88 : vector<16x16xf32> to vector<16x16xbf16>
    %cst_31 = arith.constant dense<0.000000e+00> : vector<16x16xf32>
    %90 = tpu.matmul %89, %77, %cst_31 {dimension_numbers = #tpu.dot_dimension_numbers<[1], [0], [0], [1], [0, 0, 1, 1], [], []>} : vector<16x16xbf16>, vector<16x16xbf16>, vector<16x16xf32> -> vector<16x16xf32>
    %c0_32 = arith.constant 0 : index
    %c32 = arith.constant 32 : index
    %91 = vector.load %arg10[%c0_32, %c32] : memref<16x64xf32, #tpu.memory_space<vmem>>, vector<16x16xf32>
    tpu.vector_store %arg10[%c0_32, %c32], %90 {strides = array<i32>} : memref<16x64xf32, #tpu.memory_space<vmem>>, vector<16x16xf32>,
    %92 = vector.extract_strided_slice %31 {offsets = [0, 48], sizes = [16, 16], strides = [1, 1]} : vector<16x192xf32> to vector<16x16xf32>
    %93 = arith.truncf %92 : vector<16x16xf32> to vector<16x16xbf16>
    %94 = vector.extract_strided_slice %31 {offsets = [0, 112], sizes = [16, 16], strides = [1, 1]} : vector<16x192xf32> to vector<16x16xf32>
    %95 = arith.truncf %94 : vector<16x16xf32> to vector<16x16xbf16>
    %96 = vector.extract_strided_slice %31 {offsets = [0, 176], sizes = [16, 16], strides = [1, 1]} : vector<16x192xf32> to vector<16x16xf32>
    %97 = arith.truncf %96 : vector<16x16xf32> to vector<16x16xbf16>
    %cst_33 = arith.constant dense<0.000000e+00> : vector<16x16xf32>
    %98 = tpu.matmul %93, %95, %cst_33 {dimension_numbers = #tpu.dot_dimension_numbers<[1], [1], [0], [0], [0, 0, 1, 0], [], []>} : vector<16x16xbf16>, vector<16x16xbf16>, vector<16x16xf32> -> vector<16x16xf32>
    %cst_34 = arith.constant dense<0xFF800000> : vector<16xf32>
    %99 = vector.multi_reduction <maximumf>, %98, %cst_34 [1] : vector<16x16xf32> to vector<16xf32>
    %100 = vector.shape_cast %99 : vector<16xf32> to vector<16x1xf32>
    %101 = vector.broadcast %100 : vector<16x1xf32> to vector<16x16xf32>
    %102 = arith.subf %98, %101 : vector<16x16xf32>
    %103 = math.exp %102 : vector<16x16xf32>
    %cst_35 = arith.constant dense<0.000000e+00> : vector<16xf32>
    %104 = vector.multi_reduction <add>, %103, %cst_35 [1] : vector<16x16xf32> to vector<16xf32>
    %105 = vector.shape_cast %104 : vector<16xf32> to vector<16x1xf32>
    %106 = tpu.reciprocal %105 {approx = true} : vector<16x1xf32> -> vector<16x1xf32>
    %107 = vector.broadcast %106 : vector<16x1xf32> to vector<16x16xf32>
    %108 = arith.mulf %103, %107 : vector<16x16xf32>
    %109 = arith.truncf %108 : vector<16x16xf32> to vector<16x16xbf16>
    %cst_36 = arith.constant dense<0.000000e+00> : vector<16x16xf32>
    %110 = tpu.matmul %109, %97, %cst_36 {dimension_numbers = #tpu.dot_dimension_numbers<[1], [0], [0], [1], [0, 0, 1, 1], [], []>} : vector<16x16xbf16>, vector<16x16xbf16>, vector<16x16xf32> -> vector<16x16xf32>
    %c0_37 = arith.constant 0 : index
    %c48 = arith.constant 48 : index
    %111 = vector.load %arg10[%c0_37, %c48] : memref<16x64xf32, #tpu.memory_space<vmem>>, vector<16x16xf32>
    tpu.vector_store %arg10[%c0_37, %c48], %110 {strides = array<i32>} : memref<16x64xf32, #tpu.memory_space<vmem>>, vector<16x16xf32>,
    %c0_38 = arith.constant 0 : index
    %c0_39 = arith.constant 0 : index
    %112 = vector.load %arg10[%c0_38, %c0_39] : memref<16x64xf32, #tpu.memory_space<vmem>>, vector<16x64xf32>
    %113 = arith.truncf %112 : vector<16x64xf32> to vector<16x64xbf16>
    %c0_40 = arith.constant 0 : index
    %c0_41 = arith.constant 0 : index
    %114 = vector.load %arg7[%c0_40, %c0_41] : memref<64x64xbf16, #tpu.memory_space<vmem>>, vector<64x64xbf16>
    %cst_42 = arith.constant dense<0.000000e+00> : vector<16x64xf32>
    %115 = tpu.matmul %113, %114, %cst_42 {dimension_numbers = #tpu.dot_dimension_numbers<[1], [0], [0], [1], [0, 0, 1, 1], [], []>} : vector<16x64xbf16>, vector<64x64xbf16>, vector<16x64xf32> -> vector<16x64xf32>
    %c0_43 = arith.constant 0 : index
    %c0_44 = arith.constant 0 : index
    %116 = vector.load %arg8[%c0_43, %c0_44] : memref<1x64xf32, #tpu.memory_space<vmem>>, vector<1x64xf32>
    %117 = vector.broadcast %116 : vector<1x64xf32> to vector<16x64xf32>
    %118 = arith.addf %115, %117 : vector<16x64xf32>
    %119 = arith.addf %3, %118 : vector<16x64xf32>
    %120 = vector.extract_strided_slice %119 {offsets = [0, 0], sizes = [16, 16], strides = [1, 1]} : vector<16x64xf32> to vector<16x16xf32>
    %121 = vector.extract_strided_slice %119 {offsets = [0, 16], sizes = [16, 16], strides = [1, 1]} : vector<16x64xf32> to vector<16x16xf32>
    %122 = arith.maximumf %120, %121 : vector<16x16xf32>
    %123 = vector.extract_strided_slice %119 {offsets = [0, 32], sizes = [16, 16], strides = [1, 1]} : vector<16x64xf32> to vector<16x16xf32>
    %124 = vector.extract_strided_slice %119 {offsets = [0, 48], sizes = [16, 16], strides = [1, 1]} : vector<16x64xf32> to vector<16x16xf32>
    %125 = arith.maximumf %123, %124 : vector<16x16xf32>
    %126 = arith.maximumf %122, %125 : vector<16x16xf32>
    %c0_45 = arith.constant 0 : index
    %c0_46 = arith.constant 0 : index
    %c0_47 = arith.constant 0 : index
    %127 = vector.load %arg9[%c0_45, %c0_46, %c0_47] : memref<1x16x16xf32, #tpu.memory_space<vmem>>, vector<1x16x16xf32>
    %128 = vector.shape_cast %127 : vector<1x16x16xf32> to vector<16x16xf32>
    %129 = vector.shape_cast %126 : vector<16x16xf32> to vector<1x16x16xf32>
    tpu.vector_store %arg9[%c0_45, %c0_46, %c0_47], %129 {strides = array<i32>} : memref<1x16x16xf32, #tpu.memory_space<vmem>>, vector<1x16x16xf32>,
    return
  }
  func.func @transform_0(%arg0: i32) -> (i32, i32, i32) {
    %c0_i32 = arith.constant 0 : i32
    %c0_i32_0 = arith.constant 0 : i32
    %c0_i32_1 = arith.constant 0 : i32
    return %arg0, %c0_i32, %c0_i32_0 : i32, i32, i32
  }
  func.func @transform_1(%arg0: i32) -> (i32, i32) {
    %c0_i32 = arith.constant 0 : i32
    %c0_i32_0 = arith.constant 0 : i32
    %c0_i32_1 = arith.constant 0 : i32
    return %c0_i32, %c0_i32_0 : i32, i32
  }
  func.func @transform_2(%arg0: i32) -> (i32, i32) {
    %c0_i32 = arith.constant 0 : i32
    %c0_i32_0 = arith.constant 0 : i32
    %c0_i32_1 = arith.constant 0 : i32
    return %c0_i32, %c0_i32_0 : i32, i32
  }
  func.func @transform_3(%arg0: i32) -> (i32, i32) {
    %c0_i32 = arith.constant 0 : i32
    %c0_i32_0 = arith.constant 0 : i32
    %c0_i32_1 = arith.constant 0 : i32
    return %c0_i32, %c0_i32_0 : i32, i32
  }
  func.func @transform_4(%arg0: i32) -> (i32, i32) {
    %c0_i32 = arith.constant 0 : i32
    %c0_i32_0 = arith.constant 0 : i32
    %c0_i32_1 = arith.constant 0 : i32
    return %c0_i32, %c0_i32_0 : i32, i32
  }
  func.func @transform_5(%arg0: i32) -> (i32, i32) {
    %c0_i32 = arith.constant 0 : i32
    %c0_i32_0 = arith.constant 0 : i32
    %c0_i32_1 = arith.constant 0 : i32
    return %c0_i32, %c0_i32_0 : i32, i32
  }
  func.func @transform_6(%arg0: i32) -> (i32, i32) {
    %c0_i32 = arith.constant 0 : i32
    %c0_i32_0 = arith.constant 0 : i32
    %c0_i32_1 = arith.constant 0 : i32
    return %c0_i32, %c0_i32_0 : i32, i32
  }
  func.func @transform_7(%arg0: i32) -> (i32, i32) {
    %c0_i32 = arith.constant 0 : i32
    %c0_i32_0 = arith.constant 0 : i32
    %c0_i32_1 = arith.constant 0 : i32
    return %c0_i32, %c0_i32_0 : i32, i32
  }
  func.func @transform_8(%arg0: i32) -> (i32, i32, i32) {
    %c0_i32 = arith.constant 0 : i32
    %c0_i32_0 = arith.constant 0 : i32
    %c0_i32_1 = arith.constant 0 : i32
    return %arg0, %c0_i32, %c0_i32_0 : i32, i32, i32
  }
}

module attributes {stable_mosaic.version = 11 : i64} {
  func.func @_conv3x3_kernel(%arg0: i32, %arg1: memref<1x6x6x16xbf16, #tpu.memory_space<vmem>>, %arg2: memref<3x48x32xbf16, #tpu.memory_space<vmem>>, %arg3: memref<1x32xf32, #tpu.memory_space<vmem>>, %arg4: memref<1x16x32xf32, #tpu.memory_space<vmem>>) attributes {dimension_semantics = [#tpu.dimension_semantics<parallel>], iteration_bounds = array<i64: 2>, scalar_prefetch = 0 : i64, scratch_operands = 0 : i64, tpu.core_type = #tpu.core_type<tc>, window_params = [{transform_indices = @transform_0, window_bounds = array<i64: 1, 6, 6, 16>}, {pipeline_mode = #tpu.pipeline_mode<synchronous>, transform_indices = @transform_1, window_bounds = array<i64: 3, 48, 32>}, {pipeline_mode = #tpu.pipeline_mode<synchronous>, transform_indices = @transform_2, window_bounds = array<i64: 1, 32>}, {transform_indices = @transform_3, window_bounds = array<i64: 1, 16, 32>}]} {
    %c0 = arith.constant 0 : index
    %c0_0 = arith.constant 0 : index
    %c0_1 = arith.constant 0 : index
    %c0_2 = arith.constant 0 : index
    %0 = vector.load %arg1[%c0, %c0_0, %c0_1, %c0_2] : memref<1x6x6x16xbf16, #tpu.memory_space<vmem>>, vector<1x4x4x16xbf16>
    %1 = vector.shape_cast %0 : vector<1x4x4x16xbf16> to vector<4x4x16xbf16>
    %c0_3 = arith.constant 0 : index
    %c0_4 = arith.constant 0 : index
    %c1 = arith.constant 1 : index
    %c0_5 = arith.constant 0 : index
    %2 = vector.load %arg1[%c0_3, %c0_4, %c1, %c0_5] : memref<1x6x6x16xbf16, #tpu.memory_space<vmem>>, vector<1x4x4x16xbf16>
    %3 = vector.shape_cast %2 : vector<1x4x4x16xbf16> to vector<4x4x16xbf16>
    %c0_6 = arith.constant 0 : index
    %c0_7 = arith.constant 0 : index
    %c2 = arith.constant 2 : index
    %c0_8 = arith.constant 0 : index
    %4 = vector.load %arg1[%c0_6, %c0_7, %c2, %c0_8] : memref<1x6x6x16xbf16, #tpu.memory_space<vmem>>, vector<1x4x4x16xbf16>
    %5 = vector.shape_cast %4 : vector<1x4x4x16xbf16> to vector<4x4x16xbf16>
    %6 = tpu.concatenate %1, %3, %5 in 2 : vector<4x4x16xbf16>, vector<4x4x16xbf16>, vector<4x4x16xbf16> -> vector<4x4x48xbf16>
    %7 = vector.shape_cast %6 : vector<4x4x48xbf16> to vector<16x48xbf16>
    %c0_9 = arith.constant 0 : index
    %c0_10 = arith.constant 0 : index
    %c0_11 = arith.constant 0 : index
    %8 = vector.load %arg2[%c0_9, %c0_10, %c0_11] : memref<3x48x32xbf16, #tpu.memory_space<vmem>>, vector<1x48x32xbf16>
    %9 = vector.shape_cast %8 : vector<1x48x32xbf16> to vector<48x32xbf16>
    %cst = arith.constant dense<0.000000e+00> : vector<16x32xf32>
    %10 = tpu.matmul %7, %9, %cst {dimension_numbers = #tpu.dot_dimension_numbers<[1], [0], [0], [1], [0, 0, 1, 1], [], []>} : vector<16x48xbf16>, vector<48x32xbf16>, vector<16x32xf32> -> vector<16x32xf32>
    %c0_12 = arith.constant 0 : index
    %c1_13 = arith.constant 1 : index
    %c0_14 = arith.constant 0 : index
    %c0_15 = arith.constant 0 : index
    %11 = vector.load %arg1[%c0_12, %c1_13, %c0_14, %c0_15] : memref<1x6x6x16xbf16, #tpu.memory_space<vmem>>, vector<1x4x4x16xbf16>
    %12 = vector.shape_cast %11 : vector<1x4x4x16xbf16> to vector<4x4x16xbf16>
    %c0_16 = arith.constant 0 : index
    %c1_17 = arith.constant 1 : index
    %c1_18 = arith.constant 1 : index
    %c0_19 = arith.constant 0 : index
    %13 = vector.load %arg1[%c0_16, %c1_17, %c1_18, %c0_19] : memref<1x6x6x16xbf16, #tpu.memory_space<vmem>>, vector<1x4x4x16xbf16>
    %14 = vector.shape_cast %13 : vector<1x4x4x16xbf16> to vector<4x4x16xbf16>
    %c0_20 = arith.constant 0 : index
    %c1_21 = arith.constant 1 : index
    %c2_22 = arith.constant 2 : index
    %c0_23 = arith.constant 0 : index
    %15 = vector.load %arg1[%c0_20, %c1_21, %c2_22, %c0_23] : memref<1x6x6x16xbf16, #tpu.memory_space<vmem>>, vector<1x4x4x16xbf16>
    %16 = vector.shape_cast %15 : vector<1x4x4x16xbf16> to vector<4x4x16xbf16>
    %17 = tpu.concatenate %12, %14, %16 in 2 : vector<4x4x16xbf16>, vector<4x4x16xbf16>, vector<4x4x16xbf16> -> vector<4x4x48xbf16>
    %18 = vector.shape_cast %17 : vector<4x4x48xbf16> to vector<16x48xbf16>
    %c1_24 = arith.constant 1 : index
    %c0_25 = arith.constant 0 : index
    %c0_26 = arith.constant 0 : index
    %19 = vector.load %arg2[%c1_24, %c0_25, %c0_26] : memref<3x48x32xbf16, #tpu.memory_space<vmem>>, vector<1x48x32xbf16>
    %20 = vector.shape_cast %19 : vector<1x48x32xbf16> to vector<48x32xbf16>
    %cst_27 = arith.constant dense<0.000000e+00> : vector<16x32xf32>
    %21 = tpu.matmul %18, %20, %cst_27 {dimension_numbers = #tpu.dot_dimension_numbers<[1], [0], [0], [1], [0, 0, 1, 1], [], []>} : vector<16x48xbf16>, vector<48x32xbf16>, vector<16x32xf32> -> vector<16x32xf32>
    %22 = arith.addf %10, %21 : vector<16x32xf32>
    %c0_28 = arith.constant 0 : index
    %c2_29 = arith.constant 2 : index
    %c0_30 = arith.constant 0 : index
    %c0_31 = arith.constant 0 : index
    %23 = vector.load %arg1[%c0_28, %c2_29, %c0_30, %c0_31] : memref<1x6x6x16xbf16, #tpu.memory_space<vmem>>, vector<1x4x4x16xbf16>
    %24 = vector.shape_cast %23 : vector<1x4x4x16xbf16> to vector<4x4x16xbf16>
    %c0_32 = arith.constant 0 : index
    %c2_33 = arith.constant 2 : index
    %c1_34 = arith.constant 1 : index
    %c0_35 = arith.constant 0 : index
    %25 = vector.load %arg1[%c0_32, %c2_33, %c1_34, %c0_35] : memref<1x6x6x16xbf16, #tpu.memory_space<vmem>>, vector<1x4x4x16xbf16>
    %26 = vector.shape_cast %25 : vector<1x4x4x16xbf16> to vector<4x4x16xbf16>
    %c0_36 = arith.constant 0 : index
    %c2_37 = arith.constant 2 : index
    %c2_38 = arith.constant 2 : index
    %c0_39 = arith.constant 0 : index
    %27 = vector.load %arg1[%c0_36, %c2_37, %c2_38, %c0_39] : memref<1x6x6x16xbf16, #tpu.memory_space<vmem>>, vector<1x4x4x16xbf16>
    %28 = vector.shape_cast %27 : vector<1x4x4x16xbf16> to vector<4x4x16xbf16>
    %29 = tpu.concatenate %24, %26, %28 in 2 : vector<4x4x16xbf16>, vector<4x4x16xbf16>, vector<4x4x16xbf16> -> vector<4x4x48xbf16>
    %30 = vector.shape_cast %29 : vector<4x4x48xbf16> to vector<16x48xbf16>
    %c2_40 = arith.constant 2 : index
    %c0_41 = arith.constant 0 : index
    %c0_42 = arith.constant 0 : index
    %31 = vector.load %arg2[%c2_40, %c0_41, %c0_42] : memref<3x48x32xbf16, #tpu.memory_space<vmem>>, vector<1x48x32xbf16>
    %32 = vector.shape_cast %31 : vector<1x48x32xbf16> to vector<48x32xbf16>
    %cst_43 = arith.constant dense<0.000000e+00> : vector<16x32xf32>
    %33 = tpu.matmul %30, %32, %cst_43 {dimension_numbers = #tpu.dot_dimension_numbers<[1], [0], [0], [1], [0, 0, 1, 1], [], []>} : vector<16x48xbf16>, vector<48x32xbf16>, vector<16x32xf32> -> vector<16x32xf32>
    %34 = arith.addf %22, %33 : vector<16x32xf32>
    %c0_44 = arith.constant 0 : index
    %c0_45 = arith.constant 0 : index
    %35 = vector.load %arg3[%c0_44, %c0_45] : memref<1x32xf32, #tpu.memory_space<vmem>>, vector<1x32xf32>
    %36 = vector.broadcast %35 : vector<1x32xf32> to vector<16x32xf32>
    %37 = arith.addf %34, %36 : vector<16x32xf32>
    %c0_46 = arith.constant 0 : index
    %c0_47 = arith.constant 0 : index
    %c0_48 = arith.constant 0 : index
    %38 = vector.load %arg4[%c0_46, %c0_47, %c0_48] : memref<1x16x32xf32, #tpu.memory_space<vmem>>, vector<1x16x32xf32>
    %39 = vector.shape_cast %38 : vector<1x16x32xf32> to vector<16x32xf32>
    %40 = vector.shape_cast %37 : vector<16x32xf32> to vector<1x16x32xf32>
    tpu.vector_store %arg4[%c0_46, %c0_47, %c0_48], %40 {strides = array<i32>} : memref<1x16x32xf32, #tpu.memory_space<vmem>>, vector<1x16x32xf32>,
    return
  }
  func.func @transform_0(%arg0: i32) -> (i32, i32, i32, i32) {
    %c0_i32 = arith.constant 0 : i32
    %c0_i32_0 = arith.constant 0 : i32
    %c0_i32_1 = arith.constant 0 : i32
    %c0_i32_2 = arith.constant 0 : i32
    return %arg0, %c0_i32, %c0_i32_0, %c0_i32_1 : i32, i32, i32, i32
  }
  func.func @transform_1(%arg0: i32) -> (i32, i32, i32) {
    %c0_i32 = arith.constant 0 : i32
    %c0_i32_0 = arith.constant 0 : i32
    %c0_i32_1 = arith.constant 0 : i32
    %c0_i32_2 = arith.constant 0 : i32
    return %c0_i32, %c0_i32_0, %c0_i32_1 : i32, i32, i32
  }
  func.func @transform_2(%arg0: i32) -> (i32, i32) {
    %c0_i32 = arith.constant 0 : i32
    %c0_i32_0 = arith.constant 0 : i32
    %c0_i32_1 = arith.constant 0 : i32
    return %c0_i32, %c0_i32_0 : i32, i32
  }
  func.func @transform_3(%arg0: i32) -> (i32, i32, i32) {
    %c0_i32 = arith.constant 0 : i32
    %c0_i32_0 = arith.constant 0 : i32
    %c0_i32_1 = arith.constant 0 : i32
    return %arg0, %c0_i32, %c0_i32_0 : i32, i32, i32
  }
}

module attributes {stable_mosaic.version = 11 : i64} {
  func.func @_res_attn_kernel(%arg0: i32, %arg1: memref<1x16x32xf32, #tpu.memory_space<vmem>>, %arg2: memref<16x32xf32, #tpu.memory_space<vmem>>, %arg3: memref<1x32xf32, #tpu.memory_space<vmem>>, %arg4: memref<1x32xf32, #tpu.memory_space<vmem>>, %arg5: memref<32x96xbf16, #tpu.memory_space<vmem>>, %arg6: memref<1x96xf32, #tpu.memory_space<vmem>>, %arg7: memref<32x32xbf16, #tpu.memory_space<vmem>>, %arg8: memref<1x32xf32, #tpu.memory_space<vmem>>, %arg9: memref<1x16x32xf32, #tpu.memory_space<vmem>>, %arg10: memref<16x32xf32, #tpu.memory_space<vmem>>) attributes {dimension_semantics = [#tpu.dimension_semantics<parallel>], iteration_bounds = array<i64: 2>, scalar_prefetch = 0 : i64, scratch_operands = 1 : i64, tpu.core_type = #tpu.core_type<tc>, window_params = [{transform_indices = @transform_0, window_bounds = array<i64: 1, 16, 32>}, {pipeline_mode = #tpu.pipeline_mode<synchronous>, transform_indices = @transform_1, window_bounds = array<i64: 16, 32>}, {pipeline_mode = #tpu.pipeline_mode<synchronous>, transform_indices = @transform_2, window_bounds = array<i64: 1, 32>}, {pipeline_mode = #tpu.pipeline_mode<synchronous>, transform_indices = @transform_3, window_bounds = array<i64: 1, 32>}, {pipeline_mode = #tpu.pipeline_mode<synchronous>, transform_indices = @transform_4, window_bounds = array<i64: 32, 96>}, {pipeline_mode = #tpu.pipeline_mode<synchronous>, transform_indices = @transform_5, window_bounds = array<i64: 1, 96>}, {pipeline_mode = #tpu.pipeline_mode<synchronous>, transform_indices = @transform_6, window_bounds = array<i64: 32, 32>}, {pipeline_mode = #tpu.pipeline_mode<synchronous>, transform_indices = @transform_7, window_bounds = array<i64: 1, 32>}, {transform_indices = @transform_8, window_bounds = array<i64: 1, 16, 32>}]} {
    %c0 = arith.constant 0 : index
    %c0_0 = arith.constant 0 : index
    %c0_1 = arith.constant 0 : index
    %0 = vector.load %arg1[%c0, %c0_0, %c0_1] : memref<1x16x32xf32, #tpu.memory_space<vmem>>, vector<1x16x32xf32>
    %1 = vector.shape_cast %0 : vector<1x16x32xf32> to vector<16x32xf32>
    %c0_2 = arith.constant 0 : index
    %c0_3 = arith.constant 0 : index
    %2 = vector.load %arg2[%c0_2, %c0_3] : memref<16x32xf32, #tpu.memory_space<vmem>>, vector<16x32xf32>
    %3 = arith.addf %1, %2 : vector<16x32xf32>
    %cst = arith.constant dense<0.000000e+00> : vector<16xf32>
    %4 = vector.multi_reduction <add>, %3, %cst [1] : vector<16x32xf32> to vector<16xf32>
    %5 = vector.shape_cast %4 : vector<16xf32> to vector<16x1xf32>
    %cst_4 = arith.constant 3.200000e+01 : f32
    %6 = vector.broadcast %cst_4 : f32 to vector<16x1xf32>
    %7 = arith.divf %5, %6 : vector<16x1xf32>
    %8 = vector.broadcast %7 : vector<16x1xf32> to vector<16x32xf32>
    %9 = arith.subf %3, %8 : vector<16x32xf32>
    %10 = arith.mulf %9, %9 : vector<16x32xf32>
    %cst_5 = arith.constant dense<0.000000e+00> : vector<16xf32>
    %11 = vector.multi_reduction <add>, %10, %cst_5 [1] : vector<16x32xf32> to vector<16xf32>
    %12 = vector.shape_cast %11 : vector<16xf32> to vector<16x1xf32>
    %cst_6 = arith.constant 3.200000e+01 : f32
    %13 = vector.broadcast %cst_6 : f32 to vector<16x1xf32>
    %14 = arith.divf %12, %13 : vector<16x1xf32>
    %cst_7 = arith.constant 9.99999974E-6 : f32
    %15 = vector.broadcast %cst_7 : f32 to vector<16x1xf32>
    %16 = arith.addf %14, %15 : vector<16x1xf32>
    %17 = math.rsqrt %16 : vector<16x1xf32>
    %18 = vector.broadcast %17 : vector<16x1xf32> to vector<16x32xf32>
    %19 = arith.mulf %9, %18 : vector<16x32xf32>
    %c0_8 = arith.constant 0 : index
    %c0_9 = arith.constant 0 : index
    %20 = vector.load %arg3[%c0_8, %c0_9] : memref<1x32xf32, #tpu.memory_space<vmem>>, vector<1x32xf32>
    %21 = vector.broadcast %20 : vector<1x32xf32> to vector<16x32xf32>
    %22 = arith.mulf %19, %21 : vector<16x32xf32>
    %c0_10 = arith.constant 0 : index
    %c0_11 = arith.constant 0 : index
    %23 = vector.load %arg4[%c0_10, %c0_11] : memref<1x32xf32, #tpu.memory_space<vmem>>, vector<1x32xf32>
    %24 = vector.broadcast %23 : vector<1x32xf32> to vector<16x32xf32>
    %25 = arith.addf %22, %24 : vector<16x32xf32>
    %26 = arith.truncf %25 : vector<16x32xf32> to vector<16x32xbf16>
    %c0_12 = arith.constant 0 : index
    %c0_13 = arith.constant 0 : index
    %27 = vector.load %arg5[%c0_12, %c0_13] : memref<32x96xbf16, #tpu.memory_space<vmem>>, vector<32x96xbf16>
    %cst_14 = arith.constant dense<0.000000e+00> : vector<16x96xf32>
    %28 = tpu.matmul %26, %27, %cst_14 {dimension_numbers = #tpu.dot_dimension_numbers<[1], [0], [0], [1], [0, 0, 1, 1], [], []>} : vector<16x32xbf16>, vector<32x96xbf16>, vector<16x96xf32> -> vector<16x96xf32>
    %c0_15 = arith.constant 0 : index
    %c0_16 = arith.constant 0 : index
    %29 = vector.load %arg6[%c0_15, %c0_16] : memref<1x96xf32, #tpu.memory_space<vmem>>, vector<1x96xf32>
    %30 = vector.broadcast %29 : vector<1x96xf32> to vector<16x96xf32>
    %31 = arith.addf %28, %30 : vector<16x96xf32>
    %32 = vector.extract_strided_slice %31 {offsets = [0, 0], sizes = [16, 16], strides = [1, 1]} : vector<16x96xf32> to vector<16x16xf32>
    %33 = arith.truncf %32 : vector<16x16xf32> to vector<16x16xbf16>
    %34 = vector.extract_strided_slice %31 {offsets = [0, 32], sizes = [16, 16], strides = [1, 1]} : vector<16x96xf32> to vector<16x16xf32>
    %35 = arith.truncf %34 : vector<16x16xf32> to vector<16x16xbf16>
    %36 = vector.extract_strided_slice %31 {offsets = [0, 64], sizes = [16, 16], strides = [1, 1]} : vector<16x96xf32> to vector<16x16xf32>
    %37 = arith.truncf %36 : vector<16x16xf32> to vector<16x16xbf16>
    %cst_17 = arith.constant dense<0.000000e+00> : vector<16x16xf32>
    %38 = tpu.matmul %33, %35, %cst_17 {dimension_numbers = #tpu.dot_dimension_numbers<[1], [1], [0], [0], [0, 0, 1, 0], [], []>} : vector<16x16xbf16>, vector<16x16xbf16>, vector<16x16xf32> -> vector<16x16xf32>
    %cst_18 = arith.constant dense<0xFF800000> : vector<16xf32>
    %39 = vector.multi_reduction <maximumf>, %38, %cst_18 [1] : vector<16x16xf32> to vector<16xf32>
    %40 = vector.shape_cast %39 : vector<16xf32> to vector<16x1xf32>
    %41 = vector.broadcast %40 : vector<16x1xf32> to vector<16x16xf32>
    %42 = arith.subf %38, %41 : vector<16x16xf32>
    %43 = math.exp %42 : vector<16x16xf32>
    %cst_19 = arith.constant dense<0.000000e+00> : vector<16xf32>
    %44 = vector.multi_reduction <add>, %43, %cst_19 [1] : vector<16x16xf32> to vector<16xf32>
    %45 = vector.shape_cast %44 : vector<16xf32> to vector<16x1xf32>
    %46 = tpu.reciprocal %45 {approx = true} : vector<16x1xf32> -> vector<16x1xf32>
    %47 = vector.broadcast %46 : vector<16x1xf32> to vector<16x16xf32>
    %48 = arith.mulf %43, %47 : vector<16x16xf32>
    %49 = arith.truncf %48 : vector<16x16xf32> to vector<16x16xbf16>
    %cst_20 = arith.constant dense<0.000000e+00> : vector<16x16xf32>
    %50 = tpu.matmul %49, %37, %cst_20 {dimension_numbers = #tpu.dot_dimension_numbers<[1], [0], [0], [1], [0, 0, 1, 1], [], []>} : vector<16x16xbf16>, vector<16x16xbf16>, vector<16x16xf32> -> vector<16x16xf32>
    %c0_21 = arith.constant 0 : index
    %c0_22 = arith.constant 0 : index
    %51 = vector.load %arg10[%c0_21, %c0_22] : memref<16x32xf32, #tpu.memory_space<vmem>>, vector<16x16xf32>
    tpu.vector_store %arg10[%c0_21, %c0_22], %50 {strides = array<i32>} : memref<16x32xf32, #tpu.memory_space<vmem>>, vector<16x16xf32>,
    %52 = vector.extract_strided_slice %31 {offsets = [0, 16], sizes = [16, 16], strides = [1, 1]} : vector<16x96xf32> to vector<16x16xf32>
    %53 = arith.truncf %52 : vector<16x16xf32> to vector<16x16xbf16>
    %54 = vector.extract_strided_slice %31 {offsets = [0, 48], sizes = [16, 16], strides = [1, 1]} : vector<16x96xf32> to vector<16x16xf32>
    %55 = arith.truncf %54 : vector<16x16xf32> to vector<16x16xbf16>
    %56 = vector.extract_strided_slice %31 {offsets = [0, 80], sizes = [16, 16], strides = [1, 1]} : vector<16x96xf32> to vector<16x16xf32>
    %57 = arith.truncf %56 : vector<16x16xf32> to vector<16x16xbf16>
    %cst_23 = arith.constant dense<0.000000e+00> : vector<16x16xf32>
    %58 = tpu.matmul %53, %55, %cst_23 {dimension_numbers = #tpu.dot_dimension_numbers<[1], [1], [0], [0], [0, 0, 1, 0], [], []>} : vector<16x16xbf16>, vector<16x16xbf16>, vector<16x16xf32> -> vector<16x16xf32>
    %cst_24 = arith.constant dense<0xFF800000> : vector<16xf32>
    %59 = vector.multi_reduction <maximumf>, %58, %cst_24 [1] : vector<16x16xf32> to vector<16xf32>
    %60 = vector.shape_cast %59 : vector<16xf32> to vector<16x1xf32>
    %61 = vector.broadcast %60 : vector<16x1xf32> to vector<16x16xf32>
    %62 = arith.subf %58, %61 : vector<16x16xf32>
    %63 = math.exp %62 : vector<16x16xf32>
    %cst_25 = arith.constant dense<0.000000e+00> : vector<16xf32>
    %64 = vector.multi_reduction <add>, %63, %cst_25 [1] : vector<16x16xf32> to vector<16xf32>
    %65 = vector.shape_cast %64 : vector<16xf32> to vector<16x1xf32>
    %66 = tpu.reciprocal %65 {approx = true} : vector<16x1xf32> -> vector<16x1xf32>
    %67 = vector.broadcast %66 : vector<16x1xf32> to vector<16x16xf32>
    %68 = arith.mulf %63, %67 : vector<16x16xf32>
    %69 = arith.truncf %68 : vector<16x16xf32> to vector<16x16xbf16>
    %cst_26 = arith.constant dense<0.000000e+00> : vector<16x16xf32>
    %70 = tpu.matmul %69, %57, %cst_26 {dimension_numbers = #tpu.dot_dimension_numbers<[1], [0], [0], [1], [0, 0, 1, 1], [], []>} : vector<16x16xbf16>, vector<16x16xbf16>, vector<16x16xf32> -> vector<16x16xf32>
    %c0_27 = arith.constant 0 : index
    %c16 = arith.constant 16 : index
    %71 = vector.load %arg10[%c0_27, %c16] : memref<16x32xf32, #tpu.memory_space<vmem>>, vector<16x16xf32>
    tpu.vector_store %arg10[%c0_27, %c16], %70 {strides = array<i32>} : memref<16x32xf32, #tpu.memory_space<vmem>>, vector<16x16xf32>,
    %c0_28 = arith.constant 0 : index
    %c0_29 = arith.constant 0 : index
    %72 = vector.load %arg10[%c0_28, %c0_29] : memref<16x32xf32, #tpu.memory_space<vmem>>, vector<16x32xf32>
    %73 = arith.truncf %72 : vector<16x32xf32> to vector<16x32xbf16>
    %c0_30 = arith.constant 0 : index
    %c0_31 = arith.constant 0 : index
    %74 = vector.load %arg7[%c0_30, %c0_31] : memref<32x32xbf16, #tpu.memory_space<vmem>>, vector<32x32xbf16>
    %cst_32 = arith.constant dense<0.000000e+00> : vector<16x32xf32>
    %75 = tpu.matmul %73, %74, %cst_32 {dimension_numbers = #tpu.dot_dimension_numbers<[1], [0], [0], [1], [0, 0, 1, 1], [], []>} : vector<16x32xbf16>, vector<32x32xbf16>, vector<16x32xf32> -> vector<16x32xf32>
    %c0_33 = arith.constant 0 : index
    %c0_34 = arith.constant 0 : index
    %76 = vector.load %arg8[%c0_33, %c0_34] : memref<1x32xf32, #tpu.memory_space<vmem>>, vector<1x32xf32>
    %77 = vector.broadcast %76 : vector<1x32xf32> to vector<16x32xf32>
    %78 = arith.addf %75, %77 : vector<16x32xf32>
    %79 = arith.addf %3, %78 : vector<16x32xf32>
    %c0_35 = arith.constant 0 : index
    %c0_36 = arith.constant 0 : index
    %c0_37 = arith.constant 0 : index
    %80 = vector.load %arg9[%c0_35, %c0_36, %c0_37] : memref<1x16x32xf32, #tpu.memory_space<vmem>>, vector<1x16x32xf32>
    %81 = vector.shape_cast %80 : vector<1x16x32xf32> to vector<16x32xf32>
    %82 = vector.shape_cast %79 : vector<16x32xf32> to vector<1x16x32xf32>
    tpu.vector_store %arg9[%c0_35, %c0_36, %c0_37], %82 {strides = array<i32>} : memref<1x16x32xf32, #tpu.memory_space<vmem>>, vector<1x16x32xf32>,
    return
  }
  func.func @transform_0(%arg0: i32) -> (i32, i32, i32) {
    %c0_i32 = arith.constant 0 : i32
    %c0_i32_0 = arith.constant 0 : i32
    %c0_i32_1 = arith.constant 0 : i32
    return %arg0, %c0_i32, %c0_i32_0 : i32, i32, i32
  }
  func.func @transform_1(%arg0: i32) -> (i32, i32) {
    %c0_i32 = arith.constant 0 : i32
    %c0_i32_0 = arith.constant 0 : i32
    %c0_i32_1 = arith.constant 0 : i32
    return %c0_i32, %c0_i32_0 : i32, i32
  }
  func.func @transform_2(%arg0: i32) -> (i32, i32) {
    %c0_i32 = arith.constant 0 : i32
    %c0_i32_0 = arith.constant 0 : i32
    %c0_i32_1 = arith.constant 0 : i32
    return %c0_i32, %c0_i32_0 : i32, i32
  }
  func.func @transform_3(%arg0: i32) -> (i32, i32) {
    %c0_i32 = arith.constant 0 : i32
    %c0_i32_0 = arith.constant 0 : i32
    %c0_i32_1 = arith.constant 0 : i32
    return %c0_i32, %c0_i32_0 : i32, i32
  }
  func.func @transform_4(%arg0: i32) -> (i32, i32) {
    %c0_i32 = arith.constant 0 : i32
    %c0_i32_0 = arith.constant 0 : i32
    %c0_i32_1 = arith.constant 0 : i32
    return %c0_i32, %c0_i32_0 : i32, i32
  }
  func.func @transform_5(%arg0: i32) -> (i32, i32) {
    %c0_i32 = arith.constant 0 : i32
    %c0_i32_0 = arith.constant 0 : i32
    %c0_i32_1 = arith.constant 0 : i32
    return %c0_i32, %c0_i32_0 : i32, i32
  }
  func.func @transform_6(%arg0: i32) -> (i32, i32) {
    %c0_i32 = arith.constant 0 : i32
    %c0_i32_0 = arith.constant 0 : i32
    %c0_i32_1 = arith.constant 0 : i32
    return %c0_i32, %c0_i32_0 : i32, i32
  }
  func.func @transform_7(%arg0: i32) -> (i32, i32) {
    %c0_i32 = arith.constant 0 : i32
    %c0_i32_0 = arith.constant 0 : i32
    %c0_i32_1 = arith.constant 0 : i32
    return %c0_i32, %c0_i32_0 : i32, i32
  }
  func.func @transform_8(%arg0: i32) -> (i32, i32, i32) {
    %c0_i32 = arith.constant 0 : i32
    %c0_i32_0 = arith.constant 0 : i32
    %c0_i32_1 = arith.constant 0 : i32
    return %arg0, %c0_i32, %c0_i32_0 : i32, i32, i32
  }
}

module attributes {stable_mosaic.version = 11 : i64} {
  func.func @_conv3x3_kernel(%arg0: i32, %arg1: memref<1x10x10x8xbf16, #tpu.memory_space<vmem>>, %arg2: memref<3x24x4xbf16, #tpu.memory_space<vmem>>, %arg3: memref<1x4xf32, #tpu.memory_space<vmem>>, %arg4: memref<1x64x4xf32, #tpu.memory_space<vmem>>) attributes {dimension_semantics = [#tpu.dimension_semantics<parallel>], iteration_bounds = array<i64: 2>, scalar_prefetch = 0 : i64, scratch_operands = 0 : i64, tpu.core_type = #tpu.core_type<tc>, window_params = [{transform_indices = @transform_0, window_bounds = array<i64: 1, 10, 10, 8>}, {pipeline_mode = #tpu.pipeline_mode<synchronous>, transform_indices = @transform_1, window_bounds = array<i64: 3, 24, 4>}, {pipeline_mode = #tpu.pipeline_mode<synchronous>, transform_indices = @transform_2, window_bounds = array<i64: 1, 4>}, {transform_indices = @transform_3, window_bounds = array<i64: 1, 64, 4>}]} {
    %c0 = arith.constant 0 : index
    %c0_0 = arith.constant 0 : index
    %c0_1 = arith.constant 0 : index
    %c0_2 = arith.constant 0 : index
    %0 = vector.load %arg1[%c0, %c0_0, %c0_1, %c0_2] : memref<1x10x10x8xbf16, #tpu.memory_space<vmem>>, vector<1x8x8x8xbf16>
    %1 = vector.shape_cast %0 : vector<1x8x8x8xbf16> to vector<8x8x8xbf16>
    %c0_3 = arith.constant 0 : index
    %c0_4 = arith.constant 0 : index
    %c1 = arith.constant 1 : index
    %c0_5 = arith.constant 0 : index
    %2 = vector.load %arg1[%c0_3, %c0_4, %c1, %c0_5] : memref<1x10x10x8xbf16, #tpu.memory_space<vmem>>, vector<1x8x8x8xbf16>
    %3 = vector.shape_cast %2 : vector<1x8x8x8xbf16> to vector<8x8x8xbf16>
    %c0_6 = arith.constant 0 : index
    %c0_7 = arith.constant 0 : index
    %c2 = arith.constant 2 : index
    %c0_8 = arith.constant 0 : index
    %4 = vector.load %arg1[%c0_6, %c0_7, %c2, %c0_8] : memref<1x10x10x8xbf16, #tpu.memory_space<vmem>>, vector<1x8x8x8xbf16>
    %5 = vector.shape_cast %4 : vector<1x8x8x8xbf16> to vector<8x8x8xbf16>
    %6 = tpu.concatenate %1, %3, %5 in 2 : vector<8x8x8xbf16>, vector<8x8x8xbf16>, vector<8x8x8xbf16> -> vector<8x8x24xbf16>
    %7 = vector.shape_cast %6 : vector<8x8x24xbf16> to vector<64x24xbf16>
    %c0_9 = arith.constant 0 : index
    %c0_10 = arith.constant 0 : index
    %c0_11 = arith.constant 0 : index
    %8 = vector.load %arg2[%c0_9, %c0_10, %c0_11] : memref<3x24x4xbf16, #tpu.memory_space<vmem>>, vector<1x24x4xbf16>
    %9 = vector.shape_cast %8 : vector<1x24x4xbf16> to vector<24x4xbf16>
    %cst = arith.constant dense<0.000000e+00> : vector<64x4xf32>
    %10 = tpu.matmul %7, %9, %cst {dimension_numbers = #tpu.dot_dimension_numbers<[1], [0], [0], [1], [0, 0, 1, 1], [], []>} : vector<64x24xbf16>, vector<24x4xbf16>, vector<64x4xf32> -> vector<64x4xf32>
    %c0_12 = arith.constant 0 : index
    %c1_13 = arith.constant 1 : index
    %c0_14 = arith.constant 0 : index
    %c0_15 = arith.constant 0 : index
    %11 = vector.load %arg1[%c0_12, %c1_13, %c0_14, %c0_15] : memref<1x10x10x8xbf16, #tpu.memory_space<vmem>>, vector<1x8x8x8xbf16>
    %12 = vector.shape_cast %11 : vector<1x8x8x8xbf16> to vector<8x8x8xbf16>
    %c0_16 = arith.constant 0 : index
    %c1_17 = arith.constant 1 : index
    %c1_18 = arith.constant 1 : index
    %c0_19 = arith.constant 0 : index
    %13 = vector.load %arg1[%c0_16, %c1_17, %c1_18, %c0_19] : memref<1x10x10x8xbf16, #tpu.memory_space<vmem>>, vector<1x8x8x8xbf16>
    %14 = vector.shape_cast %13 : vector<1x8x8x8xbf16> to vector<8x8x8xbf16>
    %c0_20 = arith.constant 0 : index
    %c1_21 = arith.constant 1 : index
    %c2_22 = arith.constant 2 : index
    %c0_23 = arith.constant 0 : index
    %15 = vector.load %arg1[%c0_20, %c1_21, %c2_22, %c0_23] : memref<1x10x10x8xbf16, #tpu.memory_space<vmem>>, vector<1x8x8x8xbf16>
    %16 = vector.shape_cast %15 : vector<1x8x8x8xbf16> to vector<8x8x8xbf16>
    %17 = tpu.concatenate %12, %14, %16 in 2 : vector<8x8x8xbf16>, vector<8x8x8xbf16>, vector<8x8x8xbf16> -> vector<8x8x24xbf16>
    %18 = vector.shape_cast %17 : vector<8x8x24xbf16> to vector<64x24xbf16>
    %c1_24 = arith.constant 1 : index
    %c0_25 = arith.constant 0 : index
    %c0_26 = arith.constant 0 : index
    %19 = vector.load %arg2[%c1_24, %c0_25, %c0_26] : memref<3x24x4xbf16, #tpu.memory_space<vmem>>, vector<1x24x4xbf16>
    %20 = vector.shape_cast %19 : vector<1x24x4xbf16> to vector<24x4xbf16>
    %cst_27 = arith.constant dense<0.000000e+00> : vector<64x4xf32>
    %21 = tpu.matmul %18, %20, %cst_27 {dimension_numbers = #tpu.dot_dimension_numbers<[1], [0], [0], [1], [0, 0, 1, 1], [], []>} : vector<64x24xbf16>, vector<24x4xbf16>, vector<64x4xf32> -> vector<64x4xf32>
    %22 = arith.addf %10, %21 : vector<64x4xf32>
    %c0_28 = arith.constant 0 : index
    %c2_29 = arith.constant 2 : index
    %c0_30 = arith.constant 0 : index
    %c0_31 = arith.constant 0 : index
    %23 = vector.load %arg1[%c0_28, %c2_29, %c0_30, %c0_31] : memref<1x10x10x8xbf16, #tpu.memory_space<vmem>>, vector<1x8x8x8xbf16>
    %24 = vector.shape_cast %23 : vector<1x8x8x8xbf16> to vector<8x8x8xbf16>
    %c0_32 = arith.constant 0 : index
    %c2_33 = arith.constant 2 : index
    %c1_34 = arith.constant 1 : index
    %c0_35 = arith.constant 0 : index
    %25 = vector.load %arg1[%c0_32, %c2_33, %c1_34, %c0_35] : memref<1x10x10x8xbf16, #tpu.memory_space<vmem>>, vector<1x8x8x8xbf16>
    %26 = vector.shape_cast %25 : vector<1x8x8x8xbf16> to vector<8x8x8xbf16>
    %c0_36 = arith.constant 0 : index
    %c2_37 = arith.constant 2 : index
    %c2_38 = arith.constant 2 : index
    %c0_39 = arith.constant 0 : index
    %27 = vector.load %arg1[%c0_36, %c2_37, %c2_38, %c0_39] : memref<1x10x10x8xbf16, #tpu.memory_space<vmem>>, vector<1x8x8x8xbf16>
    %28 = vector.shape_cast %27 : vector<1x8x8x8xbf16> to vector<8x8x8xbf16>
    %29 = tpu.concatenate %24, %26, %28 in 2 : vector<8x8x8xbf16>, vector<8x8x8xbf16>, vector<8x8x8xbf16> -> vector<8x8x24xbf16>
    %30 = vector.shape_cast %29 : vector<8x8x24xbf16> to vector<64x24xbf16>
    %c2_40 = arith.constant 2 : index
    %c0_41 = arith.constant 0 : index
    %c0_42 = arith.constant 0 : index
    %31 = vector.load %arg2[%c2_40, %c0_41, %c0_42] : memref<3x24x4xbf16, #tpu.memory_space<vmem>>, vector<1x24x4xbf16>
    %32 = vector.shape_cast %31 : vector<1x24x4xbf16> to vector<24x4xbf16>
    %cst_43 = arith.constant dense<0.000000e+00> : vector<64x4xf32>
    %33 = tpu.matmul %30, %32, %cst_43 {dimension_numbers = #tpu.dot_dimension_numbers<[1], [0], [0], [1], [0, 0, 1, 1], [], []>} : vector<64x24xbf16>, vector<24x4xbf16>, vector<64x4xf32> -> vector<64x4xf32>
    %34 = arith.addf %22, %33 : vector<64x4xf32>
    %c0_44 = arith.constant 0 : index
    %c0_45 = arith.constant 0 : index
    %35 = vector.load %arg3[%c0_44, %c0_45] : memref<1x4xf32, #tpu.memory_space<vmem>>, vector<1x4xf32>
    %36 = vector.broadcast %35 : vector<1x4xf32> to vector<64x4xf32>
    %37 = arith.addf %34, %36 : vector<64x4xf32>
    %c0_46 = arith.constant 0 : index
    %c0_47 = arith.constant 0 : index
    %c0_48 = arith.constant 0 : index
    %38 = vector.load %arg4[%c0_46, %c0_47, %c0_48] : memref<1x64x4xf32, #tpu.memory_space<vmem>>, vector<1x64x4xf32>
    %39 = vector.shape_cast %38 : vector<1x64x4xf32> to vector<64x4xf32>
    %40 = vector.shape_cast %37 : vector<64x4xf32> to vector<1x64x4xf32>
    tpu.vector_store %arg4[%c0_46, %c0_47, %c0_48], %40 {strides = array<i32>} : memref<1x64x4xf32, #tpu.memory_space<vmem>>, vector<1x64x4xf32>,
    return
  }
  func.func @transform_0(%arg0: i32) -> (i32, i32, i32, i32) {
    %c0_i32 = arith.constant 0 : i32
    %c0_i32_0 = arith.constant 0 : i32
    %c0_i32_1 = arith.constant 0 : i32
    %c0_i32_2 = arith.constant 0 : i32
    return %arg0, %c0_i32, %c0_i32_0, %c0_i32_1 : i32, i32, i32, i32
  }
  func.func @transform_1(%arg0: i32) -> (i32, i32, i32) {
    %c0_i32 = arith.constant 0 : i32
    %c0_i32_0 = arith.constant 0 : i32
    %c0_i32_1 = arith.constant 0 : i32
    %c0_i32_2 = arith.constant 0 : i32
    return %c0_i32, %c0_i32_0, %c0_i32_1 : i32, i32, i32
  }
  func.func @transform_2(%arg0: i32) -> (i32, i32) {
    %c0_i32 = arith.constant 0 : i32
    %c0_i32_0 = arith.constant 0 : i32
    %c0_i32_1 = arith.constant 0 : i32
    return %c0_i32, %c0_i32_0 : i32, i32
  }
  func.func @transform_3(%arg0: i32) -> (i32, i32, i32) {
    %c0_i32 = arith.constant 0 : i32
    %c0_i32_0 = arith.constant 0 : i32
    %c0_i32_1 = arith.constant 0 : i32
    return %arg0, %c0_i32, %c0_i32_0 : i32, i32, i32
  }
}

module attributes {stable_mosaic.version = 11 : i64} {
  func.func @_res_attn_kernel(%arg0: i32, %arg1: memref<1x64x4xf32, #tpu.memory_space<vmem>>, %arg2: memref<64x4xf32, #tpu.memory_space<vmem>>, %arg3: memref<1x4xf32, #tpu.memory_space<vmem>>, %arg4: memref<1x4xf32, #tpu.memory_space<vmem>>, %arg5: memref<4x12xbf16, #tpu.memory_space<vmem>>, %arg6: memref<1x12xf32, #tpu.memory_space<vmem>>, %arg7: memref<4x4xbf16, #tpu.memory_space<vmem>>, %arg8: memref<1x4xf32, #tpu.memory_space<vmem>>, %arg9: memref<1x64x4xf32, #tpu.memory_space<vmem>>, %arg10: memref<64x4xf32, #tpu.memory_space<vmem>>) attributes {dimension_semantics = [#tpu.dimension_semantics<parallel>], iteration_bounds = array<i64: 2>, scalar_prefetch = 0 : i64, scratch_operands = 1 : i64, tpu.core_type = #tpu.core_type<tc>, window_params = [{transform_indices = @transform_0, window_bounds = array<i64: 1, 64, 4>}, {pipeline_mode = #tpu.pipeline_mode<synchronous>, transform_indices = @transform_1, window_bounds = array<i64: 64, 4>}, {pipeline_mode = #tpu.pipeline_mode<synchronous>, transform_indices = @transform_2, window_bounds = array<i64: 1, 4>}, {pipeline_mode = #tpu.pipeline_mode<synchronous>, transform_indices = @transform_3, window_bounds = array<i64: 1, 4>}, {pipeline_mode = #tpu.pipeline_mode<synchronous>, transform_indices = @transform_4, window_bounds = array<i64: 4, 12>}, {pipeline_mode = #tpu.pipeline_mode<synchronous>, transform_indices = @transform_5, window_bounds = array<i64: 1, 12>}, {pipeline_mode = #tpu.pipeline_mode<synchronous>, transform_indices = @transform_6, window_bounds = array<i64: 4, 4>}, {pipeline_mode = #tpu.pipeline_mode<synchronous>, transform_indices = @transform_7, window_bounds = array<i64: 1, 4>}, {transform_indices = @transform_8, window_bounds = array<i64: 1, 64, 4>}]} {
    %c0 = arith.constant 0 : index
    %c0_0 = arith.constant 0 : index
    %c0_1 = arith.constant 0 : index
    %0 = vector.load %arg1[%c0, %c0_0, %c0_1] : memref<1x64x4xf32, #tpu.memory_space<vmem>>, vector<1x64x4xf32>
    %1 = vector.shape_cast %0 : vector<1x64x4xf32> to vector<64x4xf32>
    %c0_2 = arith.constant 0 : index
    %c0_3 = arith.constant 0 : index
    %2 = vector.load %arg2[%c0_2, %c0_3] : memref<64x4xf32, #tpu.memory_space<vmem>>, vector<64x4xf32>
    %3 = arith.addf %1, %2 : vector<64x4xf32>
    %cst = arith.constant dense<0.000000e+00> : vector<64xf32>
    %4 = vector.multi_reduction <add>, %3, %cst [1] : vector<64x4xf32> to vector<64xf32>
    %5 = vector.shape_cast %4 : vector<64xf32> to vector<64x1xf32>
    %cst_4 = arith.constant 4.000000e+00 : f32
    %6 = vector.broadcast %cst_4 : f32 to vector<64x1xf32>
    %7 = arith.divf %5, %6 : vector<64x1xf32>
    %8 = vector.broadcast %7 : vector<64x1xf32> to vector<64x4xf32>
    %9 = arith.subf %3, %8 : vector<64x4xf32>
    %10 = arith.mulf %9, %9 : vector<64x4xf32>
    %cst_5 = arith.constant dense<0.000000e+00> : vector<64xf32>
    %11 = vector.multi_reduction <add>, %10, %cst_5 [1] : vector<64x4xf32> to vector<64xf32>
    %12 = vector.shape_cast %11 : vector<64xf32> to vector<64x1xf32>
    %cst_6 = arith.constant 4.000000e+00 : f32
    %13 = vector.broadcast %cst_6 : f32 to vector<64x1xf32>
    %14 = arith.divf %12, %13 : vector<64x1xf32>
    %cst_7 = arith.constant 9.99999974E-6 : f32
    %15 = vector.broadcast %cst_7 : f32 to vector<64x1xf32>
    %16 = arith.addf %14, %15 : vector<64x1xf32>
    %17 = math.rsqrt %16 : vector<64x1xf32>
    %18 = vector.broadcast %17 : vector<64x1xf32> to vector<64x4xf32>
    %19 = arith.mulf %9, %18 : vector<64x4xf32>
    %c0_8 = arith.constant 0 : index
    %c0_9 = arith.constant 0 : index
    %20 = vector.load %arg3[%c0_8, %c0_9] : memref<1x4xf32, #tpu.memory_space<vmem>>, vector<1x4xf32>
    %21 = vector.broadcast %20 : vector<1x4xf32> to vector<64x4xf32>
    %22 = arith.mulf %19, %21 : vector<64x4xf32>
    %c0_10 = arith.constant 0 : index
    %c0_11 = arith.constant 0 : index
    %23 = vector.load %arg4[%c0_10, %c0_11] : memref<1x4xf32, #tpu.memory_space<vmem>>, vector<1x4xf32>
    %24 = vector.broadcast %23 : vector<1x4xf32> to vector<64x4xf32>
    %25 = arith.addf %22, %24 : vector<64x4xf32>
    %26 = arith.truncf %25 : vector<64x4xf32> to vector<64x4xbf16>
    %c0_12 = arith.constant 0 : index
    %c0_13 = arith.constant 0 : index
    %27 = vector.load %arg5[%c0_12, %c0_13] : memref<4x12xbf16, #tpu.memory_space<vmem>>, vector<4x12xbf16>
    %cst_14 = arith.constant dense<0.000000e+00> : vector<64x12xf32>
    %28 = tpu.matmul %26, %27, %cst_14 {dimension_numbers = #tpu.dot_dimension_numbers<[1], [0], [0], [1], [0, 0, 1, 1], [], []>} : vector<64x4xbf16>, vector<4x12xbf16>, vector<64x12xf32> -> vector<64x12xf32>
    %c0_15 = arith.constant 0 : index
    %c0_16 = arith.constant 0 : index
    %29 = vector.load %arg6[%c0_15, %c0_16] : memref<1x12xf32, #tpu.memory_space<vmem>>, vector<1x12xf32>
    %30 = vector.broadcast %29 : vector<1x12xf32> to vector<64x12xf32>
    %31 = arith.addf %28, %30 : vector<64x12xf32>
    %32 = vector.extract_strided_slice %31 {offsets = [0, 0], sizes = [64, 2], strides = [1, 1]} : vector<64x12xf32> to vector<64x2xf32>
    %33 = arith.truncf %32 : vector<64x2xf32> to vector<64x2xbf16>
    %34 = vector.extract_strided_slice %31 {offsets = [0, 4], sizes = [64, 2], strides = [1, 1]} : vector<64x12xf32> to vector<64x2xf32>
    %35 = arith.truncf %34 : vector<64x2xf32> to vector<64x2xbf16>
    %36 = vector.extract_strided_slice %31 {offsets = [0, 8], sizes = [64, 2], strides = [1, 1]} : vector<64x12xf32> to vector<64x2xf32>
    %37 = arith.truncf %36 : vector<64x2xf32> to vector<64x2xbf16>
    %cst_17 = arith.constant dense<0.000000e+00> : vector<64x64xf32>
    %38 = tpu.matmul %33, %35, %cst_17 {dimension_numbers = #tpu.dot_dimension_numbers<[1], [1], [0], [0], [0, 0, 1, 0], [], []>} : vector<64x2xbf16>, vector<64x2xbf16>, vector<64x64xf32> -> vector<64x64xf32>
    %cst_18 = arith.constant dense<0xFF800000> : vector<64xf32>
    %39 = vector.multi_reduction <maximumf>, %38, %cst_18 [1] : vector<64x64xf32> to vector<64xf32>
    %40 = vector.shape_cast %39 : vector<64xf32> to vector<64x1xf32>
    %41 = vector.broadcast %40 : vector<64x1xf32> to vector<64x64xf32>
    %42 = arith.subf %38, %41 : vector<64x64xf32>
    %43 = math.exp %42 : vector<64x64xf32>
    %cst_19 = arith.constant dense<0.000000e+00> : vector<64xf32>
    %44 = vector.multi_reduction <add>, %43, %cst_19 [1] : vector<64x64xf32> to vector<64xf32>
    %45 = vector.shape_cast %44 : vector<64xf32> to vector<64x1xf32>
    %46 = tpu.reciprocal %45 {approx = true} : vector<64x1xf32> -> vector<64x1xf32>
    %47 = vector.broadcast %46 : vector<64x1xf32> to vector<64x64xf32>
    %48 = arith.mulf %43, %47 : vector<64x64xf32>
    %49 = arith.truncf %48 : vector<64x64xf32> to vector<64x64xbf16>
    %cst_20 = arith.constant dense<0.000000e+00> : vector<64x2xf32>
    %50 = tpu.matmul %49, %37, %cst_20 {dimension_numbers = #tpu.dot_dimension_numbers<[1], [0], [0], [1], [0, 0, 1, 1], [], []>} : vector<64x64xbf16>, vector<64x2xbf16>, vector<64x2xf32> -> vector<64x2xf32>
    %c0_21 = arith.constant 0 : index
    %c0_22 = arith.constant 0 : index
    %51 = vector.load %arg10[%c0_21, %c0_22] : memref<64x4xf32, #tpu.memory_space<vmem>>, vector<64x2xf32>
    tpu.vector_store %arg10[%c0_21, %c0_22], %50 {strides = array<i32>} : memref<64x4xf32, #tpu.memory_space<vmem>>, vector<64x2xf32>,
    %52 = vector.extract_strided_slice %31 {offsets = [0, 2], sizes = [64, 2], strides = [1, 1]} : vector<64x12xf32> to vector<64x2xf32>
    %53 = arith.truncf %52 : vector<64x2xf32> to vector<64x2xbf16>
    %54 = vector.extract_strided_slice %31 {offsets = [0, 6], sizes = [64, 2], strides = [1, 1]} : vector<64x12xf32> to vector<64x2xf32>
    %55 = arith.truncf %54 : vector<64x2xf32> to vector<64x2xbf16>
    %56 = vector.extract_strided_slice %31 {offsets = [0, 10], sizes = [64, 2], strides = [1, 1]} : vector<64x12xf32> to vector<64x2xf32>
    %57 = arith.truncf %56 : vector<64x2xf32> to vector<64x2xbf16>
    %cst_23 = arith.constant dense<0.000000e+00> : vector<64x64xf32>
    %58 = tpu.matmul %53, %55, %cst_23 {dimension_numbers = #tpu.dot_dimension_numbers<[1], [1], [0], [0], [0, 0, 1, 0], [], []>} : vector<64x2xbf16>, vector<64x2xbf16>, vector<64x64xf32> -> vector<64x64xf32>
    %cst_24 = arith.constant dense<0xFF800000> : vector<64xf32>
    %59 = vector.multi_reduction <maximumf>, %58, %cst_24 [1] : vector<64x64xf32> to vector<64xf32>
    %60 = vector.shape_cast %59 : vector<64xf32> to vector<64x1xf32>
    %61 = vector.broadcast %60 : vector<64x1xf32> to vector<64x64xf32>
    %62 = arith.subf %58, %61 : vector<64x64xf32>
    %63 = math.exp %62 : vector<64x64xf32>
    %cst_25 = arith.constant dense<0.000000e+00> : vector<64xf32>
    %64 = vector.multi_reduction <add>, %63, %cst_25 [1] : vector<64x64xf32> to vector<64xf32>
    %65 = vector.shape_cast %64 : vector<64xf32> to vector<64x1xf32>
    %66 = tpu.reciprocal %65 {approx = true} : vector<64x1xf32> -> vector<64x1xf32>
    %67 = vector.broadcast %66 : vector<64x1xf32> to vector<64x64xf32>
    %68 = arith.mulf %63, %67 : vector<64x64xf32>
    %69 = arith.truncf %68 : vector<64x64xf32> to vector<64x64xbf16>
    %cst_26 = arith.constant dense<0.000000e+00> : vector<64x2xf32>
    %70 = tpu.matmul %69, %57, %cst_26 {dimension_numbers = #tpu.dot_dimension_numbers<[1], [0], [0], [1], [0, 0, 1, 1], [], []>} : vector<64x64xbf16>, vector<64x2xbf16>, vector<64x2xf32> -> vector<64x2xf32>
    %c0_27 = arith.constant 0 : index
    %c2 = arith.constant 2 : index
    %71 = vector.load %arg10[%c0_27, %c2] : memref<64x4xf32, #tpu.memory_space<vmem>>, vector<64x2xf32>
    tpu.vector_store %arg10[%c0_27, %c2], %70 {strides = array<i32>} : memref<64x4xf32, #tpu.memory_space<vmem>>, vector<64x2xf32>,
    %c0_28 = arith.constant 0 : index
    %c0_29 = arith.constant 0 : index
    %72 = vector.load %arg10[%c0_28, %c0_29] : memref<64x4xf32, #tpu.memory_space<vmem>>, vector<64x4xf32>
    %73 = arith.truncf %72 : vector<64x4xf32> to vector<64x4xbf16>
    %c0_30 = arith.constant 0 : index
    %c0_31 = arith.constant 0 : index
    %74 = vector.load %arg7[%c0_30, %c0_31] : memref<4x4xbf16, #tpu.memory_space<vmem>>, vector<4x4xbf16>
    %cst_32 = arith.constant dense<0.000000e+00> : vector<64x4xf32>
    %75 = tpu.matmul %73, %74, %cst_32 {dimension_numbers = #tpu.dot_dimension_numbers<[1], [0], [0], [1], [0, 0, 1, 1], [], []>} : vector<64x4xbf16>, vector<4x4xbf16>, vector<64x4xf32> -> vector<64x4xf32>
    %c0_33 = arith.constant 0 : index
    %c0_34 = arith.constant 0 : index
    %76 = vector.load %arg8[%c0_33, %c0_34] : memref<1x4xf32, #tpu.memory_space<vmem>>, vector<1x4xf32>
    %77 = vector.broadcast %76 : vector<1x4xf32> to vector<64x4xf32>
    %78 = arith.addf %75, %77 : vector<64x4xf32>
    %79 = arith.addf %3, %78 : vector<64x4xf32>
    %cst_35 = arith.constant 0.000000e+00 : f32
    %80 = vector.broadcast %cst_35 : f32 to vector<64x4xf32>
    %81 = arith.maximumf %79, %80 : vector<64x4xf32>
    %c0_36 = arith.constant 0 : index
    %c0_37 = arith.constant 0 : index
    %c0_38 = arith.constant 0 : index
    %82 = vector.load %arg9[%c0_36, %c0_37, %c0_38] : memref<1x64x4xf32, #tpu.memory_space<vmem>>, vector<1x64x4xf32>
    %83 = vector.shape_cast %82 : vector<1x64x4xf32> to vector<64x4xf32>
    %84 = vector.shape_cast %81 : vector<64x4xf32> to vector<1x64x4xf32>
    tpu.vector_store %arg9[%c0_36, %c0_37, %c0_38], %84 {strides = array<i32>} : memref<1x64x4xf32, #tpu.memory_space<vmem>>, vector<1x64x4xf32>,
    return
  }
  func.func @transform_0(%arg0: i32) -> (i32, i32, i32) {
    %c0_i32 = arith.constant 0 : i32
    %c0_i32_0 = arith.constant 0 : i32
    %c0_i32_1 = arith.constant 0 : i32
    return %arg0, %c0_i32, %c0_i32_0 : i32, i32, i32
  }
  func.func @transform_1(%arg0: i32) -> (i32, i32) {
    %c0_i32 = arith.constant 0 : i32
    %c0_i32_0 = arith.constant 0 : i32
    %c0_i32_1 = arith.constant 0 : i32
    return %c0_i32, %c0_i32_0 : i32, i32
  }
  func.func @transform_2(%arg0: i32) -> (i32, i32) {
    %c0_i32 = arith.constant 0 : i32
    %c0_i32_0 = arith.constant 0 : i32
    %c0_i32_1 = arith.constant 0 : i32
    return %c0_i32, %c0_i32_0 : i32, i32
  }
  func.func @transform_3(%arg0: i32) -> (i32, i32) {
    %c0_i32 = arith.constant 0 : i32
    %c0_i32_0 = arith.constant 0 : i32
    %c0_i32_1 = arith.constant 0 : i32
    return %c0_i32, %c0_i32_0 : i32, i32
  }
  func.func @transform_4(%arg0: i32) -> (i32, i32) {
    %c0_i32 = arith.constant 0 : i32
    %c0_i32_0 = arith.constant 0 : i32
    %c0_i32_1 = arith.constant 0 : i32
    return %c0_i32, %c0_i32_0 : i32, i32
  }
  func.func @transform_5(%arg0: i32) -> (i32, i32) {
    %c0_i32 = arith.constant 0 : i32
    %c0_i32_0 = arith.constant 0 : i32
    %c0_i32_1 = arith.constant 0 : i32
    return %c0_i32, %c0_i32_0 : i32, i32
  }
  func.func @transform_6(%arg0: i32) -> (i32, i32) {
    %c0_i32 = arith.constant 0 : i32
    %c0_i32_0 = arith.constant 0 : i32
    %c0_i32_1 = arith.constant 0 : i32
    return %c0_i32, %c0_i32_0 : i32, i32
  }
  func.func @transform_7(%arg0: i32) -> (i32, i32) {
    %c0_i32 = arith.constant 0 : i32
    %c0_i32_0 = arith.constant 0 : i32
    %c0_i32_1 = arith.constant 0 : i32
    return %c0_i32, %c0_i32_0 : i32, i32
  }
  func.func @transform_8(%arg0: i32) -> (i32, i32, i32) {
    %c0_i32 = arith.constant 0 : i32
    %c0_i32_0 = arith.constant 0 : i32
    %c0_i32_1 = arith.constant 0 : i32
    return %arg0, %c0_i32, %c0_i32_0 : i32, i32, i32
  }
}

</mosaic_0001>

<bundles_post_ra>
// kernel: _lambda_.9
= control target key start
LH: loop header
LB: loop body
LE: loop exit
PB: predicated region body
PF: predicated region fallthrough
CT: control target
= control target key end

     0   :  { %s1802_s27 = smov 0   ;;  %s2150_s0 = inlined_call_operand.vmem [shape: f32[2,64,32], index: 0, kind: input, shape index: {}]   ;;  %s2151_s1 = inlined_call_operand.vmem [shape: f32[64,32], index: 1, kind: input, shape index: {}]   ;;  %s2152_s2 = inlined_call_operand.vmem [shape: f32[1,32], index: 2, kind: input, shape index: {}]   ;;  %s2153_s3 = inlined_call_operand.vmem [shape: f32[1,32], index: 3, kind: input, shape index: {}]   ;;  %s2154_s4 = inlined_call_operand.vmem [shape: bf16[32,96], index: 4, kind: input, shape index: {}]   ;;  %s2155_s5 = inlined_call_operand.vmem [shape: f32[1,96], index: 5, kind: input, shape index: {}]   ;;  %s2156_s6 = inlined_call_operand.vmem [shape: bf16[32,32], index: 6, kind: input, shape index: {}]   ;;  %s2157_s7 = inlined_call_operand.vmem [shape: f32[1,32], index: 7, kind: input, shape index: {}]   ;;  %s2158_s8 = inlined_call_operand.vmem [shape: f32[2,64,8], index: 8, kind: output, shape index: {}]  }
   0x1 LB: > { %s1458_s28 = sadd.s32 4294967295, %s1748_s27   ;;  %p1462_p0 = scmp.ge.s32.totalorder %s1748_s27, 1  ;;  %s1748_s27 = sphi %s1802_s27, %s18_s27  }
   0x2   : > { %p262_p1 = scmp.lt.s32.totalorder %s1748_s27, 3 }
   0x4   : > { %p263_p2 = pnand %p1462_p0, %p262_p1 }
   0x5   : > { %p296_p3 = scmp.lt.s32.totalorder (!%p263_p2), %s1458_s28, 1  ;;  %v315_v0 = vld [vmem:[%s2151_s1] sm:$0xff] (!%p263_p2)  ;;  %v317_v1 = vld [vmem:[%s2151_s1 + $0x10] sm:$0xff] (!%p263_p2)  ;;  %v316_v2 = vld [vmem:[%s2151_s1 + $0x8] sm:$0xff] (!%p263_p2)  ;;  %vm331_vm0 = vcmask (!%p263_p2), 261120   ;;  %vm587_vm1 = vcmask (!%p263_p2), 130048  }
   0x6   : > { %266 = sbr.rel (%p263_p2) target bundleno = 2722 (0xaa2), region = 52  ;;  %v318_v3 = vld [vmem:[%s2151_s1 + $0x18] sm:$0xff] (!%p263_p2)  ;;  %v319_v11 = vld [vmem:[%s2151_s1 + $0x20] sm:$0xff] (!%p263_p2)  ;;  %v320_v15 = vld [vmem:[%s2151_s1 + $0x28] sm:$0xff] (!%p263_p2)  ;;  %s1750_s18 = smov (!%p263_p2), 96   ;;  %vm677_vm2 = vcmask (!%p263_p2), 523264  }
   0x7   : > { %v321_v22 = vld [vmem:[%s2151_s1 + $0x30] sm:$0xff] (!%p263_p2)  ;;  %v322_v25 = vld [vmem:[%s2151_s1 + $0x38] sm:$0xff] (!%p263_p2)  ;;  %s1751_s19 = smov (!%p263_p2), 64   ;;  %s1752_s20 = smov (!%p263_p2), 80   ;;  %vm1185_vm3 = vcmask (!%p263_p2), 261248   ;;  %vm1394_vm4 = vcmask (!%p263_p2), 64512  }
   0x8   : > { %s1753_s21 = smov (!%p263_p2), 112   ;;  %s1754_s22 = smov (!%p263_p2), 48  }
   0x9   : > { %s1755_s29 = smov (!%p263_p2), 16   ;;  %s1756_s10 = smov (!%p263_p2), 120  }
   0xd   : > { %s2160_s28 = smov (!%p296_p3, %s1458_s28), 1 }
   0xe   : > { %s1501_s11 = sshll.u32 %s2160_s28, 6 }
   0xf   : > { %s300_s16 = scalar_lea.vmem %s2150_s0, %s1501_s11  ;;  %s305_s14 = scalar_lea.vmem %s2158_s8, %s1501_s11 }
  0x10   : > { %v307_v4 = vld [vmem:[%s300_s16] sm:$0xff]  ;;  %v309_v5 = vld [vmem:[%s300_s16 + $0x10] sm:$0xff]  ;;  %v308_v6 = vld [vmem:[%s300_s16 + $0x8] sm:$0xff] }
  0x11   : > { %v1830_v7 = vadd.f32 %v315_v0, %v307_v4  ;;  %v1832_v8 = vadd.f32 %v317_v1, %v309_v5  ;;  %v1834_v9 = vadd.f32 %v316_v2, %v308_v6  ;;  %v310_v10 = vld [vmem:[%s300_s16 + $0x18] sm:$0xff]  ;;  %v311_v13 = vld [vmem:[%s300_s16 + $0x20] sm:$0xff]  ;;  %v312_v14 = vld [vmem:[%s300_s16 + $0x28] sm:$0xff] }
  0x12   : > { %v1839_v12 = vadd.f32 %v318_v3, %v310_v10  ;;  %v1852_v20 = vadd.f32 %v319_v11, %v311_v13  ;;  %v1854_v21 = vadd.f32 %v320_v15, %v312_v14  ;;  %v313_v23 = vld [vmem:[%s300_s16 + $0x30] sm:$0xff]  ;;  %v314_v24 = vld [vmem:[%s300_s16 + $0x38] sm:$0xff]  ;;  %v1658_v11 = vld [vmem:[%s2154_s4] sm:$0xff]  }
  0x13   : > { %v332_v16 = vsel %vm331_vm0, %v1830_v7, 0.0  ;;  %v338_v17 = vsel %vm331_vm0, %v1832_v8, 0.0  ;;  %v335_v18 = vsel %vm331_vm0, %v1834_v9, 0.0  ;;  %v1866_v28 = vadd.f32 %v321_v22, %v313_v23  ;;  %1547 = vmatprep.subr.bf16.mxu0 %v1658_v11  ;;  %v1659_v13 = vld [vmem:[%s2154_s4 + $0x8] sm:$0xff]  }
  0x14   : > { %333 = vadd.xlane.f32.xlu0 %v332_v16  ;;  %339 = vadd.xlane.f32.xlu1 %v338_v17  ;;  %v341_v19 = vsel %vm331_vm0, %v1839_v12, 0.0  ;;  %v344_v26 = vsel %vm331_vm0, %v1852_v20, 0.0  ;;  %v347_v27 = vsel %vm331_vm0, %v1854_v21, 0.0  ;;  %v1868_v29 = vadd.f32 %v322_v25, %v314_v24 }
  0x15   : > { %v350_v30 = vsel %vm331_vm0, %v1866_v28, 0.0  ;;  %1548 = vmatpush3.bf16.msra.mxu0 %v1658_v11 }
  0x16   : > { %v353_v31 = vsel %vm331_vm0, %v1868_v29, 0.0  ;;  %1549 = vmatprep.subr.bf16.mxu0 %v1659_v13 }
  0x18   : > { %336 = vadd.xlane.f32.xlu0 %v335_v18  ;;  %342 = vadd.xlane.f32.xlu1 %v341_v19 }
  0x19   : > { %1550 = vmatpush3.bf16.msra.mxu0 %v1659_v13 }
  0x1c   : > { %345 = vadd.xlane.f32.xlu0 %v344_v26  ;;  %348 = vadd.xlane.f32.xlu1 %v347_v27 }
  0x20   : > { %351 = vadd.xlane.f32.xlu0 %v350_v30  ;;  %354 = vadd.xlane.f32.xlu1 %v353_v31 }
  0xa1   : > { %v334_v32 = vpop.xlane.xlu0 %333  ;;  %v340_v33 = vpop.xlane.xlu1 %339 }
  0xa2   : > { %v357_v34 = vmul.f32 0.03125, %v334_v32  ;;  %v359_v35 = vmul.f32 0.03125, %v340_v33 }
  0xa4   : > { %v1875_v36 = vsub.f32 %v1830_v7, %v357_v34  ;;  %v1878_v37 = vsub.f32 %v1832_v8, %v359_v35 }
  0xa5   : > { %v337_v38 = vpop.xlane.xlu0 %336  ;;  %v343_v39 = vpop.xlane.xlu1 %342 }
  0xa6   : > { %v358_v40 = vmul.f32 0.03125, %v337_v38  ;;  %v360_v41 = vmul.f32 0.03125, %v343_v39  ;;  %v373_v42 = vmul.f32 %v1875_v36, %v1875_v36  ;;  %v375_v43 = vmul.f32 %v1878_v37, %v1878_v37 }
  0xa8   : > { %v1885_v44 = vsub.f32 %v1834_v9, %v358_v40  ;;  %v1888_v45 = vsub.f32 %v1839_v12, %v360_v41  ;;  %v381_v46 = vsel %vm331_vm0, %v373_v42, 0.0  ;;  %v387_v49 = vsel %vm331_vm0, %v375_v43, 0.0 }
  0xa9   : > { %382 = vadd.xlane.f32.xlu0 %v381_v46  ;;  %v346_v47 = vpop.xlane.xlu0 %345  ;;  %v349_v48 = vpop.xlane.xlu1 %348 }
  0xaa   : > { %v361_v50 = vmul.f32 0.03125, %v346_v47  ;;  %v362_v51 = vmul.f32 0.03125, %v349_v48  ;;  %v374_v52 = vmul.f32 %v1885_v44, %v1885_v44  ;;  %v376_v53 = vmul.f32 %v1888_v45, %v1888_v45  ;;  %v1467_v47 = vld [vmem:[%s2152_s2] ss:$0 sm:$0xff] }
  0xac   : > { %v1897_v54 = vsub.f32 %v1852_v20, %v361_v50  ;;  %v1900_v55 = vsub.f32 %v1854_v21, %v362_v51  ;;  %v384_v56 = vsel %vm331_vm0, %v374_v52, 0.0  ;;  %v390_v59 = vsel %vm331_vm0, %v376_v53, 0.0 }
  0xad   : > { %388 = vadd.xlane.f32.xlu0 %v387_v49  ;;  %385 = vadd.xlane.f32.xlu1 %v384_v56  ;;  %v352_v57 = vpop.xlane.xlu0 %351  ;;  %v355_v58 = vpop.xlane.xlu1 %354 }
  0xae   : > { %v363_v60 = vmul.f32 0.03125, %v352_v57  ;;  %v364_v61 = vmul.f32 0.03125, %v355_v58  ;;  %v377_v62 = vmul.f32 %v1897_v54, %v1897_v54  ;;  %v378_v63 = vmul.f32 %v1900_v55, %v1900_v55 }
  0xb0   : > { %v1909_v0 = vsub.f32 %v1866_v28, %v363_v60  ;;  %v1912_v1 = vsub.f32 %v1868_v29, %v364_v61  ;;  %v393_v2 = vsel %vm331_vm0, %v377_v62, 0.0  ;;  %v396_v3 = vsel %vm331_vm0, %v378_v63, 0.0 }
  0xb1   : > { %391 = vadd.xlane.f32.xlu1 %v390_v59  ;;  %394 = vadd.xlane.f32.xlu0 %v393_v2 }
  0xb2   : > { %v379_v4 = vmul.f32 %v1909_v0, %v1909_v0  ;;  %v380_v5 = vmul.f32 %v1912_v1, %v1912_v1 }
  0xb4   : > { %v399_v6 = vsel %vm331_vm0, %v379_v4, 0.0  ;;  %v402_v10 = vsel %vm331_vm0, %v380_v5, 0.0 }
  0xb5   : > { %397 = vadd.xlane.f32.xlu1 %v396_v3  ;;  %400 = vadd.xlane.f32.xlu0 %v399_v6 }
  0xb9   : > { %403 = vadd.xlane.f32.xlu1 %v402_v10 }
 0x136   : > { %v383_v14 = vpop.xlane.xlu0 %382 }
 0x137   : > { %v405_v15 = vmul.f32 0.03125, %v383_v14 }
 0x139   : > { %v413_v16 = vadd.f32 1e-05, %v405_v15 }
 0x13a   : > { %v386_v17 = vpop.xlane.xlu1 %385  ;;  %v389_v18 = vpop.xlane.xlu0 %388 }
 0x13b   : > { %1662 = vrsqrt.f32 %v413_v16  ;;  %v406_v19 = vmul.f32 0.03125, %v386_v17  ;;  %v407_v22 = vmul.f32 0.03125, %v389_v18 }
 0x13d   : > { %v414_v23 = vadd.f32 1e-05, %v406_v19  ;;  %v415_v24 = vadd.f32 1e-05, %v407_v22 }
 0x13e   : > { %v392_v25 = vpop.xlane.xlu1 %391  ;;  %v395_v26 = vpop.xlane.xlu0 %394 }
 0x13f   : > { %1664 = vrsqrt.f32 %v414_v23  ;;  %v408_v27 = vmul.f32 0.03125, %v392_v25  ;;  %v409_v30 = vmul.f32 0.03125, %v395_v26 }
 0x140   : > { %1666 = vrsqrt.f32 %v415_v24  ;;  %v1469_v24 = vld [vmem:[%s2155_s5] ss:$0 sm:$0xff] }
 0x141   : > { %v416_v31 = vadd.f32 1e-05, %v408_v27  ;;  %v417_v32 = vadd.f32 1e-05, %v409_v30 }
 0x142   : > { %v398_v33 = vpop.xlane.xlu1 %397  ;;  %v401_v34 = vpop.xlane.xlu0 %400 }
 0x143   : > { %1668 = vrsqrt.f32 %v416_v31  ;;  %v410_v35 = vmul.f32 0.03125, %v398_v33  ;;  %v411_v38 = vmul.f32 0.03125, %v401_v34 }
 0x144   : > { %1670 = vrsqrt.f32 %v417_v32 }
 0x145   : > { %v1663_v39 = vpop.eup %1662  ;;  %v418_v40 = vadd.f32 1e-05, %v410_v35  ;;  %v419_v41 = vadd.f32 1e-05, %v411_v38 }
 0x146   : > { %v404_v42 = vpop.xlane.xlu1 %403  ;;  %v429_v43 = vmul.f32 %v1663_v39, %v1875_v36  ;;  %v1468_v36 = vld [vmem:[%s2153_s3] ss:$0 sm:$0xff] }
 0x147   : > { %1672 = vrsqrt.f32 %v418_v40  ;;  %v412_v46 = vmul.f32 0.03125, %v404_v42 }
 0x148   : > { %1674 = vrsqrt.f32 %v419_v41  ;;  %v444_v52 = vmul.f32 %v1467_v47, %v429_v43 }
 0x149   : > { %v1665_v48 = vpop.eup %1664  ;;  %v420_v49 = vadd.f32 1e-05, %v412_v46 }
 0x14a   : > { %v1667_v50 = vpop.eup %1666  ;;  %v430_v51 = vmul.f32 %v1665_v48, %v1885_v44  ;;  %v459_v60 = vadd.f32 %v1468_v36, %v444_v52 }
 0x14b   : > { %v431_v53 = vmul.f32 %v1667_v50, %v1878_v37  ;;  %1676 = vrsqrt.f32 %v420_v49 }
 0x14c   : > { %v445_v56 = vmul.f32 %v1467_v47, %v430_v51 }
 0x14d   : > { %v1669_v57 = vpop.eup %1668  ;;  %v446_v62 = vmul.f32 %v1467_v47, %v431_v53 }
 0x14e   : > { %v1671_v58 = vpop.eup %1670  ;;  %v432_v59 = vmul.f32 %v1669_v57, %v1888_v45  ;;  %v460_v61 = vadd.f32 %v1468_v36, %v445_v56 }
 0x14f   : > { %v433_v63 = vmul.f32 %v1671_v58, %v1897_v54  ;;  %v461_v5 = vadd.f32 %v1468_v36, %v446_v62 }
 0x150   : > { %v467_v2 = vpack.c.bf16 %v460_v61, %v459_v60  ;;  %v447_v44 = vmul.f32 %v1467_v47, %v432_v59 }
 0x151   : > { %v1673_v3 = vpop.eup %1672  ;;  %v448_v10 = vmul.f32 %v1467_v47, %v433_v63 }
 0x152   : > { %v1675_v4 = vpop.eup %1674  ;;  %v434_v37 = vmul.f32 %v1673_v3, %v1900_v55  ;;  %1551 = vmatprep.mubr.msk.bf16.mxu0 %vm331_vm0, %v467_v2  ;;  %v462_v6 = vadd.f32 %v1468_v36, %v447_v44 }
 0x153   : > { %v435_v11 = vmul.f32 %v1675_v4, %v1909_v0  ;;  %v463_v54 = vadd.f32 %v1468_v36, %v448_v10 }
 0x154   : > { %v468_v13 = vpack.c.bf16 %v462_v6, %v461_v5  ;;  %v449_v45 = vmul.f32 %v1467_v47, %v434_v37 }
 0x155   : > { %v1677_v14 = vpop.eup %1676  ;;  %v450_v17 = vmul.f32 %v1467_v47, %v435_v11 }
 0x156   : > { %v436_v15 = vmul.f32 %v1677_v14, %v1912_v1  ;;  %1552 = vmatmul.mubr.msk.bf16.vlgmr.msra.gmra.mrb[0].mxu0 %vm331_vm0, %v468_v13  ;;  %v464_v16 = vadd.f32 %v1468_v36, %v449_v45 }
 0x157   : > { %v465_v55 = vadd.f32 %v1468_v36, %v450_v17 }
 0x158   : > { %v469_v18 = vpack.c.bf16 %v464_v16, %v463_v54  ;;  %v451_v19 = vmul.f32 %v1467_v47, %v436_v15 }
 0x15a   : > { %1555 = vmatprep.mubr.msk.bf16.mxu0 %vm331_vm0, %v469_v18  ;;  %v466_v22 = vadd.f32 %v1468_v36, %v451_v19 }
 0x15c   : > { %v470_v23 = vpack.c.bf16 %v466_v22, %v465_v55 }
 0x15e   : > { %1556 = vmatmul.mubr.msk.bf16.gmra.mrb[4].mxu0 %vm331_vm0, %v470_v23 }
 0x229   : > { %v1553_v0 = vpop.f32.mrb[0].mxu0 }
 0x22a   : > { %v540_v1 = vpop.f32.mrb[1].mxu0  ;;  %v549_v26 = vadd.f32 %v1553_v0, %v1469_v24 }
 0x22b   : > { %v1554_v25 = vpop.f32.mrb[2].mxu0  ;;  %v541_v31 = vadd.f32 %v1469_v24, %v540_v1 }
 0x22c   : > { %v552_v27 = vadd.f32 %v1554_v25, %v1469_v24  ;;  %v543_v30 = vpop.f32.mrb[3].mxu0 }
 0x22d   : > { %v544_v32 = vadd.f32 %v1469_v24, %v543_v30 }
 0x22e   : > { %v1949_v33 = vpack.c.bf16 %v552_v27, %v549_v26 }
 0x22f   : > { %v1951_v34 = vpack.c.bf16 %v544_v32, %v541_v31 }
 0x230   : > { %581 = vrot.lane.b32.xlu1 %v1949_v33, %s1750_s18 }
 0x231   : > { %579 = vrot.lane.b32.xlu0 %v1951_v34, %s1750_s18  ;;  %v1557_v35 = vpop.f32.mrb[4].mxu0  ;;  %1567 = vmatprep.mubr.msk.bf16.mxu1 %vm587_vm1, %v1951_v34 }
 0x232   : > { %v556_v38 = vpop.f32.mrb[5].mxu0  ;;  %v565_v40 = vadd.f32 %v1557_v35, %v1469_v24 }
 0x233   : > { %v1558_v39 = vpop.f32.mrb[6].mxu0  ;;  %v557_v43 = vadd.f32 %v1469_v24, %v556_v38 }
 0x234   : > { %v568_v41 = vadd.f32 %v1558_v39, %v1469_v24  ;;  %v559_v42 = vpop.f32.mrb[7].mxu0 }
 0x235   : > { %v560_v46 = vadd.f32 %v1469_v24, %v559_v42 }
 0x236   : > { %v1957_v47 = vpack.c.bf16 %v568_v41, %v565_v40 }
 0x237   : > { %v1959_v48 = vpack.c.bf16 %v560_v46, %v557_v43 }
 0x239   : > { %583 = vrot.lane.b32.xlu1 %v1959_v48, %s1750_s18 }
 0x23d   : > { %585 = vrot.lane.b32.xlu1 %v1957_v47, %s1750_s18 }
 0x2a2   : > { %v582_v51 = vpop.permute.xlu1 %581 }
 0x2a3   : > { %v580_v49 = vpop.permute.xlu0 %579  ;;  %v604_v52 = vsel %vm587_vm1, %v582_v51, 0 }
 0x2a4   : > { %1635 = vmatprep.subr.msk.bf16.mxu1 %vm587_vm1, %v580_v49  ;;  %v601_v50 = vsel %vm587_vm1, %v580_v49, 0 }
 0x2a5   : > { %1560 = vmatpush3.bf16.xpose.msra.mxu1 %v601_v50 }
 0x2a6   : > { %1636 = vmatprep.subr.msk.bf16.mxu1 %vm587_vm1, %v582_v51 }
 0x2ab   : > { %v584_v53 = vpop.permute.xlu1 %583 }
 0x2ac   : > { %v607_v36 = vsel %vm587_vm1, %v584_v53, 0 }
 0x2ad   : > { %1562 = vmatpush3.bf16.xpose.msra.mxu1 %v604_v52 }
 0x2ae   : > { %1637 = vmatprep.subr.msk.bf16.mxu1 %vm587_vm1, %v584_v53 }
 0x2af   : > { %v586_v56 = vpop.permute.xlu1 %585 }
 0x2b0   : > { %v610_v57 = vsel %vm587_vm1, %v586_v56, 0 }
 0x2b5   : > { %1564 = vmatpush3.bf16.xpose.msra.mxu1 %v607_v36 }
 0x2b6   : > { %1638 = vmatprep.subr.msk.bf16.mxu1 %vm587_vm1, %v586_v56 }
 0x2bd   : > { %1566 = vmatpush3.bf16.xpose.msra.mxu1 %v610_v57 }
 0x2c4   : > { %1568 = vmatmul.mubr.msk.bf16.vlgmr.msra.gmra.mrb[0].mxu1 %vm587_vm1, %v1949_v33 }
 0x2c5   : > { %1571 = vmatprep.mubr.msk.bf16.mxu1 %vm587_vm1, %v1959_v48 }
 0x2cc   : > { %1572 = vmatmul.mubr.msk.bf16.gmra.mrb[4].mxu1 %vm587_vm1, %v1957_v47 }
 0x397   : > { %v1569_v58 = vpop.f32.mrb[0].mxu1 }
 0x398   : > { %v646_v59 = vpop.f32.mrb[1].mxu1  ;;  %v684_v60 = vsel %vm677_vm2, %v1569_v58, -inf }
 0x399   : > { %685 = vmax.xlane.f32.xlu0 %v684_v60  ;;  %v1570_v61 = vpop.f32.mrb[2].mxu1  ;;  %v678_v2 = vsel %vm677_vm2, %v646_v59, -inf }
 0x39a   : > { %v649_v62 = vpop.f32.mrb[3].mxu1  ;;  %v687_v4 = vsel %vm677_vm2, %v1570_v61, -inf }
 0x39b   : > { %v681_v63 = vsel %vm677_vm2, %v649_v62, -inf }
 0x39c   : > { %682 = vmax.xlane.f32.xlu1 %v681_v63 }
 0x39d   : > { %679 = vmax.xlane.f32.xlu0 %v678_v2 }
 0x39f   : > { %v1573_v44 = vpop.f32.mrb[4].mxu1 }
 0x3a0   : > { %v662_v3 = vpop.f32.mrb[5].mxu1  ;;  %v696_v6 = vsel %vm677_vm2, %v1573_v44, -inf }
 0x3a1   : > { %688 = vmax.xlane.f32.xlu0 %v687_v4  ;;  %v1981_v37 = vpop.f32.mrb[6].mxu1  ;;  %v690_v10 = vsel %vm677_vm2, %v662_v3, -inf }
 0x3a2   : > { %v1983_v5 = vpop.f32.mrb[7].mxu1  ;;  %v699_v11 = vsel %vm677_vm2, %v1981_v37, -inf }
 0x3a3   : > { %v693_v13 = vsel %vm677_vm2, %v1983_v5, -inf }
 0x3a5   : > { %697 = vmax.xlane.f32.xlu0 %v696_v6 }
 0x3a9   : > { %691 = vmax.xlane.f32.xlu0 %v690_v10 }
 0x3ad   : > { %772 = vrot.lane.b32.xlu1 %v1949_v33, %s1751_s19 }
 0x3b1   : > { %774 = vrot.lane.b32.xlu1 %v1959_v48, %s1751_s19 }
 0x3bf   : > { %770 = vrot.lane.b32.xlu0 %v1951_v34, %s1751_s19 }
 0x3d5   : > { %700 = vmax.xlane.f32.xlu1 %v699_v11 }
 0x3d9   : > { %694 = vmax.xlane.f32.xlu1 %v693_v13 }
 0x3ea   : > { %776 = vrot.lane.b32.xlu1 %v1957_v47, %s1751_s19 }
 0x426   : > { %v686_v45 = vpop.xlane.xlu0 %685 }
 0x427   : > { %v704_v14 = vsub.f32 %v1569_v58, %v686_v45 }
 0x429   : > { %v714_v15 = vmul.f32 1.442695, %v704_v14  ;;  %v683_v54 = vpop.xlane.xlu1 %682 }
 0x42a   : > { %v680_v16 = vpop.xlane.xlu0 %679  ;;  %v703_v18 = vsub.f32 %v649_v62, %v683_v54 }
 0x42b   : > { %1678 = vpow2.f32 %v714_v15  ;;  %v702_v17 = vsub.f32 %v646_v59, %v680_v16 }
 0x42c   : > { %v712_v23 = vmul.f32 1.442695, %v703_v18 }
 0x42d   : > { %v710_v19 = vmul.f32 1.442695, %v702_v17  ;;  %v773_v38 = vpop.permute.xlu1 %772 }
 0x42e   : > { %v689_v55 = vpop.xlane.xlu0 %688 }
 0x42f   : > { %1680 = vpow2.f32 %v710_v19  ;;  %v705_v22 = vsub.f32 %v1570_v61, %v689_v55 }
 0x431   : > { %v716_v0 = vmul.f32 1.442695, %v705_v22  ;;  %v775_v46 = vpop.permute.xlu1 %774 }
 0x432   : > { %v698_v24 = vpop.xlane.xlu0 %697 }
 0x433   : > { %1682 = vpow2.f32 %v716_v0  ;;  %v708_v1 = vsub.f32 %v1573_v44, %v698_v24 }
 0x434   : > { %1684 = vpow2.f32 %v712_v23 }
 0x435   : > { %v1995_v25 = vpop.eup %1678  ;;  %v722_v26 = vmul.f32 1.442695, %v708_v1 }
 0x436   : > { %v692_v27 = vpop.xlane.xlu0 %691  ;;  %v732_v30 = vsel %vm677_vm2, %v1995_v25, 0.0 }
 0x437   : > { %1686 = vpow2.f32 %v722_v26  ;;  %v706_v31 = vsub.f32 %v662_v3, %v692_v27  ;;  %733 = vadd.xlane.f32.xlu0 %v732_v30 }
 0x439   : > { %v1999_v32 = vpop.eup %1680  ;;  %v718_v35 = vmul.f32 1.442695, %v706_v31 }
 0x43a   : > { %v771_v39 = vpop.permute.xlu0 %770  ;;  %v726_v40 = vsel %vm677_vm2, %v1999_v32, 0.0 }
 0x43b   : > { %1688 = vpow2.f32 %v718_v35  ;;  %727 = vadd.xlane.f32.xlu0 %v726_v40  ;;  %1575 = vmatprep.subr.bf16.mxu0 %v771_v39 }
 0x43c   : > { %1576 = vmatpush3.bf16.msra.mxu0 %v771_v39 }
 0x43d   : > { %v1683_v41 = vpop.eup %1682  ;;  %1577 = vmatprep.subr.bf16.mxu0 %v773_v38 }
 0x43e   : > { %v735_v42 = vsel %vm677_vm2, %v1683_v41, 0.0  ;;  %v1685_v43 = vpop.eup %1684 }
 0x43f   : > { %736 = vadd.xlane.f32.xlu1 %v735_v42  ;;  %v729_v51 = vsel %vm677_vm2, %v1685_v43, 0.0 }
 0x440   : > { %1578 = vmatpush3.bf16.msra.mxu0 %v773_v38 }
 0x441   : > { %v2004_v49 = vpop.eup %1686  ;;  %1579 = vmatprep.subr.bf16.mxu0 %v775_v46 }
 0x442   : > { %v744_v50 = vsel %vm677_vm2, %v2004_v49, 0.0 }
 0x443   : > { %745 = vadd.xlane.f32.xlu0 %v744_v50  ;;  %730 = vadd.xlane.f32.xlu1 %v729_v51 }
 0x444   : > { %1580 = vmatpush3.bf16.msra.mxu0 %v775_v46 }
 0x445   : > { %v2009_v52 = vpop.eup %1688 }
 0x446   : > { %v738_v53 = vsel %vm677_vm2, %v2009_v52, 0.0 }
 0x447   : > { %739 = vadd.xlane.f32.xlu0 %v738_v53 }
 0x454   : > { %877 = vrot.lane.b32.xlu1 %v1949_v33, %s1752_s20 }
 0x458   : > { %879 = vrot.lane.b32.xlu1 %v1959_v48, %s1752_s20 }
 0x462   : > { %v701_v36 = vpop.xlane.xlu1 %700 }
 0x463   : > { %v709_v56 = vsub.f32 %v1981_v37, %v701_v36 }
 0x465   : > { %v724_v57 = vmul.f32 1.442695, %v709_v56 }
 0x466   : > { %v695_v58 = vpop.xlane.xlu1 %694 }
 0x467   : > { %1690 = vpow2.f32 %v724_v57  ;;  %v707_v59 = vsub.f32 %v1983_v5, %v695_v58 }
 0x469   : > { %v720_v60 = vmul.f32 1.442695, %v707_v59 }
 0x46a   : > { %v777_v61 = vpop.permute.xlu1 %776 }
 0x46b   : > { %1581 = vmatprep.subr.bf16.mxu0 %v777_v61  ;;  %1692 = vpow2.f32 %v720_v60 }
 0x46c   : > { %1582 = vmatpush3.bf16.msra.mxu0 %v777_v61 }
 0x471   : > { %v1691_v62 = vpop.eup %1690 }
 0x472   : > { %v747_v63 = vsel %vm677_vm2, %v1691_v62, 0.0 }
 0x473   : > { %748 = vadd.xlane.f32.xlu0 %v747_v63 }
 0x475   : > { %v1693_v2 = vpop.eup %1692 }
 0x476   : > { %v741_v44 = vsel %vm677_vm2, %v1693_v2, 0.0 }
 0x47c   : > { %742 = vadd.xlane.f32.xlu1 %v741_v44 }
 0x489   : > { %875 = vrot.lane.b32.xlu0 %v1951_v34, %s1752_s20 }
 0x48d   : > { %867 = vrot.lane.b32.xlu0 %v1951_v34, %s1753_s21  ;;  %881 = vrot.lane.b32.xlu1 %v1957_v47, %s1752_s20 }
 0x491   : > { %871 = vrot.lane.b32.xlu0 %v1959_v48, %s1753_s21  ;;  %869 = vrot.lane.b32.xlu1 %v1949_v33, %s1753_s21 }
 0x495   : > { %873 = vrot.lane.b32.xlu1 %v1957_v47, %s1753_s21 }
 0x4c4   : > { %v734_v3 = vpop.xlane.xlu0 %733 }
 0x4c8   : > { %v728_v37 = vpop.xlane.xlu0 %727 }
 0x4cc   : > { %v737_v4 = vpop.xlane.xlu1 %736 }
 0x4cd   : > { %1694 = vrcp.f32 %v737_v4 }
 0x4ce   : > { %1696 = vrcp.f32 %v728_v37 }
 0x4cf   : > { %1698 = vrcp.f32 %v734_v3 }
 0x4d0   : > { %v731_v5 = vpop.xlane.xlu1 %730  ;;  %v746_v18 = vpop.xlane.xlu0 %745 }
 0x4d1   : > { %1700 = vrcp.f32 %v731_v5 }
 0x4d4   : > { %v740_v19 = vpop.xlane.xlu0 %739  ;;  %v878_v55 = vpop.permute.xlu1 %877 }
 0x4d7   : > { %v1695_v6 = vpop.eup %1694 }
 0x4d8   : > { %v1697_v10 = vpop.eup %1696  ;;  %v761_v45 = vmul.f32 %v1695_v6, %v1683_v41  ;;  %v880_v0 = vpop.permute.xlu1 %879 }
 0x4d9   : > { %v1699_v11 = vpop.eup %1698  ;;  %v758_v14 = vmul.f32 %v1697_v10, %v1999_v32  ;;  %v902_v35 = vsel %vm587_vm1, %v880_v0, 0 }
 0x4da   : > { %v760_v54 = vmul.f32 %v1699_v11, %v1995_v25  ;;  %v899_v25 = vsel %vm587_vm1, %v878_v55, 0 }
 0x4db   : > { %v1701_v13 = vpop.eup %1700 }
 0x4dc   : > { %v759_v15 = vmul.f32 %v1701_v13, %v1685_v43  ;;  %v767_v17 = vpack.c.bf16 %v761_v45, %v760_v54 }
 0x4de   : > { %v766_v16 = vpack.c.bf16 %v759_v15, %v758_v14 }
 0x4e0   : > { %1583 = vmatprep.mubr.msk.bf16.mxu0 %vm677_vm2, %v766_v16 }
 0x4e1   : > { %1584 = vmatmul.mubr.msk.bf16.vlgmr.msra.gmra.mrb[8].mxu0 %vm677_vm2, %v767_v17 }
 0x500   : > { %v749_v22 = vpop.xlane.xlu0 %748 }
 0x501   : > { %1702 = vrcp.f32 %v749_v22 }
 0x502   : > { %1704 = vrcp.f32 %v740_v19 }
 0x503   : > { %1706 = vrcp.f32 %v746_v18 }
 0x504   : > { %v876_v23 = vpop.permute.xlu0 %875 }
 0x505   : > { %v896_v24 = vsel %vm587_vm1, %v876_v23, 0  ;;  %1639 = vmatprep.subr.msk.bf16.mxu0 %vm587_vm1, %v876_v23 }
 0x506   : > { %1592 = vmatpush3.bf16.xpose.msra.mxu0 %v896_v24 }
 0x507   : > { %1640 = vmatprep.subr.msk.bf16.mxu0 %vm587_vm1, %v878_v55 }
 0x508   : > { %v868_v46 = vpop.permute.xlu0 %867 }
 0x509   : > { %v743_v1 = vpop.xlane.xlu1 %742 }
 0x50a   : > { %1708 = vrcp.f32 %v743_v1 }
 0x50b   : > { %v1703_v26 = vpop.eup %1702 }
 0x50c   : > { %v1705_v27 = vpop.eup %1704  ;;  %v765_v32 = vmul.f32 %v1703_v26, %v1691_v62 }
 0x50d   : > { %v1707_v30 = vpop.eup %1706  ;;  %v762_v38 = vmul.f32 %v1705_v27, %v2009_v52  ;;  %v882_v40 = vpop.permute.xlu1 %881 }
 0x50e   : > { %1594 = vmatpush3.bf16.xpose.msra.mxu0 %v899_v25  ;;  %v764_v41 = vmul.f32 %v1707_v30, %v2004_v49  ;;  %v905_v50 = vsel %vm587_vm1, %v882_v40, 0  ;;  %v872_v52 = vpop.permute.xlu0 %871 }
 0x50f   : > { %1641 = vmatprep.subr.msk.bf16.mxu0 %vm587_vm1, %v880_v0 }
 0x510   : > { %v769_v43 = vpack.c.bf16 %v765_v32, %v764_v41 }
 0x511   : > { %v870_v51 = vpop.permute.xlu1 %869 }
 0x514   : > { %v1709_v31 = vpop.eup %1708 }
 0x515   : > { %v763_v39 = vmul.f32 %v1709_v31, %v1693_v2  ;;  %v874_v49 = vpop.permute.xlu1 %873 }
 0x516   : > { %1596 = vmatpush3.bf16.xpose.msra.mxu0 %v902_v35 }
 0x517   : > { %1642 = vmatprep.subr.msk.bf16.mxu0 %vm587_vm1, %v882_v40  ;;  %v768_v42 = vpack.c.bf16 %v763_v39, %v762_v38 }
 0x519   : > { %1587 = vmatprep.mubr.msk.bf16.mxu0 %vm677_vm2, %v768_v42 }
 0x51a   : > { %1588 = vmatmul.mubr.msk.bf16.gmra.mrb[12].mxu0 %vm677_vm2, %v769_v43 }
 0x51b   : > { %1599 = vmatprep.mubr.msk.bf16.mxu0 %vm587_vm1, %v868_v46 }
 0x51e   : > { %1598 = vmatpush3.bf16.xpose.msra.mxu0 %v905_v50 }
 0x525   : > { %1600 = vmatmul.mubr.msk.bf16.vlgmr.msra.gmra.mrb[16].mxu0 %vm587_vm1, %v870_v51 }
 0x526   : > { %1603 = vmatprep.mubr.msk.bf16.mxu0 %vm587_vm1, %v872_v52 }
 0x52d   : > { %1604 = vmatmul.mubr.msk.bf16.gmra.mrb[20].mxu0 %vm587_vm1, %v874_v49 }
 0x5b4   : > { %v1585_v53 = vpop.f32.mrb[8].mxu0 }
 0x5b5   : > { %861 = vst.msk [vmem:[#allocation2 + $0x10] sm:$0xff] %vm587_vm1, %v1585_v53  ;;  %v828_v36 = vpop.f32.mrb[9].mxu0 }
 0x5b6   : > { %859 = vst.msk [vmem:[#allocation2] sm:$0xff] %vm587_vm1, %v828_v36  ;;  %v1586_v56 = vpop.f32.mrb[10].mxu0 }
 0x5b7   : > { %862 = vst.msk [vmem:[#allocation2 + $0x18] sm:$0xff] %vm587_vm1, %v1586_v56  ;;  %v831_v57 = vpop.f32.mrb[11].mxu0 }
 0x5b8   : > { %860 = vst.msk [vmem:[#allocation2 + $0x8] sm:$0xff] %vm587_vm1, %v831_v57 }
 0x5ed   : > { %v1589_v58 = vpop.f32.mrb[12].mxu0 }
 0x5ee   : > { %865 = vst.msk [vmem:[#allocation2 + $0x30] sm:$0xff] %vm587_vm1, %v1589_v58  ;;  %v844_v59 = vpop.f32.mrb[13].mxu0 }
 0x5ef   : > { %863 = vst.msk [vmem:[#allocation2 + $0x20] sm:$0xff] %vm587_vm1, %v844_v59  ;;  %v1590_v60 = vpop.f32.mrb[14].mxu0 }
 0x5f0   : > { %866 = vst.msk [vmem:[#allocation2 + $0x38] sm:$0xff] %vm587_vm1, %v1590_v60  ;;  %v847_v61 = vpop.f32.mrb[15].mxu0 }
 0x5f1   : > { %864 = vst.msk [vmem:[#allocation2 + $0x28] sm:$0xff] %vm587_vm1, %v847_v61 }
 0x5f8   : > { %v1601_v62 = vpop.f32.mrb[16].mxu0 }
 0x5f9   : > { %v941_v63 = vpop.f32.mrb[17].mxu0  ;;  %v978_v37 = vsel %vm677_vm2, %v1601_v62, -inf }
 0x5fa   : > { %v1602_v2 = vpop.f32.mrb[18].mxu0  ;;  %v972_v44 = vsel %vm677_vm2, %v941_v63, -inf }
 0x5fb   : > { %973 = vmax.xlane.f32.xlu0 %v972_v44  ;;  %v944_v3 = vpop.f32.mrb[19].mxu0  ;;  %v981_v11 = vsel %vm677_vm2, %v1602_v2, -inf }
 0x5fc   : > { %v975_v4 = vsel %vm677_vm2, %v944_v3, -inf }
 0x5fd   : > { %976 = vmax.xlane.f32.xlu1 %v975_v4 }
 0x5ff   : > { %979 = vmax.xlane.f32.xlu0 %v978_v37 }
 0x600   : > { %v1605_v5 = vpop.f32.mrb[20].mxu0 }
 0x601   : > { %v957_v6 = vpop.f32.mrb[21].mxu0  ;;  %v990_v54 = vsel %vm677_vm2, %v1605_v5, -inf }
 0x602   : > { %v1606_v10 = vpop.f32.mrb[22].mxu0  ;;  %v984_v14 = vsel %vm677_vm2, %v957_v6, -inf }
 0x603   : > { %982 = vmax.xlane.f32.xlu0 %v981_v11  ;;  %v960_v13 = vpop.f32.mrb[23].mxu0  ;;  %v993_v15 = vsel %vm677_vm2, %v1606_v10, -inf }
 0x604   : > { %v987_v45 = vsel %vm677_vm2, %v960_v13, -inf }
 0x605   : > { %988 = vmax.xlane.f32.xlu1 %v987_v45 }
 0x607   : > { %985 = vmax.xlane.f32.xlu0 %v984_v14 }
 0x609   : > { %994 = vmax.xlane.f32.xlu1 %v993_v15 }
 0x60b   : > { %991 = vmax.xlane.f32.xlu0 %v990_v54 }
 0x688   : > { %v974_v16 = vpop.xlane.xlu0 %973 }
 0x689   : > { %v996_v17 = vsub.f32 %v941_v63, %v974_v16 }
 0x68a   : > { %v977_v18 = vpop.xlane.xlu1 %976 }
 0x68b   : > { %v1004_v22 = vmul.f32 1.442695, %v996_v17  ;;  %v997_v23 = vsub.f32 %v944_v3, %v977_v18 }
 0x68c   : > { %v980_v19 = vpop.xlane.xlu0 %979 }
 0x68d   : > { %v998_v55 = vsub.f32 %v1601_v62, %v980_v19  ;;  %v1006_v25 = vmul.f32 1.442695, %v997_v23 }
 0x68f   : > { %v1008_v0 = vmul.f32 1.442695, %v998_v55 }
 0x690   : > { %v983_v24 = vpop.xlane.xlu0 %982 }
 0x691   : > { %1710 = vpow2.f32 %v1008_v0  ;;  %v999_v1 = vsub.f32 %v1602_v2, %v983_v24 }
 0x692   : > { %1712 = vpow2.f32 %v1004_v22  ;;  %v989_v56 = vpop.xlane.xlu1 %988 }
 0x693   : > { %v1010_v26 = vmul.f32 1.442695, %v999_v1  ;;  %v1001_v59 = vsub.f32 %v960_v13, %v989_v56 }
 0x694   : > { %v986_v27 = vpop.xlane.xlu0 %985 }
 0x695   : > { %1714 = vpow2.f32 %v1010_v26  ;;  %v1000_v30 = vsub.f32 %v957_v6, %v986_v27  ;;  %v1014_v61 = vmul.f32 1.442695, %v1001_v59 }
 0x696   : > { %1716 = vpow2.f32 %v1006_v25  ;;  %v995_v57 = vpop.xlane.xlu1 %994 }
 0x697   : > { %v1012_v38 = vmul.f32 1.442695, %v1000_v30  ;;  %v1003_v58 = vsub.f32 %v1606_v10, %v995_v57 }
 0x698   : > { %v992_v31 = vpop.xlane.xlu0 %991 }
 0x699   : > { %v1002_v32 = vsub.f32 %v1605_v5, %v992_v31  ;;  %v1018_v60 = vmul.f32 1.442695, %v1003_v58 }
 0x69b   : > { %v2065_v35 = vpop.eup %1710  ;;  %v1016_v39 = vmul.f32 1.442695, %v1002_v32 }
 0x69c   : > { %v1026_v40 = vsel %vm677_vm2, %v2065_v35, 0.0  ;;  %v1713_v41 = vpop.eup %1712 }
 0x69d   : > { %1718 = vpow2.f32 %v1016_v39  ;;  %1027 = vadd.xlane.f32.xlu0 %v1026_v40  ;;  %v1020_v43 = vsel %vm677_vm2, %v1713_v41, 0.0 }
 0x69e   : > { %1720 = vpow2.f32 %v1012_v38  ;;  %v1661_v38 = vld [vmem:[%s2156_s6 + $0x8] sm:$0xff]  }
 0x69f   : > { %v2069_v42 = vpop.eup %1714  ;;  %1722 = vpow2.f32 %v1018_v60 }
 0x6a0   : > { %v1029_v46 = vsel %vm677_vm2, %v2069_v42, 0.0  ;;  %v1717_v50 = vpop.eup %1716  ;;  %1724 = vpow2.f32 %v1014_v61 }
 0x6a1   : > { %1021 = vadd.xlane.f32.xlu0 %v1020_v43  ;;  %1030 = vadd.xlane.f32.xlu1 %v1029_v46  ;;  %v1023_v51 = vsel %vm677_vm2, %v1717_v50, 0.0 }
 0x6a5   : > { %1024 = vadd.xlane.f32.xlu1 %v1023_v51 }
 0x6a7   : > { %v2075_v52 = vpop.eup %1718 }
 0x6a8   : > { %v1038_v49 = vsel %vm677_vm2, %v2075_v52, 0.0  ;;  %v2079_v53 = vpop.eup %1720 }
 0x6a9   : > { %1039 = vadd.xlane.f32.xlu0 %v1038_v49  ;;  %v1032_v36 = vsel %vm677_vm2, %v2079_v53, 0.0  ;;  %v1723_v62 = vpop.eup %1722 }
 0x6aa   : > { %v1041_v63 = vsel %vm677_vm2, %v1723_v62, 0.0  ;;  %v1725_v2 = vpop.eup %1724 }
 0x6ab   : > { %v1035_v44 = vsel %vm677_vm2, %v1725_v2, 0.0 }
 0x6ad   : > { %1033 = vadd.xlane.f32.xlu0 %v1032_v36 }
 0x6b6   : > { %1066 = vrot.lane.b32.xlu1 %v1949_v33, %s1754_s22 }
 0x6ba   : > { %1068 = vrot.lane.b32.xlu1 %v1959_v48, %s1754_s22 }
 0x6c3   : > { %1064 = vrot.lane.b32.xlu0 %v1951_v34, %s1754_s22 }
 0x6de   : > { %1042 = vadd.xlane.f32.xlu1 %v1041_v63 }
 0x6e2   : > { %1036 = vadd.xlane.f32.xlu1 %v1035_v44 }
 0x6f3   : > { %1070 = vrot.lane.b32.xlu1 %v1957_v47, %s1754_s22 }
 0x72a   : > { %v1028_v33 = vpop.xlane.xlu0 %1027 }
 0x72e   : > { %v1022_v48 = vpop.xlane.xlu0 %1021  ;;  %v1031_v34 = vpop.xlane.xlu1 %1030 }
 0x72f   : > { %1726 = vrcp.f32 %v1022_v48 }
 0x732   : > { %v1025_v3 = vpop.xlane.xlu1 %1024 }
 0x733   : > { %1728 = vrcp.f32 %v1025_v3 }
 0x734   : > { %1730 = vrcp.f32 %v1031_v34 }
 0x735   : > { %1732 = vrcp.f32 %v1028_v33 }
 0x736   : > { %v1040_v4 = vpop.xlane.xlu0 %1039  ;;  %v1067_v10 = vpop.permute.xlu1 %1066 }
 0x739   : > { %v1727_v5 = vpop.eup %1726 }
 0x73a   : > { %v1034_v37 = vpop.xlane.xlu0 %1033  ;;  %v1052_v13 = vmul.f32 %v1727_v5, %v1713_v41  ;;  %v1069_v47 = vpop.permute.xlu1 %1068  ;;  %v1492_v5 = vld [vmem:[%s2157_s7] ss:$0 sm:$0xff] }
 0x73d   : > { %v1729_v6 = vpop.eup %1728 }
 0x73e   : > { %v1065_v11 = vpop.permute.xlu0 %1064  ;;  %v1053_v45 = vmul.f32 %v1729_v6, %v1717_v50  ;;  %v1731_v54 = vpop.eup %1730 }
 0x73f   : > { %1607 = vmatprep.subr.bf16.mxu1 %v1065_v11  ;;  %v1733_v17 = vpop.eup %1732  ;;  %v1055_v18 = vmul.f32 %v1731_v54, %v2069_v42 }
 0x740   : > { %1608 = vmatpush3.bf16.msra.mxu1 %v1065_v11  ;;  %v1060_v14 = vpack.c.bf16 %v1053_v45, %v1052_v13  ;;  %v1054_v55 = vmul.f32 %v1733_v17, %v2065_v35  ;;  %v1660_v35 = vld [vmem:[%s2156_s6] sm:$0xff]  }
 0x741   : > { %1609 = vmatprep.subr.bf16.mxu1 %v1067_v10 }
 0x742   : > { %1615 = vmatprep.mubr.msk.bf16.mxu1 %vm677_vm2, %v1060_v14  ;;  %v1061_v22 = vpack.c.bf16 %v1055_v18, %v1054_v55 }
 0x744   : > { %1610 = vmatpush3.bf16.msra.mxu1 %v1067_v10 }
 0x745   : > { %1611 = vmatprep.subr.bf16.mxu1 %v1069_v47 }
 0x748   : > { %1612 = vmatpush3.bf16.msra.mxu1 %v1069_v47 }
 0x76b   : > { %v1043_v15 = vpop.xlane.xlu1 %1042 }
 0x76c   : > { %1734 = vrcp.f32 %v1043_v15 }
 0x76d   : > { %1736 = vrcp.f32 %v1034_v37 }
 0x76e   : > { %1738 = vrcp.f32 %v1040_v4 }
 0x76f   : > { %v1037_v16 = vpop.xlane.xlu1 %1036 }
 0x770   : > { %1740 = vrcp.f32 %v1037_v16 }
 0x773   : > { %v1071_v19 = vpop.permute.xlu1 %1070 }
 0x774   : > { %1613 = vmatprep.subr.bf16.mxu1 %v1071_v19 }
 0x775   : > { %1614 = vmatpush3.bf16.msra.mxu1 %v1071_v19 }
 0x776   : > { %v1735_v23 = vpop.eup %1734  ;;  %1623 = vmatprep.subr.bf16.mxu1 %v1660_v35 }
 0x777   : > { %v1737_v0 = vpop.eup %1736  ;;  %v1059_v25 = vmul.f32 %v1735_v23, %v1723_v62 }
 0x778   : > { %1616 = vmatmul.mubr.msk.bf16.vlgmr.msra.gmra.mrb[8].mxu1 %vm677_vm2, %v1061_v22  ;;  %v1739_v24 = vpop.eup %1738  ;;  %v1056_v26 = vmul.f32 %v1737_v0, %v2079_v53 }
 0x779   : > { %v1058_v30 = vmul.f32 %v1739_v24, %v2075_v52  ;;  %1624 = vmatpush3.bf16.msra.mxu1 %v1660_v35 }
 0x77a   : > { %v1741_v1 = vpop.eup %1740  ;;  %1625 = vmatprep.subr.bf16.mxu1 %v1661_v38 }
 0x77b   : > { %v1057_v27 = vmul.f32 %v1741_v1, %v1725_v2  ;;  %v1063_v32 = vpack.c.bf16 %v1059_v25, %v1058_v30 }
 0x77d   : > { %v1062_v31 = vpack.c.bf16 %v1057_v27, %v1056_v26  ;;  %1626 = vmatpush3.bf16.msra.mxu1 %v1661_v38 }
 0x77f   : > { %1619 = vmatprep.mubr.msk.bf16.mxu1 %vm677_vm2, %v1062_v31 }
 0x780   : > { %1620 = vmatmul.mubr.msk.bf16.gmra.mrb[12].mxu1 %vm677_vm2, %v1063_v32 }
 0x84b   : > { %v1617_v39 = vpop.f32.mrb[8].mxu1 }
 0x84c   : > { %v1122_v40 = vpop.f32.mrb[9].mxu1 }
 0x84d   : > { %1161 = vrot.lane.b32.xlu0 %v1122_v40, %s1755_s29  ;;  %v1618_v41 = vpop.f32.mrb[10].mxu1 }
 0x84e   : > { %v1125_v42 = vpop.f32.mrb[11].mxu1 }
 0x84f   : > { %1163 = vrot.lane.b32.xlu1 %v1125_v42, %s1755_s29 }
 0x851   : > { %1165 = vrot.lane.b32.xlu0 %v1617_v39, %s1755_s29 }
 0x853   : > { %1167 = vrot.lane.b32.xlu1 %v1618_v41, %s1755_s29  ;;  %v1621_v43 = vpop.f32.mrb[12].mxu1 }
 0x854   : > { %v1138_v46 = vpop.f32.mrb[13].mxu1 }
 0x855   : > { %1169 = vrot.lane.b32.xlu0 %v1138_v46, %s1755_s29  ;;  %v1622_v50 = vpop.f32.mrb[14].mxu1 }
 0x856   : > { %v1141_v51 = vpop.f32.mrb[15].mxu1 }
 0x857   : > { %1171 = vrot.lane.b32.xlu1 %v1141_v51, %s1755_s29 }
 0x859   : > { %1173 = vrot.lane.b32.xlu0 %v1621_v43, %s1755_s29 }
 0x85b   : > { %1175 = vrot.lane.b32.xlu1 %v1622_v50, %s1755_s29 }
 0x8bf   : > { %v1162_v52 = vpop.permute.xlu0 %1161 }
 0x8c0   : > { %1186 = vst.msk [vmem:[#allocation2] sm:$0xff] %vm1185_vm3, %v1162_v52 }
 0x8c1   : > { %v1164_v49 = vpop.permute.xlu1 %1163 }
 0x8c2   : > { %1187 = vst.msk [vmem:[#allocation2 + $0x8] sm:$0xff] %vm1185_vm3, %v1164_v49 }
 0x8c3   : > { %v1166_v53 = vpop.permute.xlu0 %1165 }
 0x8c4   : > { %1188 = vst.msk [vmem:[#allocation2 + $0x10] sm:$0xff] %vm1185_vm3, %v1166_v53 }
 0x8c5   : > { %v1168_v36 = vpop.permute.xlu1 %1167 }
 0x8c6   : > { %1189 = vst.msk [vmem:[#allocation2 + $0x18] sm:$0xff] %vm1185_vm3, %v1168_v36 }
 0x8c7   : > { %v1170_v56 = vpop.permute.xlu0 %1169  ;;  %v1194_v58 = vld [vmem:[#allocation2] sm:$0xff] }
 0x8c8   : > { %1190 = vst.msk [vmem:[#allocation2 + $0x20] sm:$0xff] %vm1185_vm3, %v1170_v56 }
 0x8c9   : > { %v1172_v57 = vpop.permute.xlu1 %1171  ;;  %v1195_v59 = vld [vmem:[#allocation2 + $0x8] sm:$0xff] }
 0x8ca   : > { %1191 = vst.msk [vmem:[#allocation2 + $0x28] sm:$0xff] %vm1185_vm3, %v1172_v57  ;;  %v1202_v60 = vpack.c.bf16 %v1195_v59, %v1194_v58 }
 0x8cb   : > { %v1174_v61 = vpop.permute.xlu0 %1173  ;;  %v1196_v63 = vld [vmem:[#allocation2 + $0x10] sm:$0xff] }
 0x8cc   : > { %1192 = vst.msk [vmem:[#allocation2 + $0x30] sm:$0xff] %vm1185_vm3, %v1174_v61  ;;  %1627 = vmatprep.mubr.msk.bf16.mxu1 %vm331_vm0, %v1202_v60 }
 0x8cd   : > { %v1176_v62 = vpop.permute.xlu1 %1175  ;;  %v1197_v2 = vld [vmem:[#allocation2 + $0x18] sm:$0xff] }
 0x8ce   : > { %1193 = vst.msk [vmem:[#allocation2 + $0x38] sm:$0xff] %vm1185_vm3, %v1176_v62  ;;  %v1203_v44 = vpack.c.bf16 %v1197_v2, %v1196_v63 }
 0x8cf   : > { %v1198_v33 = vld [vmem:[#allocation2 + $0x20] sm:$0xff] }
 0x8d0   : > { %1628 = vmatmul.mubr.msk.bf16.vlgmr.msra.gmra.mrb[16].mxu1 %vm331_vm0, %v1203_v44 }
 0x8d1   : > { %v1199_v48 = vld [vmem:[#allocation2 + $0x28] sm:$0xff] }
 0x8d2   : > { %v1204_v34 = vpack.c.bf16 %v1199_v48, %v1198_v33 }
 0x8d3   : > { %v1200_v3 = vld [vmem:[#allocation2 + $0x30] sm:$0xff] }
 0x8d4   : > { %1631 = vmatprep.mubr.msk.bf16.mxu1 %vm331_vm0, %v1204_v34 }
 0x8d5   : > { %v1201_v4 = vld [vmem:[#allocation2 + $0x38] sm:$0xff] }
 0x8d6   : > { %v1205_v37 = vpack.c.bf16 %v1201_v4, %v1200_v3 }
 0x8d8   : > { %1632 = vmatmul.mubr.msk.bf16.gmra.mrb[20].mxu1 %vm331_vm0, %v1205_v37 }
 0x9a3   : > { %v1629_v6 = vpop.f32.mrb[16].mxu1 }
 0x9a4   : > { %v1284_v10 = vadd.f32 %v1629_v6, %v1492_v5  ;;  %v1275_v11 = vpop.f32.mrb[17].mxu1 }
 0x9a5   : > { %v1630_v13 = vpop.f32.mrb[18].mxu1  ;;  %v1276_v14 = vadd.f32 %v1492_v5, %v1275_v11 }
 0x9a6   : > { %v1308_v45 = vadd.f32 %v1284_v10, %v1832_v8  ;;  %v1287_v47 = vadd.f32 %v1630_v13, %v1492_v5  ;;  %v1278_v15 = vpop.f32.mrb[19].mxu1 }
 0x9a7   : > { %v1279_v16 = vadd.f32 %v1492_v5, %v1278_v15  ;;  %v1306_v17 = vadd.f32 %v1276_v14, %v1830_v7 }
 0x9a8   : > { %v1309_v54 = vadd.f32 %v1287_v47, %v1839_v12  ;;  %1326 = vrot.lane.b32.xlu0 %v1308_v45, %s1756_s10 }
 0x9a9   : > { %v1307_v19 = vadd.f32 %v1279_v16, %v1834_v9 }
 0x9aa   : > { %1328 = vrot.lane.b32.xlu1 %v1309_v54, %s1756_s10 }
 0x9ab   : > { %v1633_v18 = vpop.f32.mrb[20].mxu1 }
 0x9ac   : > { %v1291_v55 = vpop.f32.mrb[21].mxu1  ;;  %1322 = vrot.lane.b32.xlu0 %v1306_v17, %s1756_s10  ;;  %v1300_v8 = vadd.f32 %v1633_v18, %v1492_v5 }
 0x9ad   : > { %v1292_v22 = vadd.f32 %v1492_v5, %v1291_v55  ;;  %v1634_v23 = vpop.f32.mrb[22].mxu1 }
 0x9ae   : > { %v1294_v0 = vpop.f32.mrb[23].mxu1  ;;  %1324 = vrot.lane.b32.xlu1 %v1307_v19, %s1756_s10  ;;  %v1303_v12 = vadd.f32 %v1634_v23, %v1492_v5  ;;  %v1312_v7 = vadd.f32 %v1300_v8, %v1866_v28 }
 0x9af   : > { %v1310_v24 = vadd.f32 %v1292_v22, %v1852_v20  ;;  %v1295_v1 = vadd.f32 %v1492_v5, %v1294_v0 }
 0x9b0   : > { %v1313_v26 = vadd.f32 %v1303_v12, %v1868_v29 }
 0x9b1   : > { %v1311_v25 = vadd.f32 %v1295_v1, %v1854_v21  ;;  %1330 = vrot.lane.b32.xlu0 %v1310_v24, %s1756_s10 }
 0x9b3   : > { %1332 = vrot.lane.b32.xlu1 %v1311_v25, %s1756_s10 }
 0x9b5   : > { %1334 = vrot.lane.b32.xlu0 %v1312_v7, %s1756_s10 }
 0x9b7   : > { %1336 = vrot.lane.b32.xlu1 %v1313_v26, %s1756_s10 }
 0xa1a   : > { %v1327_v9 = vpop.permute.xlu0 %1326 }
 0xa1b   : > { %v1348_v27 = vmax.f32 %v1308_v45, %v1327_v9 }
 0xa1c   : > { %v1329_v30 = vpop.permute.xlu1 %1328 }
 0xa1d   : > { %v1349_v31 = vmax.f32 %v1309_v54, %v1329_v30  ;;  %1366 = vrot.lane.b32.xlu0 %v1348_v27, %s1753_s21 }
 0xa1e   : > { %v1323_v32 = vpop.permute.xlu0 %1322 }
 0xa1f   : > { %v1346_v20 = vmax.f32 %v1306_v17, %v1323_v32  ;;  %1368 = vrot.lane.b32.xlu1 %v1349_v31, %s1753_s21 }
 0xa20   : > { %v1325_v35 = vpop.permute.xlu1 %1324 }
 0xa21   : > { %v1347_v21 = vmax.f32 %v1307_v19, %v1325_v35  ;;  %1362 = vrot.lane.b32.xlu0 %v1346_v20, %s1753_s21 }
 0xa23   : > { %1364 = vrot.lane.b32.xlu1 %v1347_v21, %s1753_s21  ;;  %v1331_v28 = vpop.permute.xlu0 %1330 }
 0xa24   : > { %v1350_v29 = vmax.f32 %v1310_v24, %v1331_v28 }
 0xa25   : > { %v1333_v38 = vpop.permute.xlu1 %1332 }
 0xa26   : > { %v1351_v39 = vmax.f32 %v1311_v25, %v1333_v38  ;;  %1370 = vrot.lane.b32.xlu0 %v1350_v29, %s1753_s21 }
 0xa27   : > { %v1335_v40 = vpop.permute.xlu0 %1334 }
 0xa28   : > { %v1352_v41 = vmax.f32 %v1312_v7, %v1335_v40  ;;  %1372 = vrot.lane.b32.xlu1 %v1351_v39, %s1753_s21 }
 0xa29   : > { %v1337_v42 = vpop.permute.xlu1 %1336 }
 0xa2a   : > { %v1353_v43 = vmax.f32 %v1313_v26, %v1337_v42  ;;  %1374 = vrot.lane.b32.xlu0 %v1352_v41, %s1753_s21 }
 0xa2c   : > { %1376 = vrot.lane.b32.xlu1 %v1353_v43, %s1753_s21 }
 0xa8f   : > { %v1367_v46 = vpop.permute.xlu0 %1366 }
 0xa90   : > { %v1388_v50 = vmax.f32 %v1348_v27, %v1367_v46 }
 0xa91   : > { %v1369_v51 = vpop.permute.xlu1 %1368 }
 0xa92   : > { %1397 = vst.msk [vmem:[%s305_s14 + $0x10] sm:$0xff] %vm1394_vm4, %v1388_v50  ;;  %v1389_v52 = vmax.f32 %v1349_v31, %v1369_v51 }
 0xa93   : > { %v1363_v49 = vpop.permute.xlu0 %1362 }
 0xa94   : > { %1398 = vst.msk [vmem:[%s305_s14 + $0x18] sm:$0xff] %vm1394_vm4, %v1389_v52  ;;  %v1386_v53 = vmax.f32 %v1346_v20, %v1363_v49 }
 0xa95   : > { %v1365_v36 = vpop.permute.xlu1 %1364 }
 0xa96   : > { %1395 = vst.msk [vmem:[%s305_s14] sm:$0xff] %vm1394_vm4, %v1386_v53  ;;  %v1387_v56 = vmax.f32 %v1347_v21, %v1365_v36 }
 0xa98   : > { %1396 = vst.msk [vmem:[%s305_s14 + $0x8] sm:$0xff] %vm1394_vm4, %v1387_v56  ;;  %v1371_v57 = vpop.permute.xlu0 %1370 }
 0xa99   : > { %v1390_v58 = vmax.f32 %v1350_v29, %v1371_v57 }
 0xa9a   : > { %v1373_v59 = vpop.permute.xlu1 %1372 }
 0xa9b   : > { %1399 = vst.msk [vmem:[%s305_s14 + $0x20] sm:$0xff] %vm1394_vm4, %v1390_v58  ;;  %v1391_v60 = vmax.f32 %v1351_v39, %v1373_v59 }
 0xa9c   : > { %v1375_v61 = vpop.permute.xlu0 %1374 }
 0xa9d   : > { %1400 = vst.msk [vmem:[%s305_s14 + $0x28] sm:$0xff] %vm1394_vm4, %v1391_v60  ;;  %v1392_v62 = vmax.f32 %v1352_v41, %v1375_v61 }
 0xa9e   : > { %v1377_v63 = vpop.permute.xlu1 %1376 }
 0xa9f   : > { %1401 = vst.msk [vmem:[%s305_s14 + $0x30] sm:$0xff] %vm1394_vm4, %v1392_v62  ;;  %v1393_v2 = vmax.f32 %v1353_v43, %v1377_v63 }
 0xaa1   : > { %1402 = vst.msk [vmem:[%s305_s14 + $0x38] sm:$0xff] %vm1394_vm4, %v1393_v2 }
 0xaa2 PF: > { %s18_s27 = sadd.s32 1, %s1748_s27  }
 0xaa3   : > { %p15_p4 = scmp.ge.s32.totalorder %s18_s27, 4  }
 0xaa5   :  { %17 = sbr.rel (!%p15_p4) target bundleno = 1 (0x1), region = 82 }

// kernel: _lambda_.10
= control target key start
LH: loop header
LB: loop body
LE: loop exit
PB: predicated region body
PF: predicated region fallthrough
CT: control target
= control target key end

     0   :  { %s1591_s12 = smov 0   ;;  %s2035_s0 = inlined_call_operand.vmem [shape: bf16[2,10,10,8], index: 0, kind: input, shape index: {}]   ;;  %s2036_s1 = inlined_call_operand.vmem [shape: bf16[3,24,16], index: 1, kind: input, shape index: {}]   ;;  %s2037_s2 = inlined_call_operand.vmem [shape: f32[1,16], index: 2, kind: input, shape index: {}]   ;;  %s2038_s3 = inlined_call_operand.vmem [shape: f32[2,64,16], index: 3, kind: output, shape index: {}]  }
   0x1 LB: > { %s1274_s13 = sadd.s32 4294967295, %s1567_s12   ;;  %p1278_p0 = scmp.ge.s32.totalorder %s1567_s12, 1  ;;  %s1567_s12 = sphi %s1591_s12, %s13_s12  }
   0x2   : > { %p137_p1 = scmp.lt.s32.totalorder %s1567_s12, 3 }
   0x4   : > { %p138_p2 = pnand %p1278_p0, %p137_p1 }
   0x5   : > { %p161_p3 = scmp.lt.s32.totalorder (!%p138_p2), %s1274_s13, 1  ;;  %s1569_s18 = smov (!%p138_p2), 16   ;;  %v1673_v48 = vld [vmem:[%s2036_s1] sm:$0xff] (!%p138_p2)   ;;  %v1556_v57 = vld [vmem:[%s2036_s1 + $0xc] sm:$0xff] (!%p138_p2)   ;;  %vm672_vm0 = vcmask (!%p138_p2), 1043456   ;;  %vm356_vm1 = vcmask (!%p138_p2), 64512  }
   0x6   : > { %141 = sbr.rel (%p138_p2) target bundleno = 454 (0x1c6), region = 32  ;;  %s1570_s19 = smov (!%p138_p2), 8   ;;  %1448 = vmatprep.subr.bf16.mxu0 (!%p138_p2), %v1673_v48  ;;  %1436 = vmatprep.subr.bf16.mxu1 (!%p138_p2), %v1556_v57  ;;  %vm381_vm2 = vcmask (!%p138_p2), 130048   ;;  %vm659_vm3 = vcmask (!%p138_p2), 195584  }
   0x7   : > { %1449 = vmatpush3.bf16.msra.mxu0 (!%p138_p2), %v1673_v48  ;;  %1437 = vmatpush3.bf16.msra.mxu1 (!%p138_p2), %v1556_v57 }
   0xd   : > { %s2040_s13 = smov (!%p161_p3, %s1274_s13), 1 }
   0xe   : > { %s1496_s14 = smul.u32 80, %s2040_s13  ;;  %s1417_s5 = sshll.u32 %s2040_s13, 6 }
   0xf   : > { %s2014_s10 = scalar_lea.vmem %s2038_s3, %s1417_s5 }
  0x10   : > { %s1605_s17 = scalar_lea.vmem %s2035_s0, %s1496_s14 }
  0x11   : > { %v181_v0 = vld [vmem:[%s1605_s17 + $0xc] sm:$0x1]  ;;  %v189_v1 = vld [vmem:[%s1605_s17 + $0x8] sm:$0xe]  ;;  %v180_v5 = vld [vmem:[%s1605_s17 + $0x4] sm:$0x1] }
  0x12   : > { %v1610_v2 = vld [vmem:[%s1605_s17 + $0x8] sm:$0xf]  ;;  %v1291_v3 = vcombine.low %v189_v1, %v181_v0  ;;  %v188_v6 = vld [vmem:[%s1605_s17] sm:$0xe]  ;;  %v1623_v11 = vld [vmem:[%s1605_s17 + $0xc] sm:$0x1] }
  0x13   : > { %v1283_v4 = vcombine.low %v1610_v2, %v181_v0  ;;  %v1616_v7 = vld [vmem:[%s1605_s17] sm:$0xf]  ;;  %v1290_v8 = vcombine.low %v188_v6, %v180_v5  ;;  %v1620_v10 = vld [vmem:[%s1605_s17 + $0x8] sm:$0xf]  ;;  %v1626_v12 = vld [vmem:[%s1605_s17 + $0x10] sm:$0xf] }
  0x14   : > { %v1282_v9 = vcombine.low %v1616_v7, %v180_v5  ;;  %v333_v13 = vrot.slane %v1291_v3, 1  ;;  %v1322_v15 = vcombine.low %v1620_v10, %v1623_v11  ;;  %v1631_v16 = vld [vmem:[%s1605_s17 + $0x14] sm:$0x1]  ;;  %v1636_v21 = vld [vmem:[%s1605_s17 + $0x18] sm:$0xf] }
  0x15   : > { %v246_v14 = vshll.u32 %v1283_v4, 16  ;;  %v332_v17 = vrot.slane %v1290_v8, 1  ;;  %v1323_v20 = vcombine.low %v1626_v12, %v1631_v16  ;;  %v244_v24 = vshrl.u32 %v1283_v4, 16  ;;  %v1640_v26 = vld [vmem:[%s1605_s17 + $0x1c] sm:$0x1] }
  0x16   : > { %v239_v18 = vshll.u32 %v1282_v9, 16  ;;  %v237_v19 = vshrl.u32 %v1282_v9, 16  ;;  %342 = vrot.lane.b32.xlu1 %v333_v13, %s1569_s18  ;;  %v467_v22 = vshrl.u32 %v1322_v15, 16  ;;  %v469_v23 = vshll.u32 %v1322_v15, 16  ;;  %v1646_v31 = vld [vmem:[%s1605_s17 + $0x10] sm:$0xf] }
  0x17   : > { %v248_v25 = vrot.slane %v246_v14, 1  ;;  %340 = vrot.lane.b32.xlu0 %v332_v17, %s1569_s18  ;;  %v474_v28 = vshrl.u32 %v1323_v20, 16  ;;  %v476_v29 = vshll.u32 %v1323_v20, 16  ;;  %v1285_v30 = vcombine.low %v1636_v21, %v1640_v26  ;;  %v1649_v33 = vld [vmem:[%s1605_s17 + $0x14] sm:$0x1] }
  0x18   : > { %v241_v27 = vrot.slane %v239_v18, 1  ;;  %v471_v32 = vrot.slane %v469_v23, 1  ;;  %v1652_v34 = vld [vmem:[%s1605_s17 + $0x20] sm:$0xf]  ;;  %v1655_v38 = vld [vmem:[%s1605_s17 + $0x24] sm:$0x1]  ;;  %v1284_v40 = vcombine.low %v1646_v31, %v1649_v33 }
  0x19   : > { %v478_v36 = vrot.slane %v476_v29, 1  ;;  %v260_v37 = vshll.u32 %v1285_v30, 16  ;;  %v1325_v41 = vcombine.low %v1652_v34, %v1655_v38  ;;  %v1662_v42 = vld [vmem:[%s1605_s17 + $0x18] sm:$0xf]  ;;  %v1665_v43 = vld [vmem:[%s1605_s17 + $0x1c] sm:$0x1]  ;;  %v249_v45 = vor.u32 %v248_v25, %v244_v24 }
  0x1a   : > { %v242_v35 = vor.u32 %v241_v27, %v237_v19  ;;  %v472_v39 = vor.u32 %v471_v32, %v467_v22  ;;  %v258_v46 = vshrl.u32 %v1285_v30, 16  ;;  %v1324_v47 = vcombine.low %v1662_v42, %v1665_v43  ;;  %v1315_v62 = vld [vmem:[%s1605_s17 + $0x10] sm:$0xe]  ;;  %v1314_v63 = vld [vmem:[%s1605_s17 + $0x8] sm:$0xe] }
  0x1b   : > { %v479_v44 = vor.u32 %v478_v36, %v474_v28  ;;  %v262_v49 = vrot.slane %v260_v37, 1  ;;  %v251_v50 = vshrl.u32 %v1284_v40, 16  ;;  %v253_v51 = vshll.u32 %v1284_v40, 16  ;;  %v190_v5 = vld [vmem:[%s1605_s17 + $0x10] sm:$0xe] }
  0x1c   : > { %292 = vrot.lane.b32.xlu0 %v242_v35, %s1570_s19  ;;  %522 = vrot.lane.b32.xlu1 %v472_v39, %s1570_s19  ;;  %v490_v52 = vshll.u32 %v1325_v41, 16  ;;  %v483_v53 = vshll.u32 %v1324_v47, 16  ;;  %v481_v55 = vshrl.u32 %v1324_v47, 16  ;;  %v488_v60 = vshrl.u32 %v1325_v41, 16  ;;  %v1691_v6 = vld [vmem:[%s1605_s17 + $0x28] sm:$0xf] }
  0x1d   : > { %v255_v54 = vrot.slane %v253_v51, 1  ;;  %v263_v58 = vor.u32 %v262_v49, %v258_v46  ;;  %v1331_v1 = vcombine.low %v1315_v62, %v1631_v16  ;;  %v1330_v3 = vcombine.low %v1314_v63, %v1623_v11  ;;  %v1694_v8 = vld [vmem:[%s1605_s17 + $0x2c] sm:$0x1]  ;;  %v191_v9 = vld [vmem:[%s1605_s17 + $0x18] sm:$0xe] }
  0x1e   : > { %v485_v56 = vrot.slane %v483_v53, 1  ;;  %v492_v61 = vrot.slane %v490_v52, 1  ;;  %v1698_v13 = vld [vmem:[%s1605_s17 + $0x30] sm:$0xf]  ;;  %v1701_v14 = vld [vmem:[%s1605_s17 + $0x34] sm:$0x1]  ;;  %v1292_v16 = vcombine.low %v190_v5, %v1649_v33  ;;  %v1326_v17 = vcombine.low %v1691_v6, %v1694_v8 }
  0x1f   : > { %v256_v59 = vor.u32 %v255_v54, %v251_v50  ;;  %v563_v11 = vrot.slane %v1331_v1, 1  ;;  %v562_v15 = vrot.slane %v1330_v3, 1  ;;  %v1293_v18 = vcombine.low %v191_v9, %v1640_v26  ;;  %v1316_v19 = vld [vmem:[%s1605_s17 + $0x18] sm:$0xe]  ;;  %v1716_v23 = vld [vmem:[%s1605_s17 + $0x3c] sm:$0x1] }
  0x20   : > { %294 = vrot.lane.b32.xlu0 %v249_v45, %s1570_s19  ;;  %524 = vrot.lane.b32.xlu1 %v479_v44, %s1570_s19  ;;  %v486_v0 = vor.u32 %v485_v56, %v481_v55  ;;  %v493_v4 = vor.u32 %v492_v61, %v488_v60  ;;  %v1327_v20 = vcombine.low %v1698_v13, %v1701_v14  ;;  %v1713_v22 = vld [vmem:[%s1605_s17 + $0x38] sm:$0xf]  ;;  %v1317_v24 = vld [vmem:[%s1605_s17 + $0x20] sm:$0xe]  ;;  %v334_v28 = vrot.slane %v1292_v16, 1 }
  0x21   : > { %v1720_v25 = vld [vmem:[%s1605_s17 + $0x40] sm:$0xf]  ;;  %v1723_v27 = vld [vmem:[%s1605_s17 + $0x44] sm:$0x1]  ;;  %v1332_v29 = vcombine.low %v1316_v19, %v1665_v43  ;;  %v497_v30 = vshll.u32 %v1326_v17, 16  ;;  %v1328_v26 = vcombine.low %v1713_v22, %v1716_v23  ;;  %v335_v32 = vrot.slane %v1293_v18, 1 }
  0x22   : > { %v1333_v33 = vcombine.low %v1317_v24, %v1655_v38  ;;  %v504_v35 = vshll.u32 %v1327_v20, 16  ;;  %v1329_v36 = vcombine.low %v1720_v25, %v1723_v27  ;;  %v495_v39 = vshrl.u32 %v1326_v17, 16  ;;  %v1318_v50 = vld [vmem:[%s1605_s17 + $0x28] sm:$0xe]  ;;  %v1739_v54 = vld [vmem:[%s1605_s17 + $0x10] sm:$0xf] }
  0x23   : > { %v564_v37 = vrot.slane %v1332_v29, 1  ;;  %v499_v40 = vrot.slane %v497_v30, 1  ;;  %v511_v41 = vshll.u32 %v1328_v26, 16  ;;  %v502_v44 = vshrl.u32 %v1327_v20, 16  ;;  %v1742_v55 = vld [vmem:[%s1605_s17 + $0x14] sm:$0x1] }
  0x24   : > { %296 = vrot.lane.b32.xlu0 %v256_v59, %s1570_s19  ;;  %298 = vrot.lane.b32.xlu1 %v263_v58, %s1570_s19  ;;  %v565_v43 = vrot.slane %v1333_v33, 1  ;;  %v506_v38 = vrot.slane %v504_v35, 1  ;;  %v518_v45 = vshll.u32 %v1329_v36, 16  ;;  %v509_v47 = vshrl.u32 %v1328_v26, 16  ;;  %v1319_v56 = vld [vmem:[%s1605_s17 + $0x30] sm:$0xe] }
  0x25   : > { %v500_v46 = vor.u32 %v499_v40, %v495_v39  ;;  %v513_v49 = vrot.slane %v511_v41, 1  ;;  %v516_v52 = vshrl.u32 %v1329_v36, 16  ;;  %v1746_v57 = vld [vmem:[%s1605_s17 + $0x18] sm:$0xf]  ;;  %v1749_v58 = vld [vmem:[%s1605_s17 + $0x1c] sm:$0x1]  ;;  %v1334_v60 = vcombine.low %v1318_v50, %v1694_v8 }
  0x26   : > { %v507_v51 = vor.u32 %v506_v38, %v502_v44  ;;  %v520_v53 = vrot.slane %v518_v45, 1  ;;  %v1320_v61 = vld [vmem:[%s1605_s17 + $0x38] sm:$0xe]  ;;  %v1385_v62 = vcombine.low %v1739_v54, %v1742_v55  ;;  %v1386_v1 = vcombine.low %v1746_v57, %v1749_v58  ;;  %v1761_v3 = vld [vmem:[%s1605_s17 + $0x20] sm:$0xf] }
  0x27   : > { %v514_v59 = vor.u32 %v513_v49, %v509_v47  ;;  %v1321_v5 = vld [vmem:[%s1605_s17 + $0x40] sm:$0xe]  ;;  %v1768_v9 = vld [vmem:[%s1605_s17 + $0x28] sm:$0xf]  ;;  %v1771_v8 = vld [vmem:[%s1605_s17 + $0x2c] sm:$0x1] }
  0x28   : > { %526 = vrot.lane.b32.xlu0 %v486_v0, %s1570_s19  ;;  %528 = vrot.lane.b32.xlu1 %v493_v4, %s1570_s19  ;;  %v521_v63 = vor.u32 %v520_v53, %v516_v52  ;;  %v1335_v0 = vcombine.low %v1319_v56, %v1701_v14  ;;  %v1764_v4 = vld [vmem:[%s1605_s17 + $0x24] sm:$0x1]  ;;  %v1558_v14 = vld [vmem:[%s2036_s1 + $0x14] ss:$0 sps:$4 sm:$0xff]   ;;  %v566_v16 = vrot.slane %v1334_v60, 1  ;;  %v918_v17 = vshll.u32 %v1385_v62, 16 }
  0x29   : > { %v1387_v18 = vcombine.low %v1761_v3, %v1764_v4  ;;  %v1337_v20 = vcombine.low %v1321_v5, %v1723_v27  ;;  %v1388_v24 = vcombine.low %v1768_v9, %v1771_v8  ;;  %v916_v29 = vshrl.u32 %v1385_v62, 16  ;;  %1492 = vmatprep.subr.msk.bf16.mxu1 %vm672_vm0, %v1558_v14  ;;  %v1801_v33 = vld [vmem:[%s2036_s1 + $0x18] sm:$0xff]   ;;  %v1377_v44 = vld [vmem:[%s1605_s17 + $0x10] sm:$0xe]  ;;  %v1811_v47 = vld [vmem:[%s1605_s17 + $0x20] sm:$0xf] }
  0x2a   : > { %v567_v19 = vrot.slane %v1335_v0, 1  ;;  %v920_v30 = vrot.slane %v918_v17, 1  ;;  %v674_v27 = vsel %vm672_vm0, %v1558_v14, 0  ;;  %v923_v36 = vshrl.u32 %v1386_v1, 16  ;;  %v1814_v49 = vld [vmem:[%s1605_s17 + $0x24] sm:$0x1] }
  0x2b   : > { %v932_v26 = vshll.u32 %v1387_v18, 16  ;;  %v569_v35 = vrot.slane %v1337_v20, 1  ;;  %v939_v39 = vshll.u32 %v1388_v24, 16  ;;  %1439 = vmatpush3.bf16.msra.mxu1 %v674_v27  ;;  %v930_v41 = vshrl.u32 %v1387_v18, 16  ;;  %v1378_v50 = vld [vmem:[%s1605_s17 + $0x18] sm:$0xe] }
  0x2c   : > { %570 = vrot.lane.b32.xlu0 %v562_v15, %s1569_s18  ;;  %572 = vrot.lane.b32.xlu1 %v563_v11, %s1569_s18  ;;  %v1336_v11 = vcombine.low %v1320_v61, %v1716_v23  ;;  %v1777_v15 = vld [vmem:[%s2036_s1 + $0x8] ss:$0 sps:$4 sm:$0xff]   ;;  %v925_v23 = vshll.u32 %v1386_v1, 16  ;;  %v921_v40 = vor.u32 %v920_v30, %v916_v29  ;;  %v937_v45 = vshrl.u32 %v1388_v24, 16  ;;  %v1821_v52 = vld [vmem:[%s1605_s17 + $0x2c] sm:$0x1] }
  0x2d   : > { %1493 = vmatprep.subr.msk.bf16.mxu0 %vm672_vm0, %v1777_v15  ;;  %1472 = vmatprep.subr.bf16.mxu1 %v1673_v48  ;;  %v1393_v56 = vcombine.low %v1377_v44, %v1742_v55  ;;  %v1379_v60 = vld [vmem:[%s1605_s17 + $0x20] sm:$0xe]  ;;  %v1286_v61 = vcombine.low %v1811_v47, %v1814_v49  ;;  %v1834_v1 = vld [vmem:[%s1605_s17 + $0x30] sm:$0xf]  ;;  %v1837_v5 = vld [vmem:[%s1605_s17 + $0x34] sm:$0x1] }
  0x2e   : > { %v1840_v55 = vld [vmem:[%s1605_s17 + $0x38] sm:$0xf]  ;;  %v1389_v18 = vcombine.low %v1834_v1, %v1837_v5  ;;  %v1854_v24 = vld [vmem:[%s1605_s17 + $0x30] sm:$0xf] }
  0x2f   : > { %v267_v17 = vshll.u32 %v1286_v61, 16 }
  0x30   : > { %344 = vrot.lane.b32.xlu0 %v334_v28, %s1569_s18  ;;  %346 = vrot.lane.b32.xlu1 %v335_v32, %s1569_s18  ;;  %v568_v28 = vrot.slane %v1336_v11, 1  ;;  %v1795_v32 = vsel %vm672_vm0, %v1777_v15, 0  ;;  %v1843_v11 = vld [vmem:[%s1605_s17 + $0x3c] sm:$0x1] }
  0x31   : > { %1451 = vmatpush3.bf16.msra.mxu0 %v1795_v32  ;;  %v269_v27 = vrot.slane %v267_v17, 1 }
  0x32   : > { %1460 = vmatprep.subr.bf16.mxu0 %v1801_v33 }
  0x34   : > { %574 = vrot.lane.b32.xlu0 %v564_v37, %s1569_s18  ;;  %576 = vrot.lane.b32.xlu1 %v565_v43, %s1569_s18  ;;  %v927_v37 = vrot.slane %v925_v23, 1  ;;  %v934_v43 = vrot.slane %v932_v26, 1  ;;  %v1390_v23 = vcombine.low %v1840_v55, %v1843_v11  ;;  %v265_v26 = vshrl.u32 %v1286_v61, 16  ;;  %v1878_v61 = vld [vmem:[%s1605_s17 + $0x48] sm:$0xf] }
  0x36   : > { %v928_v38 = vor.u32 %v927_v37, %v923_v36  ;;  %v935_v53 = vor.u32 %v934_v43, %v930_v41  ;;  %v951_v43 = vshrl.u32 %v1390_v23, 16  ;;  %v270_v44 = vor.u32 %v269_v27, %v265_v26 }
  0x38   : > { %530 = vrot.lane.b32.xlu0 %v500_v46, %s1570_s19  ;;  %532 = vrot.lane.b32.xlu1 %v507_v51, %s1570_s19  ;;  %v941_v46 = vrot.slane %v939_v39, 1  ;;  %v1818_v51 = vld [vmem:[%s1605_s17 + $0x28] sm:$0xf] }
  0x39   : > { %v1287_v0 = vcombine.low %v1818_v51, %v1821_v52 }
  0x3a   : > { %v942_v62 = vor.u32 %v941_v46, %v937_v45 }
  0x3b   : > { %v274_v20 = vshll.u32 %v1287_v0, 16  ;;  %v272_v37 = vshrl.u32 %v1287_v0, 16 }
  0x3c   : > { %534 = vrot.lane.b32.xlu0 %v514_v59, %s1570_s19  ;;  %536 = vrot.lane.b32.xlu1 %v521_v63, %s1570_s19  ;;  %v1380_v59 = vld [vmem:[%s1605_s17 + $0x28] sm:$0xe]  ;;  %v1394_v63 = vcombine.low %v1378_v50, %v1749_v58  ;;  %v1011_v58 = vrot.slane %v1393_v56, 1 }
  0x3d   : > { %v1396_v14 = vcombine.low %v1380_v59, %v1771_v8  ;;  %v1860_v8 = vld [vmem:[%s1605_s17 + $0x38] sm:$0xf]  ;;  %v276_v39 = vrot.slane %v274_v20, 1  ;;  %v1874_v59 = vld [vmem:[%s1605_s17 + $0x40] sm:$0xf] }
  0x3f   : > { %v1014_v29 = vrot.slane %v1396_v14, 1  ;;  %v277_v50 = vor.u32 %v276_v39, %v272_v37 }
  0x40   : > { %578 = vrot.lane.b32.xlu0 %v566_v16, %s1569_s18  ;;  %580 = vrot.lane.b32.xlu1 %v567_v19, %s1569_s18  ;;  %v1395_v16 = vcombine.low %v1379_v60, %v1764_v4  ;;  %v1012_v19 = vrot.slane %v1394_v63, 1  ;;  %v1863_v4 = vld [vmem:[%s1605_s17 + $0x3c] sm:$0x1]  ;;  %v1375_v60 = vld [vmem:[%s1605_s17 + $0x44] sm:$0x1] }
  0x41   : > { %v1289_v41 = vcombine.low %v1860_v8, %v1863_v4 }
  0x42   : > { %v1013_v30 = vrot.slane %v1395_v16, 1  ;;  %v1391_v16 = vcombine.low %v1874_v59, %v1375_v60 }
  0x43   : > { %v288_v56 = vshll.u32 %v1289_v41, 16  ;;  %v286_v17 = vshrl.u32 %v1289_v41, 16 }
  0x44   : > { %582 = vrot.lane.b32.xlu0 %v568_v28, %s1569_s18  ;;  %584 = vrot.lane.b32.xlu1 %v569_v35, %s1569_s18  ;;  %v1857_v28 = vld [vmem:[%s1605_s17 + $0x34] sm:$0x1]  ;;  %v946_v35 = vshll.u32 %v1389_v18, 16  ;;  %v960_v26 = vshll.u32 %v1391_v16, 16  ;;  %v958_v39 = vshrl.u32 %v1391_v16, 16 }
  0x45   : > { %v1288_v36 = vcombine.low %v1854_v24, %v1857_v28 }
  0x46   : > { %v948_v45 = vrot.slane %v946_v35, 1 }
  0x47   : > { %v281_v46 = vshll.u32 %v1288_v36, 16  ;;  %v279_v0 = vshrl.u32 %v1288_v36, 16 }
  0x48   : > { %971 = vrot.lane.b32.xlu0 %v921_v40, %s1570_s19  ;;  %973 = vrot.lane.b32.xlu1 %v928_v38, %s1570_s19  ;;  %v953_v40 = vshll.u32 %v1390_v23, 16  ;;  %v944_v38 = vshrl.u32 %v1389_v18, 16  ;;  %v290_v18 = vrot.slane %v288_v56, 1  ;;  %v193_v23 = vld [vmem:[%s1605_s17 + $0x28] sm:$0xe] }
  0x49   : > { %v283_v14 = vrot.slane %v281_v46, 1  ;;  %v1295_v35 = vcombine.low %v193_v23, %v1821_v52  ;;  %v195_v56 = vld [vmem:[%s1605_s17 + $0x38] sm:$0xe] }
  0x4a   : > { %v949_v63 = vor.u32 %v948_v45, %v944_v38  ;;  %v291_v27 = vor.u32 %v290_v18, %v286_v17  ;;  %v1382_v38 = vld [vmem:[%s1605_s17 + $0x38] sm:$0xe]  ;;  %v1297_v16 = vcombine.low %v195_v56, %v1863_v4  ;;  %v1384_v17 = vld [vmem:[%s1605_s17 + $0x48] sm:$0xe] }
  0x4b   : > { %v337_v41 = vrot.slane %v1295_v35, 1 }
  0x4c   : > { %975 = vrot.lane.b32.xlu0 %v935_v53, %s1570_s19  ;;  %977 = vrot.lane.b32.xlu1 %v942_v62, %s1570_s19  ;;  %v955_v53 = vrot.slane %v953_v40, 1  ;;  %v1376_v62 = vld [vmem:[%s1605_s17 + $0x4c] sm:$0x1]  ;;  %v962_v40 = vrot.slane %v960_v26, 1 }
  0x4d   : > { %v1392_v20 = vcombine.low %v1878_v61, %v1376_v62 }
  0x4e   : > { %v963_v52 = vor.u32 %v962_v40, %v958_v39 }
  0x4f   : > { %v967_v36 = vshll.u32 %v1392_v20, 16 }
  0x50   : > { %1019 = vrot.lane.b32.xlu0 %v1011_v58, %s1569_s18  ;;  %1021 = vrot.lane.b32.xlu1 %v1012_v19, %s1569_s18  ;;  %v956_v58 = vor.u32 %v955_v53, %v951_v43  ;;  %v192_v19 = vld [vmem:[%s1605_s17 + $0x20] sm:$0xe]  ;;  %v965_v43 = vshrl.u32 %v1392_v20, 16  ;;  %v194_v53 = vld [vmem:[%s1605_s17 + $0x30] sm:$0xe] }
  0x54   : > { %1023 = vrot.lane.b32.xlu0 %v1013_v30, %s1569_s18  ;;  %1025 = vrot.lane.b32.xlu1 %v1014_v29, %s1569_s18  ;;  %v284_v29 = vor.u32 %v283_v14, %v279_v0  ;;  %v1294_v30 = vcombine.low %v192_v19, %v1814_v49  ;;  %v1381_v49 = vld [vmem:[%s1605_s17 + $0x30] sm:$0xe]  ;;  %v1296_v0 = vcombine.low %v194_v53, %v1857_v28 }
  0x55   : > { %v1397_v45 = vcombine.low %v1381_v49, %v1837_v5  ;;  %v1400_v19 = vcombine.low %v1384_v17, %v1376_v62 }
  0x56   : > { %v336_v37 = vrot.slane %v1294_v30, 1  ;;  %v338_v5 = vrot.slane %v1296_v0, 1  ;;  %v1560_v0 = vld [vmem:[%s2036_s1 + $0x20] ss:$0 sps:$4 sm:$0xff]  }
  0x57   : > { %v1018_v28 = vrot.slane %v1400_v19, 1 }
  0x58   : > { %300 = vrot.lane.b32.xlu0 %v270_v44, %s1570_s19  ;;  %302 = vrot.lane.b32.xlu1 %v277_v50, %s1570_s19  ;;  %v969_v44 = vrot.slane %v967_v36, 1  ;;  %v1398_v50 = vcombine.low %v1382_v38, %v1843_v11  ;;  %v339_v11 = vrot.slane %v1297_v16, 1 }
  0x5a   : > { %v970_v46 = vor.u32 %v969_v44, %v965_v43  ;;  %v1016_v14 = vrot.slane %v1398_v50, 1 }
  0x5c   : > { %979 = vrot.lane.b32.xlu0 %v949_v63, %s1570_s19  ;;  %981 = vrot.lane.b32.xlu1 %v956_v58, %s1570_s19  ;;  %v1015_v63 = vrot.slane %v1397_v45, 1  ;;  %v1383_v58 = vld [vmem:[%s1605_s17 + $0x40] sm:$0xe] }
  0x5d   : > { %v1399_v18 = vcombine.low %v1383_v58, %v1375_v60 }
  0x5f   : > { %v1017_v20 = vrot.slane %v1399_v18, 1  ;;  %v1121_v18 = vsel %vm672_vm0, %v1560_v0, 0 }
  0x60   : > { %304 = vrot.lane.b32.xlu0 %v284_v29, %s1570_s19  ;;  %306 = vrot.lane.b32.xlu1 %v291_v27, %s1570_s19 }
  0x64   : > { %348 = vrot.lane.b32.xlu0 %v336_v37, %s1569_s18  ;;  %350 = vrot.lane.b32.xlu1 %v337_v41, %s1569_s18 }
  0x68   : > { %983 = vrot.lane.b32.xlu0 %v963_v52, %s1570_s19  ;;  %985 = vrot.lane.b32.xlu1 %v970_v46, %s1570_s19 }
  0x6c   : > { %1027 = vrot.lane.b32.xlu0 %v1015_v63, %s1569_s18  ;;  %1029 = vrot.lane.b32.xlu1 %v1016_v14, %s1569_s18 }
  0x70   : > { %352 = vrot.lane.b32.xlu0 %v338_v5, %s1569_s18  ;;  %354 = vrot.lane.b32.xlu1 %v339_v11, %s1569_s18 }
  0x74   : > { %1031 = vrot.lane.b32.xlu0 %v1017_v20, %s1569_s18  ;;  %1033 = vrot.lane.b32.xlu1 %v1018_v28, %s1569_s18 }
  0x88   : > { %v343_v4 = vpop.permute.xlu1 %342 }
  0x89   : > { %v341_v23 = vpop.permute.xlu0 %340 }
  0x8e   : > { %v293_v29 = vpop.permute.xlu0 %292  ;;  %v523_v30 = vpop.permute.xlu1 %522 }
  0x8f   : > { %v359_v60 = vsel %vm356_vm1, %v1616_v7, %v293_v29  ;;  %v588_v7 = vsel %vm356_vm1, %v1620_v10, %v523_v30 }
  0x90   : > { %v383_v35 = vsel %vm381_vm2, %v359_v60, %v341_v23 }
  0x92   : > { %v295_v62 = vpop.permute.xlu0 %294  ;;  %v525_v26 = vpop.permute.xlu1 %524 }
  0x93   : > { %v362_v27 = vsel %vm356_vm1, %v1610_v2, %v295_v62  ;;  %v591_v49 = vsel %vm356_vm1, %v1626_v12, %v525_v26 }
  0x94   : > { %v385_v36 = vsel %vm381_vm2, %v362_v27, %v343_v4 }
  0x95   : > { %v1351_v37 = vcombine.low %v383_v35, %v385_v36 }
  0x96   : > { %v297_v39 = vpop.permute.xlu0 %296  ;;  %v299_v40 = vpop.permute.xlu1 %298 }
  0x97   : > { %1452 = vmatprep.mubr.msk.bf16.mxu0 %vm659_vm3, %v1351_v37  ;;  %v365_v46 = vsel %vm356_vm1, %v1646_v31, %v297_v39  ;;  %v368_v53 = vsel %vm356_vm1, %v1636_v21, %v299_v40 }
  0x9a   : > { %v527_v41 = vpop.permute.xlu0 %526  ;;  %v529_v43 = vpop.permute.xlu1 %528 }
  0x9b   : > { %v594_v14 = vsel %vm356_vm1, %v1662_v42, %v527_v41  ;;  %v597_v16 = vsel %vm356_vm1, %v1652_v34, %v529_v43 }
  0x9e   : > { %v571_v44 = vpop.permute.xlu0 %570  ;;  %v573_v2 = vpop.permute.xlu1 %572 }
  0x9f   : > { %v611_v38 = vsel %vm381_vm2, %v588_v7, %v571_v44  ;;  %v613_v52 = vsel %vm381_vm2, %v591_v49, %v573_v2 }
  0xa0   : > { %v1341_v45 = vcombine.low %v611_v38, %v613_v52 }
  0xa2   : > { %v345_v50 = vpop.permute.xlu0 %344  ;;  %v347_v56 = vpop.permute.xlu1 %346  ;;  %1440 = vmatprep.mubr.msk.bf16.mxu1 %vm659_vm3, %v1341_v45 }
  0xa3   : > { %v387_v10 = vsel %vm381_vm2, %v365_v46, %v345_v50  ;;  %v389_v12 = vsel %vm381_vm2, %v368_v53, %v347_v56 }
  0xa4   : > { %v1352_v63 = vcombine.low %v387_v10, %v389_v12 }
  0xa6   : > { %v575_v31 = vpop.permute.xlu0 %574  ;;  %v577_v21 = vpop.permute.xlu1 %576  ;;  %1453 = vmatmul.mubr.msk.bf16.vlgmr.msra.gmra.mrb[0].mxu0 %vm659_vm3, %v1352_v63 }
  0xa7   : > { %v615_v58 = vsel %vm381_vm2, %v594_v14, %v575_v31  ;;  %v617_v17 = vsel %vm381_vm2, %v597_v16, %v577_v21  ;;  %1461 = vmatpush3.bf16.msra.mxu0 %v1801_v33 }
  0xa8   : > { %v1342_v5 = vcombine.low %v615_v58, %v617_v17  ;;  %1495 = vmatprep.subr.msk.bf16.mxu0 %vm672_vm0, %v1560_v0 }
  0xaa   : > { %v531_v11 = vpop.permute.xlu0 %530  ;;  %v533_v42 = vpop.permute.xlu1 %532  ;;  %1441 = vmatmul.mubr.msk.bf16.vlgmr.msra.gmra.mrb[0].mxu1 %vm659_vm3, %v1342_v5 }
  0xab   : > { %1463 = vmatpush3.bf16.msra.mxu0 %v1121_v18  ;;  %1474 = vmatpush3.bf16.msra.mxu1 %v1673_v48  ;;  %v600_v33 = vsel %vm356_vm1, %v1691_v6, %v531_v11  ;;  %v603_v28 = vsel %vm356_vm1, %v1698_v13, %v533_v42 }
  0xac   : > { %1494 = vmatprep.subr.msk.bf16.mxu1 %vm672_vm0, %v1777_v15 }
  0xae   : > { %v535_v34 = vpop.permute.xlu0 %534  ;;  %v537_v19 = vpop.permute.xlu1 %536 }
  0xaf   : > { %1475 = vmatpush3.bf16.msra.mxu1 %v1795_v32  ;;  %v606_v15 = vsel %vm356_vm1, %v1713_v22, %v535_v34  ;;  %v609_v32 = vsel %vm356_vm1, %v1720_v25, %v537_v19 }
  0xb2   : > { %v579_v20 = vpop.permute.xlu0 %578  ;;  %v581_v4 = vpop.permute.xlu1 %580 }
  0xb3   : > { %v619_v23 = vsel %vm381_vm2, %v600_v33, %v579_v20  ;;  %v621_v29 = vsel %vm381_vm2, %v603_v28, %v581_v4 }
  0xb4   : > { %v1343_v48 = vcombine.low %v619_v23, %v621_v29 }
  0xb6   : > { %v583_v30 = vpop.permute.xlu0 %582  ;;  %v585_v60 = vpop.permute.xlu1 %584  ;;  %1444 = vmatprep.mubr.msk.bf16.mxu1 %vm659_vm3, %v1343_v48 }
  0xb7   : > { %v623_v6 = vsel %vm381_vm2, %v606_v15, %v583_v30  ;;  %v625_v13 = vsel %vm381_vm2, %v609_v32, %v585_v60 }
  0xb8   : > { %v1344_v62 = vcombine.low %v623_v6, %v625_v13 }
  0xba   : > { %v972_v26 = vpop.permute.xlu0 %971  ;;  %v974_v27 = vpop.permute.xlu1 %973  ;;  %1445 = vmatmul.mubr.msk.bf16.gmra.mrb[4].mxu1 %vm659_vm3, %v1344_v62 }
  0xbb   : > { %v1037_v22 = vsel %vm356_vm1, %v1739_v54, %v972_v26  ;;  %v1040_v25 = vsel %vm356_vm1, %v1746_v57, %v974_v27 }
  0xbe   : > { %v976_v35 = vpop.permute.xlu0 %975  ;;  %v978_v36 = vpop.permute.xlu1 %977 }
  0xbf   : > { %v1043_v7 = vsel %vm356_vm1, %v1761_v3, %v976_v35  ;;  %v1046_v49 = vsel %vm356_vm1, %v1768_v9, %v978_v36 }
  0xc2   : > { %v1020_v37 = vpop.permute.xlu0 %1019  ;;  %v1022_v39 = vpop.permute.xlu1 %1021 }
  0xc3   : > { %v1060_v40 = vsel %vm381_vm2, %v1037_v22, %v1020_v37  ;;  %v1062_v41 = vsel %vm381_vm2, %v1040_v25, %v1022_v39 }
  0xc4   : > { %v1404_v43 = vcombine.low %v1060_v40, %v1062_v41 }
  0xc6   : > { %v1024_v44 = vpop.permute.xlu0 %1023  ;;  %v1026_v2 = vpop.permute.xlu1 %1025  ;;  %1464 = vmatprep.mubr.msk.bf16.mxu0 %vm659_vm3, %v1404_v43 }
  0xc7   : > { %v1064_v54 = vsel %vm381_vm2, %v1043_v7, %v1024_v44  ;;  %v1066_v57 = vsel %vm381_vm2, %v1046_v49, %v1026_v2 }
  0xc8   : > { %v1405_v38 = vcombine.low %v1064_v54, %v1066_v57 }
  0xca   : > { %v301_v52 = vpop.permute.xlu0 %300  ;;  %v303_v45 = vpop.permute.xlu1 %302  ;;  %1465 = vmatmul.mubr.msk.bf16.vlgmr.msra.gmra.mrb[0].mxu0 %vm659_vm3, %v1405_v38 }
  0xcb   : > { %v371_v56 = vsel %vm356_vm1, %v1811_v47, %v301_v52  ;;  %v374_v10 = vsel %vm356_vm1, %v1818_v51, %v303_v45 }
  0xce   : > { %v980_v46 = vpop.permute.xlu0 %979  ;;  %v982_v50 = vpop.permute.xlu1 %981 }
  0xcf   : > { %v1049_v21 = vsel %vm356_vm1, %v1834_v1, %v980_v46  ;;  %v1052_v47 = vsel %vm356_vm1, %v1840_v55, %v982_v50 }
  0xd2   : > { %v305_v53 = vpop.permute.xlu0 %304  ;;  %v307_v3 = vpop.permute.xlu1 %306 }
  0xd3   : > { %v377_v11 = vsel %vm356_vm1, %v1854_v24, %v305_v53  ;;  %v380_v34 = vsel %vm356_vm1, %v1860_v8, %v307_v3 }
  0xd6   : > { %v349_v9 = vpop.permute.xlu0 %348  ;;  %v351_v12 = vpop.permute.xlu1 %350 }
  0xd7   : > { %v391_v63 = vsel %vm381_vm2, %v371_v56, %v349_v9  ;;  %v393_v0 = vsel %vm381_vm2, %v374_v10, %v351_v12 }
  0xd8   : > { %v1353_v14 = vcombine.low %v391_v63, %v393_v0 }
  0xda   : > { %v984_v31 = vpop.permute.xlu0 %983  ;;  %v986_v16 = vpop.permute.xlu1 %985  ;;  %1456 = vmatprep.mubr.msk.bf16.mxu1 %vm659_vm3, %v1353_v14 }
  0xdb   : > { %v1055_v20 = vsel %vm356_vm1, %v1874_v59, %v984_v31  ;;  %v1058_v24 = vsel %vm356_vm1, %v1878_v61, %v986_v16  ;;  %v1414_v61 = vld [vmem:[%s2037_s2] ss:$0 sm:$0xff] }
  0xde   : > { %v1028_v58 = vpop.permute.xlu0 %1027  ;;  %v1030_v17 = vpop.permute.xlu1 %1029 }
  0xdf   : > { %v1068_v51 = vsel %vm381_vm2, %v1049_v21, %v1028_v58  ;;  %v1070_v5 = vsel %vm381_vm2, %v1052_v47, %v1030_v17 }
  0xe0   : > { %v1406_v18 = vcombine.low %v1068_v51, %v1070_v5 }
  0xe2   : > { %v353_v42 = vpop.permute.xlu0 %352  ;;  %v355_v19 = vpop.permute.xlu1 %354  ;;  %1468 = vmatprep.mubr.msk.bf16.mxu0 %vm659_vm3, %v1406_v18 }
  0xe3   : > { %v395_v1 = vsel %vm381_vm2, %v377_v11, %v353_v42  ;;  %v397_v55 = vsel %vm381_vm2, %v380_v34, %v355_v19 }
  0xe4   : > { %v1354_v33 = vcombine.low %v395_v1, %v397_v55 }
  0xe6   : > { %v1032_v28 = vpop.permute.xlu0 %1031  ;;  %v1034_v4 = vpop.permute.xlu1 %1033  ;;  %1457 = vmatmul.mubr.msk.bf16.vlgmr.msra.gmra.mrb[4].mxu1 %vm659_vm3, %v1354_v33 }
  0xe7   : > { %v1072_v8 = vsel %vm381_vm2, %v1055_v20, %v1032_v28  ;;  %v1074_v23 = vsel %vm381_vm2, %v1058_v24, %v1034_v4 }
  0xe8   : > { %v1407_v29 = vcombine.low %v1072_v8, %v1074_v23 }
  0xea   : > { %1469 = vmatmul.mubr.msk.bf16.gmra.mrb[4].mxu0 %vm659_vm3, %v1407_v29 }
 0x17d   : > { %v1442_v48 = vpop.f32.mrb[0].mxu1 }
 0x17e   : > { %v710_v15 = vpop.f32.mrb[1].mxu1 }
 0x17f   : > { %v1443_v30 = vpop.f32.mrb[2].mxu1 }
 0x180   : > { %v713_v32 = vpop.f32.mrb[3].mxu1 }
 0x19d   : > { %v1466_v59 = vpop.f32.mrb[0].mxu0 }
 0x19e   : > { %v1476_v60 = vadd.f32 %v1466_v59, %v1442_v48  ;;  %v1157_v6 = vpop.f32.mrb[1].mxu0 }
 0x19f   : > { %v1477_v13 = vadd.f32 %v1157_v6, %v710_v15  ;;  %v1467_v62 = vpop.f32.mrb[2].mxu0 }
 0x1a0   : > { %v1205_v26 = vadd.f32 %v1476_v60, %v1414_v61  ;;  %v1478_v27 = vadd.f32 %v1467_v62, %v1443_v30  ;;  %v1160_v35 = vpop.f32.mrb[3].mxu0 }
 0x1a1   : > { %v1203_v36 = vadd.f32 %v1477_v13, %v1414_v61  ;;  %v1479_v22 = vadd.f32 %v1160_v35, %v713_v32 }
 0x1a2   : > { %1213 = vst.msk [vmem:[%s2014_s10 + $0x10] sm:$0xff] %vm381_vm2, %v1205_v26  ;;  %v1206_v37 = vadd.f32 %v1478_v27, %v1414_v61 }
 0x1a3   : > { %1211 = vst.msk [vmem:[%s2014_s10] sm:$0xff] %vm381_vm2, %v1203_v36  ;;  %v1204_v25 = vadd.f32 %v1479_v22, %v1414_v61 }
 0x1a4   : > { %1214 = vst.msk [vmem:[%s2014_s10 + $0x18] sm:$0xff] %vm381_vm2, %v1206_v37 }
 0x1a5   : > { %1212 = vst.msk [vmem:[%s2014_s10 + $0x8] sm:$0xff] %vm381_vm2, %v1204_v25 }
 0x1b9   : > { %v1458_v39 = vpop.f32.mrb[4].mxu1 }
 0x1ba   : > { %v835_v40 = vpop.f32.mrb[5].mxu1 }
 0x1bb   : > { %v1459_v41 = vpop.f32.mrb[6].mxu1 }
 0x1bc   : > { %v838_v43 = vpop.f32.mrb[7].mxu1 }
 0x1bd   : > { %v1470_v7 = vpop.f32.mrb[4].mxu0 }
 0x1be   : > { %v1480_v44 = vadd.f32 %v1470_v7, %v1458_v39  ;;  %v1173_v49 = vpop.f32.mrb[5].mxu0 }
 0x1bf   : > { %v1481_v2 = vadd.f32 %v1173_v49, %v835_v40  ;;  %v1471_v54 = vpop.f32.mrb[6].mxu0 }
 0x1c0   : > { %v1209_v57 = vadd.f32 %v1480_v44, %v1414_v61  ;;  %v1482_v38 = vadd.f32 %v1471_v54, %v1459_v41  ;;  %v1176_v52 = vpop.f32.mrb[7].mxu0 }
 0x1c1   : > { %v1207_v45 = vadd.f32 %v1481_v2, %v1414_v61  ;;  %v1483_v46 = vadd.f32 %v1176_v52, %v838_v43 }
 0x1c2   : > { %1217 = vst.msk [vmem:[%s2014_s10 + $0x30] sm:$0xff] %vm381_vm2, %v1209_v57  ;;  %v1210_v50 = vadd.f32 %v1482_v38, %v1414_v61 }
 0x1c3   : > { %1215 = vst.msk [vmem:[%s2014_s10 + $0x20] sm:$0xff] %vm381_vm2, %v1207_v45  ;;  %v1208_v53 = vadd.f32 %v1483_v46, %v1414_v61 }
 0x1c4   : > { %1218 = vst.msk [vmem:[%s2014_s10 + $0x38] sm:$0xff] %vm381_vm2, %v1210_v50 }
 0x1c5   : > { %1216 = vst.msk [vmem:[%s2014_s10 + $0x28] sm:$0xff] %vm381_vm2, %v1208_v53 }
 0x1c6 PF: > { %s13_s12 = sadd.s32 1, %s1567_s12  }
 0x1c7   : > { %p10_p4 = scmp.ge.s32.totalorder %s13_s12, 4  }
 0x1c9   :  { %12 = sbr.rel (!%p10_p4) target bundleno = 1 (0x1), region = 66 }

// kernel: _lambda_.8
= control target key start
LH: loop header
LB: loop body
LE: loop exit
PB: predicated region body
PF: predicated region fallthrough
CT: control target
= control target key end

     0   :  { %s3499_s12 = smov 0   ;;  %s4714_s0 = inlined_call_operand.vmem [shape: bf16[2,18,18,1], index: 0, kind: input, shape index: {}]   ;;  %s4715_s1 = inlined_call_operand.vmem [shape: bf16[3,3,8], index: 1, kind: input, shape index: {}]   ;;  %s4716_s2 = inlined_call_operand.vmem [shape: f32[1,8], index: 2, kind: input, shape index: {}]   ;;  %s4717_s3 = inlined_call_operand.vmem [shape: f32[2,256,8], index: 3, kind: output, shape index: {}]  }
   0x1 LB: > { %s2759_s13 = sadd.s32 4294967295, %s3474_s12   ;;  %p2763_p0 = scmp.ge.s32.totalorder %s3474_s12, 1  ;;  %s3474_s12 = sphi %s3499_s12, %s13_s12  }
   0x2   : > { %p137_p1 = scmp.lt.s32.totalorder %s3474_s12, 3 }
   0x4   : > { %p138_p2 = pnand %p2763_p0, %p137_p1 }
   0x6   : > { %141 = sbr.rel (%p138_p2) target bundleno = 552 (0x228), region = 32 }
   0xd   : > { %p161_p3 = scmp.lt.s32.totalorder %s2759_s13, 1  ;;  %vm637_vm0 = vcmask 1046528   ;;  %vm364_vm1 = vsmask.f32 7424  ;;  %s3476_s18 = smov 2   ;;  %vm1429_vm2 = vcmask 1040384  }
   0xe   : > { %s3477_s19 = smov 1   ;;  %vm1430_vm3 = vcmask 1041408   ;;  %vm718_vm4 = vcmask 7168   ;;  %vm751_vm5 = vcmask 15360   ;;  %vm1396_vm6 = vcmask 23552  }
   0xf   : > { %s4746_s13 = smov (!%p161_p3, %s2759_s13), 1  ;;  %vm2671_vm7 = vcmask 64512  }
  0x10   : > { %s3312_s14 = smul.u32 216, %s4746_s13  ;;  %s3092_s26 = sshll.u32 %s4746_s13, 8 }
  0x11   : > { %s4613_s4 = scalar_lea.vmem %s4717_s3, %s3092_s26 }
  0x12   : > { %s3513_s17 = scalar_lea.vmem %s4714_s0, %s3312_s14 }
  0x13   : > { %v175_v0 = vld [vmem:[%s3513_s17 + $0x10] sm:$0xf]  ;;  %v221_v1 = vld [vmem:[%s3513_s17 + $0xc] sm:$0xe]  ;;  %v173_v5 = vld [vmem:[%s3513_s17 + $0x4] sm:$0xf] }
  0x14   : > { %v3324_v2 = vld [vmem:[%s3513_s17 + $0x14] ss:$0 sps:$4 sm:$0x11]   ;;  %v2800_v3 = vcombine.low %v221_v1, %v175_v0  ;;  %v174_v4 = vld [vmem:[%s3513_s17 + $0xc] sm:$0xf] }
  0x15   : > { %v220_v6 = vld [vmem:[%s3513_s17] sm:$0xe]  ;;  %v642_v8 = vrot.slane %v3324_v2, 1  ;;  %v3327_v9 = vld [vmem:[%s3513_s17 + $0x8] ss:$0 sps:$4 sm:$0x11]   ;;  %v3530_v20 = vcombine.low %v174_v4, %v175_v0 }
  0x16   : > { %v641_v7 = vrot.slane %v2800_v3, 1  ;;  %v2799_v10 = vcombine.low %v220_v6, %v173_v5  ;;  %v385_v11 = vshll.u32 %v3324_v2, 16  ;;  %v172_v12 = vld [vmem:[%s3513_s17] sm:$0xf]  ;;  %v2815_v13 = vld [vmem:[%s3513_s17 + $0xc] sm:$0xf] }
  0x17   : > { %v2816_v14 = vld [vmem:[%s3513_s17 + $0x10] sm:$0xf]  ;;  %v639_v17 = vrot.slane %v3327_v9, 1  ;;  %v3526_v18 = vcombine.low %v172_v12, %v173_v5  ;;  %v2863_v19 = vld [vmem:[%s3513_s17 + $0xc] sm:$0xe]  ;;  %v373_v24 = vshll.u32 %v3327_v9, 16 }
  0x18   : > { %v643_v15 = vsel %vm637_vm0, %v641_v7, %v642_v8  ;;  %v638_v16 = vrot.slane %v2799_v10, 1  ;;  %v3532_v21 = vcombine.low %v2815_v13, %v2816_v14  ;;  %v3331_v22 = vld [vmem:[%s3513_s17 + $0x14] ss:$0 sps:$4 sm:$0x11]   ;;  %v2911_v23 = vcombine.low %v2863_v19, %v2816_v14  ;;  %v2817_v25 = vld [vmem:[%s3513_s17 + $0x18] sm:$0xf] }
  0x19   : > { %688 = vrot.lane.b32.xlu0 %v643_v15, %s3476_s18  ;;  %v366_v27 = vshrl.u32 %v3526_v18, 16  ;;  %v368_v28 = vshll.u32 %v3526_v18, 16  ;;  %v2818_v29 = vld [vmem:[%s3513_s17 + $0x1c] sm:$0xf]  ;;  %v1251_v31 = vrot.slane %v3331_v22, 1  ;;  %v375_v32 = vrot.slane %v373_v24, 1 }
  0x1a   : > { %v640_v26 = vsel %vm637_vm0, %v638_v16, %v639_v17  ;;  %v1250_v30 = vrot.slane %v2911_v23, 1  ;;  %v2864_v33 = vld [vmem:[%s3513_s17 + $0x18] sm:$0xe]  ;;  %v3542_v34 = vcombine.low %v2817_v25, %v2818_v29  ;;  %v3334_v36 = vld [vmem:[%s3513_s17 + $0x20] ss:$0 sps:$4 sm:$0x11]  }
  0x1b   : > { %686 = vrot.lane.b32.xlu1 %v640_v26, %s3476_s18  ;;  %v370_v35 = vrot.slane %v368_v28, 1  ;;  %v2912_v37 = vcombine.low %v2864_v33, %v2818_v29  ;;  %v979_v38 = vshrl.u32 %v3532_v21, 16  ;;  %v981_v39 = vshll.u32 %v3532_v21, 16  ;;  %v2819_v44 = vld [vmem:[%s3513_s17 + $0x24] sm:$0xf] }
  0x1c   : > { %v1252_v40 = vsel %vm637_vm0, %v1250_v30, %v1251_v31  ;;  %v986_v41 = vshll.u32 %v3331_v22, 16  ;;  %v378_v42 = vshrl.u32 %v3530_v20, 16  ;;  %v380_v43 = vshll.u32 %v3530_v20, 16  ;;  %v3552_v49 = vld [vmem:[%s3513_s17 + $0x28] sm:$0xf] }
  0x1d   : > { %v371_v45 = vor.u32 %v370_v35, %v366_v27  ;;  %v1253_v46 = vrot.slane %v2912_v37, 1  ;;  %v1254_v47 = vrot.slane %v3334_v36, 1  ;;  %v983_v48 = vrot.slane %v981_v39, 1  ;;  %v3560_v58 = vld [vmem:[%s3513_s17 + $0x2c] ss:$0 sps:$4 sm:$0x11]  }
  0x1e   : > { %v988_v50 = vrot.slane %v986_v41, 1  ;;  %v382_v51 = vrot.slane %v380_v43, 1  ;;  %v387_v52 = vrot.slane %v385_v11, 1  ;;  %v991_v53 = vshrl.u32 %v3542_v34, 16  ;;  %v176_v59 = vld [vmem:[%s3513_s17 + $0x18] sm:$0xf] }
  0x1f   : > { %1298 = vrot.lane.b32.xlu1 %v1252_v40, %s3476_s18  ;;  %v376_v54 = vsel %vm364_vm1, %v371_v45, %v375_v32  ;;  %v1255_v55 = vsel %vm637_vm0, %v1253_v46, %v1254_v47  ;;  %v984_v56 = vor.u32 %v983_v48, %v979_v38  ;;  %v993_v57 = vshll.u32 %v3542_v34, 16  ;;  %v177_v63 = vld [vmem:[%s3513_s17 + $0x1c] sm:$0xf]  ;;  %v3339_v4 = vld [vmem:[%s3513_s17 + $0x20] ss:$0 sps:$4 sm:$0x11]  }
  0x20   : > { %557 = vrot.lane.b32.xlu0 %v376_v54, %s3477_s19  ;;  %v383_v60 = vor.u32 %v382_v51, %v378_v42  ;;  %v998_v61 = vshll.u32 %v3334_v36, 16  ;;  %v3565_v62 = vcombine.low %v2819_v44, %v3552_v49  ;;  %v1010_v2 = vshll.u32 %v3560_v58, 16  ;;  %v222_v8 = vld [vmem:[%s3513_s17 + $0x18] sm:$0xe]  ;;  %v178_v13 = vld [vmem:[%s3513_s17 + $0x24] sm:$0xf] }
  0x21   : > { %v989_v0 = vsel %vm364_vm1, %v984_v56, %v988_v50  ;;  %v995_v1 = vrot.slane %v993_v57, 1  ;;  %v3570_v3 = vcombine.low %v176_v59, %v177_v63  ;;  %v397_v16 = vshll.u32 %v3339_v4, 16  ;;  %v179_v19 = vld [vmem:[%s3513_s17 + $0x28] sm:$0xf]  ;;  %v2865_v30 = vld [vmem:[%s3513_s17 + $0x24] sm:$0xe] }
  0x22   : > { %v1000_v5 = vrot.slane %v998_v61, 1  ;;  %v1003_v6 = vshrl.u32 %v3565_v62, 16  ;;  %v1005_v7 = vshll.u32 %v3565_v62, 16  ;;  %v388_v9 = vsel %vm364_vm1, %v383_v60, %v387_v52  ;;  %v3587_v25 = vld [vmem:[%s3513_s17 + $0x2c] ss:$0 sps:$4 sm:$0x11]  }
  0x23   : > { %1300 = vrot.lane.b32.xlu1 %v1255_v55, %s3476_s18  ;;  %v996_v10 = vor.u32 %v995_v1, %v991_v53  ;;  %v390_v11 = vshrl.u32 %v3570_v3, 16  ;;  %v392_v12 = vshll.u32 %v3570_v3, 16  ;;  %v1012_v15 = vrot.slane %v1010_v2, 1  ;;  %v2821_v36 = vld [vmem:[%s3513_s17 + $0x30] sm:$0xf] }
  0x24   : > { %1170 = vrot.lane.b32.xlu0 %v989_v0, %s3477_s19  ;;  %v1007_v14 = vrot.slane %v1005_v7, 1  ;;  %v2801_v17 = vcombine.low %v222_v8, %v177_v63  ;;  %v3584_v24 = vcombine.low %v178_v13, %v179_v19  ;;  %v399_v27 = vrot.slane %v397_v16, 1  ;;  %v2822_v39 = vld [vmem:[%s3513_s17 + $0x34] sm:$0xf]  ;;  %v2866_v40 = vld [vmem:[%s3513_s17 + $0x30] sm:$0xe] }
  0x25   : > { %v1001_v22 = vsel %vm364_vm1, %v996_v10, %v1000_v5  ;;  %v394_v23 = vrot.slane %v392_v12, 1  ;;  %v645_v29 = vrot.slane %v3339_v4, 1  ;;  %v409_v35 = vshll.u32 %v3587_v25, 16  ;;  %v3345_v45 = vld [vmem:[%s3513_s17 + $0x38] ss:$0 sps:$4 sm:$0x11]  }
  0x26   : > { %v1008_v26 = vor.u32 %v1007_v14, %v1003_v6  ;;  %v644_v28 = vrot.slane %v2801_v17, 1  ;;  %v402_v32 = vshrl.u32 %v3584_v24, 16  ;;  %v404_v33 = vshll.u32 %v3584_v24, 16  ;;  %v2823_v51 = vld [vmem:[%s3513_s17 + $0x3c] sm:$0xf] }
  0x27   : > { %559 = vrot.lane.b32.xlu1 %v388_v9, %s3477_s19  ;;  %v395_v31 = vor.u32 %v394_v23, %v390_v11  ;;  %v2913_v38 = vcombine.low %v2865_v30, %v3552_v49  ;;  %v411_v43 = vrot.slane %v409_v35, 1  ;;  %v3601_v44 = vcombine.low %v2821_v36, %v2822_v39  ;;  %v223_v49 = vld [vmem:[%s3513_s17 + $0x24] sm:$0xe]  ;;  %v2824_v56 = vld [vmem:[%s3513_s17 + $0x40] sm:$0xf] }
  0x28   : > { %1172 = vrot.lane.b32.xlu0 %v1001_v22, %s3477_s19  ;;  %v1013_v37 = vsel %vm364_vm1, %v1008_v26, %v1012_v15  ;;  %v406_v42 = vrot.slane %v404_v33, 1  ;;  %v646_v46 = vsel %vm637_vm0, %v644_v28, %v645_v29  ;;  %v1257_v48 = vrot.slane %v3560_v58, 1  ;;  %v180_v58 = vld [vmem:[%s3513_s17 + $0x30] sm:$0xf]  ;;  %v181_v7 = vld [vmem:[%s3513_s17 + $0x34] sm:$0xf] }
  0x29   : > { %v400_v41 = vsel %vm364_vm1, %v395_v31, %v399_v27  ;;  %v1256_v47 = vrot.slane %v2913_v38, 1  ;;  %v2914_v50 = vcombine.low %v2866_v40, %v2822_v39  ;;  %v1015_v53 = vshrl.u32 %v3601_v44, 16  ;;  %v3619_v2 = vld [vmem:[%s3513_s17 + $0x44] ss:$0 sps:$4 sm:$0x11]  }
  0x2a   : > { %v407_v52 = vor.u32 %v406_v42, %v402_v32  ;;  %v1017_v54 = vshll.u32 %v3601_v44, 16  ;;  %v1022_v55 = vshll.u32 %v3345_v45, 16  ;;  %v2802_v59 = vcombine.low %v223_v49, %v179_v19  ;;  %v3351_v12 = vld [vmem:[%s3513_s17 + $0x38] ss:$0 sps:$4 sm:$0x11]  }
  0x2b   : > { %1174 = vrot.lane.b32.xlu1 %v1013_v37, %s3477_s19  ;;  %v1259_v57 = vrot.slane %v2914_v50, 1  ;;  %v648_v60 = vrot.slane %v3587_v25, 1  ;;  %v3616_v1 = vcombine.low %v2823_v51, %v2824_v56  ;;  %v1258_v4 = vsel %vm637_vm0, %v1256_v47, %v1257_v48  ;;  %v224_v14 = vld [vmem:[%s3513_s17 + $0x30] sm:$0xe]  ;;  %v182_v15 = vld [vmem:[%s3513_s17 + $0x3c] sm:$0xf] }
  0x2c   : > { %561 = vrot.lane.b32.xlu0 %v400_v41, %s3477_s19  ;;  %v412_v61 = vsel %vm364_vm1, %v407_v52, %v411_v43  ;;  %v1019_v63 = vrot.slane %v1017_v54, 1  ;;  %v1024_v0 = vrot.slane %v1022_v55, 1  ;;  %v1260_v5 = vrot.slane %v3345_v45, 1  ;;  %v3634_v16 = vld [vmem:[%s3513_s17 + $0x40] sm:$0xf] }
  0x2d   : > { %v647_v6 = vrot.slane %v2802_v59, 1  ;;  %v1027_v9 = vshrl.u32 %v3616_v1, 16  ;;  %v1029_v10 = vshll.u32 %v3616_v1, 16  ;;  %v1034_v11 = vshll.u32 %v3619_v2, 16  ;;  %v2867_v32 = vld [vmem:[%s3513_s17 + $0x3c] sm:$0xe] }
  0x2e   : > { %v1020_v8 = vor.u32 %v1019_v63, %v1015_v53  ;;  %v3629_v13 = vcombine.low %v180_v58, %v181_v7  ;;  %v421_v22 = vshll.u32 %v3351_v12, 16  ;;  %v2803_v26 = vcombine.low %v224_v14, %v181_v7  ;;  %v3641_v27 = vld [vmem:[%s3513_s17 + $0x44] ss:$0 sps:$4 sm:$0x11]   ;;  %v2825_v33 = vld [vmem:[%s3513_s17 + $0x48] sm:$0xf] }
  0x2f   : > { %690 = vrot.lane.b32.xlu1 %v646_v46, %s3476_s18  ;;  %v1031_v19 = vrot.slane %v1029_v10, 1  ;;  %v1261_v28 = vsel %vm637_vm0, %v1259_v57, %v1260_v5  ;;  %v1036_v30 = vrot.slane %v1034_v11, 1  ;;  %v3645_v31 = vcombine.low %v182_v15, %v3634_v16  ;;  %v2826_v39 = vld [vmem:[%s3513_s17 + $0x4c] sm:$0xf]  ;;  %v2868_v54 = vld [vmem:[%s3513_s17 + $0x48] sm:$0xe] }
  0x30   : > { %563 = vrot.lane.b32.xlu0 %v412_v61, %s3477_s19  ;;  %v1025_v17 = vsel %vm364_vm1, %v1020_v8, %v1024_v0  ;;  %v414_v23 = vshrl.u32 %v3629_v13, 16  ;;  %v416_v25 = vshll.u32 %v3629_v13, 16  ;;  %v649_v35 = vsel %vm637_vm0, %v647_v6, %v648_v60  ;;  %v3357_v50 = vld [vmem:[%s3513_s17 + $0x50] ss:$0 sps:$4 sm:$0x11]  }
  0x31   : > { %v1032_v29 = vor.u32 %v1031_v19, %v1027_v9  ;;  %v433_v37 = vshll.u32 %v3641_v27, 16  ;;  %v2915_v38 = vcombine.low %v2867_v32, %v2824_v56  ;;  %v423_v40 = vrot.slane %v421_v22, 1  ;;  %v2827_v57 = vld [vmem:[%s3513_s17 + $0x54] sm:$0xf]  ;;  %v3667_v59 = vld [vmem:[%s3513_s17 + $0x58] sm:$0xf] }
  0x32   : > { %v418_v36 = vrot.slane %v416_v25, 1  ;;  %v426_v41 = vshrl.u32 %v3645_v31, 16  ;;  %v428_v42 = vshll.u32 %v3645_v31, 16  ;;  %v3655_v43 = vcombine.low %v2825_v33, %v2826_v39  ;;  %v184_v0 = vld [vmem:[%s3513_s17 + $0x48] sm:$0xf] }
  0x33   : > { %1302 = vrot.lane.b32.xlu1 %v1258_v4, %s3476_s18  ;;  %v650_v46 = vrot.slane %v2803_v26, 1  ;;  %v651_v47 = vrot.slane %v3351_v12, 1  ;;  %v1263_v48 = vrot.slane %v3619_v2, 1  ;;  %v1037_v49 = vsel %vm364_vm1, %v1032_v29, %v1036_v30  ;;  %v225_v4 = vld [vmem:[%s3513_s17 + $0x3c] sm:$0xe] }
  0x34   : > { %1176 = vrot.lane.b32.xlu0 %v1025_v17, %s3477_s19  ;;  %v419_v45 = vor.u32 %v418_v36, %v414_v23  ;;  %v430_v51 = vrot.slane %v428_v42, 1  ;;  %v435_v52 = vrot.slane %v433_v37, 1  ;;  %v1041_v53 = vshll.u32 %v3655_v43, 16  ;;  %v3677_v6 = vld [vmem:[%s3513_s17 + $0x5c] ss:$0 sps:$4 sm:$0x11]  }
  0x35   : > { %v1262_v55 = vrot.slane %v2915_v38, 1  ;;  %v1039_v56 = vshrl.u32 %v3655_v43, 16  ;;  %v1046_v63 = vshll.u32 %v3357_v50, 16  ;;  %v2916_v2 = vcombine.low %v2868_v54, %v2826_v39  ;;  %v185_v8 = vld [vmem:[%s3513_s17 + $0x4c] sm:$0xf] }
  0x36   : > { %v424_v60 = vsel %vm364_vm1, %v419_v45, %v423_v40  ;;  %v431_v58 = vor.u32 %v430_v51, %v426_v41  ;;  %v1043_v61 = vrot.slane %v1041_v53, 1  ;;  %v3674_v5 = vcombine.low %v2827_v57, %v3667_v59  ;;  %v3687_v14 = vld [vmem:[%s3513_s17 + $0x50] ss:$0 sps:$4 sm:$0x11]   ;;  %v186_v23 = vld [vmem:[%s3513_s17 + $0x54] sm:$0xf] }
  0x37   : > { %1304 = vrot.lane.b32.xlu1 %v1261_v28, %s3476_s18  ;;  %v652_v7 = vsel %vm637_vm0, %v650_v46, %v651_v47  ;;  %v1264_v9 = vsel %vm637_vm0, %v1262_v55, %v1263_v48  ;;  %v1266_v10 = vrot.slane %v3357_v50, 1  ;;  %v3684_v12 = vcombine.low %v184_v0, %v185_v8  ;;  %v3693_v25 = vld [vmem:[%s3513_s17 + $0x58] sm:$0xf]  ;;  %v3707_v38 = vld [vmem:[%s3513_s17 + $0x5c] ss:$0 sps:$4 sm:$0x11]  }
  0x38   : > { %692 = vrot.lane.b32.xlu0 %v649_v35, %s3476_s18  ;;  %v1053_v11 = vshll.u32 %v3674_v5, 16  ;;  %v436_v15 = vsel %vm364_vm1, %v431_v58, %v435_v52  ;;  %v1044_v17 = vor.u32 %v1043_v61, %v1039_v56  ;;  %v1048_v19 = vrot.slane %v1046_v63, 1  ;;  %v2829_v39 = vld [vmem:[%s3513_s17 + $0x60] sm:$0xf]  ;;  %v2830_v46 = vld [vmem:[%s3513_s17 + $0x64] sm:$0xf] }
  0x39   : > { %v2804_v22 = vcombine.low %v225_v4, %v3634_v16  ;;  %v1265_v26 = vrot.slane %v2916_v2, 1  ;;  %v1051_v28 = vshrl.u32 %v3674_v5, 16  ;;  %v1058_v29 = vshll.u32 %v3677_v6, 16  ;;  %v226_v16 = vld [vmem:[%s3513_s17 + $0x48] sm:$0xe] }
  0x3a   : > { %v440_v30 = vshll.u32 %v3684_v12, 16  ;;  %v1055_v32 = vrot.slane %v1053_v11, 1  ;;  %v438_v33 = vshrl.u32 %v3684_v12, 16  ;;  %v445_v35 = vshll.u32 %v3687_v14, 16  ;;  %v2869_v53 = vld [vmem:[%s3513_s17 + $0x54] sm:$0xe] }
  0x3b   : > { %1178 = vrot.lane.b32.xlu1 %v1037_v49, %s3477_s19  ;;  %v3703_v36 = vcombine.low %v186_v23, %v3693_v25  ;;  %v1049_v40 = vsel %vm364_vm1, %v1044_v17, %v1048_v19  ;;  %v653_v41 = vrot.slane %v2804_v22, 1  ;;  %v654_v42 = vrot.slane %v3641_v27, 1  ;;  %v3723_v56 = vld [vmem:[%s3513_s17 + $0x68] ss:$0 sps:$4 sm:$0x11]  }
  0x3c   : > { %565 = vrot.lane.b32.xlu0 %v424_v60, %s3477_s19  ;;  %v442_v37 = vrot.slane %v440_v30, 1  ;;  %v1267_v47 = vsel %vm637_vm0, %v1265_v26, %v1266_v10  ;;  %v1060_v48 = vrot.slane %v1058_v29, 1  ;;  %v2805_v50 = vcombine.low %v226_v16, %v185_v8  ;;  %v2960_v57 = vld [vmem:[%s3513_s17 + $0x18] sm:$0xf]  ;;  %v3729_v63 = vld [vmem:[%s3513_s17 + $0x1c] sm:$0xf] }
  0x3d   : > { %v452_v45 = vshll.u32 %v3703_v36, 16  ;;  %v1056_v49 = vor.u32 %v1055_v32, %v1051_v28  ;;  %v447_v51 = vrot.slane %v445_v35, 1  ;;  %v450_v52 = vshrl.u32 %v3703_v36, 16  ;;  %v2870_v8 = vld [vmem:[%s3513_s17 + $0x60] sm:$0xe] }
  0x3e   : > { %v3718_v54 = vcombine.low %v2829_v39, %v2830_v46  ;;  %v443_v27 = vor.u32 %v442_v37, %v438_v33  ;;  %v457_v55 = vshll.u32 %v3707_v38, 16  ;;  %v655_v60 = vsel %vm637_vm0, %v653_v41, %v654_v42  ;;  %v2831_v10 = vld [vmem:[%s3513_s17 + $0x6c] sm:$0xf]  ;;  %v3741_v11 = vld [vmem:[%s3513_s17 + $0x70] sm:$0xf] }
  0x3f   : > { %694 = vrot.lane.b32.xlu1 %v652_v7, %s3476_s18  ;;  %v454_v58 = vrot.slane %v452_v45, 1  ;;  %v656_v0 = vrot.slane %v2805_v50, 1  ;;  %v657_v2 = vrot.slane %v3687_v14, 1  ;;  %v1061_v4 = vsel %vm364_vm1, %v1056_v49, %v1060_v48  ;;  %v227_v19 = vld [vmem:[%s3513_s17 + $0x54] sm:$0xe] }
  0x40   : > { %567 = vrot.lane.b32.xlu0 %v436_v15, %s3477_s19  ;;  %v1065_v61 = vshll.u32 %v3718_v54, 16  ;;  %v2917_v7 = vcombine.low %v2869_v53, %v3667_v59  ;;  %v448_v15 = vsel %vm364_vm1, %v443_v27, %v447_v51  ;;  %v459_v17 = vrot.slane %v457_v55, 1  ;;  %v3749_v26 = vld [vmem:[%s3513_s17 + $0x20] ss:$0 sps:$4 sm:$0x11]  }
  0x41   : > { %v1070_v14 = vshll.u32 %v3723_v56, 16  ;;  %v455_v22 = vor.u32 %v454_v58, %v450_v52  ;;  %v1063_v59 = vshrl.u32 %v3718_v54, 16  ;;  %v3752_v28 = vcombine.low %v2831_v10, %v3741_v11  ;;  %v3757_v32 = vld [vmem:[%s3513_s17 + $0x74] ss:$0 sps:$4 sm:$0x11]  }
  0x42   : > { %v1067_v23 = vrot.slane %v1065_v61, 1  ;;  %v1269_v29 = vrot.slane %v3677_v6, 1  ;;  %v2918_v30 = vcombine.low %v2870_v8, %v2830_v46  ;;  %v2833_v33 = vld [vmem:[%s3513_s17 + $0x78] sm:$0xf]  ;;  %v658_v35 = vsel %vm637_vm0, %v656_v0, %v657_v2  ;;  %v3763_v39 = vld [vmem:[%s3513_s17 + $0x7c] sm:$0xf] }
  0x43   : > { %1306 = vrot.lane.b32.xlu1 %v1264_v9, %s3476_s18  ;;  %v3737_v9 = vcombine.low %v2960_v57, %v3729_v63  ;;  %v1268_v16 = vrot.slane %v2917_v7, 1  ;;  %v3767_v41 = vcombine.low %v2833_v33, %v3763_v39  ;;  %v460_v6 = vsel %vm364_vm1, %v455_v22, %v459_v17  ;;  %v3778_v52 = vld [vmem:[%s3513_s17 + $0x28] sm:$0xf]  ;;  %v2871_v57 = vld [vmem:[%s3513_s17 + $0x6c] sm:$0xe] }
  0x44   : > { %1180 = vrot.lane.b32.xlu0 %v1049_v40, %s3477_s19  ;;  %v1072_v40 = vrot.slane %v1070_v14, 1  ;;  %v1068_v42 = vor.u32 %v1067_v23, %v1063_v59  ;;  %v2806_v45 = vcombine.low %v227_v19, %v3693_v25  ;;  %v1077_v46 = vshll.u32 %v3752_v28, 16  ;;  %v3008_v8 = vld [vmem:[%s3513_s17 + $0x18] sm:$0xe]  ;;  %v2964_v19 = vld [vmem:[%s3513_s17 + $0x30] sm:$0xf] }
  0x45   : > { %v1989_v37 = vshll.u32 %v3737_v9, 16  ;;  %v1271_v48 = vrot.slane %v2918_v30, 1  ;;  %v1272_v50 = vrot.slane %v3723_v56, 1  ;;  %v660_v49 = vrot.slane %v3707_v38, 1  ;;  %v3801_v22 = vld [vmem:[%s3513_s17 + $0x34] sm:$0xf] }
  0x46   : > { %v1994_v51 = vshll.u32 %v3749_v26, 16  ;;  %v1270_v53 = vsel %vm637_vm0, %v1268_v16, %v1269_v29  ;;  %v1987_v27 = vshrl.u32 %v3737_v9, 16  ;;  %v1082_v55 = vshll.u32 %v3757_v32, 16  ;;  %v3381_v29 = vld [vmem:[%s3513_s17 + $0x2c] ss:$0 sps:$4 sm:$0x11]  }
  0x47   : > { %1308 = vrot.lane.b32.xlu1 %v1267_v47, %s3476_s18  ;;  %v2962_v47 = vld [vmem:[%s3513_s17 + $0x24] sm:$0xf]  ;;  %v1991_v25 = vrot.slane %v1989_v37, 1  ;;  %v1089_v38 = vshll.u32 %v3767_v41, 16  ;;  %v1073_v58 = vsel %vm364_vm1, %v1068_v42, %v1072_v40  ;;  %v659_v61 = vrot.slane %v2806_v45, 1 }
  0x48   : > { %696 = vrot.lane.b32.xlu0 %v655_v60, %s3476_s18  ;;  %v3786_v60 = vld [vmem:[%s3513_s17 + $0x80] ss:$0 sps:$4 sm:$0x11]   ;;  %v3790_v56 = vcombine.low %v2962_v47, %v3778_v52  ;;  %v1075_v0 = vshrl.u32 %v3752_v28, 16  ;;  %v1079_v2 = vrot.slane %v1077_v46, 1  ;;  %v1996_v7 = vrot.slane %v1994_v51, 1 }
  0x49   : > { %v1992_v10 = vor.u32 %v1991_v25, %v1987_v27  ;;  %v2919_v17 = vcombine.low %v2871_v57, %v3741_v11  ;;  %v1087_v14 = vshrl.u32 %v3767_v41, 16  ;;  %v1091_v59 = vrot.slane %v1089_v38, 1  ;;  %v2835_v16 = vld [vmem:[%s3513_s17 + $0x84] sm:$0xf]  ;;  %v3810_v37 = vld [vmem:[%s3513_s17 + $0x88] sm:$0xf] }
  0x4a   : > { %v1094_v23 = vshll.u32 %v3786_v60, 16  ;;  %v2001_v30 = vshll.u32 %v3790_v56, 16  ;;  %v661_v33 = vsel %vm637_vm0, %v659_v61, %v660_v49  ;;  %v3056_v11 = vcombine.low %v3008_v8, %v3729_v63  ;;  %v3009_v40 = vld [vmem:[%s3513_s17 + $0x24] sm:$0xe]  ;;  %v2872_v49 = vld [vmem:[%s3513_s17 + $0x78] sm:$0xe] }
  0x4b   : > { %1182 = vrot.lane.b32.xlu1 %v1061_v4, %s3477_s19  ;;  %v1273_v4 = vsel %vm637_vm0, %v1271_v48, %v1272_v50  ;;  %v1997_v42 = vsel %vm364_vm1, %v1992_v10, %v1996_v7  ;;  %v1274_v45 = vrot.slane %v2919_v17, 1  ;;  %v1275_v46 = vrot.slane %v3757_v32, 1  ;;  %v2837_v38 = vld [vmem:[%s3513_s17 + $0x90] sm:$0xf] }
  0x4c   : > { %569 = vrot.lane.b32.xlu0 %v448_v15, %s3477_s19  ;;  %v1084_v15 = vrot.slane %v1082_v55, 1  ;;  %v2259_v47 = vrot.slane %v3749_v26, 1  ;;  %v1092_v48 = vor.u32 %v1091_v59, %v1087_v14  ;;  %v1096_v50 = vrot.slane %v1094_v23, 1  ;;  %v3830_v55 = vld [vmem:[%s3513_s17 + $0x38] ss:$0 sps:$4 sm:$0x11]  }
  0x4d   : > { %v2006_v63 = vshll.u32 %v3381_v29, 16  ;;  %v3824_v51 = vcombine.low %v2835_v16, %v3810_v37  ;;  %v1999_v27 = vshrl.u32 %v3790_v56, 16  ;;  %v2003_v25 = vrot.slane %v2001_v30, 1  ;;  %v2966_v23 = vld [vmem:[%s3513_s17 + $0x3c] sm:$0xf] }
  0x4e   : > { %v3057_v32 = vcombine.low %v3009_v40, %v3778_v52  ;;  %v2258_v26 = vrot.slane %v3056_v11, 1  ;;  %v1276_v61 = vsel %vm637_vm0, %v1274_v45, %v1275_v46  ;;  %v1097_v52 = vsel %vm364_vm1, %v1092_v48, %v1096_v50  ;;  %v2873_v40 = vld [vmem:[%s3513_s17 + $0x84] sm:$0xe]  ;;  %v3010_v50 = vld [vmem:[%s3513_s17 + $0x30] sm:$0xe] }
  0x4f   : > { %698 = vrot.lane.b32.xlu1 %v658_v35, %s3476_s18  ;;  %v1080_v35 = vor.u32 %v1079_v2, %v1075_v0  ;;  %v2262_v0 = vrot.slane %v3381_v29, 1  ;;  %v3840_v2 = vld [vmem:[%s3513_s17 + $0x8c] ss:$0 sps:$4 sm:$0x11]   ;;  %v2920_v7 = vcombine.low %v2872_v49, %v3763_v39  ;;  %v1101_v8 = vshll.u32 %v3824_v51, 16 }
  0x50   : > { %571 = vrot.lane.b32.xlu0 %v460_v6, %s3477_s19  ;;  %v3816_v6 = vcombine.low %v2964_v19, %v3801_v22  ;;  %v2004_v10 = vor.u32 %v2003_v25, %v1999_v27  ;;  %v2018_v17 = vshll.u32 %v3830_v55, 16  ;;  %v3854_v29 = vld [vmem:[%s3513_s17 + $0x40] sm:$0xf]  ;;  %v2260_v39 = vsel %vm637_vm0, %v2258_v26, %v2259_v47  ;;  %v3876_v25 = vld [vmem:[%s3513_s17 + $0x44] ss:$0 sps:$4 sm:$0x11]  }
  0x51   : > { %v1106_v30 = vshll.u32 %v3840_v2, 16  ;;  %v1099_v16 = vshrl.u32 %v3824_v51, 16  ;;  %v1103_v11 = vrot.slane %v1101_v8, 1  ;;  %v1277_v45 = vrot.slane %v2920_v7, 1  ;;  %v2968_v26 = vld [vmem:[%s3513_s17 + $0x48] sm:$0xf] }
  0x52   : > { %v2013_v57 = vshll.u32 %v3816_v6, 16  ;;  %v2011_v19 = vshrl.u32 %v3816_v6, 16  ;;  %v3868_v47 = vcombine.low %v2966_v23, %v3854_v29  ;;  %v3890_v7 = vld [vmem:[%s3513_s17 + $0xa0] sm:$0xf]  ;;  %v2030_v23 = vshll.u32 %v3876_v25, 16 }
  0x53   : > { %1310 = vrot.lane.b32.xlu1 %v1270_v53, %s3476_s18  ;;  %v1085_v53 = vsel %vm364_vm1, %v1080_v35, %v1084_v15  ;;  %v2261_v15 = vrot.slane %v3057_v32, 1  ;;  %v1278_v35 = vrot.slane %v3786_v60, 1  ;;  %v2020_v60 = vrot.slane %v2018_v17, 1  ;;  %v3011_v17 = vld [vmem:[%s3513_s17 + $0x3c] sm:$0xe] }
  0x54   : > { %1184 = vrot.lane.b32.xlu0 %v1073_v58, %s3477_s19  ;;  %v3836_v58 = vld [vmem:[%s3513_s17 + $0x94] sm:$0xf]  ;;  %v2015_v59 = vrot.slane %v2013_v57, 1  ;;  %v1108_v49 = vrot.slane %v1106_v30, 1  ;;  %v1104_v32 = vor.u32 %v1103_v11, %v1099_v16  ;;  %v3881_v57 = vld [vmem:[%s3513_s17 + $0x4c] sm:$0xf] }
  0x55   : > { %v3848_v14 = vcombine.low %v2837_v38, %v3836_v58  ;;  %v2263_v48 = vsel %vm637_vm0, %v2261_v15, %v2262_v0  ;;  %v1279_v38 = vsel %vm637_vm0, %v1277_v45, %v1278_v35  ;;  %v1281_v15 = vrot.slane %v3840_v2, 1  ;;  %v2841_v11 = vld [vmem:[%s3513_s17 + $0xa8] sm:$0xf] }
  0x56   : > { %v2023_v35 = vshrl.u32 %v3868_v47, 16  ;;  %v2265_v45 = vrot.slane %v3830_v55, 1 }
  0x57   : > { %1312 = vrot.lane.b32.xlu1 %v1273_v4, %s3476_s18  ;;  %v2008_v4 = vrot.slane %v2006_v63, 1  ;;  %v1113_v46 = vshll.u32 %v3848_v14, 16  ;;  %v2016_v63 = vor.u32 %v2015_v59, %v2011_v19  ;;  %v3896_v19 = vcombine.low %v2968_v26, %v3881_v57 }
  0x58   : > { %700 = vrot.lane.b32.xlu0 %v661_v33, %s3476_s18  ;;  %v3859_v33 = vld [vmem:[%s3513_s17 + $0x98] ss:$0 sps:$4 sm:$0x11]   ;;  %v1109_v59 = vsel %vm364_vm1, %v1104_v32, %v1108_v49  ;;  %v3921_v49 = vld [vmem:[%s3513_s17 + $0xa4] ss:$0 sps:$4 sm:$0x11]  }
  0x59   : > { %v1118_v27 = vshll.u32 %v3859_v33, 16  ;;  %v1115_v0 = vrot.slane %v1113_v46, 1  ;;  %v2021_v8 = vsel %vm364_vm1, %v2016_v63, %v2020_v60  ;;  %v3913_v46 = vld [vmem:[%s3513_s17 + $0x50] ss:$0 sps:$4 sm:$0x11]   ;;  %v3059_v60 = vcombine.low %v3011_v17, %v3854_v29 }
  0x5a   : > { %v2032_v32 = vrot.slane %v2030_v23, 1  ;;  %v3930_v29 = vld [vmem:[%s3513_s17 + $0x58] sm:$0xf]  ;;  %v1284_v17 = vrot.slane %v3859_v33, 1 }
  0x5b   : > { %2178 = vrot.lane.b32.xlu1 %v1997_v42, %s3477_s19  ;;  %v2009_v42 = vsel %vm364_vm1, %v2004_v10, %v2008_v4  ;;  %v2839_v4 = vld [vmem:[%s3513_s17 + $0x9c] sm:$0xf] }
  0x5c   : > { %1186 = vrot.lane.b32.xlu0 %v1085_v53, %s3477_s19  ;;  %v2921_v53 = vcombine.low %v2873_v40, %v3810_v37  ;;  %v3058_v37 = vcombine.low %v3010_v50, %v3801_v22  ;;  %v1120_v22 = vrot.slane %v1118_v27, 1  ;;  %v3904_v2 = vcombine.low %v2839_v4, %v3890_v7  ;;  %v3908_v40 = vld [vmem:[%s3513_s17 + $0xac] sm:$0xf] }
  0x5d   : > { %v2037_v50 = vshll.u32 %v3896_v19, 16  ;;  %v2035_v4 = vshrl.u32 %v3896_v19, 16 }
  0x5e   : > { %v1280_v10 = vrot.slane %v2921_v53, 1  ;;  %v3924_v53 = vcombine.low %v2841_v11, %v3908_v40  ;;  %v1125_v26 = vshll.u32 %v3904_v2, 16  ;;  %v1123_v23 = vshrl.u32 %v3904_v2, 16  ;;  %v3012_v11 = vld [vmem:[%s3513_s17 + $0x48] sm:$0xe] }
  0x5f   : > { %1314 = vrot.lane.b32.xlu1 %v1276_v61, %s3476_s18  ;;  %v1111_v61 = vshrl.u32 %v3848_v14, 16 }
  0x60   : > { %1188 = vrot.lane.b32.xlu0 %v1097_v52, %s3477_s19  ;;  %v2025_v52 = vshll.u32 %v3868_v47, 16  ;;  %4727 = vst [vmem:[#allocation2_spill] sm:$0xff] %v3924_v53 }
  0x61   : > { %v1116_v30 = vor.u32 %v1115_v0, %v1111_v61  ;;  %v3936_v0 = vld [vmem:[%s3513_s17 + $0xb0] ss:$0 sps:$4 sm:$0x11]  }
  0x62   : > { %v2027_v16 = vrot.slane %v2025_v52, 1  ;;  %v2267_v52 = vrot.slane %v3059_v60, 1  ;;  %v3957_v60 = vld [vmem:[%s3513_s17 + $0x5c] ss:$0 sps:$4 sm:$0x11]  }
  0x63   : > { %2306 = vrot.lane.b32.xlu1 %v2260_v39, %s3476_s18  ;;  %v2874_v39 = vld [vmem:[%s3513_s17 + $0x90] sm:$0xe]  ;;  %v1121_v55 = vsel %vm364_vm1, %v1116_v30, %v1120_v22  ;;  %v1130_v30 = vshll.u32 %v3921_v49, 16 }
  0x64   : > { %2180 = vrot.lane.b32.xlu0 %v2009_v42, %s3477_s19  ;;  %v2264_v42 = vrot.slane %v3058_v37, 1  ;;  %v2922_v63 = vcombine.low %v2874_v39, %v3836_v58  ;;  %v2028_v27 = vor.u32 %v2027_v16, %v2023_v35  ;;  %v2042_v58 = vshll.u32 %v3913_v46, 16 }
  0x65   : > { %v2268_v37 = vrot.slane %v3876_v25, 1  ;;  %v1127_v39 = vrot.slane %v1125_v26, 1  ;;  %v1142_v16 = vshll.u32 %v3936_v0, 16  ;;  %v1132_v26 = vrot.slane %v1130_v30, 1 }
  0x66   : > { %v2266_v61 = vsel %vm637_vm0, %v2264_v42, %v2265_v45  ;;  %v2033_v25 = vsel %vm364_vm1, %v2028_v27, %v2032_v32  ;;  %v2044_v35 = vrot.slane %v2042_v58, 1  ;;  %v3060_v58 = vcombine.low %v3012_v11, %v3881_v57  ;;  %v2845_v11 = vld [vmem:[%s3513_s17 + $0xc0] sm:$0xf] }
  0x67   : > { %2308 = vrot.lane.b32.xlu1 %v2263_v48, %s3476_s18  ;;  %v1282_v48 = vsel %vm637_vm0, %v1280_v10, %v1281_v15  ;;  %v2875_v10 = vld [vmem:[%s3513_s17 + $0x9c] sm:$0xe]  ;;  %v1283_v15 = vrot.slane %v2922_v63, 1  ;;  %v2269_v42 = vsel %vm637_vm0, %v2267_v52, %v2268_v37  ;;  %v1128_v32 = vor.u32 %v1127_v39, %v1123_v23  ;;  %v2843_v37 = vld [vmem:[%s3513_s17 + $0xb4] sm:$0xf] }
  0x68   : > { %1316 = vrot.lane.b32.xlu0 %v1279_v38, %s3476_s18  ;;  %v2970_v38 = vld [vmem:[%s3513_s17 + $0x54] sm:$0xf]  ;;  %v2923_v33 = vcombine.low %v2875_v10, %v3890_v7  ;;  %v2271_v52 = vrot.slane %v3913_v46, 1  ;;  %v1144_v10 = vrot.slane %v1142_v16, 1  ;;  %v2054_v46 = vshll.u32 %v3957_v60, 16 }
  0x69   : > { %v3945_v22 = vcombine.low %v2970_v38, %v3930_v29  ;;  %v1285_v27 = vsel %vm637_vm0, %v1283_v15, %v1284_v17  ;;  %v1287_v38 = vrot.slane %v3921_v49, 1  ;;  %v3013_v15 = vld [vmem:[%s3513_s17 + $0x54] sm:$0xe]  ;;  %v2876_v17 = vld [vmem:[%s3513_s17 + $0xa8] sm:$0xe]  ;;  %v1133_v39 = vsel %vm364_vm1, %v1128_v32, %v1132_v26 }
  0x6a   : > { %v3984_v23 = vld [vmem:[%s3513_s17 + $0x68] ss:$0 sps:$4 sm:$0x11]   ;;  %v2270_v16 = vrot.slane %v3060_v58, 1  ;;  %v2924_v26 = vcombine.low %v2876_v17, %v3908_v40 }
  0x6b   : > { %2182 = vrot.lane.b32.xlu1 %v2021_v8, %s3477_s19  ;;  %v2039_v8 = vrot.slane %v2037_v50, 1  ;;  %4728 = vst [vmem:[#allocation3_spill] sm:$0xff] %v3945_v22  ;;  %v2972_v50 = vld [vmem:[%s3513_s17 + $0x60] sm:$0xf]  ;;  %v2049_v7 = vshll.u32 %v3945_v22, 16  ;;  %v2047_v57 = vshrl.u32 %v3945_v22, 16 }
  0x6c   : > { %1190 = vrot.lane.b32.xlu0 %v1109_v59, %s3477_s19  ;;  %v1137_v59 = vshll.u32 %v3924_v53, 16  ;;  %v4012_v58 = vld [vmem:[%s3513_s17 + $0xbc] ss:$0 sps:$4 sm:$0x11]   ;;  %v2272_v40 = vsel %vm637_vm0, %v2270_v16, %v2271_v52 }
  0x6d   : > { %v2040_v45 = vor.u32 %v2039_v8, %v2035_v4  ;;  %v3972_v4 = vld [vmem:[%s3513_s17 + $0xb8] sm:$0xf]  ;;  %v1154_v52 = vshll.u32 %v4012_v58, 16  ;;  %v4134_v22 = vld [vmem:[%s3513_s17 + $0x8c] ss:$0 sps:$4 sm:$0x11]  }
  0x6e   : > { %v1139_v63 = vrot.slane %v1137_v59, 1  ;;  %v3988_v30 = vcombine.low %v2843_v37, %v3972_v4 }
  0x6f   : > { %1318 = vrot.lane.b32.xlu1 %v1282_v48, %s3476_s18  ;;  %v1135_v48 = vshrl.u32 %v3924_v53, 16  ;;  %v2045_v8 = vsel %vm364_vm1, %v2040_v45, %v2044_v35  ;;  %v784_v35 = vld [vmem:[%s4715_s1] sm:$0x3]  ;;  %v3478_v45 = vmov 65535  }
  0x70   : > { %1192 = vrot.lane.b32.xlu0 %v1121_v55, %s3477_s19  ;;  %v3963_v55 = vld [vmem:[%s3513_s17 + $0x64] sm:$0xf]  ;;  %4730 = vst [vmem:[#allocation5_spill] sm:$0xff] %v3988_v30 }
  0x71   : > { %v3978_v49 = vcombine.low %v2972_v50, %v3963_v55  ;;  %v1140_v59 = vor.u32 %v1139_v63, %v1135_v48  ;;  %v1431_v48 = vsel %vm1429_vm2, 4294967295, %v3478_v45  ;;  %v3061_v63 = vcombine.low %v3013_v15, %v3930_v29  ;;  %v2974_v45 = vld [vmem:[%s3513_s17 + $0x6c] sm:$0xf] }
  0x72   : > { %v2056_v29 = vrot.slane %v2054_v46, 1  ;;  %v1289_v46 = vrot.slane %v2924_v26, 1 }
  0x73   : > { %2310 = vrot.lane.b32.xlu1 %v2266_v61, %s3476_s18  ;;  %v1286_v61 = vrot.slane %v2923_v33, 1  ;;  %4729 = vst [vmem:[#allocation4_spill] sm:$0xff] %v3978_v49  ;;  %v2927_v33 = vld [vmem:[%s4715_s1 + $0x2] sm:$0x3]  ;;  %v1145_v32 = vsel %vm364_vm1, %v1140_v59, %v1144_v10  ;;  %v2066_v10 = vshll.u32 %v3984_v23, 16  ;;  %v2273_v17 = vrot.slane %v3061_v63, 1 }
  0x74   : > { %2184 = vrot.lane.b32.xlu0 %v2033_v25, %s3477_s19  ;;  %v2051_v25 = vrot.slane %v2049_v7, 1  ;;  %v2061_v7 = vshll.u32 %v3978_v49, 16  ;;  %v2274_v59 = vrot.slane %v3957_v60, 1 }
  0x75   : > { %v1288_v50 = vsel %vm637_vm0, %v1286_v61, %v1287_v38  ;;  %v1149_v61 = vshll.u32 %v3988_v30, 16  ;;  %v2068_v63 = vrot.slane %v2066_v10, 1 }
  0x76   : > { %v2052_v38 = vor.u32 %v2051_v25, %v2047_v57  ;;  %v2059_v57 = vshrl.u32 %v3978_v49, 16  ;;  %v2063_v25 = vrot.slane %v2061_v7, 1  ;;  %v2275_v7 = vsel %vm637_vm0, %v2273_v17, %v2274_v59 }
  0x77   : > { %2312 = vrot.lane.b32.xlu1 %v2269_v42, %s3476_s18  ;;  %v3999_v42 = vld [vmem:[%s3513_s17 + $0xc4] sm:$0xf]  ;;  %v2277_v49 = vrot.slane %v3984_v23, 1  ;;  %v188_v23 = vld [vmem:[%s3513_s17 + $0x60] sm:$0xf] }
  0x78   : > { %1320 = vrot.lane.b32.xlu0 %v1285_v27, %s3476_s18  ;;  %v4006_v27 = vsel %vm1430_vm3, %v1431_v48, 0  ;;  %v4020_v15 = vcombine.low %v2845_v11, %v3999_v42  ;;  %v2057_v60 = vsel %vm364_vm1, %v2052_v38, %v2056_v29  ;;  %v1147_v11 = vshrl.u32 %v3988_v30, 16  ;;  %v2976_v38 = vld [vmem:[%s3513_s17 + $0x78] sm:$0xf]  ;;  %v4053_v29 = vld [vmem:[%s3513_s17 + $0x7c] sm:$0xf] }
  0x79   : > { %v1434_v37 = vand.u32 %v2927_v33, %v4006_v27  ;;  %v2877_v33 = vld [vmem:[%s3513_s17 + $0xb4] sm:$0xe]  ;;  %v1151_v48 = vrot.slane %v1149_v61, 1 }
  0x7a   : > { %4731 = vst [vmem:[#allocation6_spill] sm:$0xff] %v4020_v15  ;;  %v2925_v26 = vcombine.low %v2877_v33, %v3972_v4  ;;  %v1159_v4 = vshrl.u32 %v4020_v15, 16 }
  0x7b   : > { %2186 = vrot.lane.b32.xlu1 %v2045_v8, %s3477_s19  ;;  %v4016_v8 = vand.u32 %v4006_v27, %v784_v35  ;;  %3144 = vmatprep.subr.bf16.mxu1 %v1434_v37  ;;  %v1290_v35 = vrot.slane %v3936_v0, 1  ;;  %v1161_v0 = vshll.u32 %v4020_v15, 16  ;;  %v1152_v17 = vor.u32 %v1151_v48, %v1147_v11  ;;  %v3015_v48 = vld [vmem:[%s3513_s17 + $0x6c] sm:$0xe] }
  0x7c   : > { %1194 = vrot.lane.b32.xlu0 %v1133_v39, %s3477_s19  ;;  %v4024_v39 = vld [vmem:[%s3513_s17 + $0x70] sm:$0xf]  ;;  %3145 = vmatpush3.bf16.msra.mxu1 %v1434_v37  ;;  %v3014_v37 = vld [vmem:[%s3513_s17 + $0x60] sm:$0xe]  ;;  %v1292_v33 = vrot.slane %v2925_v26, 1 }
  0x7d   : > { %3178 = vmatprep.subr.bf16.mxu0 %v4016_v8  ;;  %v4037_v16 = vcombine.low %v2974_v45, %v4024_v39  ;;  %3246 = vmatprep.subr.bf16.mxu1 %v4016_v8  ;;  %v1291_v61 = vsel %vm637_vm0, %v1289_v46, %v1290_v35  ;;  %v1156_v45 = vrot.slane %v1154_v52, 1  ;;  %v1163_v59 = vrot.slane %v1161_v0, 1  ;;  %v4071_v35 = vld [vmem:[%s3513_s17 + $0x64] sm:$0xf] }
  0x7e   : > { %3179 = vmatpush3.bf16.msra.mxu0 %v4016_v8  ;;  %v4067_v46 = vcombine.low %v2976_v38, %v4053_v29 }
  0x7f   : > { %1322 = vrot.lane.b32.xlu1 %v1288_v50, %s3476_s18  ;;  %4732 = vst [vmem:[#allocation7_spill] sm:$0xff] %v4037_v16  ;;  %v4043_v50 = vld [vmem:[%s3513_s17 + $0xc8] ss:$0 sps:$4 sm:$0x11]   ;;  %v2073_v10 = vshll.u32 %v4037_v16, 16  ;;  %v2071_v11 = vshrl.u32 %v4037_v16, 16  ;;  %v1164_v38 = vor.u32 %v1163_v59, %v1159_v4 }
  0x80   : > { %1196 = vrot.lane.b32.xlu0 %v1145_v32, %s3477_s19  ;;  %v2064_v32 = vor.u32 %v2063_v25, %v2059_v57  ;;  %v1166_v57 = vshll.u32 %v4043_v50, 16  ;;  %v3062_v25 = vcombine.low %v3014_v37, %v3963_v55  ;;  %4733 = vst [vmem:[#allocation8_spill] sm:$0xff] %v4067_v46  ;;  %v1157_v37 = vsel %vm364_vm1, %v1152_v17, %v1156_v45  ;;  %v228_v16 = vld [vmem:[%s3513_s17 + $0x60] sm:$0xe] }
  0x81   : > { %v2075_v55 = vrot.slane %v2073_v10, 1  ;;  %v2085_v26 = vshll.u32 %v4067_v46, 16  ;;  %v4091_v10 = vld [vmem:[%s3513_s17 + $0x70] sm:$0xf]  ;;  %v3063_v17 = vcombine.low %v3015_v48, %v4024_v39  ;;  %v4111_v48 = vld [vmem:[%s3513_s17 + $0x88] sm:$0xf] }
  0x82   : > { %v2069_v52 = vsel %vm364_vm1, %v2064_v32, %v2068_v63  ;;  %v1168_v15 = vrot.slane %v1166_v57, 1  ;;  %v4082_v63 = vld [vmem:[%s3513_s17 + $0x80] ss:$0 sps:$4 sm:$0x11]   ;;  %v2276_v32 = vrot.slane %v3062_v25, 1 }
  0x83   : > { %2314 = vrot.lane.b32.xlu1 %v2272_v40, %s3476_s18  ;;  %v4059_v40 = vld [vmem:[%s3513_s17 + $0x74] ss:$0 sps:$4 sm:$0x11]   ;;  %v2076_v25 = vor.u32 %v2075_v55, %v2071_v11  ;;  %v2083_v55 = vshrl.u32 %v4067_v46, 16 }
  0x84   : > { %2188 = vrot.lane.b32.xlu0 %v2057_v60, %s3477_s19  ;;  %v1293_v60 = vrot.slane %v4012_v58, 1  ;;  %v2078_v0 = vshll.u32 %v4059_v40, 16  ;;  %v4085_v58 = vcombine.low %v188_v23, %v4071_v35  ;;  %v1169_v30 = vsel %vm364_vm1, %v1164_v38, %v1168_v15 }
  0x85   : > { %v2278_v11 = vsel %vm637_vm0, %v2276_v32, %v2277_v49  ;;  %v2279_v15 = vrot.slane %v3063_v17, 1  ;;  %v2807_v32 = vcombine.low %v228_v16, %v4071_v35 }
  0x86   : > { %4734 = vst [vmem:[#allocation9_spill] sm:$0xff] %v4085_v58  ;;  %v1294_v45 = vsel %vm637_vm0, %v1292_v33, %v1293_v60  ;;  %v2080_v23 = vrot.slane %v2078_v0, 1  ;;  %v2090_v33 = vshll.u32 %v4082_v63, 16  ;;  %v464_v60 = vshll.u32 %v4085_v58, 16 }
  0x87   : > { %2316 = vrot.lane.b32.xlu1 %v2275_v7, %s3476_s18  ;;  %v2878_v7 = vld [vmem:[%s3513_s17 + $0xc0] sm:$0xe]  ;;  %v2087_v0 = vrot.slane %v2085_v26, 1  ;;  %v462_v17 = vshrl.u32 %v4085_v58, 16 }
  0x88   : > { %1324 = vrot.lane.b32.xlu0 %v1291_v61, %s3476_s18  ;;  %v190_v61 = vld [vmem:[%s3513_s17 + $0x6c] sm:$0xf]  ;;  %v2926_v4 = vcombine.low %v2878_v7, %v3999_v42  ;;  %v2978_v42 = vld [vmem:[%s3513_s17 + $0x84] sm:$0xf] }
  0x89   : > { %v4107_v39 = vcombine.low %v190_v61, %v4091_v10  ;;  %v4117_v7 = vld [vmem:[%s3513_s17 + $0x74] ss:$0 sps:$4 sm:$0x11]   ;;  %v1296_v61 = vrot.slane %v4043_v50, 1  ;;  %v4126_v26 = vcombine.low %v2978_v42, %v4111_v48  ;;  %v2980_v42 = vld [vmem:[%s3513_s17 + $0x90] sm:$0xf] }
  0x8a   : > { %v1295_v38 = vrot.slane %v2926_v4, 1  ;;  %v466_v4 = vrot.slane %v464_v60, 1  ;;  %v4142_v60 = vld [vmem:[%s3513_s17 + $0x94] sm:$0xf] }
  0x8b   : > { %2190 = vrot.lane.b32.xlu1 %v2069_v52, %s3477_s19  ;;  %v4097_v59 = vpop.permute.xlu0 %688  ;;  %v4100_v52 = vld [vmem:[%s3513_s17 + $0x68] ss:$0 sps:$4 sm:$0x11]   ;;  %4735 = vst [vmem:[#allocation10_spill] sm:$0xff] %v4107_v39  ;;  %v476_v50 = vshll.u32 %v4107_v39, 16 }
  0x8c   : > { %1198 = vrot.lane.b32.xlu0 %v1157_v37, %s3477_s19  ;;  %v2280_v37 = vrot.slane %v4059_v40, 1  ;;  %v469_v49 = vshll.u32 %v4100_v52, 16  ;;  %v2092_v40 = vrot.slane %v2090_v33, 1  ;;  %v1297_v33 = vsel %vm637_vm0, %v1295_v38, %v1296_v61 }
  0x8d   : > { %v687_v57 = vpop.permute.xlu1 %686  ;;  %v663_v58 = vrot.slane %v4100_v52, 1  ;;  %v478_v38 = vrot.slane %v476_v50, 1  ;;  %v4155_v52 = vcombine.low %v2980_v42, %v4142_v60  ;;  %v2102_v50 = vshll.u32 %v4134_v22, 16 }
  0x8e   : > { %v2281_v35 = vsel %vm637_vm0, %v2279_v15, %v2280_v37  ;;  %v662_v15 = vrot.slane %v2807_v32, 1  ;;  %v474_v37 = vshrl.u32 %v4107_v39, 16  ;;  %v4201_v39 = vld [vmem:[%s3513_s17 + $0xa0] sm:$0xf] }
  0x8f   : > { %1326 = vrot.lane.b32.xlu1 %v1294_v45, %s3476_s18  ;;  %v2081_v45 = vsel %vm364_vm1, %v2076_v25, %v2080_v23  ;;  %v481_v25 = vshll.u32 %v4117_v7, 16  ;;  %v3016_v23 = vld [vmem:[%s3513_s17 + $0x78] sm:$0xe] }
  0x90   : > { %1200 = vrot.lane.b32.xlu0 %v1169_v30, %s3477_s19  ;;  %v2088_v30 = vor.u32 %v2087_v0, %v2083_v55  ;;  %v471_v0 = vrot.slane %v469_v49, 1  ;;  %v3017_v49 = vld [vmem:[%s3513_s17 + $0x84] sm:$0xe]  ;;  %v479_v42 = vor.u32 %v478_v38, %v474_v37  ;;  %v664_v38 = vsel %vm637_vm0, %v662_v15, %v663_v58 }
  0x91   : > { %v1299_v53 = vpop.permute.xlu1 %1298  ;;  %v666_v58 = vrot.slane %v4117_v7, 1  ;;  %v2286_v7 = vrot.slane %v4134_v22, 1 }
  0x92   : > { %v558_v46 = vpop.permute.xlu0 %557 }
  0x93   : > { %2318 = vrot.lane.b32.xlu1 %v2278_v11, %s3476_s18  ;;  %v720_v16 = vsel %vm718_vm4, %v3526_v18, %v558_v46  ;;  %v2097_v18 = vshll.u32 %v4126_v26, 16  ;;  %v467_v46 = vor.u32 %v466_v4, %v462_v17  ;;  %v483_v17 = vrot.slane %v481_v25, 1 }
  0x94   : > { %2192 = vrot.lane.b32.xlu0 %v2081_v45, %s3477_s19  ;;  %v753_v11 = vsel %vm751_vm5, %v720_v16, %v687_v57  ;;  %v2093_v57 = vsel %vm364_vm1, %v2088_v30, %v2092_v40  ;;  %v3064_v45 = vcombine.low %v3016_v23, %v4053_v29  ;;  %v192_v16 = vld [vmem:[%s3513_s17 + $0x78] sm:$0xf]  ;;  %v2095_v4 = vshrl.u32 %v4126_v26, 16 }
  0x95   : > { %v1301_v55 = vpop.permute.xlu1 %1300  ;;  %3180 = vmatprep.mubr.msk.bf16.mxu0 %vm1396_vm6, %v753_v11  ;;  %v4159_v11 = vld [vmem:[%s3513_s17 + $0x7c] sm:$0xf]  ;;  %v2099_v30 = vrot.slane %v2097_v18, 1  ;;  %v4169_v23 = vld [vmem:[%s3513_s17 + $0x98] ss:$0 sps:$4 sm:$0x11]   ;;  %v472_v25 = vsel %vm364_vm1, %v467_v46, %v471_v0 }
  0x96   : > { %v1171_v61 = vpop.permute.xlu0 %1170  ;;  %v194_v0 = vld [vmem:[%s3513_s17 + $0x84] sm:$0xf]  ;;  %v4189_v46 = vld [vmem:[%s3513_s17 + $0x88] sm:$0xf] }
  0x97   : > { %2320 = vrot.lane.b32.xlu1 %v2281_v35, %s3476_s18  ;;  %v1331_v32 = vsel %vm718_vm4, %v3532_v21, %v1171_v61  ;;  %v229_v35 = vld [vmem:[%s3513_s17 + $0x6c] sm:$0xe]  ;;  %v4176_v61 = vcombine.low %v192_v16, %v4159_v11  ;;  %v2104_v16 = vrot.slane %v2102_v50, 1 }
  0x98   : > { %1328 = vrot.lane.b32.xlu0 %v1297_v33, %s3476_s18  ;;  %v1363_v29 = vsel %vm751_vm5, %v1331_v32, %v1299_v53  ;;  %v4179_v33 = vld [vmem:[%s3513_s17 + $0x80] ss:$0 sps:$4 sm:$0x11]   ;;  %v2283_v32 = vrot.slane %v4082_v63, 1 }
  0x99   : > { %v560_v40 = vpop.permute.xlu1 %559  ;;  %3146 = vmatprep.mubr.msk.bf16.mxu1 %vm1396_vm6, %v1363_v29  ;;  %v3065_v29 = vcombine.low %v3017_v49, %v4111_v48  ;;  %v2100_v49 = vor.u32 %v2099_v30, %v2095_v4  ;;  %v2107_v4 = vshrl.u32 %v4155_v52, 16  ;;  %v230_v30 = vld [vmem:[%s3513_s17 + $0x78] sm:$0xe] }
  0x9a   : > { %v722_v21 = vsel %vm718_vm4, %v3530_v20, %v560_v40  ;;  %v1173_v53 = vpop.permute.xlu0 %1172  ;;  %v2109_v20 = vshll.u32 %v4155_v52, 16  ;;  %v2114_v40 = vshll.u32 %v4169_v23, 16 }
  0x9b   : > { %2194 = vrot.lane.b32.xlu1 %v2093_v57, %s3477_s19  ;;  %v755_v18 = vsel %vm751_vm5, %v722_v21, %v4097_v59  ;;  %v1333_v37 = vsel %vm718_vm4, %v3542_v34, %v1173_v53  ;;  %v2282_v57 = vrot.slane %v3064_v45, 1  ;;  %v2808_v59 = vcombine.low %v229_v35, %v4091_v10  ;;  %v2982_v21 = vld [vmem:[%s3513_s17 + $0x9c] sm:$0xf] }
  0x9c   : > { %3181 = vmatmul.mubr.msk.bf16.vlgmr.msra.gmra.mrb[0].mxu0 %vm1396_vm6, %v755_v18  ;;  %573 = vrot.lane.b32.xlu0 %v472_v25, %s3477_s19  ;;  %v1365_v63 = vsel %vm751_vm5, %v1333_v37, %v1301_v55  ;;  %v484_v34 = vsel %vm364_vm1, %v479_v42, %v483_v17  ;;  %v488_v10 = vshll.u32 %v4176_v61, 16  ;;  %v4208_v55 = vcombine.low %v194_v0, %v4189_v46  ;;  %v4218_v25 = vld [vmem:[%s3513_s17 + $0x8c] ss:$0 sps:$4 sm:$0x11]  }
  0x9d   : > { %v1175_v48 = vpop.permute.xlu1 %1174  ;;  %3147 = vmatmul.mubr.msk.bf16.vlgmr.msra.gmra.mrb[0].mxu1 %vm1396_vm6, %v1365_v63  ;;  %v2285_v45 = vrot.slane %v3065_v29, 1  ;;  %v2111_v50 = vrot.slane %v2109_v20, 1  ;;  %v493_v35 = vshll.u32 %v4179_v33, 16  ;;  %v2284_v17 = vsel %vm637_vm0, %v2282_v57, %v2283_v32  ;;  %v3018_v63 = vld [vmem:[%s3513_s17 + $0x90] sm:$0xe] }
  0x9e   : > { %v562_v15 = vpop.permute.xlu0 %561  ;;  %3247 = vmatpush3.bf16.msra.mxu1 %v4016_v8  ;;  %v4221_v42 = vcombine.low %v2982_v21, %v4201_v39  ;;  %v2105_v8 = vsel %vm364_vm1, %v2100_v49, %v2104_v16  ;;  %v665_v29 = vrot.slane %v2808_v59, 1  ;;  %v2116_v32 = vrot.slane %v2114_v40, 1  ;;  %v4235_v49 = vld [vmem:[%s3513_s17 + $0xa4] ss:$0 sps:$4 sm:$0x11]  }
  0x9f   : > { %702 = vrot.lane.b32.xlu1 %v664_v38, %s3476_s18  ;;  %v724_v53 = vsel %vm718_vm4, %v3570_v3, %v562_v15  ;;  %v486_v20 = vshrl.u32 %v4176_v61, 16  ;;  %v490_v0 = vrot.slane %v488_v10, 1  ;;  %v500_v37 = vshll.u32 %v4208_v55, 16  ;;  %v4242_v10 = vld [vmem:[%s3513_s17 + $0xac] sm:$0xf] }
  0xa0   : > { %575 = vrot.lane.b32.xlu0 %v484_v34, %s3477_s19  ;;  %v2112_v3 = vor.u32 %v2111_v50, %v2107_v4  ;;  %v495_v57 = vrot.slane %v493_v35, 1  ;;  %v2809_v59 = vcombine.low %v230_v30, %v4159_v11  ;;  %v2287_v16 = vsel %vm637_vm0, %v2285_v45, %v2286_v7  ;;  %v2984_v34 = vld [vmem:[%s3513_s17 + $0xa8] sm:$0xf]  ;;  %v196_v50 = vld [vmem:[%s3513_s17 + $0x90] sm:$0xf] }
  0xa1   : > { %v691_v18 = vpop.permute.xlu1 %690  ;;  %v505_v40 = vshll.u32 %v4218_v25, 16  ;;  %v2121_v21 = vshll.u32 %v4221_v42, 16  ;;  %v1335_v15 = vsel %vm718_vm4, %v3565_v62, %v1175_v48  ;;  %v667_v11 = vsel %vm637_vm0, %v665_v29, %v666_v58  ;;  %v4250_v35 = vld [vmem:[%s3513_s17 + $0x94] sm:$0xf] }
  0xa2   : > { %v757_v22 = vsel %vm751_vm5, %v724_v53, %v691_v18  ;;  %v564_v38 = vpop.permute.xlu0 %563  ;;  %v498_v7 = vshrl.u32 %v4208_v55, 16  ;;  %v502_v30 = vrot.slane %v500_v37, 1  ;;  %v3019_v53 = vld [vmem:[%s3513_s17 + $0x9c] sm:$0xe]  ;;  %v2117_v62 = vsel %vm364_vm1, %v2112_v3, %v2116_v32 }
  0xa3   : > { %2322 = vrot.lane.b32.xlu1 %v2284_v17, %s3476_s18  ;;  %3184 = vmatprep.mubr.msk.bf16.mxu0 %vm1396_vm6, %v757_v22  ;;  %v491_v17 = vor.u32 %v490_v0, %v486_v20  ;;  %v668_v48 = vrot.slane %v2809_v59, 1  ;;  %v669_v58 = vrot.slane %v4179_v33, 1  ;;  %v507_v29 = vrot.slane %v505_v40, 1  ;;  %v231_v59 = vld [vmem:[%s3513_s17 + $0x84] sm:$0xe] }
  0xa4   : > { %2196 = vrot.lane.b32.xlu0 %v2105_v8, %s3477_s19  ;;  %v3066_v8 = vcombine.low %v3018_v63, %v4142_v60  ;;  %v2119_v22 = vshrl.u32 %v4221_v42, 16  ;;  %v4262_v20 = vcombine.low %v2984_v34, %v4242_v10  ;;  %v4265_v0 = vcombine.low %v196_v50, %v4250_v35  ;;  %v4276_v34 = vld [vmem:[%s3513_s17 + $0xb0] ss:$0 sps:$4 sm:$0x11]   ;;  %v4288_v50 = vld [vmem:[%s3513_s17 + $0xa0] sm:$0xf] }
  0xa5   : > { %v1303_v4 = vpop.permute.xlu1 %1302  ;;  %v2123_v33 = vrot.slane %v2121_v21, 1  ;;  %v2126_v60 = vshll.u32 %v4235_v49, 16  ;;  %v3067_v3 = vcombine.low %v3019_v53, %v4201_v39  ;;  %v503_v40 = vor.u32 %v502_v30, %v498_v7 }
  0xa6   : > { %v1367_v45 = vsel %vm751_vm5, %v1335_v15, %v1303_v4  ;;  %v1177_v18 = vpop.permute.xlu0 %1176  ;;  %v4279_v15 = vld [vmem:[%s3513_s17 + $0x98] ss:$0 sps:$4 sm:$0x11]   ;;  %v2288_v21 = vrot.slane %v3066_v8, 1  ;;  %v2289_v39 = vrot.slane %v4169_v23, 1  ;;  %v512_v7 = vshll.u32 %v4265_v0, 16 }
  0xa7   : > { %2324 = vrot.lane.b32.xlu1 %v2287_v16, %s3476_s18  ;;  %3150 = vmatprep.mubr.msk.bf16.mxu1 %vm1396_vm6, %v1367_v45  ;;  %v1337_v37 = vsel %vm718_vm4, %v3601_v44, %v1177_v18  ;;  %v496_v16 = vsel %vm364_vm1, %v491_v17, %v495_v57  ;;  %v726_v44 = vsel %vm718_vm4, %v3584_v24, %v564_v38  ;;  %v2133_v17 = vshll.u32 %v4262_v20, 16  ;;  %v3072_v24 = vld [vmem:[%s4715_s1 + $0x4] sm:$0x3] }
  0xa8   : > { %704 = vrot.lane.b32.xlu0 %v667_v11, %s3476_s18  ;;  %v198_v11 = vld [vmem:[%s3513_s17 + $0x9c] sm:$0xf]  ;;  %v670_v45 = vsel %vm637_vm0, %v668_v48, %v669_v58  ;;  %v2291_v38 = vrot.slane %v3067_v3, 1  ;;  %v2292_v30 = vrot.slane %v4235_v49, 1  ;;  %v2810_v53 = vcombine.low %v231_v59, %v4189_v46  ;;  %v2986_v3 = vld [vmem:[%s3513_s17 + $0xb4] sm:$0xf] }
  0xa9   : > { %v1305_v32 = vpop.permute.xlu1 %1304  ;;  %v508_v18 = vsel %vm364_vm1, %v503_v40, %v507_v29  ;;  %v2128_v48 = vrot.slane %v2126_v60, 1  ;;  %v4303_v58 = vcombine.low %v198_v11, %v4288_v50  ;;  %v2138_v49 = vshll.u32 %v4276_v34, 16  ;;  %v4311_v46 = vld [vmem:[%s3513_s17 + $0xb8] sm:$0xf] }
  0xaa   : > { %v1369_v63 = vsel %vm751_vm5, %v1337_v37, %v1305_v32  ;;  %v693_v4 = vpop.permute.xlu0 %692  ;;  %v2290_v37 = vsel %vm637_vm0, %v2288_v21, %v2289_v39  ;;  %v2131_v32 = vshrl.u32 %v4262_v20, 16  ;;  %v2437_v29 = vand.u32 %v3072_v24, %v4006_v27  ;;  %v4322_v21 = vld [vmem:[%s3513_s17 + $0xa4] ss:$0 sps:$4 sm:$0x11]  }
  0xab   : > { %2198 = vrot.lane.b32.xlu1 %v2117_v62, %s3477_s19  ;;  %3151 = vmatmul.mubr.msk.bf16.gmra.mrb[4].mxu1 %vm1396_vm6, %v1369_v63  ;;  %v759_v57 = vsel %vm751_vm5, %v726_v44, %v693_v4  ;;  %v2124_v62 = vor.u32 %v2123_v33, %v2119_v22  ;;  %v2135_v22 = vrot.slane %v2133_v17, 1  ;;  %v510_v33 = vshrl.u32 %v4265_v0, 16  ;;  %v232_v63 = vld [vmem:[%s3513_s17 + $0x90] sm:$0xe] }
  0xac   : > { %577 = vrot.lane.b32.xlu0 %v496_v16, %s3477_s19  ;;  %3185 = vmatmul.mubr.msk.bf16.gmra.mrb[4].mxu0 %vm1396_vm6, %v759_v57  ;;  %v514_v60 = vrot.slane %v512_v7, 1  ;;  %v517_v59 = vshll.u32 %v4279_v15, 16  ;;  %v671_v44 = vrot.slane %v2810_v53, 1  ;;  %v672_v4 = vrot.slane %v4218_v25, 1 }
  0xad   : > { %v1179_v23 = vpop.permute.xlu1 %1178  ;;  %3212 = vmatprep.subr.bf16.mxu0 %v2437_v29  ;;  %v2129_v39 = vsel %vm364_vm1, %v2124_v62, %v2128_v48  ;;  %v524_v11 = vshll.u32 %v4303_v58, 16  ;;  %v4328_v57 = vcombine.low %v2986_v3, %v4311_v46  ;;  %v2140_v25 = vrot.slane %v2138_v49, 1  ;;  %v4336_v62 = vld [vmem:[%s3513_s17 + $0xbc] ss:$0 sps:$4 sm:$0x11]  }
  0xae   : > { %v566_v8 = vpop.permute.xlu0 %565  ;;  %3213 = vmatpush3.bf16.msra.mxu0 %v2437_v29  ;;  %v2293_v17 = vsel %vm637_vm0, %v2291_v38, %v2292_v30  ;;  %v2136_v7 = vor.u32 %v2135_v22, %v2131_v32  ;;  %v515_v24 = vor.u32 %v514_v60, %v510_v33  ;;  %v519_v53 = vrot.slane %v517_v59, 1  ;;  %v2988_v49 = vld [vmem:[%s3513_s17 + $0xc0] sm:$0xf]  ;;  %v4345_v38 = vld [vmem:[%s3513_s17 + $0xc4] sm:$0xf] }
  0xaf   : > { %706 = vrot.lane.b32.xlu1 %v670_v45, %s3476_s18  ;;  %v728_v16 = vsel %vm718_vm4, %v3629_v13, %v566_v8  ;;  %v2811_v45 = vcombine.low %v232_v63, %v4250_v35  ;;  %v1339_v48 = vsel %vm718_vm4, %v3616_v1, %v1179_v23  ;;  %v529_v35 = vshll.u32 %v4322_v21, 16  ;;  %v200_v22 = vld [vmem:[%s3513_s17 + $0xa8] sm:$0xf]  ;;  %v4352_v1 = vld [vmem:[%s3513_s17 + $0xac] sm:$0xf] }
  0xb0   : > { %579 = vrot.lane.b32.xlu0 %v508_v18, %s3477_s19  ;;  %v3020_v18 = vld [vmem:[%s3513_s17 + $0xa8] sm:$0xe]  ;;  %v673_v32 = vsel %vm637_vm0, %v671_v44, %v672_v4  ;;  %v526_v3 = vrot.slane %v524_v11, 1  ;;  %v2145_v29 = vshll.u32 %v4328_v57, 16  ;;  %v2141_v59 = vsel %vm364_vm1, %v2136_v7, %v2140_v25  ;;  %v233_v11 = vld [vmem:[%s3513_s17 + $0x9c] sm:$0xe] }
  0xb1   : > { %v695_v40 = vpop.permute.xlu1 %694  ;;  %v674_v33 = vrot.slane %v2811_v45, 1  ;;  %v3068_v60 = vcombine.low %v3020_v18, %v4242_v10  ;;  %v520_v63 = vsel %vm364_vm1, %v515_v24, %v519_v53  ;;  %v4362_v44 = vcombine.low %v2988_v49, %v4345_v38 }
  0xb2   : > { %v761_v27 = vsel %vm751_vm5, %v728_v16, %v695_v40  ;;  %v568_v13 = vpop.permute.xlu0 %567  ;;  %v675_v16 = vrot.slane %v4279_v15, 1  ;;  %v3021_v40 = vld [vmem:[%s3513_s17 + $0xb4] sm:$0xe]  ;;  %v2150_v10 = vshll.u32 %v4336_v62, 16  ;;  %v4370_v25 = vcombine.low %v200_v22, %v4352_v1 }
  0xb3   : > { %2326 = vrot.lane.b32.xlu1 %v2290_v37, %s3476_s18  ;;  %3188 = vmatprep.mubr.msk.bf16.mxu0 %vm1396_vm6, %v761_v27  ;;  %v522_v37 = vshrl.u32 %v4303_v58, 16  ;;  %v2147_v7 = vrot.slane %v2145_v29, 1  ;;  %v2294_v53 = vrot.slane %v3068_v60, 1  ;;  %v2295_v18 = vrot.slane %v4276_v34, 1 }
  0xb4   : > { %2200 = vrot.lane.b32.xlu0 %v2129_v39, %s3477_s19  ;;  %v531_v39 = vrot.slane %v529_v35, 1  ;;  %v4382_v35 = vld [vmem:[%s3513_s17 + $0xb8] sm:$0xf]  ;;  %v676_v49 = vsel %vm637_vm0, %v674_v33, %v675_v16  ;;  %v2298_v22 = vrot.slane %v4336_v62, 1  ;;  %v2990_v16 = vld [vmem:[%s3513_s17 + $0xcc] sm:$0xf] }
  0xb5   : > { %v1307_v8 = vpop.permute.xlu1 %1306  ;;  %v527_v45 = vor.u32 %v526_v3, %v522_v37  ;;  %v536_v3 = vshll.u32 %v4370_v25, 16  ;;  %v2296_v60 = vsel %vm637_vm0, %v2294_v53, %v2295_v18 }
  0xb6   : > { %v1371_v30 = vsel %vm751_vm5, %v1339_v48, %v1307_v8  ;;  %v1181_v23 = vpop.permute.xlu0 %1180  ;;  %v3069_v48 = vcombine.low %v3021_v40, %v4311_v46  ;;  %v202_v8 = vld [vmem:[%s3513_s17 + $0xb4] sm:$0xf]  ;;  %v2152_v46 = vrot.slane %v2150_v10, 1  ;;  %v4407_v40 = vld [vmem:[%s3513_s17 + $0xd0] sm:$0xf] }
  0xb7   : > { %2328 = vrot.lane.b32.xlu1 %v2293_v17, %s3476_s18  ;;  %3154 = vmatprep.mubr.msk.bf16.mxu1 %vm1396_vm6, %v1371_v30  ;;  %v1341_v4 = vsel %vm718_vm4, %v3655_v43, %v1181_v23  ;;  %v2143_v17 = vshrl.u32 %v4328_v57, 16  ;;  %v730_v43 = vsel %vm718_vm4, %v3645_v31, %v568_v13  ;;  %v2812_v31 = vcombine.low %v233_v11, %v4288_v50  ;;  %v4388_v13 = vld [vmem:[%s3513_s17 + $0xc8] ss:$0 sps:$4 sm:$0x11]   ;;  %v234_v10 = vld [vmem:[%s3513_s17 + $0xa8] sm:$0xe] }
  0xb8   : > { %708 = vrot.lane.b32.xlu0 %v673_v32, %s3476_s18  ;;  %v2157_v30 = vshll.u32 %v4362_v44, 16  ;;  %v4394_v32 = vld [vmem:[%s3513_s17 + $0xb0] ss:$0 sps:$4 sm:$0x11]   ;;  %v532_v29 = vsel %vm364_vm1, %v527_v45, %v531_v39  ;;  %v4400_v23 = vcombine.low %v202_v8, %v4382_v35  ;;  %v2162_v62 = vshll.u32 %v4388_v13, 16 }
  0xb9   : > { %v1309_v27 = vpop.permute.xlu1 %1308  ;;  %v2148_v50 = vor.u32 %v2147_v7, %v2143_v17  ;;  %v534_v45 = vshrl.u32 %v4370_v25, 16  ;;  %v541_v17 = vshll.u32 %v4394_v32, 16  ;;  %v4418_v7 = vld [vmem:[%s3513_s17 + $0xbc] ss:$0 sps:$4 sm:$0x11]   ;;  %v4424_v18 = vcombine.low %v2990_v16, %v4407_v40 }
  0xba   : > { %v1373_v15 = vsel %vm751_vm5, %v1341_v4, %v1309_v27  ;;  %v697_v24 = vpop.permute.xlu0 %696  ;;  %v677_v4 = vrot.slane %v2812_v31, 1  ;;  %v2155_v27 = vshrl.u32 %v4362_v44, 16  ;;  %v2159_v39 = vrot.slane %v2157_v30, 1  ;;  %v3022_v30 = vld [vmem:[%s3513_s17 + $0xc0] sm:$0xe] }
  0xbb   : > { %2202 = vrot.lane.b32.xlu1 %v2141_v59, %s3477_s19  ;;  %3155 = vmatmul.mubr.msk.bf16.gmra.mrb[8].mxu1 %vm1396_vm6, %v1373_v15  ;;  %v763_v37 = vsel %vm751_vm5, %v730_v43, %v697_v24  ;;  %v2297_v59 = vrot.slane %v3069_v48, 1  ;;  %v2153_v24 = vsel %vm364_vm1, %v2148_v50, %v2152_v46  ;;  %v548_v53 = vshll.u32 %v4400_v23, 16 }
  0xbc   : > { %581 = vrot.lane.b32.xlu0 %v520_v63, %s3477_s19  ;;  %3189 = vmatmul.mubr.msk.bf16.gmra.mrb[8].mxu0 %vm1396_vm6, %v763_v37  ;;  %v678_v63 = vrot.slane %v4322_v21, 1  ;;  %v538_v21 = vrot.slane %v536_v3, 1  ;;  %v2813_v48 = vcombine.low %v234_v10, %v4352_v1  ;;  %v2164_v31 = vrot.slane %v2162_v62, 1 }
  0xbd   : > { %v1183_v34 = vpop.permute.xlu1 %1182  ;;  %v2299_v8 = vsel %vm637_vm0, %v2297_v59, %v2298_v22  ;;  %v543_v50 = vrot.slane %v541_v17, 1  ;;  %v546_v22 = vshrl.u32 %v4400_v23, 16  ;;  %v550_v59 = vrot.slane %v548_v53, 1  ;;  %v235_v53 = vld [vmem:[%s3513_s17 + $0xb4] sm:$0xe] }
  0xbe   : > { %v570_v33 = vpop.permute.xlu0 %569  ;;  %v679_v37 = vsel %vm637_vm0, %v677_v4, %v678_v63  ;;  %v1343_v46 = vsel %vm718_vm4, %v3674_v5, %v1183_v34  ;;  %v2169_v63 = vshll.u32 %v4424_v18, 16  ;;  %v680_v5 = vrot.slane %v2813_v48, 1 }
  0xbf   : > { %710 = vrot.lane.b32.xlu1 %v676_v49, %s3476_s18  ;;  %v732_v11 = vsel %vm718_vm4, %v3684_v12, %v570_v33  ;;  %v2160_v49 = vor.u32 %v2159_v39, %v2155_v27  ;;  %v553_v33 = vshll.u32 %v4418_v7, 16  ;;  %v681_v34 = vrot.slane %v4394_v32, 1 }
  0xc0   : > { %583 = vrot.lane.b32.xlu0 %v532_v29, %s3477_s19  ;;  %v539_v29 = vor.u32 %v538_v21, %v534_v45  ;;  %v3070_v27 = vcombine.low %v3022_v30, %v4345_v38  ;;  %v3023_v45 = vld [vmem:[%s3513_s17 + $0xcc] sm:$0xe]  ;;  %v551_v17 = vor.u32 %v550_v59, %v546_v22  ;;  %v2167_v32 = vshrl.u32 %v4424_v18, 16 }
  0xc1   : > { %v699_v15 = vpop.permute.xlu1 %698  ;;  %v2165_v4 = vsel %vm364_vm1, %v2160_v49, %v2164_v31  ;;  %v3071_v49 = vcombine.low %v3023_v45, %v4407_v40 }
  0xc2   : > { %v765_v43 = vsel %vm751_vm5, %v732_v11, %v699_v15  ;;  %v572_v12 = vpop.permute.xlu0 %571  ;;  %v544_v10 = vsel %vm364_vm1, %v539_v29, %v543_v50  ;;  %v555_v11 = vrot.slane %v553_v33, 1 }
  0xc3   : > { %2330 = vrot.lane.b32.xlu1 %v2296_v60, %s3476_s18  ;;  %3192 = vmatprep.mubr.msk.bf16.mxu0 %vm1396_vm6, %v765_v43  ;;  %v3465_v60 = vld [vmem:[%s3513_s17 + $0xd4] ss:$0 sps:$4 sm:$0x11]   ;;  %v2171_v43 = vrot.slane %v2169_v63, 1  ;;  %v734_v38 = vsel %vm718_vm4, %v3703_v36, %v572_v12  ;;  %v2303_v50 = vrot.slane %v3071_v49, 1 }
  0xc4   : > { %2204 = vrot.lane.b32.xlu0 %v2153_v24, %s3477_s19  ;;  %v2174_v15 = vshll.u32 %v3465_v60, 16  ;;  %v556_v12 = vsel %vm364_vm1, %v551_v17, %v555_v11 }
  0xc5   : > { %v1311_v3 = vpop.permute.xlu1 %1310  ;;  %v2172_v31 = vor.u32 %v2171_v43, %v2167_v32 }
  0xc6   : > { %v1375_v1 = vsel %vm751_vm5, %v1343_v46, %v1311_v3  ;;  %v1185_v16 = vpop.permute.xlu0 %1184  ;;  %v2176_v30 = vrot.slane %v2174_v15, 1  ;;  %v2814_v46 = vcombine.low %v235_v53, %v4382_v35  ;;  %v684_v35 = vrot.slane %v4418_v7, 1 }
  0xc7   : > { %2332 = vrot.lane.b32.xlu1 %v2299_v8, %s3476_s18  ;;  %3158 = vmatprep.mubr.msk.bf16.mxu1 %vm1396_vm6, %v1375_v1  ;;  %v1345_v39 = vsel %vm718_vm4, %v3718_v54, %v1185_v16  ;;  %v682_v54 = vsel %vm637_vm0, %v680_v5, %v681_v34  ;;  %v2300_v8 = vrot.slane %v3070_v27, 1 }
  0xc8   : > { %712 = vrot.lane.b32.xlu0 %v679_v37, %s3476_s18  ;;  %v2301_v37 = vrot.slane %v4388_v13, 1  ;;  %v2304_v13 = vrot.slane %v3465_v60, 1  ;;  %v2177_v22 = vsel %vm364_vm1, %v2172_v31, %v2176_v30  ;;  %v683_v59 = vrot.slane %v2814_v46, 1 }
  0xc9   : > { %v1313_v62 = vpop.permute.xlu1 %1312 }
  0xca   : > { %v1377_v21 = vsel %vm751_vm5, %v1345_v39, %v1313_v62  ;;  %v701_v24 = vpop.permute.xlu0 %700  ;;  %v2302_v29 = vsel %vm637_vm0, %v2300_v8, %v2301_v37  ;;  %v2305_v60 = vsel %vm637_vm0, %v2303_v50, %v2304_v13  ;;  %v685_v34 = vsel %vm637_vm0, %v683_v59, %v684_v35  ;;  %v4737_v13 = vld [vmem:[#allocation2_spill] sm:$0xff]  ;;  %v4738_v59 = vld [vmem:[#allocation5_spill] sm:$0xff] }
  0xcb   : > { %2206 = vrot.lane.b32.xlu1 %v2165_v4, %s3477_s19  ;;  %3159 = vmatmul.mubr.msk.bf16.gmra.mrb[12].mxu1 %vm1396_vm6, %v1377_v21  ;;  %v767_v48 = vsel %vm751_vm5, %v734_v38, %v701_v24 }
  0xcc   : > { %585 = vrot.lane.b32.xlu0 %v544_v10, %s3477_s19  ;;  %3193 = vmatmul.mubr.msk.bf16.gmra.mrb[12].mxu0 %vm1396_vm6, %v767_v48 }
  0xcd   : > { %v2179_v36 = vpop.permute.xlu1 %2178 }
  0xce   : > { %v1187_v3 = vpop.permute.xlu0 %1186 }
  0xcf   : > { %714 = vrot.lane.b32.xlu1 %v682_v54, %s3476_s18  ;;  %v1347_v40 = vsel %vm718_vm4, %v3752_v28, %v1187_v3  ;;  %v2339_v28 = vsel %vm718_vm4, %v3737_v9, %v2179_v36  ;;  %v4736_v3 = vld [vmem:[#allocation3_spill] sm:$0xff] }
  0xd0   : > { %587 = vrot.lane.b32.xlu0 %v556_v12, %s3477_s19 }
  0xd1   : > { %v1315_v33 = vpop.permute.xlu1 %1314 }
  0xd2   : > { %v1379_v1 = vsel %vm751_vm5, %v1347_v40, %v1315_v33  ;;  %v1189_v63 = vpop.permute.xlu0 %1188 }
  0xd3   : > { %2334 = vrot.lane.b32.xlu1 %v2302_v29, %s3476_s18  ;;  %3162 = vmatprep.mubr.msk.bf16.mxu1 %vm1396_vm6, %v1379_v1  ;;  %v1349_v39 = vsel %vm718_vm4, %v3767_v41, %v1189_v63 }
  0xd4   : > { %2208 = vrot.lane.b32.xlu0 %v2177_v22, %s3477_s19 }
  0xd5   : > { %v2307_v16 = vpop.permute.xlu1 %2306 }
  0xd6   : > { %v2371_v5 = vsel %vm751_vm5, %v2339_v28, %v2307_v16  ;;  %v2181_v4 = vpop.permute.xlu0 %2180  ;;  %v4739_v16 = vld [vmem:[#allocation4_spill] sm:$0xff] }
  0xd7   : > { %2336 = vrot.lane.b32.xlu1 %v2305_v60, %s3476_s18  ;;  %3214 = vmatprep.mubr.msk.bf16.mxu0 %vm1396_vm6, %v2371_v5  ;;  %v2341_v7 = vsel %vm718_vm4, %v3790_v56, %v2181_v4 }
  0xd8   : > { %716 = vrot.lane.b32.xlu0 %v685_v34, %s3476_s18 }
  0xd9   : > { %v2309_v27 = vpop.permute.xlu1 %2308 }
  0xda   : > { %v2373_v9 = vsel %vm751_vm5, %v2341_v7, %v2309_v27  ;;  %v1317_v62 = vpop.permute.xlu0 %1316  ;;  %v4740_v27 = vld [vmem:[#allocation7_spill] sm:$0xff] }
  0xdb   : > { %3215 = vmatmul.mubr.msk.bf16.vlgmr.msra.gmra.mrb[0].mxu0 %vm1396_vm6, %v2373_v9  ;;  %v1381_v10 = vsel %vm751_vm5, %v1349_v39, %v1317_v62 }
  0xdc   : > { %3163 = vmatmul.mubr.msk.bf16.gmra.mrb[16].mxu1 %vm1396_vm6, %v1381_v10  ;;  %v4741_v10 = vld [vmem:[#allocation6_spill] sm:$0xff] }
  0xdd   : > { %v2183_v11 = vpop.permute.xlu1 %2182 }
  0xde   : > { %v1191_v15 = vpop.permute.xlu0 %1190  ;;  %v2343_v41 = vsel %vm718_vm4, %v3816_v6, %v2183_v11 }
  0xdf   : > { %v1351_v56 = vsel %vm718_vm4, %v3824_v51, %v1191_v15 }
  0xe1   : > { %v1319_v45 = vpop.permute.xlu1 %1318 }
  0xe2   : > { %v1383_v21 = vsel %vm751_vm5, %v1351_v56, %v1319_v45  ;;  %v1193_v17 = vpop.permute.xlu0 %1192 }
  0xe3   : > { %3166 = vmatprep.mubr.msk.bf16.mxu1 %vm1396_vm6, %v1383_v21  ;;  %v1353_v53 = vsel %vm718_vm4, %v3848_v14, %v1193_v17  ;;  %v4742_v17 = vld [vmem:[#allocation9_spill] sm:$0xff] }
  0xe5   : > { %v2311_v32 = vpop.permute.xlu1 %2310 }
  0xe6   : > { %v2375_v43 = vsel %vm751_vm5, %v2343_v41, %v2311_v32  ;;  %v2185_v38 = vpop.permute.xlu0 %2184 }
  0xe7   : > { %3218 = vmatprep.mubr.msk.bf16.mxu0 %vm1396_vm6, %v2375_v43  ;;  %v2345_v24 = vsel %vm718_vm4, %v3868_v47, %v2185_v38 }
  0xe9   : > { %v2313_v54 = vpop.permute.xlu1 %2312 }
  0xea   : > { %v2377_v51 = vsel %vm751_vm5, %v2345_v24, %v2313_v54  ;;  %v1321_v48 = vpop.permute.xlu0 %1320  ;;  %v4743_v24 = vld [vmem:[#allocation8_spill] sm:$0xff] }
  0xeb   : > { %3219 = vmatmul.mubr.msk.bf16.gmra.mrb[4].mxu0 %vm1396_vm6, %v2377_v51  ;;  %v1385_v6 = vsel %vm751_vm5, %v1353_v53, %v1321_v48 }
  0xec   : > { %3167 = vmatmul.mubr.msk.bf16.gmra.mrb[20].mxu1 %vm1396_vm6, %v1385_v6 }
  0xed   : > { %v2187_v8 = vpop.permute.xlu1 %2186 }
  0xee   : > { %v1195_v37 = vpop.permute.xlu0 %1194  ;;  %v2347_v14 = vsel %vm718_vm4, %v3896_v19, %v2187_v8 }
  0xef   : > { %v1355_v49 = vsel %vm718_vm4, %v3904_v2, %v1195_v37 }
  0xf1   : > { %v1323_v36 = vpop.permute.xlu1 %1322 }
  0xf2   : > { %v1387_v47 = vsel %vm751_vm5, %v1355_v49, %v1323_v36  ;;  %v1197_v12 = vpop.permute.xlu0 %1196  ;;  %v4744_v49 = vld [vmem:[#allocation10_spill] sm:$0xff] }
  0xf3   : > { %3170 = vmatprep.mubr.msk.bf16.mxu1 %vm1396_vm6, %v1387_v47  ;;  %v1357_v40 = vsel %vm718_vm4, %v4737_v13, %v1197_v12 }
  0xf5   : > { %v2315_v31 = vpop.permute.xlu1 %2314 }
  0xf6   : > { %v2379_v30 = vsel %vm751_vm5, %v2347_v14, %v2315_v31  ;;  %v2189_v46 = vpop.permute.xlu0 %2188 }
  0xf7   : > { %3222 = vmatprep.mubr.msk.bf16.mxu0 %vm1396_vm6, %v2379_v30  ;;  %v2349_v29 = vsel %vm718_vm4, %v4736_v3, %v2189_v46 }
  0xf9   : > { %v2317_v50 = vpop.permute.xlu1 %2316 }
  0xfa   : > { %v2381_v2 = vsel %vm751_vm5, %v2349_v29, %v2317_v50  ;;  %v1325_v33 = vpop.permute.xlu0 %1324 }
  0xfb   : > { %3223 = vmatmul.mubr.msk.bf16.gmra.mrb[8].mxu0 %vm1396_vm6, %v2381_v2  ;;  %v1389_v19 = vsel %vm751_vm5, %v1357_v40, %v1325_v33 }
  0xfc   : > { %3171 = vmatmul.mubr.msk.bf16.gmra.mrb[24].mxu1 %vm1396_vm6, %v1389_v19 }
  0xfd   : > { %v2191_v1 = vpop.permute.xlu1 %2190 }
  0xfe   : > { %v1199_v22 = vpop.permute.xlu0 %1198  ;;  %v2351_v5 = vsel %vm718_vm4, %v4739_v16, %v2191_v1 }
  0xff   : > { %v1359_v35 = vsel %vm718_vm4, %v4738_v59, %v1199_v22 }
 0x101   : > { %v1327_v63 = vpop.permute.xlu1 %1326 }
 0x102   : > { %v1391_v60 = vsel %vm751_vm5, %v1359_v35, %v1327_v63  ;;  %v1201_v28 = vpop.permute.xlu0 %1200 }
 0x103   : > { %3174 = vmatprep.mubr.msk.bf16.mxu1 %vm1396_vm6, %v1391_v60  ;;  %v1361_v11 = vsel %vm718_vm4, %v4741_v10, %v1201_v28 }
 0x105   : > { %v2319_v34 = vpop.permute.xlu1 %2318 }
 0x106   : > { %v2383_v4 = vsel %vm751_vm5, %v2351_v5, %v2319_v34  ;;  %v2193_v7 = vpop.permute.xlu0 %2192 }
 0x107   : > { %3226 = vmatprep.mubr.msk.bf16.mxu0 %vm1396_vm6, %v2383_v4  ;;  %v2353_v9 = vsel %vm718_vm4, %v4740_v27, %v2193_v7 }
 0x109   : > { %v2321_v39 = vpop.permute.xlu1 %2320 }
 0x10a   : > { %v2385_v62 = vsel %vm751_vm5, %v2353_v9, %v2321_v39  ;;  %v1329_v15 = vpop.permute.xlu0 %1328 }
 0x10b   : > { %3227 = vmatmul.mubr.msk.bf16.gmra.mrb[12].mxu0 %vm1396_vm6, %v2385_v62  ;;  %v1393_v56 = vsel %vm751_vm5, %v1361_v11, %v1329_v15 }
 0x10c   : > { %3175 = vmatmul.mubr.msk.bf16.gmra.mrb[28].mxu1 %vm1396_vm6, %v1393_v56 }
 0x10d   : > { %v2195_v45 = vpop.permute.xlu1 %2194 }
 0x10e   : > { %v574_v21 = vpop.permute.xlu0 %573  ;;  %v2355_v54 = vsel %vm718_vm4, %v4743_v24, %v2195_v45 }
 0x10f   : > { %v736_v41 = vsel %vm718_vm4, %v4742_v17, %v574_v21 }
 0x111   : > { %v703_v32 = vpop.permute.xlu1 %702 }
 0x112   : > { %v769_v43 = vsel %vm751_vm5, %v736_v41, %v703_v32  ;;  %v576_v38 = vpop.permute.xlu0 %575 }
 0x113   : > { %3196 = vmatprep.mubr.msk.bf16.mxu1 %vm1396_vm6, %v769_v43  ;;  %v738_v36 = vsel %vm718_vm4, %v4744_v49, %v576_v38 }
 0x115   : > { %v2323_v51 = vpop.permute.xlu1 %2322 }
 0x116   : > { %v2387_v53 = vsel %vm751_vm5, %v2355_v54, %v2323_v51  ;;  %v2197_v48 = vpop.permute.xlu0 %2196 }
 0x117   : > { %3230 = vmatprep.mubr.msk.bf16.mxu0 %vm1396_vm6, %v2387_v53  ;;  %v2357_v6 = vsel %vm718_vm4, %v4126_v26, %v2197_v48 }
 0x119   : > { %v2325_v8 = vpop.permute.xlu1 %2324 }
 0x11a   : > { %v2389_v37 = vsel %vm751_vm5, %v2357_v6, %v2325_v8  ;;  %v705_v47 = vpop.permute.xlu0 %704 }
 0x11b   : > { %3231 = vmatmul.mubr.msk.bf16.gmra.mrb[16].mxu0 %vm1396_vm6, %v2389_v37  ;;  %v771_v12 = vsel %vm751_vm5, %v738_v36, %v705_v47 }
 0x11c   : > { %3197 = vmatmul.mubr.msk.bf16.vlgmr.msra.gmra.mrb[16].mxu1 %vm1396_vm6, %v771_v12 }
 0x11d   : > { %v2199_v14 = vpop.permute.xlu1 %2198 }
 0x11e   : > { %v578_v31 = vpop.permute.xlu0 %577  ;;  %v2359_v29 = vsel %vm718_vm4, %v4155_v52, %v2199_v14 }
 0x11f   : > { %v740_v30 = vsel %vm718_vm4, %v4176_v61, %v578_v31  ;;  %v4608_v31 = vld [vmem:[%s4716_s2] ss:$0 sm:$0xff] }
 0x121   : > { %v707_v46 = vpop.permute.xlu1 %706 }
 0x122   : > { %v773_v26 = vsel %vm751_vm5, %v740_v30, %v707_v46  ;;  %v580_v3 = vpop.permute.xlu0 %579 }
 0x123   : > { %3200 = vmatprep.mubr.msk.bf16.mxu1 %vm1396_vm6, %v773_v26  ;;  %v742_v19 = vsel %vm718_vm4, %v4208_v55, %v580_v3 }
 0x125   : > { %v2327_v50 = vpop.permute.xlu1 %2326 }
 0x126   : > { %v2391_v2 = vsel %vm751_vm5, %v2359_v29, %v2327_v50  ;;  %v2201_v13 = vpop.permute.xlu0 %2200 }
 0x127   : > { %3234 = vmatprep.mubr.msk.bf16.mxu0 %vm1396_vm6, %v2391_v2  ;;  %v2361_v40 = vsel %vm718_vm4, %v4221_v42, %v2201_v13 }
 0x129   : > { %v2329_v33 = vpop.permute.xlu1 %2328 }
 0x12a   : > { %v2393_v61 = vsel %vm751_vm5, %v2361_v40, %v2329_v33  ;;  %v709_v1 = vpop.permute.xlu0 %708 }
 0x12b   : > { %3235 = vmatmul.mubr.msk.bf16.gmra.mrb[20].mxu0 %vm1396_vm6, %v2393_v61  ;;  %v775_v52 = vsel %vm751_vm5, %v742_v19, %v709_v1 }
 0x12c   : > { %3201 = vmatmul.mubr.msk.bf16.gmra.mrb[20].mxu1 %vm1396_vm6, %v775_v52 }
 0x12d   : > { %v2203_v22 = vpop.permute.xlu1 %2202 }
 0x12e   : > { %v582_v59 = vpop.permute.xlu0 %581  ;;  %v2363_v55 = vsel %vm718_vm4, %v4262_v20, %v2203_v22 }
 0x12f   : > { %v744_v35 = vsel %vm718_vm4, %v4265_v0, %v582_v59 }
 0x131   : > { %v711_v63 = vpop.permute.xlu1 %710 }
 0x132   : > { %v777_v42 = vsel %vm751_vm5, %v744_v35, %v711_v63  ;;  %v584_v60 = vpop.permute.xlu0 %583 }
 0x133   : > { %3204 = vmatprep.mubr.msk.bf16.mxu1 %vm1396_vm6, %v777_v42  ;;  %v746_v7 = vsel %vm718_vm4, %v4303_v58, %v584_v60 }
 0x135   : > { %v2331_v28 = vpop.permute.xlu1 %2330 }
 0x136   : > { %v2395_v16 = vsel %vm751_vm5, %v2363_v55, %v2331_v28  ;;  %v2205_v5 = vpop.permute.xlu0 %2204 }
 0x137   : > { %3238 = vmatprep.mubr.msk.bf16.mxu0 %vm1396_vm6, %v2395_v16  ;;  %v2365_v34 = vsel %vm718_vm4, %v4328_v57, %v2205_v5 }
 0x139   : > { %v2333_v4 = vpop.permute.xlu1 %2332 }
 0x13a   : > { %v2397_v0 = vsel %vm751_vm5, %v2365_v34, %v2333_v4  ;;  %v713_v27 = vpop.permute.xlu0 %712 }
 0x13b   : > { %3239 = vmatmul.mubr.msk.bf16.gmra.mrb[24].mxu0 %vm1396_vm6, %v2397_v0  ;;  %v779_v20 = vsel %vm751_vm5, %v746_v7, %v713_v27 }
 0x13c   : > { %3205 = vmatmul.mubr.msk.bf16.gmra.mrb[24].mxu1 %vm1396_vm6, %v779_v20 }
 0x13d   : > { %v2207_v9 = vpop.permute.xlu1 %2206 }
 0x13e   : > { %v586_v39 = vpop.permute.xlu0 %585  ;;  %v2367_v58 = vsel %vm718_vm4, %v4362_v44, %v2207_v9 }
 0x13f   : > { %v748_v62 = vsel %vm718_vm4, %v4370_v25, %v586_v39 }
 0x141   : > { %v715_v10 = vpop.permute.xlu1 %714 }
 0x142   : > { %v781_v57 = vsel %vm751_vm5, %v748_v62, %v715_v10  ;;  %v588_v11 = vpop.permute.xlu0 %587 }
 0x143   : > { %3208 = vmatprep.mubr.msk.bf16.mxu1 %vm1396_vm6, %v781_v57  ;;  %v750_v41 = vsel %vm718_vm4, %v4400_v23, %v588_v11 }
 0x145   : > { %v2335_v15 = vpop.permute.xlu1 %2334 }
 0x146   : > { %v2399_v56 = vsel %vm751_vm5, %v2367_v58, %v2335_v15  ;;  %v2209_v45 = vpop.permute.xlu0 %2208 }
 0x147   : > { %3242 = vmatprep.mubr.msk.bf16.mxu0 %vm1396_vm6, %v2399_v56  ;;  %v2369_v21 = vsel %vm718_vm4, %v4424_v18, %v2209_v45 }
 0x149   : > { %v2337_v17 = vpop.permute.xlu1 %2336 }
 0x14a   : > { %v2401_v25 = vsel %vm751_vm5, %v2369_v21, %v2337_v17  ;;  %v717_v32 = vpop.permute.xlu0 %716 }
 0x14b   : > { %3243 = vmatmul.mubr.msk.bf16.gmra.mrb[28].mxu0 %vm1396_vm6, %v2401_v25  ;;  %v783_v44 = vsel %vm751_vm5, %v750_v41, %v717_v32 }
 0x14c   : > { %3209 = vmatmul.mubr.msk.bf16.gmra.mrb[28].mxu1 %vm1396_vm6, %v783_v44 }
 0x170   : > { %v3148_v43 = vpop.f32.mrb[0].mxu1 }
 0x171   : > { %v1470_v38 = vpop.f32.mrb[1].mxu1 }
 0x172   : > { %v3149_v24 = vpop.f32.mrb[2].mxu1 }
 0x173   : > { %v1473_v54 = vpop.f32.mrb[3].mxu1 }
 0x17e   : > { %v3152_v51 = vpop.f32.mrb[4].mxu1 }
 0x17f   : > { %v1486_v18 = vpop.f32.mrb[5].mxu1 }
 0x180   : > { %v3153_v53 = vpop.f32.mrb[6].mxu1 }
 0x181   : > { %v1489_v48 = vpop.f32.mrb[7].mxu1 }
 0x18e   : > { %v3156_v6 = vpop.f32.mrb[8].mxu1 }
 0x18f   : > { %v1502_v8 = vpop.f32.mrb[9].mxu1 }
 0x190   : > { %v3157_v37 = vpop.f32.mrb[10].mxu1 }
 0x191   : > { %v1505_v23 = vpop.f32.mrb[11].mxu1 }
 0x19e   : > { %v3160_v49 = vpop.f32.mrb[12].mxu1 }
 0x19f   : > { %v1518_v36 = vpop.f32.mrb[13].mxu1 }
 0x1a0   : > { %v3161_v47 = vpop.f32.mrb[14].mxu1 }
 0x1a1   : > { %v1521_v12 = vpop.f32.mrb[15].mxu1 }
 0x1ae   : > { %v3216_v14 = vpop.f32.mrb[0].mxu0 }
 0x1af   : > { %v3248_v30 = vadd.f32 %v3216_v14, %v3148_v43  ;;  %v2473_v46 = vpop.f32.mrb[1].mxu0 }
 0x1b0   : > { %v3249_v26 = vadd.f32 %v2473_v46, %v1470_v38  ;;  %v3217_v3 = vpop.f32.mrb[2].mxu0 }
 0x1b1   : > { %v2641_v29 = vadd.f32 %v3248_v30, %v4608_v31  ;;  %v3250_v50 = vadd.f32 %v3217_v3, %v3149_v24  ;;  %v2476_v2 = vpop.f32.mrb[3].mxu0 }
 0x1b2   : > { %v2639_v13 = vadd.f32 %v3249_v26, %v4608_v31  ;;  %v3251_v40 = vadd.f32 %v2476_v2, %v1473_v54 }
 0x1b3   : > { %2674 = vst.msk [vmem:[%s4613_s4 + $0x10] sm:$0xff] %vm2671_vm7, %v2641_v29  ;;  %v2642_v33 = vadd.f32 %v3250_v50, %v4608_v31 }
 0x1b4   : > { %2672 = vst.msk [vmem:[%s4613_s4] sm:$0xff] %vm2671_vm7, %v2639_v13  ;;  %v2640_v61 = vadd.f32 %v3251_v40, %v4608_v31 }
 0x1b5   : > { %2675 = vst.msk [vmem:[%s4613_s4 + $0x18] sm:$0xff] %vm2671_vm7, %v2642_v33 }
 0x1b6   : > { %2673 = vst.msk [vmem:[%s4613_s4 + $0x8] sm:$0xff] %vm2671_vm7, %v2640_v61 }
 0x1be   : > { %v3220_v19 = vpop.f32.mrb[4].mxu0 }
 0x1bf   : > { %v3252_v1 = vadd.f32 %v3220_v19, %v3152_v51  ;;  %v2489_v52 = vpop.f32.mrb[5].mxu0 }
 0x1c0   : > { %v3253_v22 = vadd.f32 %v2489_v52, %v1486_v18  ;;  %v3221_v59 = vpop.f32.mrb[6].mxu0 }
 0x1c1   : > { %v2645_v35 = vadd.f32 %v3252_v1, %v4608_v31  ;;  %v3254_v63 = vadd.f32 %v3221_v59, %v3153_v53  ;;  %v2492_v42 = vpop.f32.mrb[7].mxu0 }
 0x1c2   : > { %v2643_v60 = vadd.f32 %v3253_v22, %v4608_v31  ;;  %v3255_v55 = vadd.f32 %v2492_v42, %v1489_v48 }
 0x1c3   : > { %2678 = vst.msk [vmem:[%s4613_s4 + $0x30] sm:$0xff] %vm2671_vm7, %v2645_v35  ;;  %v2646_v28 = vadd.f32 %v3254_v63, %v4608_v31 }
 0x1c4   : > { %2676 = vst.msk [vmem:[%s4613_s4 + $0x20] sm:$0xff] %vm2671_vm7, %v2643_v60  ;;  %v2644_v16 = vadd.f32 %v3255_v55, %v4608_v31 }
 0x1c5   : > { %2679 = vst.msk [vmem:[%s4613_s4 + $0x38] sm:$0xff] %vm2671_vm7, %v2646_v28 }
 0x1c6   : > { %2677 = vst.msk [vmem:[%s4613_s4 + $0x28] sm:$0xff] %vm2671_vm7, %v2644_v16 }
 0x1ce   : > { %v3224_v5 = vpop.f32.mrb[8].mxu0 }
 0x1cf   : > { %v3256_v34 = vadd.f32 %v3224_v5, %v3156_v6  ;;  %v2505_v4 = vpop.f32.mrb[9].mxu0 }
 0x1d0   : > { %v3257_v0 = vadd.f32 %v2505_v4, %v1502_v8  ;;  %v3225_v7 = vpop.f32.mrb[10].mxu0 }
 0x1d1   : > { %v2649_v27 = vadd.f32 %v3256_v34, %v4608_v31  ;;  %v3258_v20 = vadd.f32 %v3225_v7, %v3157_v37  ;;  %v2508_v9 = vpop.f32.mrb[11].mxu0 }
 0x1d2   : > { %v2647_v39 = vadd.f32 %v3257_v0, %v4608_v31  ;;  %v3259_v62 = vadd.f32 %v2508_v9, %v1505_v23 }
 0x1d3   : > { %2682 = vst.msk [vmem:[%s4613_s4 + $0x50] sm:$0xff] %vm2671_vm7, %v2649_v27  ;;  %v2650_v10 = vadd.f32 %v3258_v20, %v4608_v31 }
 0x1d4   : > { %2680 = vst.msk [vmem:[%s4613_s4 + $0x40] sm:$0xff] %vm2671_vm7, %v2647_v39  ;;  %v2648_v57 = vadd.f32 %v3259_v62, %v4608_v31 }
 0x1d5   : > { %2683 = vst.msk [vmem:[%s4613_s4 + $0x58] sm:$0xff] %vm2671_vm7, %v2650_v10 }
 0x1d6   : > { %2681 = vst.msk [vmem:[%s4613_s4 + $0x48] sm:$0xff] %vm2671_vm7, %v2648_v57 }
 0x1de   : > { %v3228_v11 = vpop.f32.mrb[12].mxu0 }
 0x1df   : > { %v3260_v58 = vadd.f32 %v3228_v11, %v3160_v49  ;;  %v2521_v15 = vpop.f32.mrb[13].mxu0 }
 0x1e0   : > { %v3261_v56 = vadd.f32 %v2521_v15, %v1518_v36  ;;  %v3229_v45 = vpop.f32.mrb[14].mxu0 }
 0x1e1   : > { %v2653_v21 = vadd.f32 %v3260_v58, %v4608_v31  ;;  %v3262_v17 = vadd.f32 %v3229_v45, %v3161_v47  ;;  %v2524_v25 = vpop.f32.mrb[15].mxu0 }
 0x1e2   : > { %v2651_v41 = vadd.f32 %v3261_v56, %v4608_v31  ;;  %v3263_v32 = vadd.f32 %v2524_v25, %v1521_v12 }
 0x1e3   : > { %2686 = vst.msk [vmem:[%s4613_s4 + $0x70] sm:$0xff] %vm2671_vm7, %v2653_v21  ;;  %v2654_v44 = vadd.f32 %v3262_v17, %v4608_v31 }
 0x1e4   : > { %2684 = vst.msk [vmem:[%s4613_s4 + $0x60] sm:$0xff] %vm2671_vm7, %v2651_v41  ;;  %v2652_v43 = vadd.f32 %v3263_v32, %v4608_v31 }
 0x1e5   : > { %2687 = vst.msk [vmem:[%s4613_s4 + $0x78] sm:$0xff] %vm2671_vm7, %v2654_v44 }
 0x1e6   : > { %2685 = vst.msk [vmem:[%s4613_s4 + $0x68] sm:$0xff] %vm2671_vm7, %v2652_v43 }
 0x1ee   : > { %v3232_v38 = vpop.f32.mrb[16].mxu0 }
 0x1ef   : > { %v2537_v24 = vpop.f32.mrb[17].mxu0  ;;  %v3198_v54 = vpop.f32.mrb[16].mxu1 }
 0x1f0   : > { %v3233_v51 = vpop.f32.mrb[18].mxu0  ;;  %v3264_v18 = vadd.f32 %v3232_v38, %v3198_v54  ;;  %v1730_v53 = vpop.f32.mrb[17].mxu1 }
 0x1f1   : > { %v2540_v48 = vpop.f32.mrb[19].mxu0  ;;  %v3265_v6 = vadd.f32 %v2537_v24, %v1730_v53  ;;  %v3199_v8 = vpop.f32.mrb[18].mxu1 }
 0x1f2   : > { %v2657_v37 = vadd.f32 %v3264_v18, %v4608_v31  ;;  %v3266_v23 = vadd.f32 %v3233_v51, %v3199_v8  ;;  %v1733_v49 = vpop.f32.mrb[19].mxu1 }
 0x1f3   : > { %v2655_v36 = vadd.f32 %v3265_v6, %v4608_v31  ;;  %v3267_v47 = vadd.f32 %v2540_v48, %v1733_v49 }
 0x1f4   : > { %2690 = vst.msk [vmem:[%s4613_s4 + $0x90] sm:$0xff] %vm2671_vm7, %v2657_v37  ;;  %v2658_v12 = vadd.f32 %v3266_v23, %v4608_v31 }
 0x1f5   : > { %2688 = vst.msk [vmem:[%s4613_s4 + $0x80] sm:$0xff] %vm2671_vm7, %v2655_v36  ;;  %v2656_v14 = vadd.f32 %v3267_v47, %v4608_v31 }
 0x1f6   : > { %2691 = vst.msk [vmem:[%s4613_s4 + $0x98] sm:$0xff] %vm2671_vm7, %v2658_v12 }
 0x1f7   : > { %2689 = vst.msk [vmem:[%s4613_s4 + $0x88] sm:$0xff] %vm2671_vm7, %v2656_v14 }
 0x1fe   : > { %v3236_v30 = vpop.f32.mrb[20].mxu0 }
 0x1ff   : > { %v2553_v46 = vpop.f32.mrb[21].mxu0  ;;  %v3202_v26 = vpop.f32.mrb[20].mxu1 }
 0x200   : > { %v3237_v3 = vpop.f32.mrb[22].mxu0  ;;  %v3268_v29 = vadd.f32 %v3236_v30, %v3202_v26  ;;  %v1746_v50 = vpop.f32.mrb[21].mxu1 }
 0x201   : > { %v2556_v2 = vpop.f32.mrb[23].mxu0  ;;  %v3269_v13 = vadd.f32 %v2553_v46, %v1746_v50  ;;  %v3203_v40 = vpop.f32.mrb[22].mxu1 }
 0x202   : > { %v2661_v33 = vadd.f32 %v3268_v29, %v4608_v31  ;;  %v3270_v61 = vadd.f32 %v3237_v3, %v3203_v40  ;;  %v1749_v19 = vpop.f32.mrb[23].mxu1 }
 0x203   : > { %v2659_v1 = vadd.f32 %v3269_v13, %v4608_v31  ;;  %v3271_v52 = vadd.f32 %v2556_v2, %v1749_v19 }
 0x204   : > { %2694 = vst.msk [vmem:[%s4613_s4 + $0xb0] sm:$0xff] %vm2671_vm7, %v2661_v33  ;;  %v2662_v22 = vadd.f32 %v3270_v61, %v4608_v31 }
 0x205   : > { %2692 = vst.msk [vmem:[%s4613_s4 + $0xa0] sm:$0xff] %vm2671_vm7, %v2659_v1  ;;  %v2660_v59 = vadd.f32 %v3271_v52, %v4608_v31 }
 0x206   : > { %2695 = vst.msk [vmem:[%s4613_s4 + $0xb8] sm:$0xff] %vm2671_vm7, %v2662_v22 }
 0x207   : > { %2693 = vst.msk [vmem:[%s4613_s4 + $0xa8] sm:$0xff] %vm2671_vm7, %v2660_v59 }
 0x20e   : > { %v3240_v35 = vpop.f32.mrb[24].mxu0 }
 0x20f   : > { %v2569_v63 = vpop.f32.mrb[25].mxu0  ;;  %v3206_v42 = vpop.f32.mrb[24].mxu1 }
 0x210   : > { %v3241_v60 = vpop.f32.mrb[26].mxu0  ;;  %v3272_v55 = vadd.f32 %v3240_v35, %v3206_v42  ;;  %v1762_v28 = vpop.f32.mrb[25].mxu1 }
 0x211   : > { %v2572_v16 = vpop.f32.mrb[27].mxu0  ;;  %v3273_v5 = vadd.f32 %v2569_v63, %v1762_v28  ;;  %v3207_v34 = vpop.f32.mrb[26].mxu1 }
 0x212   : > { %v2665_v4 = vadd.f32 %v3272_v55, %v4608_v31  ;;  %v3274_v0 = vadd.f32 %v3241_v60, %v3207_v34  ;;  %v1765_v7 = vpop.f32.mrb[27].mxu1 }
 0x213   : > { %v2663_v27 = vadd.f32 %v3273_v5, %v4608_v31  ;;  %v3275_v20 = vadd.f32 %v2572_v16, %v1765_v7 }
 0x214   : > { %2698 = vst.msk [vmem:[%s4613_s4 + $0xd0] sm:$0xff] %vm2671_vm7, %v2665_v4  ;;  %v2666_v9 = vadd.f32 %v3274_v0, %v4608_v31 }
 0x215   : > { %2696 = vst.msk [vmem:[%s4613_s4 + $0xc0] sm:$0xff] %vm2671_vm7, %v2663_v27  ;;  %v2664_v39 = vadd.f32 %v3275_v20, %v4608_v31 }
 0x216   : > { %2699 = vst.msk [vmem:[%s4613_s4 + $0xd8] sm:$0xff] %vm2671_vm7, %v2666_v9 }
 0x217   : > { %2697 = vst.msk [vmem:[%s4613_s4 + $0xc8] sm:$0xff] %vm2671_vm7, %v2664_v39 }
 0x21e   : > { %v3244_v62 = vpop.f32.mrb[28].mxu0 }
 0x21f   : > { %v2585_v10 = vpop.f32.mrb[29].mxu0  ;;  %v3210_v57 = vpop.f32.mrb[28].mxu1 }
 0x220   : > { %v3245_v11 = vpop.f32.mrb[30].mxu0  ;;  %v3276_v58 = vadd.f32 %v3244_v62, %v3210_v57  ;;  %v1778_v15 = vpop.f32.mrb[29].mxu1 }
 0x221   : > { %v2588_v56 = vpop.f32.mrb[31].mxu0  ;;  %v3277_v45 = vadd.f32 %v2585_v10, %v1778_v15  ;;  %v3211_v21 = vpop.f32.mrb[30].mxu1 }
 0x222   : > { %v2669_v17 = vadd.f32 %v3276_v58, %v4608_v31  ;;  %v3278_v25 = vadd.f32 %v3245_v11, %v3211_v21  ;;  %v1781_v41 = vpop.f32.mrb[31].mxu1 }
 0x223   : > { %v2667_v32 = vadd.f32 %v3277_v45, %v4608_v31  ;;  %v3279_v44 = vadd.f32 %v2588_v56, %v1781_v41 }
 0x224   : > { %2702 = vst.msk [vmem:[%s4613_s4 + $0xf0] sm:$0xff] %vm2671_vm7, %v2669_v17  ;;  %v2670_v43 = vadd.f32 %v3278_v25, %v4608_v31 }
 0x225   : > { %2700 = vst.msk [vmem:[%s4613_s4 + $0xe0] sm:$0xff] %vm2671_vm7, %v2667_v32  ;;  %v2668_v38 = vadd.f32 %v3279_v44, %v4608_v31 }
 0x226   : > { %2703 = vst.msk [vmem:[%s4613_s4 + $0xf8] sm:$0xff] %vm2671_vm7, %v2670_v43 }
 0x227   : > { %2701 = vst.msk [vmem:[%s4613_s4 + $0xe8] sm:$0xff] %vm2671_vm7, %v2668_v38 }
 0x228 PF: > { %s13_s12 = sadd.s32 1, %s3474_s12  }
 0x229   : > { %p10_p4 = scmp.ge.s32.totalorder %s13_s12, 4  }
 0x22b   :  { %12 = sbr.rel (!%p10_p4) target bundleno = 1 (0x1), region = 66 }

// kernel: _lambda_.11
= control target key start
LH: loop header
LB: loop body
LE: loop exit
PB: predicated region body
PF: predicated region fallthrough
CT: control target
= control target key end

     0   :  { %s1402_s27 = smov 0   ;;  %s1594_s0 = inlined_call_operand.vmem [shape: f32[2,16,64], index: 0, kind: input, shape index: {}]   ;;  %s1595_s1 = inlined_call_operand.vmem [shape: f32[16,64], index: 1, kind: input, shape index: {}]   ;;  %s1596_s2 = inlined_call_operand.vmem [shape: f32[1,64], index: 2, kind: input, shape index: {}]   ;;  %s1597_s3 = inlined_call_operand.vmem [shape: f32[1,64], index: 3, kind: input, shape index: {}]   ;;  %s1598_s4 = inlined_call_operand.vmem [shape: bf16[64,192], index: 4, kind: input, shape index: {}]   ;;  %s1599_s5 = inlined_call_operand.vmem [shape: f32[1,192], index: 5, kind: input, shape index: {}]   ;;  %s1600_s6 = inlined_call_operand.vmem [shape: bf16[64,64], index: 6, kind: input, shape index: {}]   ;;  %s1601_s7 = inlined_call_operand.vmem [shape: f32[1,64], index: 7, kind: input, shape index: {}]   ;;  %s1602_s8 = inlined_call_operand.vmem [shape: f32[2,16,16], index: 8, kind: output, shape index: {}]  }
   0x1 LB: > { %s1150_s28 = sadd.s32 4294967295, %s1345_s27   ;;  %p1154_p0 = scmp.ge.s32.totalorder %s1345_s27, 1  ;;  %s1345_s27 = sphi %s1402_s27, %s18_s27  }
   0x2   : > { %p262_p1 = scmp.lt.s32.totalorder %s1345_s27, 3 }
   0x4   : > { %p263_p2 = pnand %p1154_p0, %p262_p1 }
   0x5   : > { %p296_p3 = scmp.lt.s32.totalorder (!%p263_p2), %s1150_s28, 1  ;;  %v309_v0 = vld [vmem:[%s1595_s1] sm:$0xff] (!%p263_p2)  ;;  %v310_v1 = vld [vmem:[%s1595_s1 + $0x8] sm:$0xff] (!%p263_p2)  ;;  %vm313_vm0 = vcmask (!%p263_p2), 523264   ;;  %v1290_v20 = vld [vmem:[%s1598_s4 + $0x14] ss:$8 sps:$4 sm:$0xff] (!%p263_p2)   ;;  %v370_v44 = vlaneseq (!%p263_p2) }
   0x6   : > { %266 = sbr.rel (%p263_p2) target bundleno = 2570 (0xa0a), region = 52  ;;  %v1287_v18 = vld [vmem:[%s1598_s4 + $0x4] ss:$8 sps:$4 sm:$0xff] (!%p263_p2)   ;;  %v1289_v19 = vld [vmem:[%s1598_s4] ss:$8 sps:$4 sm:$0xff] (!%p263_p2)   ;;  %v1347_v26 = vmov (!%p263_p2), 0  }
   0x7   : > { %423 = vmatprep.subr.bf16.mxu0 (!%p263_p2), %v1287_v18  ;;  %v1292_v21 = vld [vmem:[%s1598_s4 + $0x10] ss:$8 sps:$4 sm:$0xff] (!%p263_p2)   ;;  %v1293_v22 = vld [vmem:[%s1598_s4 + $0x24] ss:$8 sps:$4 sm:$0xff] (!%p263_p2)   ;;  %v1295_v23 = vld [vmem:[%s1598_s4 + $0x20] ss:$8 sps:$4 sm:$0xff] (!%p263_p2)   ;;  %455 = vmatprep.mubr.bf16.mxu0 (!%p263_p2), %v1347_v26 }
   0x8   : > { %424 = vmatpush1.bf16.msra.mxu0 (!%p263_p2), %v1289_v19  ;;  %v1296_v24 = vld [vmem:[%s1598_s4 + $0x34] ss:$8 sps:$4 sm:$0xff] (!%p263_p2)   ;;  %v1298_v25 = vld [vmem:[%s1598_s4 + $0x30] ss:$8 sps:$4 sm:$0xff] (!%p263_p2)   ;;  %v1159_v35 = vld [vmem:[%s1596_s2] ss:$0 sm:$0xff] (!%p263_p2) }
   0x9   : > { %425 = vmatprep.subr.bf16.mxu0 (!%p263_p2), %v1290_v20  ;;  %v1160_v39 = vld [vmem:[%s1597_s3] ss:$0 sm:$0xff] (!%p263_p2)  ;;  %v371_v45 = vshrl.u32 (!%p263_p2), %v370_v44, 7  ;;  %v1348_v46 = vmov (!%p263_p2), 0.0   ;;  %vm1349_vm1 = vmmov (!%p263_p2), 0   ;;  %s1350_s18 = smov (!%p263_p2), 64  }
   0xa   : > { %1209 = vmatprep.subr.bf16.mxu1 (!%p263_p2), %v1348_v46  ;;  %v368_v48 = vld [vmem:[%s1599_s5] sm:$0x3] (!%p263_p2)  ;;  %1211 = vmatprep.mubr.msk.bf16.mxu1 (!%p263_p2), %vm1349_vm1, %v1348_v46  ;;  %s1351_s19 = smov (!%p263_p2), 112   ;;  %s1352_s20 = smov (!%p263_p2), 32   ;;  %vm471_vm2 = vcmask (!%p263_p2), 130048   ;;  %vm718_vm3 = vcmask (!%p263_p2), 261248  }
   0xb   : > { %v372_v47 = vsub.s32 (!%p263_p2), 0, %v371_v45  ;;  %v376_v49 = vsub.s32 (!%p263_p2), 1, %v371_v45  ;;  %s1353_s21 = smov (!%p263_p2), 96   ;;  %s1354_s22 = smov (!%p263_p2), 80   ;;  %vm850_vm4 = vcmask (!%p263_p2), 392448   ;;  %vm982_vm5 = vcmask (!%p263_p2), 523648  }
   0xc   : > { %426 = vmatpush1.bf16.msra.mxu0 (!%p263_p2), %v1292_v21  ;;  %s1355_s23 = smov (!%p263_p2), 48   ;;  %s1356_s24 = smov (!%p263_p2), 16  }
   0xd   : > { %s1604_s28 = smov (!%p296_p3, %s1150_s28), 1  ;;  %427 = vmatprep.subr.bf16.mxu0 %v1293_v22  ;;  %v373_v50 = vrot.slane %v368_v48, %v372_v47  ;;  %v377_v52 = vrot.slane %v368_v48, %v376_v49 }
   0xe   : > { %s1186_s9 = sshll.u32 %s1604_s28, 4 }
   0xf   : > { %s300_s14 = scalar_lea.vmem %s1594_s0, %s1186_s9 }
  0x10   : > { %v307_v2 = vld [vmem:[%s300_s14] sm:$0xff]  ;;  %v308_v3 = vld [vmem:[%s300_s14 + $0x8] sm:$0xff]  ;;  %428 = vmatpush1.bf16.msra.mxu0 %v1295_v23 }
  0x11   : > { %v1424_v4 = vadd.f32 %v309_v0, %v307_v2  ;;  %v1426_v5 = vadd.f32 %v310_v1, %v308_v3  ;;  %429 = vmatprep.subr.bf16.mxu0 %v1296_v24 }
  0x13   : > { %v314_v6 = vsel %vm313_vm0, %v1424_v4, 0.0  ;;  %v317_v7 = vsel %vm313_vm0, %v1426_v5, 0.0 }
  0x14   : > { %315 = vadd.xlane.f32.xlu0 %v314_v6  ;;  %430 = vmatpush1.bf16.msra.mxu0 %v1298_v25 }
  0x15   : > { %1233 = vmatprep.subr.bf16.mxu0 %v1348_v46 }
  0x18   : > { %318 = vadd.xlane.f32.xlu0 %v317_v7 }
  0xa1   : > { %v316_v8 = vpop.xlane.xlu0 %315 }
  0xa2   : > { %v321_v9 = vmul.f32 0.015625, %v316_v8 }
  0xa4   : > { %v323_v10 = vsub.f32 %v1424_v4, %v321_v9 }
  0xa5   : > { %v319_v11 = vpop.xlane.xlu0 %318 }
  0xa6   : > { %v322_v12 = vmul.f32 0.015625, %v319_v11  ;;  %v325_v13 = vmul.f32 %v323_v10, %v323_v10 }
  0xa8   : > { %v324_v14 = vsub.f32 %v1426_v5, %v322_v12  ;;  %v327_v15 = vsel %vm313_vm0, %v325_v13, 0.0 }
  0xa9   : > { %328 = vadd.xlane.f32.xlu1 %v327_v15 }
  0xaa   : > { %v326_v16 = vmul.f32 %v324_v14, %v324_v14 }
  0xac   : > { %v330_v17 = vsel %vm313_vm0, %v326_v16, 0.0 }
  0xad   : > { %331 = vadd.xlane.f32.xlu1 %v330_v17 }
 0x136   : > { %v329_v27 = vpop.xlane.xlu1 %328 }
 0x137   : > { %v333_v28 = vmul.f32 0.015625, %v329_v27 }
 0x139   : > { %v335_v29 = vadd.f32 1e-05, %v333_v28 }
 0x13a   : > { %v332_v30 = vpop.xlane.xlu1 %331 }
 0x13b   : > { %1303 = vrsqrt.f32 %v335_v29  ;;  %v334_v31 = vmul.f32 0.015625, %v332_v30 }
 0x13d   : > { %v336_v32 = vadd.f32 1e-05, %v334_v31 }
 0x13f   : > { %1305 = vrsqrt.f32 %v336_v32 }
 0x145   : > { %v1304_v33 = vpop.eup %1303 }
 0x146   : > { %v339_v34 = vmul.f32 %v1304_v33, %v323_v10 }
 0x148   : > { %v348_v38 = vmul.f32 %v1159_v35, %v339_v34 }
 0x149   : > { %v1306_v36 = vpop.eup %1305 }
 0x14a   : > { %v340_v37 = vmul.f32 %v1306_v36, %v324_v14  ;;  %v357_v41 = vadd.f32 %v1160_v39, %v348_v38 }
 0x14c   : > { %v349_v40 = vmul.f32 %v1159_v35, %v340_v37 }
 0x14e   : > { %v358_v42 = vadd.f32 %v1160_v39, %v349_v40 }
 0x150   : > { %v359_v43 = vpack.c.bf16 %v358_v42, %v357_v41 }
 0x152   : > { %1169 = vmatmul.mubr.msk.bf16.vlgmr.msra.gmra.mrb[0].mxu0 %vm313_vm0, %v359_v43 }
 0x153   : > { %1235 = vmatprep.mubr.msk.bf16.mxu0 %vm1349_vm1, %v1348_v46 }
 0x225   : > { %v457_v51 = vpop.f32.mrb[0].mxu0 }
 0x226   : > { %v459_v53 = vpop.f32.mrb[1].mxu0  ;;  %v458_v55 = vadd.f32 %v457_v51, %v373_v50 }
 0x227   : > { %v461_v54 = vpop.f32.mrb[2].mxu0  ;;  %v460_v58 = vadd.f32 %v459_v53, %v377_v52 }
 0x228   : > { %v462_v56 = vadd.f32 %v461_v54, %v373_v50  ;;  %v463_v57 = vpop.f32.mrb[3].mxu0 }
 0x229   : > { %v464_v59 = vadd.f32 %v463_v57, %v377_v52 }
 0x22a   : > { %v466_v60 = vpack.c.bf16 %v462_v56, %v458_v55 }
 0x22b   : > { %v1476_v61 = vpack.c.bf16 %v464_v59, %v460_v58 }
 0x22c   : > { %469 = vrot.lane.b32.xlu0 %v466_v60, %s1350_s18  ;;  %s305_s18 = scalar_lea.vmem %s1602_s8, %s1186_s9 }
 0x230   : > { %588 = vrot.lane.b32.xlu0 %v466_v60, %s1351_s19 }
 0x234   : > { %723 = vrot.lane.b32.xlu0 %v466_v60, %s1352_s20 }
 0x238   : > { %721 = vrot.lane.b32.xlu0 %v466_v60, %s1353_s21 }
 0x23c   : > { %853 = vrot.lane.b32.xlu0 %v466_v60, %s1354_s22 }
 0x29e   : > { %v470_v62 = vpop.permute.xlu0 %469 }
 0x29f   : > { %v476_v63 = vsel %vm471_vm2, %v470_v62, 0 }
 0x2a0   : > { %1210 = vmatpush3.bf16.xpose.msra.mxu1 %v476_v63 }
 0x2a1   : > { %1215 = vmatprep.subr.bf16.mxu1 %v1348_v46 }
 0x2a2   : > { %v1484_v0 = vpop.permute.xlu0 %588 }
 0x2a6   : > { %v724_v1 = vpop.permute.xlu0 %723 }
 0x2a7   : > { %v729_v2 = vsel %vm471_vm2, %v724_v1, 0  ;;  %1212 = vmatmul.mubr.msk.bf16.vlgmr.msra.gmra.mrb[0].mxu1 %vm471_vm2, %v466_v60 }
 0x2a8   : > { %1216 = vmatpush3.bf16.msra.mxu1 %v1476_v61  ;;  %1234 = vmatpush3.bf16.xpose.msra.mxu0 %v729_v2 }
 0x2a9   : > { %1245 = vmatprep.subr.bf16.mxu0 %v1348_v46  ;;  %1217 = vmatprep.mubr.msk.bf16.mxu1 %vm1349_vm1, %v1348_v46 }
 0x2aa   : > { %1221 = vmatprep.subr.bf16.mxu1 %v1348_v46  ;;  %v722_v3 = vpop.permute.xlu0 %721 }
 0x2ae   : > { %v854_v36 = vpop.permute.xlu0 %853 }
 0x2af   : > { %1236 = vmatmul.mubr.msk.bf16.vlgmr.msra.gmra.mrb[4].mxu0 %vm471_vm2, %v722_v3 }
 0x2b0   : > { %1247 = vmatprep.mubr.msk.bf16.mxu0 %vm1349_vm1, %v1348_v46 }
 0x37a   : > { %v512_v6 = vpop.f32.mrb[0].mxu1 }
 0x37b   : > { %v1213_v7 = vpop.f32.mrb[1].mxu1  ;;  %v519_v8 = vsel %vm471_vm2, %v512_v6, -inf }
 0x37c   : > { %520 = vmax.xlane.f32.xlu1 %v519_v8  ;;  %v515_v9 = vpop.f32.mrb[2].mxu1 }
 0x37d   : > { %v1214_v10 = vpop.f32.mrb[3].mxu1  ;;  %v522_v11 = vsel %vm471_vm2, %v515_v9, -inf }
 0x380   : > { %523 = vmax.xlane.f32.xlu1 %v522_v11 }
 0x382   : > { %v1498_v12 = vpop.f32.mrb[4].mxu0 }
 0x383   : > { %v1237_v13 = vpop.f32.mrb[5].mxu0  ;;  %v772_v54 = vsel %vm471_vm2, %v1498_v12, -inf }
 0x384   : > { %v1500_v14 = vpop.f32.mrb[6].mxu0 }
 0x385   : > { %v1238_v15 = vpop.f32.mrb[7].mxu0  ;;  %v775_v55 = vsel %vm471_vm2, %v1500_v14, -inf }
 0x409   : > { %v521_v16 = vpop.xlane.xlu1 %520 }
 0x40a   : > { %v525_v17 = vsub.f32 %v512_v6, %v521_v16 }
 0x40c   : > { %v527_v18 = vmul.f32 1.442695, %v525_v17 }
 0x40d   : > { %v524_v19 = vpop.xlane.xlu1 %523 }
 0x40e   : > { %1307 = vpow2.f32 %v527_v18  ;;  %v526_v20 = vsub.f32 %v515_v9, %v524_v19 }
 0x410   : > { %v529_v21 = vmul.f32 1.442695, %v526_v20 }
 0x412   : > { %1309 = vpow2.f32 %v529_v21 }
 0x418   : > { %v1308_v22 = vpop.eup %1307 }
 0x419   : > { %v531_v23 = vsel %vm471_vm2, %v1308_v22, 0.0 }
 0x41a   : > { %532 = vadd.xlane.f32.xlu1 %v531_v23 }
 0x41c   : > { %v1310_v24 = vpop.eup %1309 }
 0x41d   : > { %v534_v25 = vsel %vm471_vm2, %v1310_v24, 0.0 }
 0x41e   : > { %535 = vadd.xlane.f32.xlu1 %v534_v25 }
 0x42f   : > { %590 = vrot.lane.b32.xlu1 %v466_v60, %s1355_s23 }
 0x433   : > { %855 = vrot.lane.b32.xlu1 %v466_v60, %s1356_s24 }
 0x4a7   : > { %v533_v26 = vpop.xlane.xlu1 %532 }
 0x4a8   : > { %1311 = vrcp.f32 %v533_v26 }
 0x4ab   : > { %v536_v27 = vpop.xlane.xlu1 %535 }
 0x4ac   : > { %1313 = vrcp.f32 %v536_v27 }
 0x4af   : > { %v591_v28 = vpop.permute.xlu1 %590 }
 0x4b0   : > { %v596_v37 = vsel %vm471_vm2, %v591_v28, 0 }
 0x4b2   : > { %v1312_v30 = vpop.eup %1311 }
 0x4b3   : > { %v856_v29 = vpop.permute.xlu1 %855  ;;  %v539_v33 = vmul.f32 %v1312_v30, %v1308_v22 }
 0x4b4   : > { %v861_v31 = vsel %vm471_vm2, %v856_v29, 0 }
 0x4b5   : > { %1246 = vmatpush3.bf16.xpose.msra.mxu0 %v861_v31 }
 0x4b6   : > { %v1314_v32 = vpop.eup %1313  ;;  %1257 = vmatprep.subr.bf16.mxu0 %v1348_v46 }
 0x4b7   : > { %v540_v34 = vmul.f32 %v1314_v32, %v1310_v24 }
 0x4b9   : > { %v541_v35 = vpack.c.bf16 %v540_v34, %v539_v33 }
 0x4bb   : > { %1218 = vmatmul.mubr.msk.bf16.vlgmr.msra.gmra.mrb[4].mxu1 %vm471_vm2, %v541_v35 }
 0x4bc   : > { %1222 = vmatpush3.bf16.xpose.msra.mxu1 %v596_v37  ;;  %1248 = vmatmul.mubr.msk.bf16.vlgmr.msra.gmra.mrb[8].mxu0 %vm471_vm2, %v854_v36 }
 0x4bd   : > { %1223 = vmatprep.mubr.msk.bf16.mxu1 %vm1349_vm1, %v1348_v46  ;;  %1227 = vmatprep.subr.bf16.mxu1 %v1348_v46 }
 0x4be   : > { %1265 = vmatprep.mubr.msk.bf16.mxu0 %vm1349_vm1, %v1348_v46 }
 0x4c3   : > { %1224 = vmatmul.mubr.msk.bf16.vlgmr.msra.gmra.mrb[8].mxu1 %vm471_vm2, %v1484_v0 }
 0x4c4   : > { %1229 = vmatprep.mubr.msk.bf16.mxu1 %vm1349_vm1, %v1348_v46 }
 0x58e   : > { %v579_v38 = vpop.f32.mrb[4].mxu1 }
 0x58f   : > { %586 = vst.msk [vmem:[#allocation2] sm:$0xff] %vm471_vm2, %v579_v38  ;;  %v1219_v39 = vpop.f32.mrb[5].mxu1  ;;  %v897_v40 = vpop.f32.mrb[8].mxu0 }
 0x590   : > { %v582_v41 = vpop.f32.mrb[6].mxu1  ;;  %v1249_v42 = vpop.f32.mrb[9].mxu0  ;;  %v904_v53 = vsel %vm471_vm2, %v897_v40, -inf }
 0x591   : > { %587 = vst.msk [vmem:[#allocation2 + $0x8] sm:$0xff] %vm471_vm2, %v582_v41  ;;  %v1220_v43 = vpop.f32.mrb[7].mxu1  ;;  %v900_v44 = vpop.f32.mrb[10].mxu0 }
 0x592   : > { %v1250_v45 = vpop.f32.mrb[11].mxu0  ;;  %v907_v56 = vsel %vm471_vm2, %v900_v44, -inf }
 0x596   : > { %v632_v47 = vpop.f32.mrb[8].mxu1 }
 0x597   : > { %v1225_v48 = vpop.f32.mrb[9].mxu1  ;;  %v639_v49 = vsel %vm471_vm2, %v632_v47, -inf }
 0x598   : > { %640 = vmax.xlane.f32.xlu1 %v639_v49  ;;  %v635_v50 = vpop.f32.mrb[10].mxu1 }
 0x599   : > { %v1226_v51 = vpop.f32.mrb[11].mxu1  ;;  %v642_v52 = vsel %vm471_vm2, %v635_v50, -inf }
 0x59a   : > { %643 = vmax.xlane.f32.xlu0 %v642_v52 }
 0x59c   : > { %905 = vmax.xlane.f32.xlu1 %v904_v53 }
 0x59e   : > { %773 = vmax.xlane.f32.xlu0 %v772_v54 }
 0x5a2   : > { %776 = vmax.xlane.f32.xlu0 %v775_v55  ;;  %v1300_v55 = vld [vmem:[%s1600_s6 + $0x8] sm:$0xff]  }
 0x5a6   : > { %908 = vmax.xlane.f32.xlu0 %v907_v56  ;;  %v1301_v56 = vld [vmem:[%s1600_s6 + $0x10] sm:$0xff]  }
 0x625   : > { %v641_v57 = vpop.xlane.xlu1 %640 }
 0x626   : > { %v645_v0 = vsub.f32 %v632_v47, %v641_v57 }
 0x627   : > { %v644_v58 = vpop.xlane.xlu0 %643 }
 0x628   : > { %v646_v1 = vsub.f32 %v635_v50, %v644_v58  ;;  %v647_v8 = vmul.f32 1.442695, %v645_v0  ;;  %v1299_v50 = vld [vmem:[%s1600_s6] sm:$0xff]  }
 0x629   : > { %v906_v59 = vpop.xlane.xlu1 %905  ;;  %1258 = vmatpush3.bf16.msra.mxu0 %v1299_v50 }
 0x62a   : > { %v910_v60 = vsub.f32 %v897_v40, %v906_v59  ;;  %v649_v9 = vmul.f32 1.442695, %v646_v1  ;;  %1259 = vmatprep.subr.bf16.mxu0 %v1348_v46 }
 0x62b   : > { %v774_v62 = vpop.xlane.xlu0 %773 }
 0x62c   : > { %v778_v63 = vsub.f32 %v1498_v12, %v774_v62  ;;  %v912_v2 = vmul.f32 1.442695, %v910_v60  ;;  %v1302_v60 = vld [vmem:[%s1600_s6 + $0x18] sm:$0xff]  }
 0x62d   : > { %1260 = vmatpush3.bf16.msra.mxu0 %v1300_v55 }
 0x62e   : > { %v780_v3 = vmul.f32 1.442695, %v778_v63  ;;  %1261 = vmatprep.subr.bf16.mxu0 %v1348_v46 }
 0x62f   : > { %v777_v6 = vpop.xlane.xlu0 %776 }
 0x630   : > { %1315 = vpow2.f32 %v780_v3  ;;  %v779_v7 = vsub.f32 %v1500_v14, %v777_v6 }
 0x631   : > { %1317 = vpow2.f32 %v912_v2  ;;  %1262 = vmatpush3.bf16.msra.mxu0 %v1301_v56 }
 0x632   : > { %v782_v10 = vmul.f32 1.442695, %v779_v7  ;;  %1263 = vmatprep.subr.bf16.mxu0 %v1348_v46 }
 0x633   : > { %v909_v11 = vpop.xlane.xlu0 %908 }
 0x634   : > { %1319 = vpow2.f32 %v782_v10  ;;  %v911_v13 = vsub.f32 %v900_v44, %v909_v11 }
 0x635   : > { %1321 = vpow2.f32 %v647_v8  ;;  %1264 = vmatpush3.bf16.msra.mxu0 %v1302_v60 }
 0x636   : > { %1323 = vpow2.f32 %v649_v9  ;;  %v914_v15 = vmul.f32 1.442695, %v911_v13 }
 0x638   : > { %1325 = vpow2.f32 %v914_v15  ;;  %v1178_v15 = vld [vmem:[%s1601_s7] ss:$0 sm:$0xff] }
 0x63a   : > { %v1316_v16 = vpop.eup %1315 }
 0x63b   : > { %v784_v12 = vsel %vm471_vm2, %v1316_v16, 0.0  ;;  %v1318_v17 = vpop.eup %1317 }
 0x63c   : > { %785 = vadd.xlane.f32.xlu1 %v784_v12  ;;  %v916_v14 = vsel %vm471_vm2, %v1318_v17, 0.0 }
 0x63e   : > { %v1320_v18 = vpop.eup %1319 }
 0x63f   : > { %v1322_v19 = vpop.eup %1321  ;;  %v787_v20 = vsel %vm471_vm2, %v1320_v18, 0.0 }
 0x640   : > { %v1324_v21 = vpop.eup %1323  ;;  %917 = vadd.xlane.f32.xlu1 %v916_v14  ;;  %788 = vadd.xlane.f32.xlu0 %v787_v20  ;;  %v651_v22 = vsel %vm471_vm2, %v1322_v19, 0.0 }
 0x641   : > { %v654_v23 = vsel %vm471_vm2, %v1324_v21, 0.0 }
 0x642   : > { %v1326_v24 = vpop.eup %1325 }
 0x643   : > { %v919_v25 = vsel %vm471_vm2, %v1326_v24, 0.0 }
 0x644   : > { %652 = vadd.xlane.f32.xlu1 %v651_v22  ;;  %655 = vadd.xlane.f32.xlu0 %v654_v23 }
 0x648   : > { %920 = vadd.xlane.f32.xlu0 %v919_v25 }
 0x655   : > { %663 = vrot.lane.b32.xlu1 %v1476_v61, %s1351_s19 }
 0x659   : > { %927 = vrot.lane.b32.xlu1 %v1476_v61, %s1354_s22 }
 0x65e   : > { %795 = vrot.lane.b32.xlu0 %v1476_v61, %s1353_s21 }
 0x6c9   : > { %v786_v26 = vpop.xlane.xlu1 %785 }
 0x6cd   : > { %v918_v27 = vpop.xlane.xlu1 %917  ;;  %v789_v28 = vpop.xlane.xlu0 %788 }
 0x6d1   : > { %v653_v29 = vpop.xlane.xlu1 %652  ;;  %v656_v30 = vpop.xlane.xlu0 %655 }
 0x6d2   : > { %1327 = vrcp.f32 %v653_v29 }
 0x6d3   : > { %1329 = vrcp.f32 %v656_v30 }
 0x6d4   : > { %1331 = vrcp.f32 %v789_v28 }
 0x6d5   : > { %v664_v31 = vpop.permute.xlu1 %663  ;;  %1333 = vrcp.f32 %v786_v26  ;;  %v921_v33 = vpop.xlane.xlu0 %920 }
 0x6d6   : > { %1228 = vmatpush3.bf16.msra.mxu1 %v664_v31  ;;  %1335 = vrcp.f32 %v921_v33 }
 0x6d7   : > { %1239 = vmatprep.subr.bf16.mxu1 %v1348_v46  ;;  %1337 = vrcp.f32 %v918_v27 }
 0x6d9   : > { %v796_v38 = vpop.permute.xlu0 %795  ;;  %v928_v44 = vpop.permute.xlu1 %927 }
 0x6dc   : > { %v1328_v32 = vpop.eup %1327 }
 0x6dd   : > { %v1330_v34 = vpop.eup %1329  ;;  %v659_v35 = vmul.f32 %v1328_v32, %v1322_v19 }
 0x6de   : > { %v660_v36 = vmul.f32 %v1330_v34, %v1324_v21  ;;  %v1332_v37 = vpop.eup %1331 }
 0x6df   : > { %v1334_v39 = vpop.eup %1333  ;;  %v793_v40 = vmul.f32 %v1332_v37, %v1320_v18 }
 0x6e0   : > { %v661_v61 = vpack.c.bf16 %v660_v36, %v659_v35  ;;  %v792_v41 = vmul.f32 %v1334_v39, %v1316_v16  ;;  %v1336_v43 = vpop.eup %1335 }
 0x6e1   : > { %v1338_v45 = vpop.eup %1337  ;;  %v925_v47 = vmul.f32 %v1336_v43, %v1326_v24 }
 0x6e2   : > { %1230 = vmatmul.mubr.msk.bf16.vlgmr.msra.gmra.mrb[12].mxu1 %vm471_vm2, %v661_v61  ;;  %v794_v42 = vpack.c.bf16 %v793_v40, %v792_v41  ;;  %v924_v48 = vmul.f32 %v1338_v45, %v1318_v17 }
 0x6e3   : > { %1240 = vmatpush3.bf16.msra.mxu1 %v796_v38  ;;  %1241 = vmatprep.mubr.msk.bf16.mxu1 %vm1349_vm1, %v1348_v46 }
 0x6e4   : > { %1251 = vmatprep.subr.bf16.mxu1 %v1348_v46  ;;  %v926_v49 = vpack.c.bf16 %v925_v47, %v924_v48 }
 0x6ea   : > { %1242 = vmatmul.mubr.msk.bf16.vlgmr.msra.gmra.mrb[16].mxu1 %vm471_vm2, %v794_v42 }
 0x6eb   : > { %1252 = vmatpush3.bf16.msra.mxu1 %v928_v44  ;;  %1253 = vmatprep.mubr.msk.bf16.mxu1 %vm1349_vm1, %v1348_v46 }
 0x6f2   : > { %1254 = vmatmul.mubr.msk.bf16.vlgmr.msra.gmra.mrb[20].mxu1 %vm471_vm2, %v926_v49 }
 0x7b5   : > { %v703_v51 = vpop.f32.mrb[12].mxu1 }
 0x7b6   : > { %712 = vrot.lane.b32.xlu1 %v703_v51, %s1356_s24  ;;  %v1231_v52 = vpop.f32.mrb[13].mxu1 }
 0x7b7   : > { %v706_v53 = vpop.f32.mrb[14].mxu1 }
 0x7b8   : > { %v1232_v54 = vpop.f32.mrb[15].mxu1 }
 0x7ba   : > { %714 = vrot.lane.b32.xlu1 %v706_v53, %s1356_s24 }
 0x7bd   : > { %v835_v57 = vpop.f32.mrb[16].mxu1 }
 0x7be   : > { %844 = vrot.lane.b32.xlu0 %v835_v57, %s1352_s20  ;;  %v1243_v58 = vpop.f32.mrb[17].mxu1 }
 0x7bf   : > { %v838_v59 = vpop.f32.mrb[18].mxu1 }
 0x7c0   : > { %846 = vrot.lane.b32.xlu1 %v838_v59, %s1352_s20  ;;  %v1244_v62 = vpop.f32.mrb[19].mxu1 }
 0x7c5   : > { %v967_v63 = vpop.f32.mrb[20].mxu1 }
 0x7c6   : > { %976 = vrot.lane.b32.xlu0 %v967_v63, %s1355_s23  ;;  %v1255_v0 = vpop.f32.mrb[21].mxu1 }
 0x7c7   : > { %v970_v1 = vpop.f32.mrb[22].mxu1 }
 0x7c8   : > { %978 = vrot.lane.b32.xlu1 %v970_v1, %s1355_s23  ;;  %v1256_v2 = vpop.f32.mrb[23].mxu1 }
 0x828   : > { %v713_v3 = vpop.permute.xlu1 %712 }
 0x829   : > { %719 = vst.msk [vmem:[#allocation2] sm:$0xff] %vm718_vm3, %v713_v3 }
 0x82c   : > { %v715_v6 = vpop.permute.xlu1 %714 }
 0x82d   : > { %720 = vst.msk [vmem:[#allocation2 + $0x8] sm:$0xff] %vm718_vm3, %v715_v6 }
 0x830   : > { %v845_v7 = vpop.permute.xlu0 %844 }
 0x831   : > { %851 = vst.msk [vmem:[#allocation2] sm:$0xff] %vm850_vm4, %v845_v7 }
 0x832   : > { %v847_v8 = vpop.permute.xlu1 %846 }
 0x833   : > { %852 = vst.msk [vmem:[#allocation2 + $0x8] sm:$0xff] %vm850_vm4, %v847_v8 }
 0x838   : > { %v977_v46 = vpop.permute.xlu0 %976 }
 0x839   : > { %983 = vst.msk [vmem:[#allocation2] sm:$0xff] %vm982_vm5, %v977_v46 }
 0x83a   : > { %v979_v9 = vpop.permute.xlu1 %978 }
 0x83b   : > { %984 = vst.msk [vmem:[#allocation2 + $0x8] sm:$0xff] %vm982_vm5, %v979_v9 }
 0x840   : > { %v985_v10 = vld [vmem:[#allocation2] sm:$0xff] }
 0x842   : > { %v986_v11 = vld [vmem:[#allocation2 + $0x8] sm:$0xff] }
 0x843   : > { %v987_v13 = vpack.c.bf16 %v986_v11, %v985_v10 }
 0x845   : > { %1266 = vmatmul.mubr.msk.bf16.vlgmr.msra.gmra.mrb[12].mxu0 %vm313_vm0, %v987_v13 }
 0x918   : > { %v1064_v16 = vpop.f32.mrb[12].mxu0 }
 0x919   : > { %v1065_v12 = vadd.f32 %v1178_v15, %v1064_v16  ;;  %v1267_v17 = vpop.f32.mrb[13].mxu0 }
 0x91a   : > { %v1067_v18 = vpop.f32.mrb[14].mxu0 }
 0x91b   : > { %v1071_v19 = vadd.f32 %v1065_v12, %v1424_v4  ;;  %v1068_v14 = vadd.f32 %v1178_v15, %v1067_v18  ;;  %v1268_v20 = vpop.f32.mrb[15].mxu0 }
 0x91d   : > { %v1072_v21 = vadd.f32 %v1068_v14, %v1426_v5  ;;  %1075 = vrot.lane.b32.xlu0 %v1071_v19, %s1351_s19 }
 0x91f   : > { %1077 = vrot.lane.b32.xlu1 %v1072_v21, %s1351_s19 }
 0x98f   : > { %v1076_v22 = vpop.permute.xlu0 %1075 }
 0x990   : > { %v1081_v23 = vmax.f32 %v1071_v19, %v1076_v22 }
 0x991   : > { %v1078_v24 = vpop.permute.xlu1 %1077 }
 0x992   : > { %v1082_v25 = vmax.f32 %v1072_v21, %v1078_v24  ;;  %1085 = vrot.lane.b32.xlu0 %v1081_v23, %s1353_s21 }
 0x994   : > { %1087 = vrot.lane.b32.xlu1 %v1082_v25, %s1353_s21 }
 0xa04   : > { %v1086_v4 = vpop.permute.xlu0 %1085 }
 0xa05   : > { %v1091_v26 = vmax.f32 %v1081_v23, %v1086_v4 }
 0xa06   : > { %v1088_v5 = vpop.permute.xlu1 %1087 }
 0xa07   : > { %1093 = vst.msk [vmem:[%s305_s18] sm:$0xff] %vm471_vm2, %v1091_v26  ;;  %v1092_v27 = vmax.f32 %v1082_v25, %v1088_v5 }
 0xa09   : > { %1094 = vst.msk [vmem:[%s305_s18 + $0x8] sm:$0xff] %vm471_vm2, %v1092_v27 }
 0xa0a PF: > { %s18_s27 = sadd.s32 1, %s1345_s27  }
 0xa0b   : > { %p15_p4 = scmp.ge.s32.totalorder %s18_s27, 4  }
 0xa0d   :  { %17 = sbr.rel (!%p15_p4) target bundleno = 1 (0x1), region = 82 }

// kernel: _lambda_.12
= control target key start
LH: loop header
LB: loop body
LE: loop exit
PB: predicated region body
PF: predicated region fallthrough
CT: control target
= control target key end

     0   :  { %s1032_s12 = smov 0   ;;  %s1197_s0 = inlined_call_operand.vmem [shape: bf16[2,6,6,16], index: 0, kind: input, shape index: {}]   ;;  %s1198_s1 = inlined_call_operand.vmem [shape: bf16[3,48,32], index: 1, kind: input, shape index: {}]   ;;  %s1199_s2 = inlined_call_operand.vmem [shape: f32[1,32], index: 2, kind: input, shape index: {}]   ;;  %s1200_s3 = inlined_call_operand.vmem [shape: f32[2,16,32], index: 3, kind: output, shape index: {}]  }
   0x1 LB: > { %s826_s13 = sadd.s32 4294967295, %s1005_s12   ;;  %p830_p0 = scmp.ge.s32.totalorder %s1005_s12, 1  ;;  %s1005_s12 = sphi %s1032_s12, %s13_s12  }
   0x2   : > { %p137_p1 = scmp.lt.s32.totalorder %s1005_s12, 3 }
   0x4   : > { %p138_p2 = pnand %p830_p0, %p137_p1 }
   0x5   : > { %p161_p3 = scmp.lt.s32.totalorder (!%p138_p2), %s826_s13, 1  ;;  %v990_v0 = vld [vmem:[%s1198_s1 + $0x18] sm:$0xff] (!%p138_p2)   ;;  %v1007_v2 = vmov (!%p138_p2), 0.0   ;;  %s1008_s20 = smov (!%p138_p2), 32   ;;  %v991_v48 = vld [vmem:[%s1198_s1 + $0x20] sm:$0xff] (!%p138_p2)   ;;  %v992_v57 = vld [vmem:[%s1198_s1 + $0x28] sm:$0xff] (!%p138_p2)  }
   0x6   : > { %141 = sbr.rel (%p138_p2) target bundleno = 405 (0x195), region = 32  ;;  %922 = vmatprep.subr.bf16.mxu0 (!%p138_p2), %v1007_v2  ;;  %932 = vmatprep.subr.bf16.mxu1 (!%p138_p2), %v1007_v2  ;;  %s1009_s21 = smov (!%p138_p2), 16   ;;  %vm1010_vm0 = vmmov (!%p138_p2), 0   ;;  %vm256_vm1 = vcmask (!%p138_p2), 130048   ;;  %vm269_vm2 = vcmask (!%p138_p2), 261120   ;;  %vm435_vm3 = vcmask (!%p138_p2), 392192  }
   0x7   : > { %923 = vmatpush3.bf16.msra.mxu0 (!%p138_p2), %v990_v0  ;;  %928 = vmatprep.mubr.msk.bf16.mxu0 (!%p138_p2), %vm1010_vm0, %v1007_v2 }
   0x8   : > { %924 = vmatprep.subr.bf16.mxu0 (!%p138_p2), %v1007_v2  ;;  %938 = vmatprep.mubr.msk.bf16.mxu1 (!%p138_p2), %vm1010_vm0, %v1007_v2 }
   0xb   : > { %925 = vmatpush3.bf16.msra.mxu0 (!%p138_p2), %v991_v48 }
   0xc   : > { %926 = vmatprep.subr.bf16.mxu0 (!%p138_p2), %v1007_v2 }
   0xd   : > { %s1202_s13 = smov (!%p161_p3, %s826_s13), 1 }
   0xe   : > { %s952_s14 = smul.u32 24, %s1202_s13  ;;  %s909_s11 = sshll.u32 %s1202_s13, 4 }
   0xf   : > { %927 = vmatpush3.bf16.msra.mxu0 %v992_v57  ;;  %s170_s18 = scalar_lea.vmem %s1200_s3, %s909_s11 }
  0x10   : > { %s1046_s17 = scalar_lea.vmem %s1197_s0, %s952_s14  ;;  %942 = vmatprep.subr.bf16.mxu0 %v1007_v2 }
  0x11   : > { %v966_v1 = vld [vmem:[%s1046_s17 + $0x8] ss:$0 sps:$4 sm:$0x66]   ;;  %v967_v3 = vld [vmem:[%s1046_s17 + $0x4] ss:$0 sps:$4 sm:$0x66]  }
  0x12   : > { %v358_v4 = vrot.slane %v966_v1, 1  ;;  %v968_v5 = vld [vmem:[%s1046_s17 + $0x10] ss:$0 sps:$4 sm:$0x66]   ;;  %v357_v6 = vrot.slane %v967_v3, 1 }
  0x13   : > { %v969_v7 = vld [vmem:[%s1046_s17 + $0xc] ss:$0 sps:$4 sm:$0x66]   ;;  %v360_v8 = vrot.slane %v968_v5, 1 }
  0x14   : > { %363 = vrot.lane.b32.xlu1 %v358_v4, %s1008_s20  ;;  %v970_v9 = vld [vmem:[%s1046_s17 + $0xc] ss:$0 sps:$4 sm:$0x77]   ;;  %361 = vrot.lane.b32.xlu0 %v357_v6, %s1008_s20  ;;  %v359_v10 = vrot.slane %v969_v7, 1 }
  0x15   : > { %v971_v11 = vld [vmem:[%s1046_s17 + $0x4] ss:$0 sps:$4 sm:$0x77]   ;;  %v324_v12 = vshrl.u32 %v970_v9, 16  ;;  %v326_v13 = vshll.u32 %v970_v9, 16 }
  0x16   : > { %v310_v14 = vshrl.u32 %v971_v11, 16  ;;  %v312_v15 = vshll.u32 %v971_v11, 16  ;;  %v972_v16 = vld [vmem:[%s1046_s17 + $0x10] ss:$0 sps:$4 sm:$0x77]   ;;  %v993_v9 = vld [vmem:[%s1198_s1] sm:$0xff]  }
  0x17   : > { %v328_v17 = vrot.slane %v326_v13, 1  ;;  %v973_v18 = vld [vmem:[%s1046_s17 + $0x8] ss:$0 sps:$4 sm:$0x77]   ;;  %v331_v20 = vshrl.u32 %v972_v16, 16  ;;  %v333_v21 = vshll.u32 %v972_v16, 16  ;;  %933 = vmatpush3.bf16.msra.mxu1 %v993_v9 }
  0x18   : > { %367 = vrot.lane.b32.xlu1 %v360_v8, %s1008_s20  ;;  %365 = vrot.lane.b32.xlu0 %v359_v10, %s1008_s20  ;;  %v314_v19 = vrot.slane %v312_v15, 1  ;;  %v974_v22 = vld [vmem:[%s1046_s17 + $0x4] ss:$0 sps:$4 sm:$0x77]   ;;  %v317_v24 = vshrl.u32 %v973_v18, 16  ;;  %v319_v25 = vshll.u32 %v973_v18, 16 }
  0x19   : > { %v329_v23 = vor.u32 %v328_v17, %v324_v12  ;;  %v335_v27 = vrot.slane %v333_v21, 1  ;;  %v204_v28 = vshrl.u32 %v974_v22, 16  ;;  %v206_v29 = vshll.u32 %v974_v22, 16  ;;  %v975_v30 = vld [vmem:[%s1046_s17] ss:$0 sps:$4 sm:$0x77]   ;;  %934 = vmatprep.subr.bf16.mxu1 %v1007_v2 }
  0x1a   : > { %v315_v26 = vor.u32 %v314_v19, %v310_v14  ;;  %v321_v31 = vrot.slane %v319_v25, 1  ;;  %v976_v32 = vld [vmem:[%s1046_s17 + $0xc] ss:$0 sps:$4 sm:$0x77]   ;;  %v197_v35 = vshrl.u32 %v975_v30, 16  ;;  %v199_v36 = vshll.u32 %v975_v30, 16 }
  0x1b   : > { %v336_v33 = vor.u32 %v335_v27, %v331_v20  ;;  %v208_v34 = vrot.slane %v206_v29, 1  ;;  %v977_v37 = vld [vmem:[%s1046_s17 + $0x8] ss:$0 sps:$4 sm:$0x77]   ;;  %v220_v39 = vshll.u32 %v976_v32, 16  ;;  %v218_v43 = vshrl.u32 %v976_v32, 16 }
  0x1c   : > { %341 = vrot.lane.b32.xlu1 %v329_v23, %s1009_s21  ;;  %337 = vrot.lane.b32.xlu0 %v315_v26, %s1009_s21  ;;  %v322_v38 = vor.u32 %v321_v31, %v317_v24  ;;  %v201_v40 = vrot.slane %v199_v36, 1  ;;  %v213_v41 = vshll.u32 %v977_v37, 16  ;;  %v211_v46 = vshrl.u32 %v977_v37, 16  ;;  %v978_v49 = vld [vmem:[%s1046_s17 + $0x4] ss:$0 sps:$4 sm:$0x66]  }
  0x1d   : > { %v209_v42 = vor.u32 %v208_v34, %v204_v28  ;;  %v222_v44 = vrot.slane %v220_v39, 1  ;;  %v979_v50 = vld [vmem:[%s1046_s17] ss:$0 sps:$4 sm:$0x66]   ;;  %v245_v55 = vrot.slane %v978_v49, 1  ;;  %v994_v13 = vld [vmem:[%s1198_s1 + $0x8] sm:$0xff]   ;;  %v405_v34 = vlaneseq }
  0x1e   : > { %v202_v45 = vor.u32 %v201_v40, %v197_v35  ;;  %v215_v47 = vrot.slane %v213_v41, 1  ;;  %v982_v51 = vld [vmem:[%s1046_s17 + $0xc] ss:$0 sps:$4 sm:$0x77]   ;;  %v244_v62 = vrot.slane %v979_v50, 1  ;;  %935 = vmatpush3.bf16.msra.mxu1 %v994_v13  ;;  %v995_v19 = vld [vmem:[%s1198_s1 + $0x10] sm:$0xff]  }
  0x1f   : > { %v223_v52 = vor.u32 %v222_v44, %v218_v43  ;;  %v983_v53 = vld [vmem:[%s1046_s17 + $0x8] ss:$0 sps:$4 sm:$0x77]   ;;  %v980_v56 = vld [vmem:[%s1046_s17 + $0xc] ss:$0 sps:$4 sm:$0x66]   ;;  %936 = vmatprep.subr.bf16.mxu1 %v1007_v2 }
  0x20   : > { %343 = vrot.lane.b32.xlu1 %v336_v33, %s1009_s21  ;;  %339 = vrot.lane.b32.xlu0 %v322_v38, %s1009_s21  ;;  %v216_v54 = vor.u32 %v215_v47, %v211_v46  ;;  %v981_v58 = vld [vmem:[%s1046_s17 + $0x8] ss:$0 sps:$4 sm:$0x66]   ;;  %v598_v59 = vshll.u32 %v982_v51, 16  ;;  %v591_v63 = vshll.u32 %v983_v53, 16  ;;  %v247_v0 = vrot.slane %v980_v56, 1 }
  0x21   : > { %v984_v60 = vld [vmem:[%s1046_s17 + $0x14] ss:$0 sps:$4 sm:$0x77]   ;;  %v985_v61 = vld [vmem:[%s1046_s17 + $0x10] ss:$0 sps:$4 sm:$0x77]  }
  0x22   : > { %v596_v1 = vshrl.u32 %v982_v51, 16  ;;  %v600_v3 = vrot.slane %v598_v59, 1  ;;  %v612_v4 = vshll.u32 %v984_v60, 16  ;;  %v246_v5 = vrot.slane %v981_v58, 1  ;;  %937 = vmatpush3.bf16.msra.mxu1 %v995_v19  ;;  %v844_v36 = vld [vmem:[%s1046_s17 + $0xc] sm:$0x3] }
  0x23   : > { %v589_v6 = vshrl.u32 %v983_v53, 16  ;;  %v593_v7 = vrot.slane %v591_v63, 1  ;;  %v605_v8 = vshll.u32 %v985_v61, 16  ;;  %v610_v11 = vshrl.u32 %v984_v60, 16  ;;  %v842_v38 = vld [vmem:[%s1046_s17 + $0x4] sm:$0x3] }
  0x24   : > { %226 = vrot.lane.b32.xlu1 %v209_v42, %s1009_s21  ;;  %224 = vrot.lane.b32.xlu0 %v202_v45, %s1009_s21  ;;  %v601_v10 = vor.u32 %v600_v3, %v596_v1  ;;  %v614_v12 = vrot.slane %v612_v4, 1  ;;  %v603_v15 = vshrl.u32 %v985_v61, 16  ;;  %v986_v18 = vld [vmem:[%s1046_s17 + $0xc] ss:$0 sps:$4 sm:$0x66]   ;;  %v406_v40 = vshrl.u32 %v405_v34, 7 }
  0x25   : > { %v594_v14 = vor.u32 %v593_v7, %v589_v6  ;;  %v607_v16 = vrot.slane %v605_v8, 1  ;;  %v987_v21 = vld [vmem:[%s1046_s17 + $0x8] ss:$0 sps:$4 sm:$0x66]   ;;  %v637_v22 = vrot.slane %v986_v18, 1  ;;  %v996_v60 = vld [vmem:[%s1198_s1 + $0x30] sm:$0xff]  }
  0x26   : > { %v615_v17 = vor.u32 %v614_v12, %v610_v11  ;;  %v988_v23 = vld [vmem:[%s1046_s17 + $0x14] ss:$0 sps:$4 sm:$0x66]   ;;  %v636_v24 = vrot.slane %v987_v21, 1  ;;  %v1011_v32 = vmov 1983009808  }
  0x27   : > { %v608_v20 = vor.u32 %v607_v16, %v603_v15  ;;  %v989_v25 = vld [vmem:[%s1046_s17 + $0x10] ss:$0 sps:$4 sm:$0x66]   ;;  %v639_v26 = vrot.slane %v988_v23, 1  ;;  %v403_v33 = vunpack.c.l.s4 %v1011_v32  ;;  %v843_v43 = vld [vmem:[%s1046_s17 + $0x8] sm:$0x3] }
  0x28   : > { %230 = vrot.lane.b32.xlu1 %v223_v52, %s1009_s21  ;;  %228 = vrot.lane.b32.xlu0 %v216_v54, %s1009_s21  ;;  %v638_v27 = vrot.slane %v989_v25, 1  ;;  %v845_v41 = vld [vmem:[%s1046_s17 + $0x10] sm:$0x3]  ;;  %v172_v1 = vld [vmem:[%s1046_s17] sm:$0x3] }
  0x29   : > { %v404_v39 = vunpack.c.0.s8 %v403_v33  ;;  %v997_v3 = vld [vmem:[%s1198_s1 + $0x38] sm:$0xff]   ;;  %v175_v7 = vld [vmem:[%s1046_s17 + $0xc] sm:$0x3]  ;;  %v174_v9 = vld [vmem:[%s1046_s17 + $0x8] sm:$0x3] }
  0x2a   : > { %v998_v12 = vld [vmem:[%s1198_s1 + $0x40] sm:$0xff]   ;;  %v879_v32 = vld [vmem:[%s1046_s17 + $0x14] sm:$0x3]  ;;  %v878_v34 = vld [vmem:[%s1046_s17 + $0x10] sm:$0x3] }
  0x2b   : > { %v1131_v46 = vsub.s32 %v404_v39, %v406_v40 }
  0x2c   : > { %250 = vrot.lane.b32.xlu1 %v245_v55, %s1008_s20  ;;  %248 = vrot.lane.b32.xlu0 %v244_v62, %s1008_s20 }
  0x30   : > { %254 = vrot.lane.b32.xlu1 %v247_v0, %s1008_s20  ;;  %252 = vrot.lane.b32.xlu0 %v246_v5, %s1008_s20  ;;  %v173_v0 = vld [vmem:[%s1046_s17 + $0x4] sm:$0x3] }
  0x34   : > { %618 = vrot.lane.b32.xlu1 %v601_v10, %s1009_s21  ;;  %616 = vrot.lane.b32.xlu0 %v594_v14, %s1009_s21 }
  0x38   : > { %622 = vrot.lane.b32.xlu1 %v615_v17, %s1009_s21  ;;  %620 = vrot.lane.b32.xlu0 %v608_v20, %s1009_s21 }
  0x3c   : > { %642 = vrot.lane.b32.xlu1 %v637_v22, %s1008_s20  ;;  %640 = vrot.lane.b32.xlu0 %v636_v24, %s1008_s20 }
  0x40   : > { %646 = vrot.lane.b32.xlu1 %v639_v26, %s1008_s20  ;;  %644 = vrot.lane.b32.xlu0 %v638_v27, %s1008_s20  ;;  %v877_v27 = vld [vmem:[%s1046_s17 + $0xc] sm:$0x3] }
  0x86   : > { %v364_v28 = vpop.permute.xlu1 %363  ;;  %v362_v29 = vpop.permute.xlu0 %361 }
  0x8a   : > { %v368_v30 = vpop.permute.xlu1 %367  ;;  %v366_v31 = vpop.permute.xlu0 %365 }
  0x8e   : > { %v342_v35 = vpop.permute.xlu1 %341  ;;  %v338_v37 = vpop.permute.xlu0 %337 }
  0x8f   : > { %v377_v42 = vsel %vm256_vm1, %v844_v36, %v342_v35  ;;  %v371_v44 = vsel %vm256_vm1, %v842_v38, %v338_v37 }
  0x90   : > { %v386_v49 = vsel %vm269_vm2, %v377_v42, %v366_v31  ;;  %v382_v52 = vsel %vm269_vm2, %v371_v44, %v362_v29 }
  0x92   : > { %v344_v45 = vpop.permute.xlu1 %343  ;;  %v340_v48 = vpop.permute.xlu0 %339 }
  0x93   : > { %v380_v47 = vsel %vm256_vm1, %v845_v41, %v344_v45  ;;  %v374_v51 = vsel %vm256_vm1, %v843_v43, %v340_v48 }
  0x94   : > { %v388_v50 = vsel %vm269_vm2, %v380_v47, %v368_v30  ;;  %v384_v54 = vsel %vm269_vm2, %v374_v51, %v364_v28  ;;  %v876_v28 = vld [vmem:[%s1046_s17 + $0x8] sm:$0x3] }
  0x95   : > { %v401_v53 = vcombine.low %v386_v49, %v388_v50  ;;  %v400_v55 = vcombine.low %v382_v52, %v384_v54 }
  0x96   : > { %v227_v56 = vpop.permute.xlu1 %226  ;;  %v225_v58 = vpop.permute.xlu0 %224 }
  0x97   : > { %v415_v57 = vrot.slane %v401_v53, %v1131_v46  ;;  %v408_v59 = vrot.slane %v400_v55, %v1131_v46  ;;  %v262_v5 = vsel %vm256_vm1, %v173_v0, %v227_v56  ;;  %v259_v6 = vsel %vm256_vm1, %v172_v1, %v225_v58 }
  0x99   : > { %v416_v62 = vcombine.low %v408_v59, %v415_v57 }
  0x9a   : > { %v231_v61 = vpop.permute.xlu1 %230  ;;  %v229_v63 = vpop.permute.xlu0 %228 }
  0x9b   : > { %929 = vmatmul.mubr.msk.bf16.vlgmr.msra.gmra.mrb[0].mxu0 %vm435_vm3, %v416_v62  ;;  %v268_v13 = vsel %vm256_vm1, %v175_v7, %v231_v61  ;;  %v265_v15 = vsel %vm256_vm1, %v174_v9, %v229_v63 }
  0x9c   : > { %943 = vmatpush3.bf16.msra.mxu0 %v996_v60  ;;  %948 = vmatprep.mubr.msk.bf16.mxu0 %vm1010_vm0, %v1007_v2  ;;  %v906_v60 = vld [vmem:[%s1199_s2] ss:$0 sm:$0xff] }
  0x9d   : > { %944 = vmatprep.subr.bf16.mxu0 %v1007_v2 }
  0x9e   : > { %v251_v4 = vpop.permute.xlu1 %250  ;;  %v249_v8 = vpop.permute.xlu0 %248 }
  0x9f   : > { %v273_v10 = vsel %vm269_vm2, %v262_v5, %v251_v4  ;;  %v271_v11 = vsel %vm269_vm2, %v259_v6, %v249_v8 }
  0xa0   : > { %945 = vmatpush3.bf16.msra.mxu0 %v997_v3  ;;  %v484_v16 = vcombine.low %v271_v11, %v273_v10 }
  0xa1   : > { %946 = vmatprep.subr.bf16.mxu0 %v1007_v2 }
  0xa2   : > { %v255_v14 = vpop.permute.xlu1 %254  ;;  %v253_v18 = vpop.permute.xlu0 %252  ;;  %v492_v22 = vrot.slane %v484_v16, %v1131_v46 }
  0xa3   : > { %v277_v17 = vsel %vm269_vm2, %v268_v13, %v255_v14  ;;  %v275_v19 = vsel %vm269_vm2, %v265_v15, %v253_v18 }
  0xa4   : > { %v485_v20 = vcombine.low %v275_v19, %v277_v17  ;;  %947 = vmatpush3.bf16.msra.mxu0 %v998_v12 }
  0xa6   : > { %v619_v21 = vpop.permute.xlu1 %618  ;;  %v499_v23 = vrot.slane %v485_v20, %v1131_v46  ;;  %v617_v2 = vpop.permute.xlu0 %616 }
  0xa7   : > { %v653_v30 = vsel %vm256_vm1, %v877_v27, %v619_v21  ;;  %v650_v31 = vsel %vm256_vm1, %v876_v28, %v617_v2 }
  0xa8   : > { %v500_v24 = vcombine.low %v492_v22, %v499_v23 }
  0xaa   : > { %v623_v25 = vpop.permute.xlu1 %622  ;;  %v621_v26 = vpop.permute.xlu0 %620  ;;  %939 = vmatmul.mubr.msk.bf16.vlgmr.msra.gmra.mrb[0].mxu1 %vm435_vm3, %v500_v24 }
  0xab   : > { %v659_v37 = vsel %vm256_vm1, %v879_v32, %v623_v25  ;;  %v656_v39 = vsel %vm256_vm1, %v878_v34, %v621_v26 }
  0xae   : > { %v643_v29 = vpop.permute.xlu1 %642  ;;  %v641_v33 = vpop.permute.xlu0 %640 }
  0xaf   : > { %v663_v35 = vsel %vm269_vm2, %v653_v30, %v643_v29  ;;  %v661_v36 = vsel %vm269_vm2, %v650_v31, %v641_v33 }
  0xb0   : > { %v679_v40 = vcombine.low %v661_v36, %v663_v35 }
  0xb2   : > { %v647_v38 = vpop.permute.xlu1 %646  ;;  %v645_v42 = vpop.permute.xlu0 %644  ;;  %v687_v45 = vrot.slane %v679_v40, %v1131_v46 }
  0xb3   : > { %v667_v41 = vsel %vm269_vm2, %v659_v37, %v647_v38  ;;  %v665_v43 = vsel %vm269_vm2, %v656_v39, %v645_v42 }
  0xb4   : > { %v680_v44 = vcombine.low %v665_v43, %v667_v41 }
  0xb6   : > { %v694_v47 = vrot.slane %v680_v44, %v1131_v46 }
  0xb8   : > { %v695_v48 = vcombine.low %v687_v45, %v694_v47 }
  0xba   : > { %949 = vmatmul.mubr.msk.bf16.vlgmr.msra.gmra.mrb[4].mxu0 %vm435_vm3, %v695_v48 }
 0x16e   : > { %v473_v49 = vpop.f32.mrb[0].mxu0 }
 0x16f   : > { %v930_v50 = vpop.f32.mrb[1].mxu0 }
 0x170   : > { %v476_v51 = vpop.f32.mrb[2].mxu0 }
 0x171   : > { %v931_v52 = vpop.f32.mrb[3].mxu0 }
 0x17d   : > { %v556_v53 = vpop.f32.mrb[0].mxu1 }
 0x17e   : > { %v557_v54 = vadd.f32 %v556_v53, %v473_v49  ;;  %v940_v55 = vpop.f32.mrb[1].mxu1 }
 0x17f   : > { %v559_v56 = vpop.f32.mrb[2].mxu1 }
 0x180   : > { %v560_v57 = vadd.f32 %v559_v56, %v476_v51  ;;  %v941_v58 = vpop.f32.mrb[3].mxu1 }
 0x18d   : > { %v751_v59 = vpop.f32.mrb[4].mxu0 }
 0x18e   : > { %v758_v46 = vadd.f32 %v751_v59, %v557_v54  ;;  %v950_v61 = vpop.f32.mrb[5].mxu0 }
 0x18f   : > { %v754_v62 = vpop.f32.mrb[6].mxu0 }
 0x190   : > { %v767_v63 = vadd.f32 %v906_v60, %v758_v46  ;;  %v759_v0 = vadd.f32 %v754_v62, %v560_v57  ;;  %v951_v1 = vpop.f32.mrb[7].mxu0 }
 0x192   : > { %769 = vst.msk [vmem:[%s170_s18] sm:$0xff] %vm269_vm2, %v767_v63  ;;  %v768_v3 = vadd.f32 %v906_v60, %v759_v0 }
 0x194   : > { %770 = vst.msk [vmem:[%s170_s18 + $0x8] sm:$0xff] %vm269_vm2, %v768_v3 }
 0x195 PF: > { %s13_s12 = sadd.s32 1, %s1005_s12  }
 0x196   : > { %p10_p4 = scmp.ge.s32.totalorder %s13_s12, 4  }
 0x198   :  { %12 = sbr.rel (!%p10_p4) target bundleno = 1 (0x1), region = 66 }

// kernel: _lambda_.13
= control target key start
LH: loop header
LB: loop body
LE: loop exit
PB: predicated region body
PF: predicated region fallthrough
CT: control target
= control target key end

     0   :  { %s994_s27 = smov 0   ;;  %s1110_s0 = inlined_call_operand.vmem [shape: f32[2,16,32], index: 0, kind: input, shape index: {}]   ;;  %s1111_s1 = inlined_call_operand.vmem [shape: f32[16,32], index: 1, kind: input, shape index: {}]   ;;  %s1112_s2 = inlined_call_operand.vmem [shape: f32[1,32], index: 2, kind: input, shape index: {}]   ;;  %s1113_s3 = inlined_call_operand.vmem [shape: f32[1,32], index: 3, kind: input, shape index: {}]   ;;  %s1114_s4 = inlined_call_operand.vmem [shape: bf16[32,96], index: 4, kind: input, shape index: {}]   ;;  %s1115_s5 = inlined_call_operand.vmem [shape: f32[1,96], index: 5, kind: input, shape index: {}]   ;;  %s1116_s6 = inlined_call_operand.vmem [shape: bf16[32,32], index: 6, kind: input, shape index: {}]   ;;  %s1117_s7 = inlined_call_operand.vmem [shape: f32[1,32], index: 7, kind: input, shape index: {}]   ;;  %s1118_s8 = inlined_call_operand.vmem [shape: f32[2,16,32], index: 8, kind: output, shape index: {}]  }
   0x1 LB: > { %s812_s28 = sadd.s32 4294967295, %s939_s27   ;;  %p816_p0 = scmp.ge.s32.totalorder %s939_s27, 1  ;;  %s939_s27 = sphi %s994_s27, %s18_s27  }
   0x2   : > { %p262_p1 = scmp.lt.s32.totalorder %s939_s27, 3 }
   0x4   : > { %p263_p2 = pnand %p816_p0, %p262_p1 }
   0x5   : > { %p296_p3 = scmp.lt.s32.totalorder (!%p263_p2), %s812_s28, 1  ;;  %v309_v0 = vld [vmem:[%s1111_s1] sm:$0xff] (!%p263_p2)  ;;  %v310_v1 = vld [vmem:[%s1111_s1 + $0x8] sm:$0xff] (!%p263_p2)  ;;  %vm313_vm0 = vcmask (!%p263_p2), 261120   ;;  %v941_v19 = vmov (!%p263_p2), 0.0   ;;  %vm942_vm1 = vmmov (!%p263_p2), 0  }
   0x6   : > { %266 = sbr.rel (%p263_p2) target bundleno = 1779 (0x6f3), region = 52  ;;  %v909_v18 = vld [vmem:[%s1114_s4] sm:$0xff] (!%p263_p2)   ;;  %853 = vmatprep.subr.bf16.mxu0 (!%p263_p2), %v941_v19  ;;  %861 = vmatprep.subr.bf16.mxu1 (!%p263_p2), %v941_v19  ;;  %v910_v20 = vld [vmem:[%s1114_s4 + $0x8] sm:$0xff] (!%p263_p2)   ;;  %s943_s25 = smov (!%p263_p2), 80   ;;  %vm431_vm2 = vcmask (!%p263_p2), 130048   ;;  %vm680_vm3 = vcmask (!%p263_p2), 261248  }
   0x7   : > { %854 = vmatpush3.bf16.msra.mxu0 (!%p263_p2), %v909_v18  ;;  %857 = vmatprep.mubr.msk.bf16.mxu0 (!%p263_p2), %vm942_vm1, %v941_v19  ;;  %v821_v29 = vld [vmem:[%s1112_s2] ss:$0 sm:$0xff] (!%p263_p2)  ;;  %s944_s26 = smov (!%p263_p2), 96   ;;  %s945_s30 = smov (!%p263_p2), 112  }
   0x8   : > { %855 = vmatprep.subr.bf16.mxu0 (!%p263_p2), %v941_v19  ;;  %863 = vmatprep.mubr.msk.bf16.mxu1 (!%p263_p2), %vm942_vm1, %v941_v19  ;;  %v822_v33 = vld [vmem:[%s1113_s3] ss:$0 sm:$0xff] (!%p263_p2)  ;;  %s946_s9 = smov (!%p263_p2), 64   ;;  %s947_s10 = smov (!%p263_p2), 48  }
   0x9   : > { %v823_v38 = vld [vmem:[%s1115_s5] ss:$0 sm:$0xff] (!%p263_p2)  ;;  %s948_s15 = smov (!%p263_p2), 16  }
   0xb   : > { %856 = vmatpush3.bf16.msra.mxu0 (!%p263_p2), %v910_v20 }
   0xc   : > { %867 = vmatprep.subr.bf16.mxu0 (!%p263_p2), %v941_v19 }
   0xd   : > { %s1120_s28 = smov (!%p296_p3, %s812_s28), 1 }
   0xe   : > { %s837_s29 = sshll.u32 %s1120_s28, 4 }
   0xf   : > { %s300_s14 = scalar_lea.vmem %s1110_s0, %s837_s29  ;;  %s305_s20 = scalar_lea.vmem %s1118_s8, %s837_s29 }
  0x10   : > { %v307_v2 = vld [vmem:[%s300_s14] sm:$0xff]  ;;  %v308_v3 = vld [vmem:[%s300_s14 + $0x8] sm:$0xff] }
  0x11   : > { %v1016_v4 = vadd.f32 %v309_v0, %v307_v2  ;;  %v1018_v5 = vadd.f32 %v310_v1, %v308_v3 }
  0x13   : > { %v314_v6 = vsel %vm313_vm0, %v1016_v4, 0.0  ;;  %v317_v7 = vsel %vm313_vm0, %v1018_v5, 0.0 }
  0x14   : > { %315 = vadd.xlane.f32.xlu0 %v314_v6 }
  0x18   : > { %318 = vadd.xlane.f32.xlu0 %v317_v7 }
  0xa1   : > { %v316_v8 = vpop.xlane.xlu0 %315 }
  0xa2   : > { %v321_v9 = vmul.f32 0.03125, %v316_v8 }
  0xa4   : > { %v323_v10 = vsub.f32 %v1016_v4, %v321_v9 }
  0xa5   : > { %v319_v11 = vpop.xlane.xlu0 %318 }
  0xa6   : > { %v322_v12 = vmul.f32 0.03125, %v319_v11  ;;  %v325_v13 = vmul.f32 %v323_v10, %v323_v10 }
  0xa8   : > { %v324_v14 = vsub.f32 %v1018_v5, %v322_v12  ;;  %v327_v15 = vsel %vm313_vm0, %v325_v13, 0.0 }
  0xa9   : > { %328 = vadd.xlane.f32.xlu1 %v327_v15 }
  0xaa   : > { %v326_v16 = vmul.f32 %v324_v14, %v324_v14 }
  0xac   : > { %v330_v17 = vsel %vm313_vm0, %v326_v16, 0.0 }
  0xad   : > { %331 = vadd.xlane.f32.xlu1 %v330_v17 }
 0x136   : > { %v329_v21 = vpop.xlane.xlu1 %328 }
 0x137   : > { %v333_v22 = vmul.f32 0.03125, %v329_v21 }
 0x139   : > { %v335_v23 = vadd.f32 1e-05, %v333_v22 }
 0x13a   : > { %v332_v24 = vpop.xlane.xlu1 %331 }
 0x13b   : > { %913 = vrsqrt.f32 %v335_v23  ;;  %v334_v25 = vmul.f32 0.03125, %v332_v24 }
 0x13d   : > { %v336_v26 = vadd.f32 1e-05, %v334_v25 }
 0x13f   : > { %915 = vrsqrt.f32 %v336_v26 }
 0x145   : > { %v914_v27 = vpop.eup %913 }
 0x146   : > { %v339_v28 = vmul.f32 %v914_v27, %v323_v10 }
 0x148   : > { %v348_v32 = vmul.f32 %v821_v29, %v339_v28 }
 0x149   : > { %v916_v30 = vpop.eup %915 }
 0x14a   : > { %v340_v31 = vmul.f32 %v916_v30, %v324_v14  ;;  %v357_v35 = vadd.f32 %v822_v33, %v348_v32 }
 0x14c   : > { %v349_v34 = vmul.f32 %v821_v29, %v340_v31 }
 0x14e   : > { %v358_v36 = vadd.f32 %v822_v33, %v349_v34 }
 0x150   : > { %v359_v37 = vpack.c.bf16 %v358_v36, %v357_v35 }
 0x152   : > { %858 = vmatmul.mubr.msk.bf16.vlgmr.msra.gmra.mrb[0].mxu0 %vm313_vm0, %v359_v37 }
 0x153   : > { %869 = vmatprep.mubr.msk.bf16.mxu0 %vm942_vm1, %v941_v19 }
 0x225   : > { %v420_v39 = vpop.f32.mrb[0].mxu0 }
 0x226   : > { %v859_v40 = vpop.f32.mrb[1].mxu0  ;;  %v421_v42 = vadd.f32 %v823_v38, %v420_v39 }
 0x227   : > { %v423_v41 = vpop.f32.mrb[2].mxu0 }
 0x228   : > { %v424_v43 = vadd.f32 %v823_v38, %v423_v41  ;;  %v860_v44 = vpop.f32.mrb[3].mxu0  ;;  %v911_v41 = vld [vmem:[%s1116_s6] sm:$0xff]  }
 0x22a   : > { %v1054_v45 = vpack.c.bf16 %v424_v43, %v421_v42  ;;  %v912_v43 = vld [vmem:[%s1116_s6 + $0x8] sm:$0xff]  }
 0x22c   : > { %553 = vrot.lane.b32.xlu1 %v1054_v45, %s943_s25  ;;  %429 = vrot.lane.b32.xlu0 %v1054_v45, %s944_s26 }
 0x230   : > { %551 = vrot.lane.b32.xlu1 %v1054_v45, %s945_s30 }
 0x29e   : > { %v430_v46 = vpop.permute.xlu0 %429  ;;  %v554_v48 = vpop.permute.xlu1 %553 }
 0x29f   : > { %v436_v47 = vsel %vm431_vm2, %v430_v46, 0  ;;  %v559_v49 = vsel %vm431_vm2, %v554_v48, 0 }
 0x2a0   : > { %862 = vmatpush3.bf16.xpose.msra.mxu1 %v436_v47 }
 0x2a1   : > { %873 = vmatprep.subr.bf16.mxu1 %v941_v19 }
 0x2a2   : > { %v552_v50 = vpop.permute.xlu1 %551 }
 0x2a7   : > { %864 = vmatmul.mubr.msk.bf16.vlgmr.msra.gmra.mrb[0].mxu1 %vm431_vm2, %v1054_v45 }
 0x2a8   : > { %874 = vmatpush3.bf16.xpose.msra.mxu1 %v559_v49  ;;  %875 = vmatprep.mubr.msk.bf16.mxu1 %vm942_vm1, %v941_v19 }
 0x2a9   : > { %885 = vmatprep.subr.bf16.mxu1 %v941_v19 }
 0x2af   : > { %876 = vmatmul.mubr.msk.bf16.vlgmr.msra.gmra.mrb[4].mxu1 %vm431_vm2, %v552_v50 }
 0x2b0   : > { %889 = vmatprep.mubr.msk.bf16.mxu1 %vm942_vm1, %v941_v19  ;;  %886 = vmatpush3.bf16.msra.mxu1 %v911_v41 }
 0x2b1   : > { %887 = vmatprep.subr.bf16.mxu1 %v941_v19 }
 0x2b4   : > { %888 = vmatpush3.bf16.msra.mxu1 %v912_v43 }
 0x37a   : > { %v472_v51 = vpop.f32.mrb[0].mxu1 }
 0x37b   : > { %v865_v52 = vpop.f32.mrb[1].mxu1  ;;  %v479_v53 = vsel %vm431_vm2, %v472_v51, -inf }
 0x37c   : > { %480 = vmax.xlane.f32.xlu1 %v479_v53  ;;  %v475_v54 = vpop.f32.mrb[2].mxu1 }
 0x37d   : > { %v866_v55 = vpop.f32.mrb[3].mxu1  ;;  %v482_v56 = vsel %vm431_vm2, %v475_v54, -inf }
 0x37e   : > { %483 = vmax.xlane.f32.xlu0 %v482_v56 }
 0x382   : > { %v595_v57 = vpop.f32.mrb[4].mxu1 }
 0x383   : > { %v877_v58 = vpop.f32.mrb[5].mxu1  ;;  %v602_v59 = vsel %vm431_vm2, %v595_v57, -inf }
 0x384   : > { %603 = vmax.xlane.f32.xlu0 %v602_v59  ;;  %v598_v60 = vpop.f32.mrb[6].mxu1 }
 0x385   : > { %v878_v61 = vpop.f32.mrb[7].mxu1  ;;  %v605_v62 = vsel %vm431_vm2, %v598_v60, -inf }
 0x388   : > { %606 = vmax.xlane.f32.xlu0 %v605_v62 }
 0x409   : > { %v481_v63 = vpop.xlane.xlu1 %480 }
 0x40a   : > { %v485_v0 = vsub.f32 %v472_v51, %v481_v63 }
 0x40b   : > { %v484_v1 = vpop.xlane.xlu0 %483 }
 0x40c   : > { %v487_v2 = vmul.f32 1.442695, %v485_v0  ;;  %v486_v3 = vsub.f32 %v475_v54, %v484_v1 }
 0x40e   : > { %917 = vpow2.f32 %v487_v2  ;;  %v489_v6 = vmul.f32 1.442695, %v486_v3 }
 0x410   : > { %919 = vpow2.f32 %v489_v6 }
 0x411   : > { %v604_v7 = vpop.xlane.xlu0 %603 }
 0x412   : > { %v608_v8 = vsub.f32 %v595_v57, %v604_v7 }
 0x414   : > { %v610_v9 = vmul.f32 1.442695, %v608_v8 }
 0x415   : > { %v607_v10 = vpop.xlane.xlu0 %606 }
 0x416   : > { %921 = vpow2.f32 %v610_v9  ;;  %v609_v11 = vsub.f32 %v598_v60, %v607_v10 }
 0x418   : > { %v918_v12 = vpop.eup %917  ;;  %v612_v13 = vmul.f32 1.442695, %v609_v11 }
 0x419   : > { %v491_v14 = vsel %vm431_vm2, %v918_v12, 0.0 }
 0x41a   : > { %v920_v15 = vpop.eup %919  ;;  %923 = vpow2.f32 %v612_v13  ;;  %492 = vadd.xlane.f32.xlu1 %v491_v14 }
 0x41b   : > { %v494_v16 = vsel %vm431_vm2, %v920_v15, 0.0 }
 0x41c   : > { %495 = vadd.xlane.f32.xlu0 %v494_v16 }
 0x420   : > { %v922_v17 = vpop.eup %921 }
 0x421   : > { %v614_v18 = vsel %vm431_vm2, %v922_v17, 0.0 }
 0x422   : > { %615 = vadd.xlane.f32.xlu1 %v614_v18 }
 0x424   : > { %v924_v20 = vpop.eup %923 }
 0x425   : > { %v617_v21 = vsel %vm431_vm2, %v924_v20, 0.0 }
 0x426   : > { %618 = vadd.xlane.f32.xlu0 %v617_v21 }
 0x433   : > { %502 = vrot.lane.b32.xlu1 %v1054_v45, %s946_s9 }
 0x43c   : > { %625 = vrot.lane.b32.xlu0 %v1054_v45, %s947_s10 }
 0x4a7   : > { %v493_v22 = vpop.xlane.xlu1 %492 }
 0x4a8   : > { %925 = vrcp.f32 %v493_v22 }
 0x4a9   : > { %v496_v23 = vpop.xlane.xlu0 %495 }
 0x4aa   : > { %927 = vrcp.f32 %v496_v23 }
 0x4af   : > { %v616_v24 = vpop.xlane.xlu1 %615 }
 0x4b0   : > { %929 = vrcp.f32 %v616_v24 }
 0x4b2   : > { %v926_v25 = vpop.eup %925 }
 0x4b3   : > { %v503_v26 = vpop.permute.xlu1 %502  ;;  %v619_v27 = vpop.xlane.xlu0 %618  ;;  %v499_v29 = vmul.f32 %v926_v25, %v918_v12 }
 0x4b4   : > { %v928_v28 = vpop.eup %927  ;;  %931 = vrcp.f32 %v619_v27  ;;  %868 = vmatpush3.bf16.msra.mxu0 %v503_v26 }
 0x4b5   : > { %v500_v30 = vmul.f32 %v928_v28, %v920_v15  ;;  %879 = vmatprep.subr.bf16.mxu0 %v941_v19 }
 0x4b7   : > { %v626_v31 = vpop.permute.xlu0 %625  ;;  %v501_v32 = vpack.c.bf16 %v500_v30, %v499_v29 }
 0x4b9   : > { %870 = vmatmul.mubr.msk.bf16.vlgmr.msra.gmra.mrb[4].mxu0 %vm431_vm2, %v501_v32 }
 0x4ba   : > { %880 = vmatpush3.bf16.msra.mxu0 %v626_v31  ;;  %881 = vmatprep.mubr.msk.bf16.mxu0 %vm942_vm1, %v941_v19  ;;  %v930_v33 = vpop.eup %929  ;;  %v831_v19 = vld [vmem:[%s1117_s7] ss:$0 sm:$0xff] }
 0x4bb   : > { %v622_v35 = vmul.f32 %v930_v33, %v922_v17 }
 0x4be   : > { %v932_v34 = vpop.eup %931 }
 0x4bf   : > { %v623_v36 = vmul.f32 %v932_v34, %v924_v20 }
 0x4c1   : > { %v624_v37 = vpack.c.bf16 %v623_v36, %v622_v35 }
 0x4c3   : > { %882 = vmatmul.mubr.msk.bf16.vlgmr.msra.gmra.mrb[8].mxu0 %vm431_vm2, %v624_v37 }
 0x58c   : > { %v542_v38 = vpop.f32.mrb[4].mxu0 }
 0x58d   : > { %549 = vst.msk [vmem:[#allocation2] sm:$0xff] %vm431_vm2, %v542_v38  ;;  %v871_v39 = vpop.f32.mrb[5].mxu0 }
 0x58e   : > { %v545_v40 = vpop.f32.mrb[6].mxu0 }
 0x58f   : > { %550 = vst.msk [vmem:[#allocation2 + $0x8] sm:$0xff] %vm431_vm2, %v545_v40  ;;  %v872_v42 = vpop.f32.mrb[7].mxu0 }
 0x596   : > { %v665_v44 = vpop.f32.mrb[8].mxu0 }
 0x597   : > { %674 = vrot.lane.b32.xlu1 %v665_v44, %s948_s15  ;;  %v883_v45 = vpop.f32.mrb[9].mxu0 }
 0x598   : > { %v668_v46 = vpop.f32.mrb[10].mxu0 }
 0x599   : > { %v884_v47 = vpop.f32.mrb[11].mxu0 }
 0x59b   : > { %676 = vrot.lane.b32.xlu1 %v668_v46, %s948_s15 }
 0x609   : > { %v675_v48 = vpop.permute.xlu1 %674 }
 0x60a   : > { %681 = vst.msk [vmem:[#allocation2] sm:$0xff] %vm680_vm3, %v675_v48 }
 0x60d   : > { %v677_v49 = vpop.permute.xlu1 %676 }
 0x60e   : > { %682 = vst.msk [vmem:[#allocation2 + $0x8] sm:$0xff] %vm680_vm3, %v677_v49 }
 0x611   : > { %v683_v50 = vld [vmem:[#allocation2] sm:$0xff] }
 0x615   : > { %v684_v51 = vld [vmem:[#allocation2 + $0x8] sm:$0xff] }
 0x616   : > { %v685_v52 = vpack.c.bf16 %v684_v51, %v683_v50 }
 0x618   : > { %890 = vmatmul.mubr.msk.bf16.vlgmr.msra.gmra.mrb[8].mxu1 %vm313_vm0, %v685_v52 }
 0x6eb   : > { %v746_v53 = vpop.f32.mrb[8].mxu1 }
 0x6ec   : > { %v747_v54 = vadd.f32 %v831_v19, %v746_v53  ;;  %v891_v55 = vpop.f32.mrb[9].mxu1 }
 0x6ed   : > { %v749_v56 = vpop.f32.mrb[10].mxu1 }
 0x6ee   : > { %v753_v57 = vadd.f32 %v747_v54, %v1016_v4  ;;  %v750_v58 = vadd.f32 %v831_v19, %v749_v56  ;;  %v892_v59 = vpop.f32.mrb[11].mxu1 }
 0x6f0   : > { %755 = vst.msk [vmem:[%s305_s20] sm:$0xff] %vm313_vm0, %v753_v57  ;;  %v754_v60 = vadd.f32 %v750_v58, %v1018_v5 }
 0x6f2   : > { %756 = vst.msk [vmem:[%s305_s20 + $0x8] sm:$0xff] %vm313_vm0, %v754_v60 }
 0x6f3 PF: > { %s18_s27 = sadd.s32 1, %s939_s27  }
 0x6f4   : > { %p15_p4 = scmp.ge.s32.totalorder %s18_s27, 4  }
 0x6f6   :  { %17 = sbr.rel (!%p15_p4) target bundleno = 1 (0x1), region = 82 }

// kernel: _lambda_.15
= control target key start
LH: loop header
LB: loop body
LE: loop exit
PB: predicated region body
PF: predicated region fallthrough
CT: control target
= control target key end

     0   :  { %s1700_s27 = smov 0   ;;  %s2044_s0 = inlined_call_operand.vmem [shape: f32[2,64,4], index: 0, kind: input, shape index: {}]   ;;  %s2045_s1 = inlined_call_operand.vmem [shape: f32[64,4], index: 1, kind: input, shape index: {}]   ;;  %s2046_s2 = inlined_call_operand.vmem [shape: f32[1,4], index: 2, kind: input, shape index: {}]   ;;  %s2047_s3 = inlined_call_operand.vmem [shape: f32[1,4], index: 3, kind: input, shape index: {}]   ;;  %s2048_s4 = inlined_call_operand.vmem [shape: bf16[4,12], index: 4, kind: input, shape index: {}]   ;;  %s2049_s5 = inlined_call_operand.vmem [shape: f32[1,12], index: 5, kind: input, shape index: {}]   ;;  %s2050_s6 = inlined_call_operand.vmem [shape: bf16[4,4], index: 6, kind: input, shape index: {}]   ;;  %s2051_s7 = inlined_call_operand.vmem [shape: f32[1,4], index: 7, kind: input, shape index: {}]   ;;  %s2052_s8 = inlined_call_operand.vmem [shape: f32[2,64,4], index: 8, kind: output, shape index: {}]  }
   0x1 LB: > { %s1362_s28 = sadd.s32 4294967295, %s1647_s27   ;;  %p1366_p0 = scmp.ge.s32.totalorder %s1647_s27, 1  ;;  %s1647_s27 = sphi %s1700_s27, %s18_s27  }
   0x2   : > { %p262_p1 = scmp.lt.s32.totalorder %s1647_s27, 3 }
   0x4   : > { %p263_p2 = pnand %p1366_p0, %p262_p1 }
   0x5   : > { %p296_p3 = scmp.lt.s32.totalorder (!%p263_p2), %s1362_s28, 1  ;;  %v315_v0 = vld [vmem:[%s2045_s1] sm:$0xff] (!%p263_p2)  ;;  %v317_v1 = vld [vmem:[%s2045_s1 + $0x10] sm:$0xff] (!%p263_p2)  ;;  %v316_v2 = vld [vmem:[%s2045_s1 + $0x8] sm:$0xff] (!%p263_p2)  ;;  %vm331_vm0 = vcmask (!%p263_p2), 31744   ;;  %vm491_vm1 = vcmask (!%p263_p2), 1041408  }
   0x6   : > { %266 = sbr.rel (%p263_p2) target bundleno = 2486 (0x9b6), region = 52  ;;  %v318_v3 = vld [vmem:[%s2045_s1 + $0x18] sm:$0xff] (!%p263_p2)  ;;  %v319_v11 = vld [vmem:[%s2045_s1 + $0x20] sm:$0xff] (!%p263_p2)  ;;  %v320_v15 = vld [vmem:[%s2045_s1 + $0x28] sm:$0xff] (!%p263_p2)  ;;  %vm576_vm2 = vcmask (!%p263_p2), 15360   ;;  %vm666_vm3 = vcmask (!%p263_p2), 523264  }
   0x7   : > { %v321_v22 = vld [vmem:[%s2045_s1 + $0x30] sm:$0xff] (!%p263_p2)  ;;  %v322_v25 = vld [vmem:[%s2045_s1 + $0x38] sm:$0xff] (!%p263_p2)  ;;  %s1650_s17 = smov (!%p263_p2), 120   ;;  %s1651_s18 = smov (!%p263_p2), 122   ;;  %vm1174_vm4 = vcmask (!%p263_p2), 31760  }
   0x8   : > { %s1652_s19 = smov (!%p263_p2), 126   ;;  %s1653_s20 = smov (!%p263_p2), 118  }
   0x9   : > { %s1654_s23 = smov (!%p263_p2), 2  }
   0xd   : > { %s2054_s28 = smov (!%p296_p3, %s1362_s28), 1 }
   0xe   : > { %s1401_s29 = sshll.u32 %s2054_s28, 6 }
   0xf   : > { %s300_s16 = scalar_lea.vmem %s2044_s0, %s1401_s29  ;;  %s2016_s9 = scalar_lea.vmem %s2052_s8, %s1401_s29 }
  0x10   : > { %v307_v4 = vld [vmem:[%s300_s16] sm:$0xff]  ;;  %v309_v5 = vld [vmem:[%s300_s16 + $0x10] sm:$0xff]  ;;  %v308_v6 = vld [vmem:[%s300_s16 + $0x8] sm:$0xff] }
  0x11   : > { %v1728_v7 = vadd.f32 %v315_v0, %v307_v4  ;;  %v1730_v8 = vadd.f32 %v317_v1, %v309_v5  ;;  %v1732_v9 = vadd.f32 %v316_v2, %v308_v6  ;;  %v310_v10 = vld [vmem:[%s300_s16 + $0x18] sm:$0xff]  ;;  %v311_v13 = vld [vmem:[%s300_s16 + $0x20] sm:$0xff]  ;;  %v312_v14 = vld [vmem:[%s300_s16 + $0x28] sm:$0xff] }
  0x12   : > { %v1737_v12 = vadd.f32 %v318_v3, %v310_v10  ;;  %v1750_v20 = vadd.f32 %v319_v11, %v311_v13  ;;  %v1752_v21 = vadd.f32 %v320_v15, %v312_v14  ;;  %v313_v23 = vld [vmem:[%s300_s16 + $0x30] sm:$0xff]  ;;  %v314_v24 = vld [vmem:[%s300_s16 + $0x38] sm:$0xff]  ;;  %v471_v11 = vld [vmem:[%s2048_s4] sm:$0x3]  ;;  %s1649_s16 = smov 124  }
  0x13   : > { %v332_v16 = vsel %vm331_vm0, %v1728_v7, 0.0  ;;  %v338_v17 = vsel %vm331_vm0, %v1730_v8, 0.0  ;;  %v335_v18 = vsel %vm331_vm0, %v1732_v9, 0.0  ;;  %v1764_v28 = vadd.f32 %v321_v22, %v313_v23  ;;  %1537 = vmatprep.subr.msk.bf16.mxu0 %vm491_vm1, %v471_v11 }
  0x14   : > { %333 = vadd.xlane.f32.xlu0 %v332_v16  ;;  %339 = vadd.xlane.f32.xlu1 %v338_v17  ;;  %v341_v19 = vsel %vm331_vm0, %v1737_v12, 0.0  ;;  %v344_v26 = vsel %vm331_vm0, %v1750_v20, 0.0  ;;  %v347_v27 = vsel %vm331_vm0, %v1752_v21, 0.0  ;;  %v1766_v29 = vadd.f32 %v322_v25, %v314_v24 }
  0x15   : > { %v350_v30 = vsel %vm331_vm0, %v1764_v28, 0.0  ;;  %v493_v13 = vsel %vm491_vm1, %v471_v11, 0 }
  0x16   : > { %v353_v31 = vsel %vm331_vm0, %v1766_v29, 0.0  ;;  %1446 = vmatpush3.bf16.msra.mxu0 %v493_v13 }
  0x18   : > { %336 = vadd.xlane.f32.xlu0 %v335_v18  ;;  %342 = vadd.xlane.f32.xlu1 %v341_v19 }
  0x1c   : > { %345 = vadd.xlane.f32.xlu0 %v344_v26  ;;  %348 = vadd.xlane.f32.xlu1 %v347_v27 }
  0x20   : > { %351 = vadd.xlane.f32.xlu0 %v350_v30  ;;  %354 = vadd.xlane.f32.xlu1 %v353_v31 }
  0xa1   : > { %v334_v32 = vpop.xlane.xlu0 %333  ;;  %v340_v33 = vpop.xlane.xlu1 %339 }
  0xa2   : > { %v357_v34 = vmul.f32 0.25, %v334_v32  ;;  %v359_v35 = vmul.f32 0.25, %v340_v33 }
  0xa4   : > { %v1773_v36 = vsub.f32 %v1728_v7, %v357_v34  ;;  %v1776_v37 = vsub.f32 %v1730_v8, %v359_v35 }
  0xa5   : > { %v337_v38 = vpop.xlane.xlu0 %336  ;;  %v343_v39 = vpop.xlane.xlu1 %342 }
  0xa6   : > { %v358_v40 = vmul.f32 0.25, %v337_v38  ;;  %v360_v41 = vmul.f32 0.25, %v343_v39  ;;  %v373_v42 = vmul.f32 %v1773_v36, %v1773_v36  ;;  %v375_v43 = vmul.f32 %v1776_v37, %v1776_v37 }
  0xa8   : > { %v1783_v44 = vsub.f32 %v1732_v9, %v358_v40  ;;  %v1786_v45 = vsub.f32 %v1737_v12, %v360_v41  ;;  %v381_v46 = vsel %vm331_vm0, %v373_v42, 0.0  ;;  %v387_v49 = vsel %vm331_vm0, %v375_v43, 0.0 }
  0xa9   : > { %382 = vadd.xlane.f32.xlu0 %v381_v46  ;;  %v346_v47 = vpop.xlane.xlu0 %345  ;;  %v349_v48 = vpop.xlane.xlu1 %348 }
  0xaa   : > { %v361_v50 = vmul.f32 0.25, %v346_v47  ;;  %v362_v51 = vmul.f32 0.25, %v349_v48  ;;  %v374_v52 = vmul.f32 %v1783_v44, %v1783_v44  ;;  %v376_v53 = vmul.f32 %v1786_v45, %v1786_v45  ;;  %v1371_v47 = vld [vmem:[%s2046_s2] ss:$0 sm:$0xff] }
  0xac   : > { %v1795_v54 = vsub.f32 %v1750_v20, %v361_v50  ;;  %v1798_v55 = vsub.f32 %v1752_v21, %v362_v51  ;;  %v384_v56 = vsel %vm331_vm0, %v374_v52, 0.0  ;;  %v390_v59 = vsel %vm331_vm0, %v376_v53, 0.0 }
  0xad   : > { %388 = vadd.xlane.f32.xlu0 %v387_v49  ;;  %385 = vadd.xlane.f32.xlu1 %v384_v56  ;;  %v352_v57 = vpop.xlane.xlu0 %351  ;;  %v355_v58 = vpop.xlane.xlu1 %354 }
  0xae   : > { %v363_v60 = vmul.f32 0.25, %v352_v57  ;;  %v364_v61 = vmul.f32 0.25, %v355_v58  ;;  %v377_v62 = vmul.f32 %v1795_v54, %v1795_v54  ;;  %v378_v63 = vmul.f32 %v1798_v55, %v1798_v55 }
  0xb0   : > { %v1807_v0 = vsub.f32 %v1764_v28, %v363_v60  ;;  %v1810_v1 = vsub.f32 %v1766_v29, %v364_v61  ;;  %v393_v2 = vsel %vm331_vm0, %v377_v62, 0.0  ;;  %v396_v3 = vsel %vm331_vm0, %v378_v63, 0.0 }
  0xb1   : > { %391 = vadd.xlane.f32.xlu1 %v390_v59  ;;  %394 = vadd.xlane.f32.xlu0 %v393_v2 }
  0xb2   : > { %v379_v4 = vmul.f32 %v1807_v0, %v1807_v0  ;;  %v380_v5 = vmul.f32 %v1810_v1, %v1810_v1 }
  0xb4   : > { %v399_v6 = vsel %vm331_vm0, %v379_v4, 0.0  ;;  %v402_v10 = vsel %vm331_vm0, %v380_v5, 0.0 }
  0xb5   : > { %397 = vadd.xlane.f32.xlu1 %v396_v3  ;;  %400 = vadd.xlane.f32.xlu0 %v399_v6 }
  0xb9   : > { %403 = vadd.xlane.f32.xlu1 %v402_v10 }
 0x136   : > { %v383_v14 = vpop.xlane.xlu0 %382 }
 0x137   : > { %v405_v15 = vmul.f32 0.25, %v383_v14 }
 0x139   : > { %v413_v16 = vadd.f32 1e-05, %v405_v15 }
 0x13a   : > { %v386_v17 = vpop.xlane.xlu1 %385  ;;  %v389_v18 = vpop.xlane.xlu0 %388 }
 0x13b   : > { %1561 = vrsqrt.f32 %v413_v16  ;;  %v406_v19 = vmul.f32 0.25, %v386_v17  ;;  %v407_v22 = vmul.f32 0.25, %v389_v18 }
 0x13d   : > { %v414_v23 = vadd.f32 1e-05, %v406_v19  ;;  %v415_v24 = vadd.f32 1e-05, %v407_v22 }
 0x13e   : > { %v392_v25 = vpop.xlane.xlu1 %391  ;;  %v395_v26 = vpop.xlane.xlu0 %394 }
 0x13f   : > { %1563 = vrsqrt.f32 %v414_v23  ;;  %v408_v27 = vmul.f32 0.25, %v392_v25  ;;  %v409_v30 = vmul.f32 0.25, %v395_v26 }
 0x140   : > { %1565 = vrsqrt.f32 %v415_v24  ;;  %v1373_v24 = vld [vmem:[%s2049_s5] ss:$0 sm:$0xff] }
 0x141   : > { %v416_v31 = vadd.f32 1e-05, %v408_v27  ;;  %v417_v32 = vadd.f32 1e-05, %v409_v30 }
 0x142   : > { %v398_v33 = vpop.xlane.xlu1 %397  ;;  %v401_v34 = vpop.xlane.xlu0 %400 }
 0x143   : > { %1567 = vrsqrt.f32 %v416_v31  ;;  %v410_v35 = vmul.f32 0.25, %v398_v33  ;;  %v411_v38 = vmul.f32 0.25, %v401_v34 }
 0x144   : > { %1569 = vrsqrt.f32 %v417_v32 }
 0x145   : > { %v1562_v39 = vpop.eup %1561  ;;  %v418_v40 = vadd.f32 1e-05, %v410_v35  ;;  %v419_v41 = vadd.f32 1e-05, %v411_v38 }
 0x146   : > { %v404_v42 = vpop.xlane.xlu1 %403  ;;  %v429_v43 = vmul.f32 %v1562_v39, %v1773_v36  ;;  %v1372_v36 = vld [vmem:[%s2047_s3] ss:$0 sm:$0xff] }
 0x147   : > { %1571 = vrsqrt.f32 %v418_v40  ;;  %v412_v46 = vmul.f32 0.25, %v404_v42 }
 0x148   : > { %1573 = vrsqrt.f32 %v419_v41  ;;  %v444_v52 = vmul.f32 %v1371_v47, %v429_v43 }
 0x149   : > { %v1564_v48 = vpop.eup %1563  ;;  %v420_v49 = vadd.f32 1e-05, %v412_v46 }
 0x14a   : > { %v1566_v50 = vpop.eup %1565  ;;  %v430_v51 = vmul.f32 %v1564_v48, %v1783_v44  ;;  %v459_v60 = vadd.f32 %v1372_v36, %v444_v52 }
 0x14b   : > { %v431_v53 = vmul.f32 %v1566_v50, %v1776_v37  ;;  %1575 = vrsqrt.f32 %v420_v49 }
 0x14c   : > { %v445_v56 = vmul.f32 %v1371_v47, %v430_v51 }
 0x14d   : > { %v1568_v57 = vpop.eup %1567  ;;  %v446_v62 = vmul.f32 %v1371_v47, %v431_v53 }
 0x14e   : > { %v1570_v58 = vpop.eup %1569  ;;  %v432_v59 = vmul.f32 %v1568_v57, %v1786_v45  ;;  %v460_v61 = vadd.f32 %v1372_v36, %v445_v56 }
 0x14f   : > { %v433_v63 = vmul.f32 %v1570_v58, %v1795_v54  ;;  %v461_v5 = vadd.f32 %v1372_v36, %v446_v62 }
 0x150   : > { %v467_v2 = vpack.c.bf16 %v460_v61, %v459_v60  ;;  %v447_v44 = vmul.f32 %v1371_v47, %v432_v59 }
 0x151   : > { %v1572_v3 = vpop.eup %1571  ;;  %v448_v10 = vmul.f32 %v1371_v47, %v433_v63 }
 0x152   : > { %v1574_v4 = vpop.eup %1573  ;;  %v434_v37 = vmul.f32 %v1572_v3, %v1798_v55  ;;  %1447 = vmatprep.mubr.msk.bf16.mxu0 %vm331_vm0, %v467_v2  ;;  %v462_v6 = vadd.f32 %v1372_v36, %v447_v44 }
 0x153   : > { %v435_v11 = vmul.f32 %v1574_v4, %v1807_v0  ;;  %v463_v54 = vadd.f32 %v1372_v36, %v448_v10 }
 0x154   : > { %v468_v13 = vpack.c.bf16 %v462_v6, %v461_v5  ;;  %v449_v45 = vmul.f32 %v1371_v47, %v434_v37 }
 0x155   : > { %v1576_v14 = vpop.eup %1575  ;;  %v450_v17 = vmul.f32 %v1371_v47, %v435_v11 }
 0x156   : > { %v436_v15 = vmul.f32 %v1576_v14, %v1810_v1  ;;  %1448 = vmatmul.mubr.msk.bf16.vlgmr.msra.gmra.mrb[0].mxu0 %vm331_vm0, %v468_v13  ;;  %v464_v16 = vadd.f32 %v1372_v36, %v449_v45 }
 0x157   : > { %v465_v55 = vadd.f32 %v1372_v36, %v450_v17 }
 0x158   : > { %v469_v18 = vpack.c.bf16 %v464_v16, %v463_v54  ;;  %v451_v19 = vmul.f32 %v1371_v47, %v436_v15 }
 0x15a   : > { %1451 = vmatprep.mubr.msk.bf16.mxu0 %vm331_vm0, %v469_v18  ;;  %v466_v22 = vadd.f32 %v1372_v36, %v451_v19 }
 0x15c   : > { %v470_v23 = vpack.c.bf16 %v466_v22, %v465_v55 }
 0x15e   : > { %1452 = vmatmul.mubr.msk.bf16.gmra.mrb[4].mxu0 %vm331_vm0, %v470_v23 }
 0x229   : > { %v1449_v0 = vpop.f32.mrb[0].mxu0 }
 0x22a   : > { %v529_v1 = vpop.f32.mrb[1].mxu0  ;;  %v538_v26 = vadd.f32 %v1449_v0, %v1373_v24 }
 0x22b   : > { %v1450_v25 = vpop.f32.mrb[2].mxu0  ;;  %v530_v31 = vadd.f32 %v1373_v24, %v529_v1 }
 0x22c   : > { %v541_v27 = vadd.f32 %v1450_v25, %v1373_v24  ;;  %v532_v30 = vpop.f32.mrb[3].mxu0 }
 0x22d   : > { %v533_v32 = vadd.f32 %v1373_v24, %v532_v30 }
 0x22e   : > { %v1846_v33 = vpack.c.bf16 %v541_v27, %v538_v26 }
 0x22f   : > { %v1848_v34 = vpack.c.bf16 %v533_v32, %v530_v31 }
 0x230   : > { %570 = vrot.lane.b32.xlu1 %v1846_v33, %s1649_s16 }
 0x231   : > { %568 = vrot.lane.b32.xlu0 %v1848_v34, %s1649_s16  ;;  %v1453_v35 = vpop.f32.mrb[4].mxu0  ;;  %1463 = vmatprep.mubr.msk.bf16.mxu1 %vm576_vm2, %v1848_v34 }
 0x232   : > { %v545_v38 = vpop.f32.mrb[5].mxu0  ;;  %v554_v40 = vadd.f32 %v1453_v35, %v1373_v24 }
 0x233   : > { %v1454_v39 = vpop.f32.mrb[6].mxu0  ;;  %v546_v43 = vadd.f32 %v1373_v24, %v545_v38 }
 0x234   : > { %v557_v41 = vadd.f32 %v1454_v39, %v1373_v24  ;;  %v548_v42 = vpop.f32.mrb[7].mxu0 }
 0x235   : > { %v549_v46 = vadd.f32 %v1373_v24, %v548_v42 }
 0x236   : > { %v1854_v47 = vpack.c.bf16 %v557_v41, %v554_v40 }
 0x237   : > { %v1856_v48 = vpack.c.bf16 %v549_v46, %v546_v43 }
 0x239   : > { %572 = vrot.lane.b32.xlu1 %v1856_v48, %s1649_s16 }
 0x23d   : > { %574 = vrot.lane.b32.xlu1 %v1854_v47, %s1649_s16 }
 0x2a2   : > { %v571_v51 = vpop.permute.xlu1 %570 }
 0x2a3   : > { %v569_v49 = vpop.permute.xlu0 %568  ;;  %v593_v52 = vsel %vm576_vm2, %v571_v51, 0 }
 0x2a4   : > { %1538 = vmatprep.subr.msk.bf16.mxu1 %vm576_vm2, %v569_v49  ;;  %v590_v50 = vsel %vm576_vm2, %v569_v49, 0 }
 0x2a5   : > { %1456 = vmatpush3.bf16.xpose.msra.mxu1 %v590_v50 }
 0x2a6   : > { %1539 = vmatprep.subr.msk.bf16.mxu1 %vm576_vm2, %v571_v51 }
 0x2ab   : > { %v573_v53 = vpop.permute.xlu1 %572 }
 0x2ac   : > { %v596_v36 = vsel %vm576_vm2, %v573_v53, 0 }
 0x2ad   : > { %1458 = vmatpush3.bf16.xpose.msra.mxu1 %v593_v52 }
 0x2ae   : > { %1540 = vmatprep.subr.msk.bf16.mxu1 %vm576_vm2, %v573_v53 }
 0x2af   : > { %v575_v56 = vpop.permute.xlu1 %574 }
 0x2b0   : > { %v599_v57 = vsel %vm576_vm2, %v575_v56, 0 }
 0x2b5   : > { %1460 = vmatpush3.bf16.xpose.msra.mxu1 %v596_v36 }
 0x2b6   : > { %1541 = vmatprep.subr.msk.bf16.mxu1 %vm576_vm2, %v575_v56 }
 0x2bd   : > { %1462 = vmatpush3.bf16.xpose.msra.mxu1 %v599_v57 }
 0x2c4   : > { %1464 = vmatmul.mubr.msk.bf16.vlgmr.msra.gmra.mrb[0].mxu1 %vm576_vm2, %v1846_v33 }
 0x2c5   : > { %1467 = vmatprep.mubr.msk.bf16.mxu1 %vm576_vm2, %v1856_v48 }
 0x2cc   : > { %1468 = vmatmul.mubr.msk.bf16.gmra.mrb[4].mxu1 %vm576_vm2, %v1854_v47 }
 0x397   : > { %v1465_v58 = vpop.f32.mrb[0].mxu1 }
 0x398   : > { %v635_v59 = vpop.f32.mrb[1].mxu1  ;;  %v673_v60 = vsel %vm666_vm3, %v1465_v58, -inf }
 0x399   : > { %674 = vmax.xlane.f32.xlu0 %v673_v60  ;;  %v1466_v61 = vpop.f32.mrb[2].mxu1  ;;  %v667_v2 = vsel %vm666_vm3, %v635_v59, -inf }
 0x39a   : > { %v638_v62 = vpop.f32.mrb[3].mxu1  ;;  %v676_v4 = vsel %vm666_vm3, %v1466_v61, -inf }
 0x39b   : > { %v670_v63 = vsel %vm666_vm3, %v638_v62, -inf }
 0x39c   : > { %671 = vmax.xlane.f32.xlu1 %v670_v63 }
 0x39d   : > { %668 = vmax.xlane.f32.xlu0 %v667_v2 }
 0x39f   : > { %v1469_v44 = vpop.f32.mrb[4].mxu1 }
 0x3a0   : > { %v651_v3 = vpop.f32.mrb[5].mxu1  ;;  %v685_v6 = vsel %vm666_vm3, %v1469_v44, -inf }
 0x3a1   : > { %677 = vmax.xlane.f32.xlu0 %v676_v4  ;;  %v1878_v37 = vpop.f32.mrb[6].mxu1  ;;  %v679_v10 = vsel %vm666_vm3, %v651_v3, -inf }
 0x3a2   : > { %v1880_v5 = vpop.f32.mrb[7].mxu1  ;;  %v688_v11 = vsel %vm666_vm3, %v1878_v37, -inf }
 0x3a3   : > { %v682_v13 = vsel %vm666_vm3, %v1880_v5, -inf }
 0x3a5   : > { %686 = vmax.xlane.f32.xlu0 %v685_v6 }
 0x3a9   : > { %680 = vmax.xlane.f32.xlu0 %v679_v10 }
 0x3ad   : > { %761 = vrot.lane.b32.xlu1 %v1846_v33, %s1650_s17 }
 0x3b1   : > { %763 = vrot.lane.b32.xlu1 %v1856_v48, %s1650_s17 }
 0x3bf   : > { %759 = vrot.lane.b32.xlu0 %v1848_v34, %s1650_s17 }
 0x3d5   : > { %689 = vmax.xlane.f32.xlu1 %v688_v11 }
 0x3d9   : > { %683 = vmax.xlane.f32.xlu1 %v682_v13 }
 0x3ea   : > { %765 = vrot.lane.b32.xlu1 %v1854_v47, %s1650_s17 }
 0x426   : > { %v675_v45 = vpop.xlane.xlu0 %674 }
 0x427   : > { %v693_v14 = vsub.f32 %v1465_v58, %v675_v45 }
 0x429   : > { %v703_v15 = vmul.f32 1.442695, %v693_v14  ;;  %v672_v54 = vpop.xlane.xlu1 %671 }
 0x42a   : > { %v669_v16 = vpop.xlane.xlu0 %668  ;;  %v692_v18 = vsub.f32 %v638_v62, %v672_v54 }
 0x42b   : > { %1577 = vpow2.f32 %v703_v15  ;;  %v691_v17 = vsub.f32 %v635_v59, %v669_v16 }
 0x42c   : > { %v701_v23 = vmul.f32 1.442695, %v692_v18 }
 0x42d   : > { %v699_v19 = vmul.f32 1.442695, %v691_v17  ;;  %v762_v38 = vpop.permute.xlu1 %761 }
 0x42e   : > { %v678_v55 = vpop.xlane.xlu0 %677 }
 0x42f   : > { %1579 = vpow2.f32 %v699_v19  ;;  %v694_v22 = vsub.f32 %v1466_v61, %v678_v55 }
 0x431   : > { %v705_v0 = vmul.f32 1.442695, %v694_v22  ;;  %v764_v46 = vpop.permute.xlu1 %763 }
 0x432   : > { %v687_v24 = vpop.xlane.xlu0 %686 }
 0x433   : > { %1581 = vpow2.f32 %v705_v0  ;;  %v697_v1 = vsub.f32 %v1469_v44, %v687_v24 }
 0x434   : > { %1583 = vpow2.f32 %v701_v23 }
 0x435   : > { %v1892_v25 = vpop.eup %1577  ;;  %v711_v26 = vmul.f32 1.442695, %v697_v1 }
 0x436   : > { %v681_v27 = vpop.xlane.xlu0 %680  ;;  %v721_v30 = vsel %vm666_vm3, %v1892_v25, 0.0 }
 0x437   : > { %1585 = vpow2.f32 %v711_v26  ;;  %v695_v31 = vsub.f32 %v651_v3, %v681_v27  ;;  %722 = vadd.xlane.f32.xlu0 %v721_v30 }
 0x439   : > { %v1896_v32 = vpop.eup %1579  ;;  %v707_v35 = vmul.f32 1.442695, %v695_v31 }
 0x43a   : > { %v760_v39 = vpop.permute.xlu0 %759  ;;  %v715_v40 = vsel %vm666_vm3, %v1896_v32, 0.0 }
 0x43b   : > { %1587 = vpow2.f32 %v707_v35  ;;  %716 = vadd.xlane.f32.xlu0 %v715_v40  ;;  %1471 = vmatprep.subr.bf16.mxu0 %v760_v39 }
 0x43c   : > { %1472 = vmatpush3.bf16.msra.mxu0 %v760_v39 }
 0x43d   : > { %v1582_v41 = vpop.eup %1581  ;;  %1473 = vmatprep.subr.bf16.mxu0 %v762_v38 }
 0x43e   : > { %v724_v42 = vsel %vm666_vm3, %v1582_v41, 0.0  ;;  %v1584_v43 = vpop.eup %1583 }
 0x43f   : > { %725 = vadd.xlane.f32.xlu1 %v724_v42  ;;  %v718_v51 = vsel %vm666_vm3, %v1584_v43, 0.0 }
 0x440   : > { %1474 = vmatpush3.bf16.msra.mxu0 %v762_v38 }
 0x441   : > { %v1901_v49 = vpop.eup %1585  ;;  %1475 = vmatprep.subr.bf16.mxu0 %v764_v46 }
 0x442   : > { %v733_v50 = vsel %vm666_vm3, %v1901_v49, 0.0 }
 0x443   : > { %734 = vadd.xlane.f32.xlu0 %v733_v50  ;;  %719 = vadd.xlane.f32.xlu1 %v718_v51 }
 0x444   : > { %1476 = vmatpush3.bf16.msra.mxu0 %v764_v46 }
 0x445   : > { %v1906_v52 = vpop.eup %1587 }
 0x446   : > { %v727_v53 = vsel %vm666_vm3, %v1906_v52, 0.0 }
 0x447   : > { %728 = vadd.xlane.f32.xlu0 %v727_v53 }
 0x454   : > { %866 = vrot.lane.b32.xlu1 %v1846_v33, %s1651_s18 }
 0x458   : > { %868 = vrot.lane.b32.xlu1 %v1856_v48, %s1651_s18 }
 0x462   : > { %v690_v36 = vpop.xlane.xlu1 %689 }
 0x463   : > { %v698_v56 = vsub.f32 %v1878_v37, %v690_v36 }
 0x465   : > { %v713_v57 = vmul.f32 1.442695, %v698_v56 }
 0x466   : > { %v684_v58 = vpop.xlane.xlu1 %683 }
 0x467   : > { %1589 = vpow2.f32 %v713_v57  ;;  %v696_v59 = vsub.f32 %v1880_v5, %v684_v58 }
 0x469   : > { %v709_v60 = vmul.f32 1.442695, %v696_v59 }
 0x46a   : > { %v766_v61 = vpop.permute.xlu1 %765 }
 0x46b   : > { %1477 = vmatprep.subr.bf16.mxu0 %v766_v61  ;;  %1591 = vpow2.f32 %v709_v60 }
 0x46c   : > { %1478 = vmatpush3.bf16.msra.mxu0 %v766_v61 }
 0x471   : > { %v1590_v62 = vpop.eup %1589 }
 0x472   : > { %v736_v63 = vsel %vm666_vm3, %v1590_v62, 0.0 }
 0x473   : > { %737 = vadd.xlane.f32.xlu0 %v736_v63 }
 0x475   : > { %v1592_v2 = vpop.eup %1591 }
 0x476   : > { %v730_v44 = vsel %vm666_vm3, %v1592_v2, 0.0 }
 0x47c   : > { %731 = vadd.xlane.f32.xlu1 %v730_v44 }
 0x489   : > { %864 = vrot.lane.b32.xlu0 %v1848_v34, %s1651_s18 }
 0x48d   : > { %856 = vrot.lane.b32.xlu0 %v1848_v34, %s1652_s19  ;;  %870 = vrot.lane.b32.xlu1 %v1854_v47, %s1651_s18 }
 0x491   : > { %860 = vrot.lane.b32.xlu0 %v1856_v48, %s1652_s19  ;;  %858 = vrot.lane.b32.xlu1 %v1846_v33, %s1652_s19 }
 0x495   : > { %862 = vrot.lane.b32.xlu1 %v1854_v47, %s1652_s19 }
 0x4c4   : > { %v723_v3 = vpop.xlane.xlu0 %722 }
 0x4c8   : > { %v717_v37 = vpop.xlane.xlu0 %716 }
 0x4cc   : > { %v726_v4 = vpop.xlane.xlu1 %725 }
 0x4cd   : > { %1593 = vrcp.f32 %v726_v4 }
 0x4ce   : > { %1595 = vrcp.f32 %v717_v37 }
 0x4cf   : > { %1597 = vrcp.f32 %v723_v3 }
 0x4d0   : > { %v720_v5 = vpop.xlane.xlu1 %719  ;;  %v735_v18 = vpop.xlane.xlu0 %734 }
 0x4d1   : > { %1599 = vrcp.f32 %v720_v5 }
 0x4d4   : > { %v729_v19 = vpop.xlane.xlu0 %728  ;;  %v867_v55 = vpop.permute.xlu1 %866 }
 0x4d7   : > { %v1594_v6 = vpop.eup %1593 }
 0x4d8   : > { %v1596_v10 = vpop.eup %1595  ;;  %v750_v45 = vmul.f32 %v1594_v6, %v1582_v41  ;;  %v869_v0 = vpop.permute.xlu1 %868 }
 0x4d9   : > { %v1598_v11 = vpop.eup %1597  ;;  %v747_v14 = vmul.f32 %v1596_v10, %v1896_v32  ;;  %v891_v35 = vsel %vm576_vm2, %v869_v0, 0 }
 0x4da   : > { %v749_v54 = vmul.f32 %v1598_v11, %v1892_v25  ;;  %v888_v25 = vsel %vm576_vm2, %v867_v55, 0 }
 0x4db   : > { %v1600_v13 = vpop.eup %1599 }
 0x4dc   : > { %v748_v15 = vmul.f32 %v1600_v13, %v1584_v43  ;;  %v756_v17 = vpack.c.bf16 %v750_v45, %v749_v54 }
 0x4de   : > { %v755_v16 = vpack.c.bf16 %v748_v15, %v747_v14 }
 0x4e0   : > { %1479 = vmatprep.mubr.msk.bf16.mxu0 %vm666_vm3, %v755_v16 }
 0x4e1   : > { %1480 = vmatmul.mubr.msk.bf16.vlgmr.msra.gmra.mrb[8].mxu0 %vm666_vm3, %v756_v17 }
 0x500   : > { %v738_v22 = vpop.xlane.xlu0 %737 }
 0x501   : > { %1601 = vrcp.f32 %v738_v22 }
 0x502   : > { %1603 = vrcp.f32 %v729_v19 }
 0x503   : > { %1605 = vrcp.f32 %v735_v18 }
 0x504   : > { %v865_v23 = vpop.permute.xlu0 %864 }
 0x505   : > { %v885_v24 = vsel %vm576_vm2, %v865_v23, 0  ;;  %1542 = vmatprep.subr.msk.bf16.mxu0 %vm576_vm2, %v865_v23 }
 0x506   : > { %1488 = vmatpush3.bf16.xpose.msra.mxu0 %v885_v24 }
 0x507   : > { %1543 = vmatprep.subr.msk.bf16.mxu0 %vm576_vm2, %v867_v55 }
 0x508   : > { %v857_v46 = vpop.permute.xlu0 %856 }
 0x509   : > { %v732_v1 = vpop.xlane.xlu1 %731 }
 0x50a   : > { %1607 = vrcp.f32 %v732_v1 }
 0x50b   : > { %v1602_v26 = vpop.eup %1601 }
 0x50c   : > { %v1604_v27 = vpop.eup %1603  ;;  %v754_v32 = vmul.f32 %v1602_v26, %v1590_v62 }
 0x50d   : > { %v1606_v30 = vpop.eup %1605  ;;  %v751_v38 = vmul.f32 %v1604_v27, %v1906_v52  ;;  %v871_v40 = vpop.permute.xlu1 %870 }
 0x50e   : > { %1490 = vmatpush3.bf16.xpose.msra.mxu0 %v888_v25  ;;  %v753_v41 = vmul.f32 %v1606_v30, %v1901_v49  ;;  %v894_v50 = vsel %vm576_vm2, %v871_v40, 0  ;;  %v861_v52 = vpop.permute.xlu0 %860 }
 0x50f   : > { %1544 = vmatprep.subr.msk.bf16.mxu0 %vm576_vm2, %v869_v0 }
 0x510   : > { %v758_v43 = vpack.c.bf16 %v754_v32, %v753_v41 }
 0x511   : > { %v859_v51 = vpop.permute.xlu1 %858 }
 0x514   : > { %v1608_v31 = vpop.eup %1607 }
 0x515   : > { %v752_v39 = vmul.f32 %v1608_v31, %v1592_v2  ;;  %v863_v49 = vpop.permute.xlu1 %862 }
 0x516   : > { %1492 = vmatpush3.bf16.xpose.msra.mxu0 %v891_v35 }
 0x517   : > { %1545 = vmatprep.subr.msk.bf16.mxu0 %vm576_vm2, %v871_v40  ;;  %v757_v42 = vpack.c.bf16 %v752_v39, %v751_v38 }
 0x519   : > { %1483 = vmatprep.mubr.msk.bf16.mxu0 %vm666_vm3, %v757_v42 }
 0x51a   : > { %1484 = vmatmul.mubr.msk.bf16.gmra.mrb[12].mxu0 %vm666_vm3, %v758_v43 }
 0x51b   : > { %1495 = vmatprep.mubr.msk.bf16.mxu0 %vm576_vm2, %v857_v46 }
 0x51e   : > { %1494 = vmatpush3.bf16.xpose.msra.mxu0 %v894_v50 }
 0x525   : > { %1496 = vmatmul.mubr.msk.bf16.vlgmr.msra.gmra.mrb[16].mxu0 %vm576_vm2, %v859_v51 }
 0x526   : > { %1499 = vmatprep.mubr.msk.bf16.mxu0 %vm576_vm2, %v861_v52 }
 0x52d   : > { %1500 = vmatmul.mubr.msk.bf16.gmra.mrb[20].mxu0 %vm576_vm2, %v863_v49 }
 0x5b4   : > { %v1481_v53 = vpop.f32.mrb[8].mxu0 }
 0x5b5   : > { %850 = vst.msk [vmem:[#allocation2 + $0x10] sm:$0xff] %vm576_vm2, %v1481_v53  ;;  %v817_v36 = vpop.f32.mrb[9].mxu0 }
 0x5b6   : > { %848 = vst.msk [vmem:[#allocation2] sm:$0xff] %vm576_vm2, %v817_v36  ;;  %v1482_v56 = vpop.f32.mrb[10].mxu0 }
 0x5b7   : > { %851 = vst.msk [vmem:[#allocation2 + $0x18] sm:$0xff] %vm576_vm2, %v1482_v56  ;;  %v820_v57 = vpop.f32.mrb[11].mxu0 }
 0x5b8   : > { %849 = vst.msk [vmem:[#allocation2 + $0x8] sm:$0xff] %vm576_vm2, %v820_v57 }
 0x5ed   : > { %v1485_v58 = vpop.f32.mrb[12].mxu0 }
 0x5ee   : > { %854 = vst.msk [vmem:[#allocation2 + $0x30] sm:$0xff] %vm576_vm2, %v1485_v58  ;;  %v833_v59 = vpop.f32.mrb[13].mxu0 }
 0x5ef   : > { %852 = vst.msk [vmem:[#allocation2 + $0x20] sm:$0xff] %vm576_vm2, %v833_v59  ;;  %v1486_v60 = vpop.f32.mrb[14].mxu0 }
 0x5f0   : > { %855 = vst.msk [vmem:[#allocation2 + $0x38] sm:$0xff] %vm576_vm2, %v1486_v60  ;;  %v836_v61 = vpop.f32.mrb[15].mxu0 }
 0x5f1   : > { %853 = vst.msk [vmem:[#allocation2 + $0x28] sm:$0xff] %vm576_vm2, %v836_v61 }
 0x5f8   : > { %v1497_v62 = vpop.f32.mrb[16].mxu0 }
 0x5f9   : > { %v930_v63 = vpop.f32.mrb[17].mxu0  ;;  %v967_v37 = vsel %vm666_vm3, %v1497_v62, -inf }
 0x5fa   : > { %v1498_v2 = vpop.f32.mrb[18].mxu0  ;;  %v961_v44 = vsel %vm666_vm3, %v930_v63, -inf }
 0x5fb   : > { %962 = vmax.xlane.f32.xlu0 %v961_v44  ;;  %v933_v3 = vpop.f32.mrb[19].mxu0  ;;  %v970_v11 = vsel %vm666_vm3, %v1498_v2, -inf }
 0x5fc   : > { %v964_v4 = vsel %vm666_vm3, %v933_v3, -inf }
 0x5fd   : > { %965 = vmax.xlane.f32.xlu1 %v964_v4 }
 0x5ff   : > { %968 = vmax.xlane.f32.xlu0 %v967_v37 }
 0x600   : > { %v1501_v5 = vpop.f32.mrb[20].mxu0 }
 0x601   : > { %v946_v6 = vpop.f32.mrb[21].mxu0  ;;  %v979_v54 = vsel %vm666_vm3, %v1501_v5, -inf }
 0x602   : > { %v1502_v10 = vpop.f32.mrb[22].mxu0  ;;  %v973_v14 = vsel %vm666_vm3, %v946_v6, -inf }
 0x603   : > { %971 = vmax.xlane.f32.xlu0 %v970_v11  ;;  %v949_v13 = vpop.f32.mrb[23].mxu0  ;;  %v982_v15 = vsel %vm666_vm3, %v1502_v10, -inf }
 0x604   : > { %v976_v45 = vsel %vm666_vm3, %v949_v13, -inf }
 0x605   : > { %977 = vmax.xlane.f32.xlu1 %v976_v45 }
 0x607   : > { %974 = vmax.xlane.f32.xlu0 %v973_v14 }
 0x609   : > { %983 = vmax.xlane.f32.xlu1 %v982_v15 }
 0x60b   : > { %980 = vmax.xlane.f32.xlu0 %v979_v54 }
 0x688   : > { %v963_v16 = vpop.xlane.xlu0 %962 }
 0x689   : > { %v985_v17 = vsub.f32 %v930_v63, %v963_v16 }
 0x68a   : > { %v966_v18 = vpop.xlane.xlu1 %965 }
 0x68b   : > { %v993_v22 = vmul.f32 1.442695, %v985_v17  ;;  %v986_v23 = vsub.f32 %v933_v3, %v966_v18 }
 0x68c   : > { %v969_v19 = vpop.xlane.xlu0 %968 }
 0x68d   : > { %v987_v55 = vsub.f32 %v1497_v62, %v969_v19  ;;  %v995_v25 = vmul.f32 1.442695, %v986_v23 }
 0x68f   : > { %v997_v0 = vmul.f32 1.442695, %v987_v55 }
 0x690   : > { %v972_v24 = vpop.xlane.xlu0 %971 }
 0x691   : > { %1609 = vpow2.f32 %v997_v0  ;;  %v988_v1 = vsub.f32 %v1498_v2, %v972_v24 }
 0x692   : > { %1611 = vpow2.f32 %v993_v22  ;;  %v978_v56 = vpop.xlane.xlu1 %977 }
 0x693   : > { %v999_v26 = vmul.f32 1.442695, %v988_v1  ;;  %v990_v59 = vsub.f32 %v949_v13, %v978_v56 }
 0x694   : > { %v975_v27 = vpop.xlane.xlu0 %974 }
 0x695   : > { %1613 = vpow2.f32 %v999_v26  ;;  %v989_v30 = vsub.f32 %v946_v6, %v975_v27  ;;  %v1003_v61 = vmul.f32 1.442695, %v990_v59 }
 0x696   : > { %1615 = vpow2.f32 %v995_v25  ;;  %v984_v57 = vpop.xlane.xlu1 %983 }
 0x697   : > { %v1001_v38 = vmul.f32 1.442695, %v989_v30  ;;  %v992_v58 = vsub.f32 %v1502_v10, %v984_v57 }
 0x698   : > { %v981_v31 = vpop.xlane.xlu0 %980 }
 0x699   : > { %v991_v32 = vsub.f32 %v1501_v5, %v981_v31  ;;  %v1007_v60 = vmul.f32 1.442695, %v992_v58 }
 0x69b   : > { %v1958_v35 = vpop.eup %1609  ;;  %v1005_v39 = vmul.f32 1.442695, %v991_v32 }
 0x69c   : > { %v1015_v40 = vsel %vm666_vm3, %v1958_v35, 0.0  ;;  %v1612_v41 = vpop.eup %1611 }
 0x69d   : > { %1617 = vpow2.f32 %v1005_v39  ;;  %1016 = vadd.xlane.f32.xlu0 %v1015_v40  ;;  %v1009_v43 = vsel %vm666_vm3, %v1612_v41, 0.0 }
 0x69e   : > { %1619 = vpow2.f32 %v1001_v38 }
 0x69f   : > { %v1962_v42 = vpop.eup %1613  ;;  %1621 = vpow2.f32 %v1007_v60 }
 0x6a0   : > { %v1018_v46 = vsel %vm666_vm3, %v1962_v42, 0.0  ;;  %v1616_v50 = vpop.eup %1615  ;;  %1623 = vpow2.f32 %v1003_v61 }
 0x6a1   : > { %1010 = vadd.xlane.f32.xlu0 %v1009_v43  ;;  %1019 = vadd.xlane.f32.xlu1 %v1018_v46  ;;  %v1012_v51 = vsel %vm666_vm3, %v1616_v50, 0.0 }
 0x6a5   : > { %1013 = vadd.xlane.f32.xlu1 %v1012_v51 }
 0x6a7   : > { %v1968_v52 = vpop.eup %1617 }
 0x6a8   : > { %v1027_v49 = vsel %vm666_vm3, %v1968_v52, 0.0  ;;  %v1972_v53 = vpop.eup %1619 }
 0x6a9   : > { %1028 = vadd.xlane.f32.xlu0 %v1027_v49  ;;  %v1021_v36 = vsel %vm666_vm3, %v1972_v53, 0.0  ;;  %v1622_v62 = vpop.eup %1621 }
 0x6aa   : > { %v1030_v63 = vsel %vm666_vm3, %v1622_v62, 0.0  ;;  %v1624_v2 = vpop.eup %1623 }
 0x6ab   : > { %v1024_v44 = vsel %vm666_vm3, %v1624_v2, 0.0 }
 0x6ad   : > { %1022 = vadd.xlane.f32.xlu0 %v1021_v36 }
 0x6b6   : > { %1055 = vrot.lane.b32.xlu1 %v1846_v33, %s1653_s20 }
 0x6ba   : > { %1057 = vrot.lane.b32.xlu1 %v1856_v48, %s1653_s20 }
 0x6c3   : > { %1053 = vrot.lane.b32.xlu0 %v1848_v34, %s1653_s20 }
 0x6de   : > { %1031 = vadd.xlane.f32.xlu1 %v1030_v63 }
 0x6e2   : > { %1025 = vadd.xlane.f32.xlu1 %v1024_v44 }
 0x6f3   : > { %1059 = vrot.lane.b32.xlu1 %v1854_v47, %s1653_s20 }
 0x72a   : > { %v1017_v33 = vpop.xlane.xlu0 %1016 }
 0x72e   : > { %v1011_v48 = vpop.xlane.xlu0 %1010  ;;  %v1020_v34 = vpop.xlane.xlu1 %1019 }
 0x72f   : > { %1625 = vrcp.f32 %v1011_v48 }
 0x732   : > { %v1014_v3 = vpop.xlane.xlu1 %1013 }
 0x733   : > { %1627 = vrcp.f32 %v1014_v3 }
 0x734   : > { %1629 = vrcp.f32 %v1020_v34 }
 0x735   : > { %1631 = vrcp.f32 %v1017_v33 }
 0x736   : > { %v1029_v4 = vpop.xlane.xlu0 %1028  ;;  %v1056_v10 = vpop.permute.xlu1 %1055 }
 0x739   : > { %v1626_v5 = vpop.eup %1625 }
 0x73a   : > { %v1023_v37 = vpop.xlane.xlu0 %1022  ;;  %v1041_v13 = vmul.f32 %v1626_v5, %v1612_v41  ;;  %v1058_v47 = vpop.permute.xlu1 %1057  ;;  %v1394_v5 = vld [vmem:[%s2051_s7] ss:$0 sm:$0xff] }
 0x73d   : > { %v1628_v6 = vpop.eup %1627 }
 0x73e   : > { %v1054_v11 = vpop.permute.xlu0 %1053  ;;  %v1042_v45 = vmul.f32 %v1628_v6, %v1616_v50  ;;  %v1630_v54 = vpop.eup %1629 }
 0x73f   : > { %1503 = vmatprep.subr.bf16.mxu0 %v1054_v11  ;;  %1529 = vmatprep.subr.bf16.mxu1 %v1054_v11  ;;  %v1632_v17 = vpop.eup %1631  ;;  %v1044_v18 = vmul.f32 %v1630_v54, %v1962_v42 }
 0x740   : > { %1504 = vmatpush3.bf16.msra.mxu0 %v1054_v11  ;;  %1533 = vmatpush3.bf16.msra.mxu1 %v1054_v11  ;;  %v1049_v14 = vpack.c.bf16 %v1042_v45, %v1041_v13  ;;  %v1043_v55 = vmul.f32 %v1632_v17, %v1958_v35  ;;  %v1195_v35 = vld [vmem:[%s2050_s6] sm:$0x3] }
 0x741   : > { %1505 = vmatprep.subr.bf16.mxu0 %v1056_v10  ;;  %1530 = vmatprep.subr.bf16.mxu1 %v1056_v10  ;;  %v1216_v38 = vsel %vm491_vm1, %v1195_v35, 0 }
 0x742   : > { %1511 = vmatprep.mubr.msk.bf16.mxu0 %vm666_vm3, %v1049_v14  ;;  %v1050_v22 = vpack.c.bf16 %v1044_v18, %v1043_v55 }
 0x744   : > { %1506 = vmatpush3.bf16.msra.mxu0 %v1056_v10  ;;  %1534 = vmatpush3.bf16.msra.mxu1 %v1056_v10 }
 0x745   : > { %1507 = vmatprep.subr.bf16.mxu0 %v1058_v47  ;;  %1531 = vmatprep.subr.bf16.mxu1 %v1058_v47 }
 0x748   : > { %1508 = vmatpush3.bf16.msra.mxu0 %v1058_v47  ;;  %1535 = vmatpush3.bf16.msra.mxu1 %v1058_v47 }
 0x76b   : > { %v1032_v15 = vpop.xlane.xlu1 %1031 }
 0x76c   : > { %1633 = vrcp.f32 %v1032_v15 }
 0x76d   : > { %1635 = vrcp.f32 %v1023_v37 }
 0x76e   : > { %1637 = vrcp.f32 %v1029_v4 }
 0x76f   : > { %v1026_v16 = vpop.xlane.xlu1 %1025 }
 0x770   : > { %1639 = vrcp.f32 %v1026_v16 }
 0x773   : > { %v1060_v19 = vpop.permute.xlu1 %1059 }
 0x774   : > { %1509 = vmatprep.subr.bf16.mxu0 %v1060_v19  ;;  %1532 = vmatprep.subr.bf16.mxu1 %v1060_v19 }
 0x775   : > { %1510 = vmatpush3.bf16.msra.mxu0 %v1060_v19  ;;  %1536 = vmatpush3.bf16.msra.mxu1 %v1060_v19 }
 0x776   : > { %v1634_v23 = vpop.eup %1633  ;;  %1546 = vmatprep.subr.msk.bf16.mxu1 %vm491_vm1, %v1195_v35 }
 0x777   : > { %v1636_v0 = vpop.eup %1635  ;;  %v1048_v25 = vmul.f32 %v1634_v23, %v1622_v62 }
 0x778   : > { %1512 = vmatmul.mubr.msk.bf16.vlgmr.msra.gmra.mrb[24].mxu0 %vm666_vm3, %v1050_v22  ;;  %v1638_v24 = vpop.eup %1637  ;;  %v1045_v26 = vmul.f32 %v1636_v0, %v1972_v53 }
 0x779   : > { %v1047_v30 = vmul.f32 %v1638_v24, %v1968_v52 }
 0x77a   : > { %v1640_v1 = vpop.eup %1639 }
 0x77b   : > { %v1046_v27 = vmul.f32 %v1640_v1, %v1624_v2  ;;  %v1052_v32 = vpack.c.bf16 %v1048_v25, %v1047_v30 }
 0x77d   : > { %v1051_v31 = vpack.c.bf16 %v1046_v27, %v1045_v26 }
 0x77f   : > { %1515 = vmatprep.mubr.msk.bf16.mxu1 %vm666_vm3, %v1051_v31 }
 0x780   : > { %1516 = vmatmul.mubr.msk.bf16.vlgmr.msra.gmra.mrb[8].mxu1 %vm666_vm3, %v1052_v32 }
 0x781   : > { %1520 = vmatpush3.bf16.msra.mxu1 %v1216_v38 }
 0x84b   : > { %v1513_v39 = vpop.f32.mrb[24].mxu0 }
 0x84c   : > { %v1111_v40 = vpop.f32.mrb[25].mxu0 }
 0x84d   : > { %1150 = vrot.lane.b32.xlu0 %v1111_v40, %s1654_s23  ;;  %v1514_v41 = vpop.f32.mrb[26].mxu0 }
 0x84e   : > { %v1114_v42 = vpop.f32.mrb[27].mxu0 }
 0x84f   : > { %1152 = vrot.lane.b32.xlu1 %v1114_v42, %s1654_s23 }
 0x851   : > { %1154 = vrot.lane.b32.xlu0 %v1513_v39, %s1654_s23 }
 0x853   : > { %v1517_v43 = vpop.f32.mrb[8].mxu1  ;;  %1156 = vrot.lane.b32.xlu1 %v1514_v41, %s1654_s23 }
 0x854   : > { %v1127_v46 = vpop.f32.mrb[9].mxu1 }
 0x855   : > { %v1518_v50 = vpop.f32.mrb[10].mxu1  ;;  %1158 = vrot.lane.b32.xlu0 %v1127_v46, %s1654_s23 }
 0x856   : > { %v1130_v51 = vpop.f32.mrb[11].mxu1 }
 0x857   : > { %1160 = vrot.lane.b32.xlu1 %v1130_v51, %s1654_s23 }
 0x859   : > { %1162 = vrot.lane.b32.xlu0 %v1517_v43, %s1654_s23 }
 0x85b   : > { %1164 = vrot.lane.b32.xlu1 %v1518_v50, %s1654_s23 }
 0x8bf   : > { %v1151_v52 = vpop.permute.xlu0 %1150 }
 0x8c0   : > { %1175 = vst.msk [vmem:[#allocation2] sm:$0xff] %vm1174_vm4, %v1151_v52 }
 0x8c1   : > { %v1153_v49 = vpop.permute.xlu1 %1152 }
 0x8c2   : > { %1176 = vst.msk [vmem:[#allocation2 + $0x8] sm:$0xff] %vm1174_vm4, %v1153_v49 }
 0x8c3   : > { %v1155_v53 = vpop.permute.xlu0 %1154 }
 0x8c4   : > { %1177 = vst.msk [vmem:[#allocation2 + $0x10] sm:$0xff] %vm1174_vm4, %v1155_v53 }
 0x8c5   : > { %v1157_v36 = vpop.permute.xlu1 %1156 }
 0x8c6   : > { %1178 = vst.msk [vmem:[#allocation2 + $0x18] sm:$0xff] %vm1174_vm4, %v1157_v36 }
 0x8c7   : > { %v1159_v56 = vpop.permute.xlu0 %1158  ;;  %v1183_v58 = vld [vmem:[#allocation2] sm:$0xff] }
 0x8c8   : > { %1179 = vst.msk [vmem:[#allocation2 + $0x20] sm:$0xff] %vm1174_vm4, %v1159_v56 }
 0x8c9   : > { %v1161_v57 = vpop.permute.xlu1 %1160  ;;  %v1184_v59 = vld [vmem:[#allocation2 + $0x8] sm:$0xff] }
 0x8ca   : > { %1180 = vst.msk [vmem:[#allocation2 + $0x28] sm:$0xff] %vm1174_vm4, %v1161_v57  ;;  %v1191_v60 = vpack.c.bf16 %v1184_v59, %v1183_v58 }
 0x8cb   : > { %v1163_v61 = vpop.permute.xlu0 %1162  ;;  %v1185_v63 = vld [vmem:[#allocation2 + $0x10] sm:$0xff] }
 0x8cc   : > { %1181 = vst.msk [vmem:[#allocation2 + $0x30] sm:$0xff] %vm1174_vm4, %v1163_v61  ;;  %1521 = vmatprep.mubr.msk.bf16.mxu1 %vm331_vm0, %v1191_v60 }
 0x8cd   : > { %v1165_v62 = vpop.permute.xlu1 %1164  ;;  %v1186_v2 = vld [vmem:[#allocation2 + $0x18] sm:$0xff] }
 0x8ce   : > { %1182 = vst.msk [vmem:[#allocation2 + $0x38] sm:$0xff] %vm1174_vm4, %v1165_v62  ;;  %v1192_v44 = vpack.c.bf16 %v1186_v2, %v1185_v63 }
 0x8cf   : > { %v1187_v33 = vld [vmem:[#allocation2 + $0x20] sm:$0xff] }
 0x8d0   : > { %1522 = vmatmul.mubr.msk.bf16.vlgmr.msra.gmra.mrb[12].mxu1 %vm331_vm0, %v1192_v44 }
 0x8d1   : > { %v1188_v48 = vld [vmem:[#allocation2 + $0x28] sm:$0xff] }
 0x8d2   : > { %v1193_v34 = vpack.c.bf16 %v1188_v48, %v1187_v33 }
 0x8d3   : > { %v1189_v3 = vld [vmem:[#allocation2 + $0x30] sm:$0xff] }
 0x8d4   : > { %1525 = vmatprep.mubr.msk.bf16.mxu1 %vm331_vm0, %v1193_v34 }
 0x8d5   : > { %v1190_v4 = vld [vmem:[#allocation2 + $0x38] sm:$0xff] }
 0x8d6   : > { %v1194_v37 = vpack.c.bf16 %v1190_v4, %v1189_v3 }
 0x8d8   : > { %1526 = vmatmul.mubr.msk.bf16.gmra.mrb[16].mxu1 %vm331_vm0, %v1194_v37 }
 0x9a3   : > { %v1523_v6 = vpop.f32.mrb[12].mxu1 }
 0x9a4   : > { %v1261_v10 = vadd.f32 %v1523_v6, %v1394_v5  ;;  %v1252_v11 = vpop.f32.mrb[13].mxu1 }
 0x9a5   : > { %v1253_v13 = vadd.f32 %v1394_v5, %v1252_v11  ;;  %v1524_v45 = vpop.f32.mrb[14].mxu1 }
 0x9a6   : > { %v1285_v14 = vadd.f32 %v1261_v10, %v1730_v8  ;;  %v1264_v47 = vadd.f32 %v1524_v45, %v1394_v5  ;;  %v1255_v15 = vpop.f32.mrb[15].mxu1 }
 0x9a7   : > { %v1283_v54 = vadd.f32 %v1253_v13, %v1728_v7  ;;  %v1256_v16 = vadd.f32 %v1394_v5, %v1255_v15 }
 0x9a8   : > { %v1293_v17 = vmax.f32 %v1285_v14, 0.0  ;;  %v1286_v18 = vadd.f32 %v1264_v47, %v1737_v12 }
 0x9a9   : > { %v1291_v19 = vmax.f32 %v1283_v54, 0.0  ;;  %v1284_v8 = vadd.f32 %v1256_v16, %v1732_v9 }
 0x9aa   : > { %1301 = vst.msk [vmem:[%s2016_s9 + $0x10] sm:$0xff] %vm331_vm0, %v1293_v17  ;;  %v1294_v55 = vmax.f32 %v1286_v18, 0.0 }
 0x9ab   : > { %1299 = vst.msk [vmem:[%s2016_s9] sm:$0xff] %vm331_vm0, %v1291_v19  ;;  %v1292_v22 = vmax.f32 %v1284_v8, 0.0  ;;  %v1527_v23 = vpop.f32.mrb[16].mxu1 }
 0x9ac   : > { %1302 = vst.msk [vmem:[%s2016_s9 + $0x18] sm:$0xff] %vm331_vm0, %v1294_v55  ;;  %v1277_v0 = vadd.f32 %v1527_v23, %v1394_v5  ;;  %v1268_v7 = vpop.f32.mrb[17].mxu1 }
 0x9ad   : > { %1300 = vst.msk [vmem:[%s2016_s9 + $0x8] sm:$0xff] %vm331_vm0, %v1292_v22  ;;  %v1269_v12 = vadd.f32 %v1394_v5, %v1268_v7  ;;  %v1528_v24 = vpop.f32.mrb[18].mxu1 }
 0x9ae   : > { %v1289_v9 = vadd.f32 %v1277_v0, %v1764_v28  ;;  %v1280_v1 = vadd.f32 %v1528_v24, %v1394_v5  ;;  %v1271_v25 = vpop.f32.mrb[19].mxu1 }
 0x9af   : > { %v1287_v26 = vadd.f32 %v1269_v12, %v1750_v20  ;;  %v1272_v27 = vadd.f32 %v1394_v5, %v1271_v25 }
 0x9b0   : > { %v1297_v30 = vmax.f32 %v1289_v9, 0.0  ;;  %v1290_v31 = vadd.f32 %v1280_v1, %v1766_v29 }
 0x9b1   : > { %v1295_v32 = vmax.f32 %v1287_v26, 0.0  ;;  %v1288_v35 = vadd.f32 %v1272_v27, %v1752_v21 }
 0x9b2   : > { %1305 = vst.msk [vmem:[%s2016_s9 + $0x30] sm:$0xff] %vm331_vm0, %v1297_v30  ;;  %v1298_v38 = vmax.f32 %v1290_v31, 0.0 }
 0x9b3   : > { %1303 = vst.msk [vmem:[%s2016_s9 + $0x20] sm:$0xff] %vm331_vm0, %v1295_v32  ;;  %v1296_v39 = vmax.f32 %v1288_v35, 0.0 }
 0x9b4   : > { %1306 = vst.msk [vmem:[%s2016_s9 + $0x38] sm:$0xff] %vm331_vm0, %v1298_v38 }
 0x9b5   : > { %1304 = vst.msk [vmem:[%s2016_s9 + $0x28] sm:$0xff] %vm331_vm0, %v1296_v39 }
 0x9b6 PF: > { %s18_s27 = sadd.s32 1, %s1647_s27  }
 0x9b7   : > { %p15_p4 = scmp.ge.s32.totalorder %s18_s27, 4  }
 0x9b9   :  { %17 = sbr.rel (!%p15_p4) target bundleno = 1 (0x1), region = 82 }

// kernel: _lambda_.14
= control target key start
LH: loop header
LB: loop body
LE: loop exit
PB: predicated region body
PF: predicated region fallthrough
CT: control target
= control target key end

     0   :  { %s1592_s12 = smov 0   ;;  %s2036_s0 = inlined_call_operand.vmem [shape: bf16[2,10,10,8], index: 0, kind: input, shape index: {}]   ;;  %s2037_s1 = inlined_call_operand.vmem [shape: bf16[3,24,4], index: 1, kind: input, shape index: {}]   ;;  %s2038_s2 = inlined_call_operand.vmem [shape: f32[1,4], index: 2, kind: input, shape index: {}]   ;;  %s2039_s3 = inlined_call_operand.vmem [shape: f32[2,64,4], index: 3, kind: output, shape index: {}]  }
   0x1 LB: > { %s1275_s13 = sadd.s32 4294967295, %s1568_s12   ;;  %p1279_p0 = scmp.ge.s32.totalorder %s1568_s12, 1  ;;  %s1568_s12 = sphi %s1592_s12, %s13_s12  }
   0x2   : > { %p137_p1 = scmp.lt.s32.totalorder %s1568_s12, 3 }
   0x4   : > { %p138_p2 = pnand %p1279_p0, %p137_p1 }
   0x5   : > { %p161_p3 = scmp.lt.s32.totalorder (!%p138_p2), %s1275_s13, 1  ;;  %s1570_s18 = smov (!%p138_p2), 16   ;;  %v1674_v48 = vld [vmem:[%s2037_s1] sm:$0xff] (!%p138_p2)   ;;  %v1557_v57 = vld [vmem:[%s2037_s1 + $0xc] sm:$0xff] (!%p138_p2)   ;;  %vm672_vm0 = vcmask (!%p138_p2), 1043456   ;;  %vm356_vm1 = vcmask (!%p138_p2), 64512  }
   0x6   : > { %141 = sbr.rel (%p138_p2) target bundleno = 454 (0x1c6), region = 32  ;;  %s1571_s19 = smov (!%p138_p2), 8   ;;  %1449 = vmatprep.subr.bf16.mxu0 (!%p138_p2), %v1674_v48  ;;  %1437 = vmatprep.subr.bf16.mxu1 (!%p138_p2), %v1557_v57  ;;  %vm381_vm2 = vcmask (!%p138_p2), 130048   ;;  %vm659_vm3 = vcmask (!%p138_p2), 195584   ;;  %vm1211_vm4 = vcmask (!%p138_p2), 31744  }
   0x7   : > { %1450 = vmatpush3.bf16.msra.mxu0 (!%p138_p2), %v1674_v48  ;;  %1438 = vmatpush3.bf16.msra.mxu1 (!%p138_p2), %v1557_v57 }
   0xd   : > { %s2041_s13 = smov (!%p161_p3, %s1275_s13), 1 }
   0xe   : > { %s1497_s14 = smul.u32 80, %s2041_s13  ;;  %s1418_s5 = sshll.u32 %s2041_s13, 6 }
   0xf   : > { %s2015_s10 = scalar_lea.vmem %s2039_s3, %s1418_s5 }
  0x10   : > { %s1606_s17 = scalar_lea.vmem %s2036_s0, %s1497_s14 }
  0x11   : > { %v181_v0 = vld [vmem:[%s1606_s17 + $0xc] sm:$0x1]  ;;  %v189_v1 = vld [vmem:[%s1606_s17 + $0x8] sm:$0xe]  ;;  %v180_v5 = vld [vmem:[%s1606_s17 + $0x4] sm:$0x1] }
  0x12   : > { %v1611_v2 = vld [vmem:[%s1606_s17 + $0x8] sm:$0xf]  ;;  %v1292_v3 = vcombine.low %v189_v1, %v181_v0  ;;  %v188_v6 = vld [vmem:[%s1606_s17] sm:$0xe]  ;;  %v1624_v11 = vld [vmem:[%s1606_s17 + $0xc] sm:$0x1] }
  0x13   : > { %v1284_v4 = vcombine.low %v1611_v2, %v181_v0  ;;  %v1617_v7 = vld [vmem:[%s1606_s17] sm:$0xf]  ;;  %v1291_v8 = vcombine.low %v188_v6, %v180_v5  ;;  %v1621_v10 = vld [vmem:[%s1606_s17 + $0x8] sm:$0xf]  ;;  %v1627_v12 = vld [vmem:[%s1606_s17 + $0x10] sm:$0xf] }
  0x14   : > { %v1283_v9 = vcombine.low %v1617_v7, %v180_v5  ;;  %v333_v13 = vrot.slane %v1292_v3, 1  ;;  %v1323_v15 = vcombine.low %v1621_v10, %v1624_v11  ;;  %v1632_v16 = vld [vmem:[%s1606_s17 + $0x14] sm:$0x1]  ;;  %v1637_v21 = vld [vmem:[%s1606_s17 + $0x18] sm:$0xf] }
  0x15   : > { %v246_v14 = vshll.u32 %v1284_v4, 16  ;;  %v332_v17 = vrot.slane %v1291_v8, 1  ;;  %v1324_v20 = vcombine.low %v1627_v12, %v1632_v16  ;;  %v244_v24 = vshrl.u32 %v1284_v4, 16  ;;  %v1641_v26 = vld [vmem:[%s1606_s17 + $0x1c] sm:$0x1] }
  0x16   : > { %v239_v18 = vshll.u32 %v1283_v9, 16  ;;  %v237_v19 = vshrl.u32 %v1283_v9, 16  ;;  %342 = vrot.lane.b32.xlu1 %v333_v13, %s1570_s18  ;;  %v467_v22 = vshrl.u32 %v1323_v15, 16  ;;  %v469_v23 = vshll.u32 %v1323_v15, 16  ;;  %v1647_v31 = vld [vmem:[%s1606_s17 + $0x10] sm:$0xf] }
  0x17   : > { %v248_v25 = vrot.slane %v246_v14, 1  ;;  %340 = vrot.lane.b32.xlu0 %v332_v17, %s1570_s18  ;;  %v474_v28 = vshrl.u32 %v1324_v20, 16  ;;  %v476_v29 = vshll.u32 %v1324_v20, 16  ;;  %v1286_v30 = vcombine.low %v1637_v21, %v1641_v26  ;;  %v1650_v33 = vld [vmem:[%s1606_s17 + $0x14] sm:$0x1] }
  0x18   : > { %v241_v27 = vrot.slane %v239_v18, 1  ;;  %v471_v32 = vrot.slane %v469_v23, 1  ;;  %v1653_v34 = vld [vmem:[%s1606_s17 + $0x20] sm:$0xf]  ;;  %v1656_v38 = vld [vmem:[%s1606_s17 + $0x24] sm:$0x1]  ;;  %v1285_v40 = vcombine.low %v1647_v31, %v1650_v33 }
  0x19   : > { %v478_v36 = vrot.slane %v476_v29, 1  ;;  %v260_v37 = vshll.u32 %v1286_v30, 16  ;;  %v1326_v41 = vcombine.low %v1653_v34, %v1656_v38  ;;  %v1663_v42 = vld [vmem:[%s1606_s17 + $0x18] sm:$0xf]  ;;  %v1666_v43 = vld [vmem:[%s1606_s17 + $0x1c] sm:$0x1]  ;;  %v249_v45 = vor.u32 %v248_v25, %v244_v24 }
  0x1a   : > { %v242_v35 = vor.u32 %v241_v27, %v237_v19  ;;  %v472_v39 = vor.u32 %v471_v32, %v467_v22  ;;  %v258_v46 = vshrl.u32 %v1286_v30, 16  ;;  %v1325_v47 = vcombine.low %v1663_v42, %v1666_v43  ;;  %v1316_v62 = vld [vmem:[%s1606_s17 + $0x10] sm:$0xe]  ;;  %v1315_v63 = vld [vmem:[%s1606_s17 + $0x8] sm:$0xe] }
  0x1b   : > { %v479_v44 = vor.u32 %v478_v36, %v474_v28  ;;  %v262_v49 = vrot.slane %v260_v37, 1  ;;  %v251_v50 = vshrl.u32 %v1285_v40, 16  ;;  %v253_v51 = vshll.u32 %v1285_v40, 16  ;;  %v190_v5 = vld [vmem:[%s1606_s17 + $0x10] sm:$0xe] }
  0x1c   : > { %292 = vrot.lane.b32.xlu0 %v242_v35, %s1571_s19  ;;  %522 = vrot.lane.b32.xlu1 %v472_v39, %s1571_s19  ;;  %v490_v52 = vshll.u32 %v1326_v41, 16  ;;  %v483_v53 = vshll.u32 %v1325_v47, 16  ;;  %v481_v55 = vshrl.u32 %v1325_v47, 16  ;;  %v488_v60 = vshrl.u32 %v1326_v41, 16  ;;  %v1692_v6 = vld [vmem:[%s1606_s17 + $0x28] sm:$0xf] }
  0x1d   : > { %v255_v54 = vrot.slane %v253_v51, 1  ;;  %v263_v58 = vor.u32 %v262_v49, %v258_v46  ;;  %v1332_v1 = vcombine.low %v1316_v62, %v1632_v16  ;;  %v1331_v3 = vcombine.low %v1315_v63, %v1624_v11  ;;  %v1695_v8 = vld [vmem:[%s1606_s17 + $0x2c] sm:$0x1]  ;;  %v191_v9 = vld [vmem:[%s1606_s17 + $0x18] sm:$0xe] }
  0x1e   : > { %v485_v56 = vrot.slane %v483_v53, 1  ;;  %v492_v61 = vrot.slane %v490_v52, 1  ;;  %v1699_v13 = vld [vmem:[%s1606_s17 + $0x30] sm:$0xf]  ;;  %v1702_v14 = vld [vmem:[%s1606_s17 + $0x34] sm:$0x1]  ;;  %v1293_v16 = vcombine.low %v190_v5, %v1650_v33  ;;  %v1327_v17 = vcombine.low %v1692_v6, %v1695_v8 }
  0x1f   : > { %v256_v59 = vor.u32 %v255_v54, %v251_v50  ;;  %v563_v11 = vrot.slane %v1332_v1, 1  ;;  %v562_v15 = vrot.slane %v1331_v3, 1  ;;  %v1294_v18 = vcombine.low %v191_v9, %v1641_v26  ;;  %v1317_v19 = vld [vmem:[%s1606_s17 + $0x18] sm:$0xe]  ;;  %v1717_v23 = vld [vmem:[%s1606_s17 + $0x3c] sm:$0x1] }
  0x20   : > { %294 = vrot.lane.b32.xlu0 %v249_v45, %s1571_s19  ;;  %524 = vrot.lane.b32.xlu1 %v479_v44, %s1571_s19  ;;  %v486_v0 = vor.u32 %v485_v56, %v481_v55  ;;  %v493_v4 = vor.u32 %v492_v61, %v488_v60  ;;  %v1328_v20 = vcombine.low %v1699_v13, %v1702_v14  ;;  %v1714_v22 = vld [vmem:[%s1606_s17 + $0x38] sm:$0xf]  ;;  %v1318_v24 = vld [vmem:[%s1606_s17 + $0x20] sm:$0xe]  ;;  %v334_v28 = vrot.slane %v1293_v16, 1 }
  0x21   : > { %v1721_v25 = vld [vmem:[%s1606_s17 + $0x40] sm:$0xf]  ;;  %v1724_v27 = vld [vmem:[%s1606_s17 + $0x44] sm:$0x1]  ;;  %v1333_v29 = vcombine.low %v1317_v19, %v1666_v43  ;;  %v497_v30 = vshll.u32 %v1327_v17, 16  ;;  %v1329_v26 = vcombine.low %v1714_v22, %v1717_v23  ;;  %v335_v32 = vrot.slane %v1294_v18, 1 }
  0x22   : > { %v1334_v33 = vcombine.low %v1318_v24, %v1656_v38  ;;  %v504_v35 = vshll.u32 %v1328_v20, 16  ;;  %v1330_v36 = vcombine.low %v1721_v25, %v1724_v27  ;;  %v495_v39 = vshrl.u32 %v1327_v17, 16  ;;  %v1319_v50 = vld [vmem:[%s1606_s17 + $0x28] sm:$0xe]  ;;  %v1740_v54 = vld [vmem:[%s1606_s17 + $0x10] sm:$0xf] }
  0x23   : > { %v564_v37 = vrot.slane %v1333_v29, 1  ;;  %v499_v40 = vrot.slane %v497_v30, 1  ;;  %v511_v41 = vshll.u32 %v1329_v26, 16  ;;  %v502_v44 = vshrl.u32 %v1328_v20, 16  ;;  %v1743_v55 = vld [vmem:[%s1606_s17 + $0x14] sm:$0x1] }
  0x24   : > { %296 = vrot.lane.b32.xlu0 %v256_v59, %s1571_s19  ;;  %298 = vrot.lane.b32.xlu1 %v263_v58, %s1571_s19  ;;  %v565_v43 = vrot.slane %v1334_v33, 1  ;;  %v506_v38 = vrot.slane %v504_v35, 1  ;;  %v518_v45 = vshll.u32 %v1330_v36, 16  ;;  %v509_v47 = vshrl.u32 %v1329_v26, 16  ;;  %v1320_v56 = vld [vmem:[%s1606_s17 + $0x30] sm:$0xe] }
  0x25   : > { %v500_v46 = vor.u32 %v499_v40, %v495_v39  ;;  %v513_v49 = vrot.slane %v511_v41, 1  ;;  %v516_v52 = vshrl.u32 %v1330_v36, 16  ;;  %v1747_v57 = vld [vmem:[%s1606_s17 + $0x18] sm:$0xf]  ;;  %v1750_v58 = vld [vmem:[%s1606_s17 + $0x1c] sm:$0x1]  ;;  %v1335_v60 = vcombine.low %v1319_v50, %v1695_v8 }
  0x26   : > { %v507_v51 = vor.u32 %v506_v38, %v502_v44  ;;  %v520_v53 = vrot.slane %v518_v45, 1  ;;  %v1321_v61 = vld [vmem:[%s1606_s17 + $0x38] sm:$0xe]  ;;  %v1386_v62 = vcombine.low %v1740_v54, %v1743_v55  ;;  %v1387_v1 = vcombine.low %v1747_v57, %v1750_v58  ;;  %v1762_v3 = vld [vmem:[%s1606_s17 + $0x20] sm:$0xf] }
  0x27   : > { %v514_v59 = vor.u32 %v513_v49, %v509_v47  ;;  %v1322_v5 = vld [vmem:[%s1606_s17 + $0x40] sm:$0xe]  ;;  %v1769_v9 = vld [vmem:[%s1606_s17 + $0x28] sm:$0xf]  ;;  %v1772_v8 = vld [vmem:[%s1606_s17 + $0x2c] sm:$0x1] }
  0x28   : > { %526 = vrot.lane.b32.xlu0 %v486_v0, %s1571_s19  ;;  %528 = vrot.lane.b32.xlu1 %v493_v4, %s1571_s19  ;;  %v521_v63 = vor.u32 %v520_v53, %v516_v52  ;;  %v1336_v0 = vcombine.low %v1320_v56, %v1702_v14  ;;  %v1765_v4 = vld [vmem:[%s1606_s17 + $0x24] sm:$0x1]  ;;  %v1559_v14 = vld [vmem:[%s2037_s1 + $0x14] ss:$0 sps:$4 sm:$0xff]   ;;  %v566_v16 = vrot.slane %v1335_v60, 1  ;;  %v918_v17 = vshll.u32 %v1386_v62, 16 }
  0x29   : > { %v1388_v18 = vcombine.low %v1762_v3, %v1765_v4  ;;  %v1338_v20 = vcombine.low %v1322_v5, %v1724_v27  ;;  %v1389_v24 = vcombine.low %v1769_v9, %v1772_v8  ;;  %v916_v29 = vshrl.u32 %v1386_v62, 16  ;;  %1493 = vmatprep.subr.msk.bf16.mxu1 %vm672_vm0, %v1559_v14  ;;  %v1802_v33 = vld [vmem:[%s2037_s1 + $0x18] sm:$0xff]   ;;  %v1378_v44 = vld [vmem:[%s1606_s17 + $0x10] sm:$0xe]  ;;  %v1812_v47 = vld [vmem:[%s1606_s17 + $0x20] sm:$0xf] }
  0x2a   : > { %v567_v19 = vrot.slane %v1336_v0, 1  ;;  %v920_v30 = vrot.slane %v918_v17, 1  ;;  %v674_v27 = vsel %vm672_vm0, %v1559_v14, 0  ;;  %v923_v36 = vshrl.u32 %v1387_v1, 16  ;;  %v1815_v49 = vld [vmem:[%s1606_s17 + $0x24] sm:$0x1] }
  0x2b   : > { %v932_v26 = vshll.u32 %v1388_v18, 16  ;;  %v569_v35 = vrot.slane %v1338_v20, 1  ;;  %v939_v39 = vshll.u32 %v1389_v24, 16  ;;  %1440 = vmatpush3.bf16.msra.mxu1 %v674_v27  ;;  %v930_v41 = vshrl.u32 %v1388_v18, 16  ;;  %v1379_v50 = vld [vmem:[%s1606_s17 + $0x18] sm:$0xe] }
  0x2c   : > { %570 = vrot.lane.b32.xlu0 %v562_v15, %s1570_s18  ;;  %572 = vrot.lane.b32.xlu1 %v563_v11, %s1570_s18  ;;  %v1337_v11 = vcombine.low %v1321_v61, %v1717_v23  ;;  %v1778_v15 = vld [vmem:[%s2037_s1 + $0x8] ss:$0 sps:$4 sm:$0xff]   ;;  %v925_v23 = vshll.u32 %v1387_v1, 16  ;;  %v921_v40 = vor.u32 %v920_v30, %v916_v29  ;;  %v937_v45 = vshrl.u32 %v1389_v24, 16  ;;  %v1822_v52 = vld [vmem:[%s1606_s17 + $0x2c] sm:$0x1] }
  0x2d   : > { %1494 = vmatprep.subr.msk.bf16.mxu0 %vm672_vm0, %v1778_v15  ;;  %1473 = vmatprep.subr.bf16.mxu1 %v1674_v48  ;;  %v1394_v56 = vcombine.low %v1378_v44, %v1743_v55  ;;  %v1380_v60 = vld [vmem:[%s1606_s17 + $0x20] sm:$0xe]  ;;  %v1287_v61 = vcombine.low %v1812_v47, %v1815_v49  ;;  %v1835_v1 = vld [vmem:[%s1606_s17 + $0x30] sm:$0xf]  ;;  %v1838_v5 = vld [vmem:[%s1606_s17 + $0x34] sm:$0x1] }
  0x2e   : > { %v1841_v55 = vld [vmem:[%s1606_s17 + $0x38] sm:$0xf]  ;;  %v1390_v18 = vcombine.low %v1835_v1, %v1838_v5  ;;  %v1855_v24 = vld [vmem:[%s1606_s17 + $0x30] sm:$0xf] }
  0x2f   : > { %v267_v17 = vshll.u32 %v1287_v61, 16 }
  0x30   : > { %344 = vrot.lane.b32.xlu0 %v334_v28, %s1570_s18  ;;  %346 = vrot.lane.b32.xlu1 %v335_v32, %s1570_s18  ;;  %v568_v28 = vrot.slane %v1337_v11, 1  ;;  %v1796_v32 = vsel %vm672_vm0, %v1778_v15, 0  ;;  %v1844_v11 = vld [vmem:[%s1606_s17 + $0x3c] sm:$0x1] }
  0x31   : > { %1452 = vmatpush3.bf16.msra.mxu0 %v1796_v32  ;;  %v269_v27 = vrot.slane %v267_v17, 1 }
  0x32   : > { %1461 = vmatprep.subr.bf16.mxu0 %v1802_v33 }
  0x34   : > { %574 = vrot.lane.b32.xlu0 %v564_v37, %s1570_s18  ;;  %576 = vrot.lane.b32.xlu1 %v565_v43, %s1570_s18  ;;  %v927_v37 = vrot.slane %v925_v23, 1  ;;  %v934_v43 = vrot.slane %v932_v26, 1  ;;  %v1391_v23 = vcombine.low %v1841_v55, %v1844_v11  ;;  %v265_v26 = vshrl.u32 %v1287_v61, 16  ;;  %v1879_v61 = vld [vmem:[%s1606_s17 + $0x48] sm:$0xf] }
  0x36   : > { %v928_v38 = vor.u32 %v927_v37, %v923_v36  ;;  %v935_v53 = vor.u32 %v934_v43, %v930_v41  ;;  %v951_v43 = vshrl.u32 %v1391_v23, 16  ;;  %v270_v44 = vor.u32 %v269_v27, %v265_v26 }
  0x38   : > { %530 = vrot.lane.b32.xlu0 %v500_v46, %s1571_s19  ;;  %532 = vrot.lane.b32.xlu1 %v507_v51, %s1571_s19  ;;  %v941_v46 = vrot.slane %v939_v39, 1  ;;  %v1819_v51 = vld [vmem:[%s1606_s17 + $0x28] sm:$0xf] }
  0x39   : > { %v1288_v0 = vcombine.low %v1819_v51, %v1822_v52 }
  0x3a   : > { %v942_v62 = vor.u32 %v941_v46, %v937_v45 }
  0x3b   : > { %v274_v20 = vshll.u32 %v1288_v0, 16  ;;  %v272_v37 = vshrl.u32 %v1288_v0, 16 }
  0x3c   : > { %534 = vrot.lane.b32.xlu0 %v514_v59, %s1571_s19  ;;  %536 = vrot.lane.b32.xlu1 %v521_v63, %s1571_s19  ;;  %v1381_v59 = vld [vmem:[%s1606_s17 + $0x28] sm:$0xe]  ;;  %v1395_v63 = vcombine.low %v1379_v50, %v1750_v58  ;;  %v1011_v58 = vrot.slane %v1394_v56, 1 }
  0x3d   : > { %v1397_v14 = vcombine.low %v1381_v59, %v1772_v8  ;;  %v1861_v8 = vld [vmem:[%s1606_s17 + $0x38] sm:$0xf]  ;;  %v276_v39 = vrot.slane %v274_v20, 1  ;;  %v1875_v59 = vld [vmem:[%s1606_s17 + $0x40] sm:$0xf] }
  0x3f   : > { %v1014_v29 = vrot.slane %v1397_v14, 1  ;;  %v277_v50 = vor.u32 %v276_v39, %v272_v37 }
  0x40   : > { %578 = vrot.lane.b32.xlu0 %v566_v16, %s1570_s18  ;;  %580 = vrot.lane.b32.xlu1 %v567_v19, %s1570_s18  ;;  %v1396_v16 = vcombine.low %v1380_v60, %v1765_v4  ;;  %v1012_v19 = vrot.slane %v1395_v63, 1  ;;  %v1864_v4 = vld [vmem:[%s1606_s17 + $0x3c] sm:$0x1]  ;;  %v1376_v60 = vld [vmem:[%s1606_s17 + $0x44] sm:$0x1] }
  0x41   : > { %v1290_v41 = vcombine.low %v1861_v8, %v1864_v4 }
  0x42   : > { %v1013_v30 = vrot.slane %v1396_v16, 1  ;;  %v1392_v16 = vcombine.low %v1875_v59, %v1376_v60 }
  0x43   : > { %v288_v56 = vshll.u32 %v1290_v41, 16  ;;  %v286_v17 = vshrl.u32 %v1290_v41, 16 }
  0x44   : > { %582 = vrot.lane.b32.xlu0 %v568_v28, %s1570_s18  ;;  %584 = vrot.lane.b32.xlu1 %v569_v35, %s1570_s18  ;;  %v1858_v28 = vld [vmem:[%s1606_s17 + $0x34] sm:$0x1]  ;;  %v946_v35 = vshll.u32 %v1390_v18, 16  ;;  %v960_v26 = vshll.u32 %v1392_v16, 16  ;;  %v958_v39 = vshrl.u32 %v1392_v16, 16 }
  0x45   : > { %v1289_v36 = vcombine.low %v1855_v24, %v1858_v28 }
  0x46   : > { %v948_v45 = vrot.slane %v946_v35, 1 }
  0x47   : > { %v281_v46 = vshll.u32 %v1289_v36, 16  ;;  %v279_v0 = vshrl.u32 %v1289_v36, 16 }
  0x48   : > { %971 = vrot.lane.b32.xlu0 %v921_v40, %s1571_s19  ;;  %973 = vrot.lane.b32.xlu1 %v928_v38, %s1571_s19  ;;  %v953_v40 = vshll.u32 %v1391_v23, 16  ;;  %v944_v38 = vshrl.u32 %v1390_v18, 16  ;;  %v290_v18 = vrot.slane %v288_v56, 1  ;;  %v193_v23 = vld [vmem:[%s1606_s17 + $0x28] sm:$0xe] }
  0x49   : > { %v283_v14 = vrot.slane %v281_v46, 1  ;;  %v1296_v35 = vcombine.low %v193_v23, %v1822_v52  ;;  %v195_v56 = vld [vmem:[%s1606_s17 + $0x38] sm:$0xe] }
  0x4a   : > { %v949_v63 = vor.u32 %v948_v45, %v944_v38  ;;  %v291_v27 = vor.u32 %v290_v18, %v286_v17  ;;  %v1383_v38 = vld [vmem:[%s1606_s17 + $0x38] sm:$0xe]  ;;  %v1298_v16 = vcombine.low %v195_v56, %v1864_v4  ;;  %v1385_v17 = vld [vmem:[%s1606_s17 + $0x48] sm:$0xe] }
  0x4b   : > { %v337_v41 = vrot.slane %v1296_v35, 1 }
  0x4c   : > { %975 = vrot.lane.b32.xlu0 %v935_v53, %s1571_s19  ;;  %977 = vrot.lane.b32.xlu1 %v942_v62, %s1571_s19  ;;  %v955_v53 = vrot.slane %v953_v40, 1  ;;  %v1377_v62 = vld [vmem:[%s1606_s17 + $0x4c] sm:$0x1]  ;;  %v962_v40 = vrot.slane %v960_v26, 1 }
  0x4d   : > { %v1393_v20 = vcombine.low %v1879_v61, %v1377_v62 }
  0x4e   : > { %v963_v52 = vor.u32 %v962_v40, %v958_v39 }
  0x4f   : > { %v967_v36 = vshll.u32 %v1393_v20, 16 }
  0x50   : > { %1019 = vrot.lane.b32.xlu0 %v1011_v58, %s1570_s18  ;;  %1021 = vrot.lane.b32.xlu1 %v1012_v19, %s1570_s18  ;;  %v956_v58 = vor.u32 %v955_v53, %v951_v43  ;;  %v192_v19 = vld [vmem:[%s1606_s17 + $0x20] sm:$0xe]  ;;  %v965_v43 = vshrl.u32 %v1393_v20, 16  ;;  %v194_v53 = vld [vmem:[%s1606_s17 + $0x30] sm:$0xe] }
  0x54   : > { %1023 = vrot.lane.b32.xlu0 %v1013_v30, %s1570_s18  ;;  %1025 = vrot.lane.b32.xlu1 %v1014_v29, %s1570_s18  ;;  %v284_v29 = vor.u32 %v283_v14, %v279_v0  ;;  %v1295_v30 = vcombine.low %v192_v19, %v1815_v49  ;;  %v1382_v49 = vld [vmem:[%s1606_s17 + $0x30] sm:$0xe]  ;;  %v1297_v0 = vcombine.low %v194_v53, %v1858_v28 }
  0x55   : > { %v1398_v45 = vcombine.low %v1382_v49, %v1838_v5  ;;  %v1401_v19 = vcombine.low %v1385_v17, %v1377_v62 }
  0x56   : > { %v336_v37 = vrot.slane %v1295_v30, 1  ;;  %v338_v5 = vrot.slane %v1297_v0, 1  ;;  %v1561_v0 = vld [vmem:[%s2037_s1 + $0x20] ss:$0 sps:$4 sm:$0xff]  }
  0x57   : > { %v1018_v28 = vrot.slane %v1401_v19, 1 }
  0x58   : > { %300 = vrot.lane.b32.xlu0 %v270_v44, %s1571_s19  ;;  %302 = vrot.lane.b32.xlu1 %v277_v50, %s1571_s19  ;;  %v969_v44 = vrot.slane %v967_v36, 1  ;;  %v1399_v50 = vcombine.low %v1383_v38, %v1844_v11  ;;  %v339_v11 = vrot.slane %v1298_v16, 1 }
  0x5a   : > { %v970_v46 = vor.u32 %v969_v44, %v965_v43  ;;  %v1016_v14 = vrot.slane %v1399_v50, 1 }
  0x5c   : > { %979 = vrot.lane.b32.xlu0 %v949_v63, %s1571_s19  ;;  %981 = vrot.lane.b32.xlu1 %v956_v58, %s1571_s19  ;;  %v1015_v63 = vrot.slane %v1398_v45, 1  ;;  %v1384_v58 = vld [vmem:[%s1606_s17 + $0x40] sm:$0xe] }
  0x5d   : > { %v1400_v18 = vcombine.low %v1384_v58, %v1376_v60 }
  0x5f   : > { %v1017_v20 = vrot.slane %v1400_v18, 1  ;;  %v1121_v18 = vsel %vm672_vm0, %v1561_v0, 0 }
  0x60   : > { %304 = vrot.lane.b32.xlu0 %v284_v29, %s1571_s19  ;;  %306 = vrot.lane.b32.xlu1 %v291_v27, %s1571_s19 }
  0x64   : > { %348 = vrot.lane.b32.xlu0 %v336_v37, %s1570_s18  ;;  %350 = vrot.lane.b32.xlu1 %v337_v41, %s1570_s18 }
  0x68   : > { %983 = vrot.lane.b32.xlu0 %v963_v52, %s1571_s19  ;;  %985 = vrot.lane.b32.xlu1 %v970_v46, %s1571_s19 }
  0x6c   : > { %1027 = vrot.lane.b32.xlu0 %v1015_v63, %s1570_s18  ;;  %1029 = vrot.lane.b32.xlu1 %v1016_v14, %s1570_s18 }
  0x70   : > { %352 = vrot.lane.b32.xlu0 %v338_v5, %s1570_s18  ;;  %354 = vrot.lane.b32.xlu1 %v339_v11, %s1570_s18 }
  0x74   : > { %1031 = vrot.lane.b32.xlu0 %v1017_v20, %s1570_s18  ;;  %1033 = vrot.lane.b32.xlu1 %v1018_v28, %s1570_s18 }
  0x88   : > { %v343_v4 = vpop.permute.xlu1 %342 }
  0x89   : > { %v341_v23 = vpop.permute.xlu0 %340 }
  0x8e   : > { %v293_v29 = vpop.permute.xlu0 %292  ;;  %v523_v30 = vpop.permute.xlu1 %522 }
  0x8f   : > { %v359_v60 = vsel %vm356_vm1, %v1617_v7, %v293_v29  ;;  %v588_v7 = vsel %vm356_vm1, %v1621_v10, %v523_v30 }
  0x90   : > { %v383_v35 = vsel %vm381_vm2, %v359_v60, %v341_v23 }
  0x92   : > { %v295_v62 = vpop.permute.xlu0 %294  ;;  %v525_v26 = vpop.permute.xlu1 %524 }
  0x93   : > { %v362_v27 = vsel %vm356_vm1, %v1611_v2, %v295_v62  ;;  %v591_v49 = vsel %vm356_vm1, %v1627_v12, %v525_v26 }
  0x94   : > { %v385_v36 = vsel %vm381_vm2, %v362_v27, %v343_v4 }
  0x95   : > { %v1352_v37 = vcombine.low %v383_v35, %v385_v36 }
  0x96   : > { %v297_v39 = vpop.permute.xlu0 %296  ;;  %v299_v40 = vpop.permute.xlu1 %298 }
  0x97   : > { %1453 = vmatprep.mubr.msk.bf16.mxu0 %vm659_vm3, %v1352_v37  ;;  %v365_v46 = vsel %vm356_vm1, %v1647_v31, %v297_v39  ;;  %v368_v53 = vsel %vm356_vm1, %v1637_v21, %v299_v40 }
  0x9a   : > { %v527_v41 = vpop.permute.xlu0 %526  ;;  %v529_v43 = vpop.permute.xlu1 %528 }
  0x9b   : > { %v594_v14 = vsel %vm356_vm1, %v1663_v42, %v527_v41  ;;  %v597_v16 = vsel %vm356_vm1, %v1653_v34, %v529_v43 }
  0x9e   : > { %v571_v44 = vpop.permute.xlu0 %570  ;;  %v573_v2 = vpop.permute.xlu1 %572 }
  0x9f   : > { %v611_v38 = vsel %vm381_vm2, %v588_v7, %v571_v44  ;;  %v613_v52 = vsel %vm381_vm2, %v591_v49, %v573_v2 }
  0xa0   : > { %v1342_v45 = vcombine.low %v611_v38, %v613_v52 }
  0xa2   : > { %v345_v50 = vpop.permute.xlu0 %344  ;;  %v347_v56 = vpop.permute.xlu1 %346  ;;  %1441 = vmatprep.mubr.msk.bf16.mxu1 %vm659_vm3, %v1342_v45 }
  0xa3   : > { %v387_v10 = vsel %vm381_vm2, %v365_v46, %v345_v50  ;;  %v389_v12 = vsel %vm381_vm2, %v368_v53, %v347_v56 }
  0xa4   : > { %v1353_v63 = vcombine.low %v387_v10, %v389_v12 }
  0xa6   : > { %v575_v31 = vpop.permute.xlu0 %574  ;;  %v577_v21 = vpop.permute.xlu1 %576  ;;  %1454 = vmatmul.mubr.msk.bf16.vlgmr.msra.gmra.mrb[0].mxu0 %vm659_vm3, %v1353_v63 }
  0xa7   : > { %v615_v58 = vsel %vm381_vm2, %v594_v14, %v575_v31  ;;  %v617_v17 = vsel %vm381_vm2, %v597_v16, %v577_v21  ;;  %1462 = vmatpush3.bf16.msra.mxu0 %v1802_v33 }
  0xa8   : > { %v1343_v5 = vcombine.low %v615_v58, %v617_v17  ;;  %1496 = vmatprep.subr.msk.bf16.mxu0 %vm672_vm0, %v1561_v0 }
  0xaa   : > { %v531_v11 = vpop.permute.xlu0 %530  ;;  %v533_v42 = vpop.permute.xlu1 %532  ;;  %1442 = vmatmul.mubr.msk.bf16.vlgmr.msra.gmra.mrb[0].mxu1 %vm659_vm3, %v1343_v5 }
  0xab   : > { %1464 = vmatpush3.bf16.msra.mxu0 %v1121_v18  ;;  %1475 = vmatpush3.bf16.msra.mxu1 %v1674_v48  ;;  %v600_v33 = vsel %vm356_vm1, %v1692_v6, %v531_v11  ;;  %v603_v28 = vsel %vm356_vm1, %v1699_v13, %v533_v42 }
  0xac   : > { %1495 = vmatprep.subr.msk.bf16.mxu1 %vm672_vm0, %v1778_v15 }
  0xae   : > { %v535_v34 = vpop.permute.xlu0 %534  ;;  %v537_v19 = vpop.permute.xlu1 %536 }
  0xaf   : > { %1476 = vmatpush3.bf16.msra.mxu1 %v1796_v32  ;;  %v606_v15 = vsel %vm356_vm1, %v1714_v22, %v535_v34  ;;  %v609_v32 = vsel %vm356_vm1, %v1721_v25, %v537_v19 }
  0xb2   : > { %v579_v20 = vpop.permute.xlu0 %578  ;;  %v581_v4 = vpop.permute.xlu1 %580 }
  0xb3   : > { %v619_v23 = vsel %vm381_vm2, %v600_v33, %v579_v20  ;;  %v621_v29 = vsel %vm381_vm2, %v603_v28, %v581_v4 }
  0xb4   : > { %v1344_v48 = vcombine.low %v619_v23, %v621_v29 }
  0xb6   : > { %v583_v30 = vpop.permute.xlu0 %582  ;;  %v585_v60 = vpop.permute.xlu1 %584  ;;  %1445 = vmatprep.mubr.msk.bf16.mxu1 %vm659_vm3, %v1344_v48 }
  0xb7   : > { %v623_v6 = vsel %vm381_vm2, %v606_v15, %v583_v30  ;;  %v625_v13 = vsel %vm381_vm2, %v609_v32, %v585_v60 }
  0xb8   : > { %v1345_v62 = vcombine.low %v623_v6, %v625_v13 }
  0xba   : > { %v972_v26 = vpop.permute.xlu0 %971  ;;  %v974_v27 = vpop.permute.xlu1 %973  ;;  %1446 = vmatmul.mubr.msk.bf16.gmra.mrb[4].mxu1 %vm659_vm3, %v1345_v62 }
  0xbb   : > { %v1037_v22 = vsel %vm356_vm1, %v1740_v54, %v972_v26  ;;  %v1040_v25 = vsel %vm356_vm1, %v1747_v57, %v974_v27 }
  0xbe   : > { %v976_v35 = vpop.permute.xlu0 %975  ;;  %v978_v36 = vpop.permute.xlu1 %977 }
  0xbf   : > { %v1043_v7 = vsel %vm356_vm1, %v1762_v3, %v976_v35  ;;  %v1046_v49 = vsel %vm356_vm1, %v1769_v9, %v978_v36 }
  0xc2   : > { %v1020_v37 = vpop.permute.xlu0 %1019  ;;  %v1022_v39 = vpop.permute.xlu1 %1021 }
  0xc3   : > { %v1060_v40 = vsel %vm381_vm2, %v1037_v22, %v1020_v37  ;;  %v1062_v41 = vsel %vm381_vm2, %v1040_v25, %v1022_v39 }
  0xc4   : > { %v1405_v43 = vcombine.low %v1060_v40, %v1062_v41 }
  0xc6   : > { %v1024_v44 = vpop.permute.xlu0 %1023  ;;  %v1026_v2 = vpop.permute.xlu1 %1025  ;;  %1465 = vmatprep.mubr.msk.bf16.mxu0 %vm659_vm3, %v1405_v43 }
  0xc7   : > { %v1064_v54 = vsel %vm381_vm2, %v1043_v7, %v1024_v44  ;;  %v1066_v57 = vsel %vm381_vm2, %v1046_v49, %v1026_v2 }
  0xc8   : > { %v1406_v38 = vcombine.low %v1064_v54, %v1066_v57 }
  0xca   : > { %v301_v52 = vpop.permute.xlu0 %300  ;;  %v303_v45 = vpop.permute.xlu1 %302  ;;  %1466 = vmatmul.mubr.msk.bf16.vlgmr.msra.gmra.mrb[0].mxu0 %vm659_vm3, %v1406_v38 }
  0xcb   : > { %v371_v56 = vsel %vm356_vm1, %v1812_v47, %v301_v52  ;;  %v374_v10 = vsel %vm356_vm1, %v1819_v51, %v303_v45 }
  0xce   : > { %v980_v46 = vpop.permute.xlu0 %979  ;;  %v982_v50 = vpop.permute.xlu1 %981 }
  0xcf   : > { %v1049_v21 = vsel %vm356_vm1, %v1835_v1, %v980_v46  ;;  %v1052_v47 = vsel %vm356_vm1, %v1841_v55, %v982_v50 }
  0xd2   : > { %v305_v53 = vpop.permute.xlu0 %304  ;;  %v307_v3 = vpop.permute.xlu1 %306 }
  0xd3   : > { %v377_v11 = vsel %vm356_vm1, %v1855_v24, %v305_v53  ;;  %v380_v34 = vsel %vm356_vm1, %v1861_v8, %v307_v3 }
  0xd6   : > { %v349_v9 = vpop.permute.xlu0 %348  ;;  %v351_v12 = vpop.permute.xlu1 %350 }
  0xd7   : > { %v391_v63 = vsel %vm381_vm2, %v371_v56, %v349_v9  ;;  %v393_v0 = vsel %vm381_vm2, %v374_v10, %v351_v12 }
  0xd8   : > { %v1354_v14 = vcombine.low %v391_v63, %v393_v0 }
  0xda   : > { %v984_v31 = vpop.permute.xlu0 %983  ;;  %v986_v16 = vpop.permute.xlu1 %985  ;;  %1457 = vmatprep.mubr.msk.bf16.mxu1 %vm659_vm3, %v1354_v14 }
  0xdb   : > { %v1055_v20 = vsel %vm356_vm1, %v1875_v59, %v984_v31  ;;  %v1058_v24 = vsel %vm356_vm1, %v1879_v61, %v986_v16  ;;  %v1415_v61 = vld [vmem:[%s2038_s2] ss:$0 sm:$0xff] }
  0xde   : > { %v1028_v58 = vpop.permute.xlu0 %1027  ;;  %v1030_v17 = vpop.permute.xlu1 %1029 }
  0xdf   : > { %v1068_v51 = vsel %vm381_vm2, %v1049_v21, %v1028_v58  ;;  %v1070_v5 = vsel %vm381_vm2, %v1052_v47, %v1030_v17 }
  0xe0   : > { %v1407_v18 = vcombine.low %v1068_v51, %v1070_v5 }
  0xe2   : > { %v353_v42 = vpop.permute.xlu0 %352  ;;  %v355_v19 = vpop.permute.xlu1 %354  ;;  %1469 = vmatprep.mubr.msk.bf16.mxu0 %vm659_vm3, %v1407_v18 }
  0xe3   : > { %v395_v1 = vsel %vm381_vm2, %v377_v11, %v353_v42  ;;  %v397_v55 = vsel %vm381_vm2, %v380_v34, %v355_v19 }
  0xe4   : > { %v1355_v33 = vcombine.low %v395_v1, %v397_v55 }
  0xe6   : > { %v1032_v28 = vpop.permute.xlu0 %1031  ;;  %v1034_v4 = vpop.permute.xlu1 %1033  ;;  %1458 = vmatmul.mubr.msk.bf16.vlgmr.msra.gmra.mrb[4].mxu1 %vm659_vm3, %v1355_v33 }
  0xe7   : > { %v1072_v8 = vsel %vm381_vm2, %v1055_v20, %v1032_v28  ;;  %v1074_v23 = vsel %vm381_vm2, %v1058_v24, %v1034_v4 }
  0xe8   : > { %v1408_v29 = vcombine.low %v1072_v8, %v1074_v23 }
  0xea   : > { %1470 = vmatmul.mubr.msk.bf16.gmra.mrb[4].mxu0 %vm659_vm3, %v1408_v29 }
 0x17d   : > { %v1443_v48 = vpop.f32.mrb[0].mxu1 }
 0x17e   : > { %v710_v15 = vpop.f32.mrb[1].mxu1 }
 0x17f   : > { %v1444_v30 = vpop.f32.mrb[2].mxu1 }
 0x180   : > { %v713_v32 = vpop.f32.mrb[3].mxu1 }
 0x19d   : > { %v1467_v59 = vpop.f32.mrb[0].mxu0 }
 0x19e   : > { %v1477_v60 = vadd.f32 %v1467_v59, %v1443_v48  ;;  %v1157_v6 = vpop.f32.mrb[1].mxu0 }
 0x19f   : > { %v1478_v13 = vadd.f32 %v1157_v6, %v710_v15  ;;  %v1468_v62 = vpop.f32.mrb[2].mxu0 }
 0x1a0   : > { %v1205_v26 = vadd.f32 %v1477_v60, %v1415_v61  ;;  %v1479_v27 = vadd.f32 %v1468_v62, %v1444_v30  ;;  %v1160_v35 = vpop.f32.mrb[3].mxu0 }
 0x1a1   : > { %v1203_v36 = vadd.f32 %v1478_v13, %v1415_v61  ;;  %v1480_v22 = vadd.f32 %v1160_v35, %v713_v32 }
 0x1a2   : > { %1214 = vst.msk [vmem:[%s2015_s10 + $0x10] sm:$0xff] %vm1211_vm4, %v1205_v26  ;;  %v1206_v37 = vadd.f32 %v1479_v27, %v1415_v61 }
 0x1a3   : > { %1212 = vst.msk [vmem:[%s2015_s10] sm:$0xff] %vm1211_vm4, %v1203_v36  ;;  %v1204_v25 = vadd.f32 %v1480_v22, %v1415_v61 }
 0x1a4   : > { %1215 = vst.msk [vmem:[%s2015_s10 + $0x18] sm:$0xff] %vm1211_vm4, %v1206_v37 }
 0x1a5   : > { %1213 = vst.msk [vmem:[%s2015_s10 + $0x8] sm:$0xff] %vm1211_vm4, %v1204_v25 }
 0x1b9   : > { %v1459_v39 = vpop.f32.mrb[4].mxu1 }
 0x1ba   : > { %v835_v40 = vpop.f32.mrb[5].mxu1 }
 0x1bb   : > { %v1460_v41 = vpop.f32.mrb[6].mxu1 }
 0x1bc   : > { %v838_v43 = vpop.f32.mrb[7].mxu1 }
 0x1bd   : > { %v1471_v7 = vpop.f32.mrb[4].mxu0 }
 0x1be   : > { %v1481_v44 = vadd.f32 %v1471_v7, %v1459_v39  ;;  %v1173_v49 = vpop.f32.mrb[5].mxu0 }
 0x1bf   : > { %v1482_v2 = vadd.f32 %v1173_v49, %v835_v40  ;;  %v1472_v54 = vpop.f32.mrb[6].mxu0 }
 0x1c0   : > { %v1209_v57 = vadd.f32 %v1481_v44, %v1415_v61  ;;  %v1483_v38 = vadd.f32 %v1472_v54, %v1460_v41  ;;  %v1176_v52 = vpop.f32.mrb[7].mxu0 }
 0x1c1   : > { %v1207_v45 = vadd.f32 %v1482_v2, %v1415_v61  ;;  %v1484_v46 = vadd.f32 %v1176_v52, %v838_v43 }
 0x1c2   : > { %1218 = vst.msk [vmem:[%s2015_s10 + $0x30] sm:$0xff] %vm1211_vm4, %v1209_v57  ;;  %v1210_v50 = vadd.f32 %v1483_v38, %v1415_v61 }
 0x1c3   : > { %1216 = vst.msk [vmem:[%s2015_s10 + $0x20] sm:$0xff] %vm1211_vm4, %v1207_v45  ;;  %v1208_v53 = vadd.f32 %v1484_v46, %v1415_v61 }
 0x1c4   : > { %1219 = vst.msk [vmem:[%s2015_s10 + $0x38] sm:$0xff] %vm1211_vm4, %v1210_v50 }
 0x1c5   : > { %1217 = vst.msk [vmem:[%s2015_s10 + $0x28] sm:$0xff] %vm1211_vm4, %v1208_v53 }
 0x1c6 PF: > { %s13_s12 = sadd.s32 1, %s1568_s12  }
 0x1c7   : > { %p10_p4 = scmp.ge.s32.totalorder %s13_s12, 4  }
 0x1c9   :  { %12 = sbr.rel (!%p10_p4) target bundleno = 1 (0x1), region = 66 }

</bundles_post_ra>
